<compile_context>
chip_gen: v7x
topology: tpu7x:2x2x1
jax: 0.10.0
libtpu: 0.0.40
codegen_flags: <defaults>
</compile_context>

<pallas_src>
import jax
import jax.numpy as jnp
from jax.experimental import pallas as pl
from jax.experimental.pallas import tpu as pltpu


_PARALLEL_1D = pltpu.CompilerParams(dimension_semantics=("parallel",))


def _grid_steps(n):
    """One 'parallel' grid step per TensorCore: 2 on v7x, 1 on v5e/v6e."""
    try:
        kind = jax.devices()[0].device_kind.lower()
    except Exception:
        kind = ""
    g = 2 if ("v7" in kind and n >= 2) else 1
    return g if (n % g == 0) else 1


# ---------------------------------------------------------------------------
# in-kernel helpers
# ---------------------------------------------------------------------------
def _zero_pad_hw(v):
    """Spatial zero-pad by 1 on H and W of a (B, H, W, C) value (in-kernel)."""
    b, h, w, c = v.shape
    zc = jnp.zeros((b, h, 1, c), v.dtype)
    v = jnp.concatenate([zc, v, zc], axis=2)
    zr = jnp.zeros((b, 1, w + 2, c), v.dtype)
    return jnp.concatenate([zr, v, zr], axis=1)


def _conv3x3_from_pad(pad_ref, w_ref, b, ho, wo, cin):
    """3x3 stride-1 conv from a zero-padded (B, H+2, W+2, Cin) bf16 VMEM scratch.

    Taps are packed along K (per-dy lane-concat of the 3 dx slabs) and the three
    partial products accumulate in a vreg-resident f32 value.
    """
    acc = None
    for dy in range(3):
        a = jnp.concatenate(
            [pad_ref[:, dy:dy + ho, dx:dx + wo, :] for dx in range(3)], axis=-1
        ).reshape(b * ho * wo, 3 * cin)
        part = jnp.dot(a, w_ref[dy], preferred_element_type=jnp.float32)
        acc = part if acc is None else acc + part
    return acc                                            # (b*ho*wo, cout) f32


def _conv3x3_from_phases(ph_ref, w_ref, b, ho, wo, c):
    """3x3 stride-2 conv from a channel-stacked space-to-depth phase block.

    ph_ref: (B, Ho+1, Wo+1, 4*C); channel block p = 2*(dy%2) + (dx%2) holds
    tpad[dy%2::2, dx%2::2, :] of the zero-padded stride-1 feature map, so every
    tap is a static stride-1 slice.
    """
    acc = None
    for dy in range(3):
        slabs = []
        for dx in range(3):
            p = (dy % 2) * 2 + (dx % 2)
            slabs.append(ph_ref[:, dy // 2:dy // 2 + ho, dx // 2:dx // 2 + wo,
                                p * c:(p + 1) * c])
        a = jnp.concatenate(slabs, axis=-1).reshape(b * ho * wo, 3 * c)
        part = jnp.dot(a, w_ref[dy], preferred_element_type=jnp.float32)
        acc = part if acc is None else acc + part
    return acc


def _se_plus_shortcut(y, sc, sw1_ref, sw2_ref, b, span, cout):
    """SqueezeExcitation (GAP -> fc1+ReLU -> fc2+sigmoid -> scale) + residual add."""
    yv = y.reshape(b, span, cout)
    pooled = jnp.mean(yv, axis=1)                                    # AdaptiveAvgPool2d(1)
    h1 = jnp.dot(pooled.astype(jnp.bfloat16), sw1_ref[...],
                 preferred_element_type=jnp.float32)
    h1 = jnp.maximum(h1, 0.0)                                        # ReLU
    gate = jnp.dot(h1.astype(jnp.bfloat16), sw2_ref[...],
                   preferred_element_type=jnp.float32)
    gate = 1.0 / (1.0 + jnp.exp(-gate))                              # Sigmoid (EUP)
    return yv * gate[:, None, :] + sc


# ---------------------------------------------------------------------------
# kernels
# ---------------------------------------------------------------------------
def _make_fused_block_kernel(b, h, w, cin, cout, has_sc_conv):
    """Whole stride-1 Bottleneck block in ONE kernel."""
    span = h * w

    def kernel(*refs):
        if has_sc_conv:
            (x_ref, w1_ref, w2_ref, s1_ref, b1_ref, al_ref, s2_ref, b2_ref,
             sw1_ref, sw2_ref, wsc_ref, ssc_ref, bsc_ref, o_ref, pad1, pad2) = refs
        else:
            (x_ref, w1_ref, w2_ref, s1_ref, b1_ref, al_ref, s2_ref, b2_ref,
             sw1_ref, sw2_ref, o_ref, pad1, pad2) = refs

        xraw = x_ref[...]                                            # (b,h,w,cin) bf16
        # BN1 applied once to the un-padded input; zero-padding the post-BN tensor
        # matches the reference conv exactly -> no per-tap interior mask.
        xbn = (xraw.astype(jnp.float32) * s1_ref[...].reshape(1, 1, 1, cin)
               + b1_ref[...].reshape(1, 1, 1, cin))
        pad1[...] = _zero_pad_hw(xbn).astype(pad1.dtype)

        # conv1 (3x3, stride 1) + PReLU
        t = _conv3x3_from_pad(pad1, w1_ref, b, h, w, cin)
        t = jnp.where(t >= 0.0, t, t * al_ref[...])

        # conv2 (3x3, stride 1) + BN2
        pad2[...] = _zero_pad_hw(t.reshape(b, h, w, cout)).astype(pad2.dtype)
        y = _conv3x3_from_pad(pad2, w2_ref, b, h, w, cout)
        y = y * s2_ref[...] + b2_ref[...]

        # shortcut (identity / fused 1x1 conv + BN), SE gate, residual add
        if has_sc_conv:
            sc = jnp.dot(xraw.reshape(b * span, cin), wsc_ref[...],
                         preferred_element_type=jnp.float32)
            sc = (sc * ssc_ref[...] + bsc_ref[...]).reshape(b, span, cout)
        else:
            sc = xraw.reshape(b, span, cin).astype(jnp.float32)
        out = _se_plus_shortcut(y, sc, sw1_ref, sw2_ref, b, span, cout)
        o_ref[...] = out.astype(o_ref.dtype)

    return kernel


def _make_conv1_kernel(b, h, w, cin, cout):
    """BN1 + conv3x3(stride 1) + PReLU (first stage of a stride-2 block)."""
    span = h * w

    def kernel(x_ref, w1_ref, s1_ref, b1_ref, al_ref, o_ref, pad1):
        xbn = (x_ref[...].astype(jnp.float32) * s1_ref[...].reshape(1, 1, 1, cin)
               + b1_ref[...].reshape(1, 1, 1, cin))
        pad1[...] = _zero_pad_hw(xbn).astype(pad1.dtype)
        t = _conv3x3_from_pad(pad1, w1_ref, b, h, w, cin)
        t = jnp.where(t >= 0.0, t, t * al_ref[...])
        o_ref[...] = t.reshape(b, span, cout).astype(o_ref.dtype)

    return kernel


def _make_conv2_se_kernel(b, ho, wo, cin, cout, has_sc_conv):
    """conv3x3(stride 2, phase inputs) + BN2 + SE + shortcut + residual add."""
    span = ho * wo

    def kernel(*refs):
        if has_sc_conv:
            (ph_ref, scin_ref, w2_ref, s2_ref, b2_ref, sw1_ref, sw2_ref,
             wsc_ref, ssc_ref, bsc_ref, o_ref) = refs
        else:
            (ph_ref, scin_ref, w2_ref, s2_ref, b2_ref, sw1_ref, sw2_ref,
             o_ref) = refs

        y = _conv3x3_from_phases(ph_ref, w2_ref, b, ho, wo, cout)
        y = y * s2_ref[...] + b2_ref[...]                            # BN2

        scv = scin_ref[...]                                          # (b,ho,wo,cin) bf16
        if has_sc_conv:
            sc = jnp.dot(scv.reshape(b * span, cin), wsc_ref[...],
                         preferred_element_type=jnp.float32)
            sc = (sc * ssc_ref[...] + bsc_ref[...]).reshape(b, span, cout)
        else:
            sc = scv.reshape(b, span, cin).astype(jnp.float32)       # MaxPool2d(1, s)
        out = _se_plus_shortcut(y, sc, sw1_ref, sw2_ref, b, span, cout)
        o_ref[...] = out.astype(o_ref.dtype)

    return kernel


# ---------------------------------------------------------------------------
# weight / param packing (tiny, done once per call in the wrappers)
# ---------------------------------------------------------------------------
def _pack3x3(w):
    """(Cout, Cin, 3, 3) torch conv weight -> (3, 3*Cin, Cout) bf16, dx-major K."""
    cout, cin, kh, kw = w.shape
    return jnp.transpose(w, (2, 3, 1, 0)).reshape(kh, kw * cin, cout).astype(jnp.bfloat16)


def _pack_1x1(w):
    """(Cout, Cin, 1, 1) -> (Cin, Cout) bf16."""
    cout, cin = w.shape[0], w.shape[1]
    return jnp.transpose(w.reshape(cout, cin), (1, 0)).astype(jnp.bfloat16)


def _row(v):
    return v.reshape(1, -1).astype(jnp.float32)


def bn_scale_bias(p, eps=1e-5):
    scale = p["gamma"] / jnp.sqrt(p["var"] + eps)
    bias = p["beta"] - p["mean"] * scale
    return scale, bias


# ---------------------------------------------------------------------------
# pallas_call wrappers
# ---------------------------------------------------------------------------
def fused_block_stride1(x, p, cin, cout):
    """Whole Bottleneck block (stride 1) as one pallas_call.  x: (N,H,W,Cin) bf16."""
    n, h, w, _ = x.shape
    span = h * w
    has_sc = (cin != cout)
    g = _grid_steps(n)
    b = n // g

    w1 = _pack3x3(p["conv1"])
    w2 = _pack3x3(p["conv2"])
    s1, b1 = bn_scale_bias(p["bn1"])
    s2, b2 = bn_scale_bias(p["bn2"])
    sw1 = _pack_1x1(p["se_fc1"])                       # (Cout, r)
    sw2 = _pack_1x1(p["se_fc2"])                       # (r, Cout)

    inputs = [x, w1, w2, _row(s1), _row(b1), _row(p["prelu"]), _row(s2), _row(b2),
              sw1, sw2]
    in_specs = [
        pl.BlockSpec((b, h, w, cin), lambda i: (i, 0, 0, 0)),
        pl.BlockSpec(w1.shape, lambda i: (0, 0, 0)),
        pl.BlockSpec(w2.shape, lambda i: (0, 0, 0)),
        pl.BlockSpec((1, cin), lambda i: (0, 0)),
        pl.BlockSpec((1, cin), lambda i: (0, 0)),
        pl.BlockSpec((1, cout), lambda i: (0, 0)),
        pl.BlockSpec((1, cout), lambda i: (0, 0)),
        pl.BlockSpec((1, cout), lambda i: (0, 0)),
        pl.BlockSpec(sw1.shape, lambda i: (0, 0)),
        pl.BlockSpec(sw2.shape, lambda i: (0, 0)),
    ]
    if has_sc:
        ssc, bsc = bn_scale_bias(p["sc_bn"])
        wsc = _pack_1x1(p["sc_conv"])
        inputs += [wsc, _row(ssc), _row(bsc)]
        in_specs += [pl.BlockSpec(wsc.shape, lambda i: (0, 0)),
                     pl.BlockSpec((1, cout), lambda i: (0, 0)),
                     pl.BlockSpec((1, cout), lambda i: (0, 0))]

    out = pl.pallas_call(
        _make_fused_block_kernel(b, h, w, cin, cout, has_sc),
        out_shape=jax.ShapeDtypeStruct((n, span, cout), jnp.bfloat16),
        grid=(g,),
        in_specs=in_specs,
        out_specs=pl.BlockSpec((b, span, cout), lambda i: (i, 0, 0)),
        scratch_shapes=[pltpu.VMEM((b, h + 2, w + 2, cin), jnp.bfloat16),
                        pltpu.VMEM((b, h + 2, w + 2, cout), jnp.bfloat16)],
        compiler_params=_PARALLEL_1D,
    )(*inputs)
    return out.reshape(n, h, w, cout)


def conv1_stage(x, p, cin, cout):
    """BN1 + conv3x3(stride 1) + PReLU.  x: (N,H,W,Cin) bf16 -> (N,H,W,Cout) bf16."""
    n, h, w, _ = x.shape
    span = h * w
    g = _grid_steps(n)
    b = n // g
    w1 = _pack3x3(p["conv1"])
    s1, b1 = bn_scale_bias(p["bn1"])
    out = pl.pallas_call(
        _make_conv1_kernel(b, h, w, cin, cout),
        out_shape=jax.ShapeDtypeStruct((n, span, cout), jnp.bfloat16),
        grid=(g,),
        in_specs=[
            pl.BlockSpec((b, h, w, cin), lambda i: (i, 0, 0, 0)),
            pl.BlockSpec(w1.shape, lambda i: (0, 0, 0)),
            pl.BlockSpec((1, cin), lambda i: (0, 0)),
            pl.BlockSpec((1, cin), lambda i: (0, 0)),
            pl.BlockSpec((1, cout), lambda i: (0, 0)),
        ],
        out_specs=pl.BlockSpec((b, span, cout), lambda i: (i, 0, 0)),
        scratch_shapes=[pltpu.VMEM((b, h + 2, w + 2, cin), jnp.bfloat16)],
        compiler_params=_PARALLEL_1D,
    )(x, w1, _row(s1), _row(b1), _row(p["prelu"]))
    return out.reshape(n, h, w, cout)


def conv2_se_stage(t, x, p, cin, cout, stride):
    """conv3x3(stride 2) + BN2 + SqueezeExcitation + shortcut + residual add."""
    n, h, w, _ = t.shape
    assert stride == 2 and h % 2 == 0 and w % 2 == 0  # TODO(synk): general strides
    ho, wo = h // 2, w // 2
    span = ho * wo
    has_sc = (cin != cout)
    g = _grid_steps(n)
    b = n // g

    # XLA glue on small bf16 tensors: space-to-depth phase split of the padded
    # conv1 output (channel-stacked so every in-kernel tap is a static stride-1
    # slice) and the strided shortcut subsample.
    # TODO(synk): fold the phase split into the conv1 kernel's output.
    tpad = jnp.pad(t, ((0, 0), (1, 1), (1, 1), (0, 0)))
    phases = jnp.concatenate(
        [tpad[:, a::2, c::2, :] for a in range(2) for c in range(2)], axis=-1)
    sc_in = x[:, ::stride, ::stride, :]

    w2 = _pack3x3(p["conv2"])
    s2, b2 = bn_scale_bias(p["bn2"])
    sw1 = _pack_1x1(p["se_fc1"])
    sw2 = _pack_1x1(p["se_fc2"])

    hp, wp = ho + 1, wo + 1
    inputs = [phases, sc_in, w2, _row(s2), _row(b2), sw1, sw2]
    in_specs = [
        pl.BlockSpec((b, hp, wp, 4 * cout), lambda i: (i, 0, 0, 0)),
        pl.BlockSpec((b, ho, wo, cin), lambda i: (i, 0, 0, 0)),
        pl.BlockSpec(w2.shape, lambda i: (0, 0, 0)),
        pl.BlockSpec((1, cout), lambda i: (0, 0)),
        pl.BlockSpec((1, cout), lambda i: (0, 0)),
        pl.BlockSpec(sw1.shape, lambda i: (0, 0)),
        pl.BlockSpec(sw2.shape, lambda i: (0, 0)),
    ]
    if has_sc:
        ssc, bsc = bn_scale_bias(p["sc_bn"])
        wsc = _pack_1x1(p["sc_conv"])
        inputs += [wsc, _row(ssc), _row(bsc)]
        in_specs += [pl.BlockSpec(wsc.shape, lambda i: (0, 0)),
                     pl.BlockSpec((1, cout), lambda i: (0, 0)),
                     pl.BlockSpec((1, cout), lambda i: (0, 0))]

    out = pl.pallas_call(
        _make_conv2_se_kernel(b, ho, wo, cin, cout, has_sc),
        out_shape=jax.ShapeDtypeStruct((n, span, cout), jnp.bfloat16),
        grid=(g,),
        in_specs=in_specs,
        out_specs=pl.BlockSpec((b, span, cout), lambda i: (i, 0, 0)),
        compiler_params=_PARALLEL_1D,
    )(*inputs)
    return out.reshape(n, ho, wo, cout)


# ---------------------------------------------------------------------------
# parameter init (deterministic, shapes mirror the torch module)
# ---------------------------------------------------------------------------
class KeyGen:
    def __init__(self, key):
        self._key = key

    def __call__(self):
        self._key, k = jax.random.split(self._key)
        return k


def init_bn(kg, c):
    return dict(
        gamma=jax.random.uniform(kg(), (c,), jnp.float32, 0.5, 1.5),
        beta=jax.random.normal(kg(), (c,), jnp.float32) * 0.1,
        mean=jax.random.normal(kg(), (c,), jnp.float32) * 0.1,
        var=jax.random.uniform(kg(), (c,), jnp.float32, 0.5, 1.5),
    )


def init_conv(kg, cout, cin, k):
    std = (2.0 / (cin * k * k)) ** 0.5
    return jax.random.normal(kg(), (cout, cin, k, k), jnp.float32) * std


def init_bottleneck(kg, cin, cout, stride):
    p = {}
    if cin != cout:
        p["sc_conv"] = init_conv(kg, cout, cin, 1)
        p["sc_bn"] = init_bn(kg, cout)
    p["bn1"] = init_bn(kg, cin)
    p["conv1"] = init_conv(kg, cout, cin, 3)
    p["prelu"] = jnp.full((cout,), 0.25, jnp.float32)
    p["conv2"] = init_conv(kg, cout, cout, 3)
    p["bn2"] = init_bn(kg, cout)
    r = cout // 16
    p["se_fc1"] = init_conv(kg, r, cout, 1)
    p["se_fc2"] = init_conv(kg, cout, r, 1)
    return p


# ---------------------------------------------------------------------------
# forward pass
# ---------------------------------------------------------------------------
def bottleneck_forward(cfg, p, x):
    cin, cout, stride = cfg
    if stride == 1:
        return fused_block_stride1(x, p, cin, cout)
    t = conv1_stage(x, p, cin, cout)
    return conv2_se_stage(t, x, p, cin, cout, stride)


def make_forward(block_cfgs):
    @jax.jit
    def fwd(params, x_nchw):
        # NCHW -> NHWC (channels on the lane axis); bf16 activations between kernels.
        x = jnp.transpose(x_nchw, (0, 2, 3, 1)).astype(jnp.bfloat16)
        for cfg, p in zip(block_cfgs, params["blocks"]):
            x = bottleneck_forward(cfg, p, x)
        return jnp.transpose(x.astype(jnp.float32), (0, 3, 1, 2))    # NHWC -> NCHW
    return fwd


# ---------------------------------------------------------------------------
if __name__ == "__main__":
    BATCH = 2
    IN_C = 32
    RES = (16, 16)
    # Two stacked Bottleneck blocks: one exercises the conv1x1+BN shortcut
    # (stride 2), the other the MaxPool(1, stride) / identity shortcut (stride 1).
    block_cfgs = [(32, 64, 2), (64, 64, 1)]

    kg = KeyGen(jax.random.PRNGKey(0))
    params = {"blocks": [init_bottleneck(kg, ci, co, st) for ci, co, st in block_cfgs]}
    fwd = make_forward(block_cfgs)

    x = jax.random.normal(jax.random.PRNGKey(0), (BATCH, IN_C, RES[0], RES[1]),
                          jnp.float32)
    y = jax.block_until_ready(fwd(params, x))

    assert y.shape == (BATCH, 64, RES[0] // 2, RES[1] // 2), y.shape
    assert bool(jnp.all(jnp.isfinite(y)))
    print("KERNEL_OK")
</pallas_src>

<mosaic_0001>
module attributes {stable_mosaic.version = 11 : i64} {
  func.func @kernel(%arg0: i32, %arg1: memref<2x16x16x32xbf16, #tpu.memory_space<vmem>>, %arg2: memref<3x96x64xbf16, #tpu.memory_space<vmem>>, %arg3: memref<1x32xf32, #tpu.memory_space<vmem>>, %arg4: memref<1x32xf32, #tpu.memory_space<vmem>>, %arg5: memref<1x64xf32, #tpu.memory_space<vmem>>, %arg6: memref<2x256x64xbf16, #tpu.memory_space<vmem>>, %arg7: memref<2x18x18x32xbf16, #tpu.memory_space<vmem>>) attributes {dimension_semantics = [#tpu.dimension_semantics<parallel>], iteration_bounds = array<i64: 1>, scalar_prefetch = 0 : i64, scratch_operands = 1 : i64, tpu.core_type = #tpu.core_type<tc>, window_params = [{transform_indices = @transform_0, window_bounds = array<i64: 2, 16, 16, 32>}, {pipeline_mode = #tpu.pipeline_mode<synchronous>, transform_indices = @transform_1, window_bounds = array<i64: 3, 96, 64>}, {pipeline_mode = #tpu.pipeline_mode<synchronous>, transform_indices = @transform_2, window_bounds = array<i64: 1, 32>}, {pipeline_mode = #tpu.pipeline_mode<synchronous>, transform_indices = @transform_3, window_bounds = array<i64: 1, 32>}, {pipeline_mode = #tpu.pipeline_mode<synchronous>, transform_indices = @transform_4, window_bounds = array<i64: 1, 64>}, {transform_indices = @transform_5, window_bounds = array<i64: 2, 256, 64>}]} {
    %c0 = arith.constant 0 : index
    %c0_0 = arith.constant 0 : index
    %c0_1 = arith.constant 0 : index
    %c0_2 = arith.constant 0 : index
    %0 = vector.load %arg1[%c0, %c0_0, %c0_1, %c0_2] : memref<2x16x16x32xbf16, #tpu.memory_space<vmem>>, vector<2x16x16x32xbf16>
    %1 = arith.extf %0 : vector<2x16x16x32xbf16> to vector<2x16x16x32xf32>
    %c0_3 = arith.constant 0 : index
    %c0_4 = arith.constant 0 : index
    %2 = vector.load %arg3[%c0_3, %c0_4] : memref<1x32xf32, #tpu.memory_space<vmem>>, vector<1x32xf32>
    %3 = vector.shape_cast %2 : vector<1x32xf32> to vector<1x1x1x32xf32>
    %4 = vector.broadcast %3 : vector<1x1x1x32xf32> to vector<2x16x16x32xf32>
    %5 = arith.mulf %1, %4 : vector<2x16x16x32xf32>
    %c0_5 = arith.constant 0 : index
    %c0_6 = arith.constant 0 : index
    %6 = vector.load %arg4[%c0_5, %c0_6] : memref<1x32xf32, #tpu.memory_space<vmem>>, vector<1x32xf32>
    %7 = vector.shape_cast %6 : vector<1x32xf32> to vector<1x1x1x32xf32>
    %8 = vector.broadcast %7 : vector<1x1x1x32xf32> to vector<2x16x16x32xf32>
    %9 = arith.addf %5, %8 : vector<2x16x16x32xf32>
    %cst = arith.constant 0.000000e+00 : f32
    %10 = vector.broadcast %cst : f32 to vector<2x16x1x32xf32>
    %11 = tpu.concatenate %10, %9, %10 in 2 : vector<2x16x1x32xf32>, vector<2x16x16x32xf32>, vector<2x16x1x32xf32> -> vector<2x16x18x32xf32>
    %cst_7 = arith.constant 0.000000e+00 : f32
    %12 = vector.broadcast %cst_7 : f32 to vector<2x1x18x32xf32>
    %13 = tpu.concatenate %12, %11, %12 in 1 : vector<2x1x18x32xf32>, vector<2x16x18x32xf32>, vector<2x1x18x32xf32> -> vector<2x18x18x32xf32>
    %14 = arith.truncf %13 : vector<2x18x18x32xf32> to vector<2x18x18x32xbf16>
    %c0_8 = arith.constant 0 : index
    %c0_9 = arith.constant 0 : index
    %c0_10 = arith.constant 0 : index
    %c0_11 = arith.constant 0 : index
    %15 = vector.load %arg7[%c0_8, %c0_9, %c0_10, %c0_11] : memref<2x18x18x32xbf16, #tpu.memory_space<vmem>>, vector<2x18x18x32xbf16>
    tpu.vector_store %arg7[%c0_8, %c0_9, %c0_10, %c0_11], %14 {strides = array<i32>} : memref<2x18x18x32xbf16, #tpu.memory_space<vmem>>, vector<2x18x18x32xbf16>,
    %c0_12 = arith.constant 0 : index
    %c0_13 = arith.constant 0 : index
    %c0_14 = arith.constant 0 : index
    %c0_15 = arith.constant 0 : index
    %16 = vector.load %arg7[%c0_12, %c0_13, %c0_14, %c0_15] : memref<2x18x18x32xbf16, #tpu.memory_space<vmem>>, vector<2x16x16x32xbf16>
    %c0_16 = arith.constant 0 : index
    %c0_17 = arith.constant 0 : index
    %c1 = arith.constant 1 : index
    %c0_18 = arith.constant 0 : index
    %17 = vector.load %arg7[%c0_16, %c0_17, %c1, %c0_18] : memref<2x18x18x32xbf16, #tpu.memory_space<vmem>>, vector<2x16x16x32xbf16>
    %c0_19 = arith.constant 0 : index
    %c0_20 = arith.constant 0 : index
    %c2 = arith.constant 2 : index
    %c0_21 = arith.constant 0 : index
    %18 = vector.load %arg7[%c0_19, %c0_20, %c2, %c0_21] : memref<2x18x18x32xbf16, #tpu.memory_space<vmem>>, vector<2x16x16x32xbf16>
    %19 = tpu.concatenate %16, %17, %18 in 3 : vector<2x16x16x32xbf16>, vector<2x16x16x32xbf16>, vector<2x16x16x32xbf16> -> vector<2x16x16x96xbf16>
    %20 = vector.shape_cast %19 : vector<2x16x16x96xbf16> to vector<512x96xbf16>
    %c0_22 = arith.constant 0 : index
    %c0_23 = arith.constant 0 : index
    %c0_24 = arith.constant 0 : index
    %21 = vector.load %arg2[%c0_22, %c0_23, %c0_24] : memref<3x96x64xbf16, #tpu.memory_space<vmem>>, vector<1x96x64xbf16>
    %22 = vector.shape_cast %21 : vector<1x96x64xbf16> to vector<96x64xbf16>
    %cst_25 = arith.constant dense<0.000000e+00> : vector<512x64xf32>
    %23 = tpu.matmul %20, %22, %cst_25 {dimension_numbers = #tpu.dot_dimension_numbers<[1], [0], [0], [1], [0, 0, 1, 1], [], []>} : vector<512x96xbf16>, vector<96x64xbf16>, vector<512x64xf32> -> vector<512x64xf32>
    %c0_26 = arith.constant 0 : index
    %c1_27 = arith.constant 1 : index
    %c0_28 = arith.constant 0 : index
    %c0_29 = arith.constant 0 : index
    %24 = vector.load %arg7[%c0_26, %c1_27, %c0_28, %c0_29] : memref<2x18x18x32xbf16, #tpu.memory_space<vmem>>, vector<2x16x16x32xbf16>
    %c0_30 = arith.constant 0 : index
    %c1_31 = arith.constant 1 : index
    %c1_32 = arith.constant 1 : index
    %c0_33 = arith.constant 0 : index
    %25 = vector.load %arg7[%c0_30, %c1_31, %c1_32, %c0_33] : memref<2x18x18x32xbf16, #tpu.memory_space<vmem>>, vector<2x16x16x32xbf16>
    %c0_34 = arith.constant 0 : index
    %c1_35 = arith.constant 1 : index
    %c2_36 = arith.constant 2 : index
    %c0_37 = arith.constant 0 : index
    %26 = vector.load %arg7[%c0_34, %c1_35, %c2_36, %c0_37] : memref<2x18x18x32xbf16, #tpu.memory_space<vmem>>, vector<2x16x16x32xbf16>
    %27 = tpu.concatenate %24, %25, %26 in 3 : vector<2x16x16x32xbf16>, vector<2x16x16x32xbf16>, vector<2x16x16x32xbf16> -> vector<2x16x16x96xbf16>
    %28 = vector.shape_cast %27 : vector<2x16x16x96xbf16> to vector<512x96xbf16>
    %c1_38 = arith.constant 1 : index
    %c0_39 = arith.constant 0 : index
    %c0_40 = arith.constant 0 : index
    %29 = vector.load %arg2[%c1_38, %c0_39, %c0_40] : memref<3x96x64xbf16, #tpu.memory_space<vmem>>, vector<1x96x64xbf16>
    %30 = vector.shape_cast %29 : vector<1x96x64xbf16> to vector<96x64xbf16>
    %cst_41 = arith.constant dense<0.000000e+00> : vector<512x64xf32>
    %31 = tpu.matmul %28, %30, %cst_41 {dimension_numbers = #tpu.dot_dimension_numbers<[1], [0], [0], [1], [0, 0, 1, 1], [], []>} : vector<512x96xbf16>, vector<96x64xbf16>, vector<512x64xf32> -> vector<512x64xf32>
    %32 = arith.addf %23, %31 : vector<512x64xf32>
    %c0_42 = arith.constant 0 : index
    %c2_43 = arith.constant 2 : index
    %c0_44 = arith.constant 0 : index
    %c0_45 = arith.constant 0 : index
    %33 = vector.load %arg7[%c0_42, %c2_43, %c0_44, %c0_45] : memref<2x18x18x32xbf16, #tpu.memory_space<vmem>>, vector<2x16x16x32xbf16>
    %c0_46 = arith.constant 0 : index
    %c2_47 = arith.constant 2 : index
    %c1_48 = arith.constant 1 : index
    %c0_49 = arith.constant 0 : index
    %34 = vector.load %arg7[%c0_46, %c2_47, %c1_48, %c0_49] : memref<2x18x18x32xbf16, #tpu.memory_space<vmem>>, vector<2x16x16x32xbf16>
    %c0_50 = arith.constant 0 : index
    %c2_51 = arith.constant 2 : index
    %c2_52 = arith.constant 2 : index
    %c0_53 = arith.constant 0 : index
    %35 = vector.load %arg7[%c0_50, %c2_51, %c2_52, %c0_53] : memref<2x18x18x32xbf16, #tpu.memory_space<vmem>>, vector<2x16x16x32xbf16>
    %36 = tpu.concatenate %33, %34, %35 in 3 : vector<2x16x16x32xbf16>, vector<2x16x16x32xbf16>, vector<2x16x16x32xbf16> -> vector<2x16x16x96xbf16>
    %37 = vector.shape_cast %36 : vector<2x16x16x96xbf16> to vector<512x96xbf16>
    %c2_54 = arith.constant 2 : index
    %c0_55 = arith.constant 0 : index
    %c0_56 = arith.constant 0 : index
    %38 = vector.load %arg2[%c2_54, %c0_55, %c0_56] : memref<3x96x64xbf16, #tpu.memory_space<vmem>>, vector<1x96x64xbf16>
    %39 = vector.shape_cast %38 : vector<1x96x64xbf16> to vector<96x64xbf16>
    %cst_57 = arith.constant dense<0.000000e+00> : vector<512x64xf32>
    %40 = tpu.matmul %37, %39, %cst_57 {dimension_numbers = #tpu.dot_dimension_numbers<[1], [0], [0], [1], [0, 0, 1, 1], [], []>} : vector<512x96xbf16>, vector<96x64xbf16>, vector<512x64xf32> -> vector<512x64xf32>
    %41 = arith.addf %32, %40 : vector<512x64xf32>
    %cst_58 = arith.constant 0.000000e+00 : f32
    %42 = vector.broadcast %cst_58 : f32 to vector<512x64xf32>
    %43 = arith.cmpf oge, %41, %42 : vector<512x64xf32>
    %c0_59 = arith.constant 0 : index
    %c0_60 = arith.constant 0 : index
    %44 = vector.load %arg5[%c0_59, %c0_60] : memref<1x64xf32, #tpu.memory_space<vmem>>, vector<1x64xf32>
    %45 = vector.broadcast %44 : vector<1x64xf32> to vector<512x64xf32>
    %46 = arith.mulf %41, %45 : vector<512x64xf32>
    %47 = arith.select %43, %41, %46 : vector<512x64xi1>, vector<512x64xf32>
    %48 = vector.shape_cast %47 : vector<512x64xf32> to vector<2x256x64xf32>
    %49 = arith.truncf %48 : vector<2x256x64xf32> to vector<2x256x64xbf16>
    %c0_61 = arith.constant 0 : index
    %c0_62 = arith.constant 0 : index
    %c0_63 = arith.constant 0 : index
    %50 = vector.load %arg6[%c0_61, %c0_62, %c0_63] : memref<2x256x64xbf16, #tpu.memory_space<vmem>>, vector<2x256x64xbf16>
    tpu.vector_store %arg6[%c0_61, %c0_62, %c0_63], %49 {strides = array<i32>} : memref<2x256x64xbf16, #tpu.memory_space<vmem>>, vector<2x256x64xbf16>,
    return
  }
  func.func @transform_0(%arg0: i32) -> (i32, i32, i32, i32) {
    %c0_i32 = arith.constant 0 : i32
    %c0_i32_0 = arith.constant 0 : i32
    %c0_i32_1 = arith.constant 0 : i32
    %c0_i32_2 = arith.constant 0 : i32
    return %arg0, %c0_i32, %c0_i32_0, %c0_i32_1 : i32, i32, i32, i32
  }
  func.func @transform_1(%arg0: i32) -> (i32, i32, i32) {
    %c0_i32 = arith.constant 0 : i32
    %c0_i32_0 = arith.constant 0 : i32
    %c0_i32_1 = arith.constant 0 : i32
    %c0_i32_2 = arith.constant 0 : i32
    return %c0_i32, %c0_i32_0, %c0_i32_1 : i32, i32, i32
  }
  func.func @transform_2(%arg0: i32) -> (i32, i32) {
    %c0_i32 = arith.constant 0 : i32
    %c0_i32_0 = arith.constant 0 : i32
    %c0_i32_1 = arith.constant 0 : i32
    return %c0_i32, %c0_i32_0 : i32, i32
  }
  func.func @transform_3(%arg0: i32) -> (i32, i32) {
    %c0_i32 = arith.constant 0 : i32
    %c0_i32_0 = arith.constant 0 : i32
    %c0_i32_1 = arith.constant 0 : i32
    return %c0_i32, %c0_i32_0 : i32, i32
  }
  func.func @transform_4(%arg0: i32) -> (i32, i32) {
    %c0_i32 = arith.constant 0 : i32
    %c0_i32_0 = arith.constant 0 : i32
    %c0_i32_1 = arith.constant 0 : i32
    return %c0_i32, %c0_i32_0 : i32, i32
  }
  func.func @transform_5(%arg0: i32) -> (i32, i32, i32) {
    %c0_i32 = arith.constant 0 : i32
    %c0_i32_0 = arith.constant 0 : i32
    %c0_i32_1 = arith.constant 0 : i32
    return %arg0, %c0_i32, %c0_i32_0 : i32, i32, i32
  }
}

module attributes {stable_mosaic.version = 11 : i64} {
  func.func @kernel(%arg0: i32, %arg1: memref<2x9x9x256xbf16, #tpu.memory_space<vmem>>, %arg2: memref<2x8x8x32xbf16, #tpu.memory_space<vmem>>, %arg3: memref<3x192x64xbf16, #tpu.memory_space<vmem>>, %arg4: memref<1x64xf32, #tpu.memory_space<vmem>>, %arg5: memref<1x64xf32, #tpu.memory_space<vmem>>, %arg6: memref<64x4xbf16, #tpu.memory_space<vmem>>, %arg7: memref<4x64xbf16, #tpu.memory_space<vmem>>, %arg8: memref<32x64xbf16, #tpu.memory_space<vmem>>, %arg9: memref<1x64xf32, #tpu.memory_space<vmem>>, %arg10: memref<1x64xf32, #tpu.memory_space<vmem>>, %arg11: memref<2x64x64xbf16, #tpu.memory_space<vmem>>) attributes {dimension_semantics = [#tpu.dimension_semantics<parallel>], iteration_bounds = array<i64: 1>, scalar_prefetch = 0 : i64, scratch_operands = 0 : i64, tpu.core_type = #tpu.core_type<tc>, window_params = [{transform_indices = @transform_0, window_bounds = array<i64: 2, 9, 9, 256>}, {transform_indices = @transform_1, window_bounds = array<i64: 2, 8, 8, 32>}, {pipeline_mode = #tpu.pipeline_mode<synchronous>, transform_indices = @transform_2, window_bounds = array<i64: 3, 192, 64>}, {pipeline_mode = #tpu.pipeline_mode<synchronous>, transform_indices = @transform_3, window_bounds = array<i64: 1, 64>}, {pipeline_mode = #tpu.pipeline_mode<synchronous>, transform_indices = @transform_4, window_bounds = array<i64: 1, 64>}, {pipeline_mode = #tpu.pipeline_mode<synchronous>, transform_indices = @transform_5, window_bounds = array<i64: 64, 4>}, {pipeline_mode = #tpu.pipeline_mode<synchronous>, transform_indices = @transform_6, window_bounds = array<i64: 4, 64>}, {pipeline_mode = #tpu.pipeline_mode<synchronous>, transform_indices = @transform_7, window_bounds = array<i64: 32, 64>}, {pipeline_mode = #tpu.pipeline_mode<synchronous>, transform_indices = @transform_8, window_bounds = array<i64: 1, 64>}, {pipeline_mode = #tpu.pipeline_mode<synchronous>, transform_indices = @transform_9, window_bounds = array<i64: 1, 64>}, {transform_indices = @transform_10, window_bounds = array<i64: 2, 64, 64>}]} {
    %c0 = arith.constant 0 : index
    %c0_0 = arith.constant 0 : index
    %c0_1 = arith.constant 0 : index
    %c0_2 = arith.constant 0 : index
    %0 = vector.load %arg1[%c0, %c0_0, %c0_1, %c0_2] : memref<2x9x9x256xbf16, #tpu.memory_space<vmem>>, vector<2x8x8x64xbf16>
    %c0_3 = arith.constant 0 : index
    %c0_4 = arith.constant 0 : index
    %c0_5 = arith.constant 0 : index
    %c64 = arith.constant 64 : index
    %1 = vector.load %arg1[%c0_3, %c0_4, %c0_5, %c64] : memref<2x9x9x256xbf16, #tpu.memory_space<vmem>>, vector<2x8x8x64xbf16>
    %c0_6 = arith.constant 0 : index
    %c0_7 = arith.constant 0 : index
    %c1 = arith.constant 1 : index
    %c0_8 = arith.constant 0 : index
    %2 = vector.load %arg1[%c0_6, %c0_7, %c1, %c0_8] : memref<2x9x9x256xbf16, #tpu.memory_space<vmem>>, vector<2x8x8x64xbf16>
    %3 = tpu.concatenate %0, %1, %2 in 3 : vector<2x8x8x64xbf16>, vector<2x8x8x64xbf16>, vector<2x8x8x64xbf16> -> vector<2x8x8x192xbf16>
    %4 = vector.shape_cast %3 : vector<2x8x8x192xbf16> to vector<128x192xbf16>
    %c0_9 = arith.constant 0 : index
    %c0_10 = arith.constant 0 : index
    %c0_11 = arith.constant 0 : index
    %5 = vector.load %arg3[%c0_9, %c0_10, %c0_11] : memref<3x192x64xbf16, #tpu.memory_space<vmem>>, vector<1x192x64xbf16>
    %6 = vector.shape_cast %5 : vector<1x192x64xbf16> to vector<192x64xbf16>
    %cst = arith.constant dense<0.000000e+00> : vector<128x64xf32>
    %7 = tpu.matmul %4, %6, %cst {dimension_numbers = #tpu.dot_dimension_numbers<[1], [0], [0], [1], [0, 0, 1, 1], [], []>} : vector<128x192xbf16>, vector<192x64xbf16>, vector<128x64xf32> -> vector<128x64xf32>
    %c0_12 = arith.constant 0 : index
    %c0_13 = arith.constant 0 : index
    %c0_14 = arith.constant 0 : index
    %c128 = arith.constant 128 : index
    %8 = vector.load %arg1[%c0_12, %c0_13, %c0_14, %c128] : memref<2x9x9x256xbf16, #tpu.memory_space<vmem>>, vector<2x8x8x64xbf16>
    %c0_15 = arith.constant 0 : index
    %c0_16 = arith.constant 0 : index
    %c0_17 = arith.constant 0 : index
    %c192 = arith.constant 192 : index
    %9 = vector.load %arg1[%c0_15, %c0_16, %c0_17, %c192] : memref<2x9x9x256xbf16, #tpu.memory_space<vmem>>, vector<2x8x8x64xbf16>
    %c0_18 = arith.constant 0 : index
    %c0_19 = arith.constant 0 : index
    %c1_20 = arith.constant 1 : index
    %c128_21 = arith.constant 128 : index
    %10 = vector.load %arg1[%c0_18, %c0_19, %c1_20, %c128_21] : memref<2x9x9x256xbf16, #tpu.memory_space<vmem>>, vector<2x8x8x64xbf16>
    %11 = tpu.concatenate %8, %9, %10 in 3 : vector<2x8x8x64xbf16>, vector<2x8x8x64xbf16>, vector<2x8x8x64xbf16> -> vector<2x8x8x192xbf16>
    %12 = vector.shape_cast %11 : vector<2x8x8x192xbf16> to vector<128x192xbf16>
    %c1_22 = arith.constant 1 : index
    %c0_23 = arith.constant 0 : index
    %c0_24 = arith.constant 0 : index
    %13 = vector.load %arg3[%c1_22, %c0_23, %c0_24] : memref<3x192x64xbf16, #tpu.memory_space<vmem>>, vector<1x192x64xbf16>
    %14 = vector.shape_cast %13 : vector<1x192x64xbf16> to vector<192x64xbf16>
    %cst_25 = arith.constant dense<0.000000e+00> : vector<128x64xf32>
    %15 = tpu.matmul %12, %14, %cst_25 {dimension_numbers = #tpu.dot_dimension_numbers<[1], [0], [0], [1], [0, 0, 1, 1], [], []>} : vector<128x192xbf16>, vector<192x64xbf16>, vector<128x64xf32> -> vector<128x64xf32>
    %16 = arith.addf %7, %15 : vector<128x64xf32>
    %c0_26 = arith.constant 0 : index
    %c1_27 = arith.constant 1 : index
    %c0_28 = arith.constant 0 : index
    %c0_29 = arith.constant 0 : index
    %17 = vector.load %arg1[%c0_26, %c1_27, %c0_28, %c0_29] : memref<2x9x9x256xbf16, #tpu.memory_space<vmem>>, vector<2x8x8x64xbf16>
    %c0_30 = arith.constant 0 : index
    %c1_31 = arith.constant 1 : index
    %c0_32 = arith.constant 0 : index
    %c64_33 = arith.constant 64 : index
    %18 = vector.load %arg1[%c0_30, %c1_31, %c0_32, %c64_33] : memref<2x9x9x256xbf16, #tpu.memory_space<vmem>>, vector<2x8x8x64xbf16>
    %c0_34 = arith.constant 0 : index
    %c1_35 = arith.constant 1 : index
    %c1_36 = arith.constant 1 : index
    %c0_37 = arith.constant 0 : index
    %19 = vector.load %arg1[%c0_34, %c1_35, %c1_36, %c0_37] : memref<2x9x9x256xbf16, #tpu.memory_space<vmem>>, vector<2x8x8x64xbf16>
    %20 = tpu.concatenate %17, %18, %19 in 3 : vector<2x8x8x64xbf16>, vector<2x8x8x64xbf16>, vector<2x8x8x64xbf16> -> vector<2x8x8x192xbf16>
    %21 = vector.shape_cast %20 : vector<2x8x8x192xbf16> to vector<128x192xbf16>
    %c2 = arith.constant 2 : index
    %c0_38 = arith.constant 0 : index
    %c0_39 = arith.constant 0 : index
    %22 = vector.load %arg3[%c2, %c0_38, %c0_39] : memref<3x192x64xbf16, #tpu.memory_space<vmem>>, vector<1x192x64xbf16>
    %23 = vector.shape_cast %22 : vector<1x192x64xbf16> to vector<192x64xbf16>
    %cst_40 = arith.constant dense<0.000000e+00> : vector<128x64xf32>
    %24 = tpu.matmul %21, %23, %cst_40 {dimension_numbers = #tpu.dot_dimension_numbers<[1], [0], [0], [1], [0, 0, 1, 1], [], []>} : vector<128x192xbf16>, vector<192x64xbf16>, vector<128x64xf32> -> vector<128x64xf32>
    %25 = arith.addf %16, %24 : vector<128x64xf32>
    %c0_41 = arith.constant 0 : index
    %c0_42 = arith.constant 0 : index
    %26 = vector.load %arg4[%c0_41, %c0_42] : memref<1x64xf32, #tpu.memory_space<vmem>>, vector<1x64xf32>
    %27 = vector.broadcast %26 : vector<1x64xf32> to vector<128x64xf32>
    %28 = arith.mulf %25, %27 : vector<128x64xf32>
    %c0_43 = arith.constant 0 : index
    %c0_44 = arith.constant 0 : index
    %29 = vector.load %arg5[%c0_43, %c0_44] : memref<1x64xf32, #tpu.memory_space<vmem>>, vector<1x64xf32>
    %30 = vector.broadcast %29 : vector<1x64xf32> to vector<128x64xf32>
    %31 = arith.addf %28, %30 : vector<128x64xf32>
    %c0_45 = arith.constant 0 : index
    %c0_46 = arith.constant 0 : index
    %c0_47 = arith.constant 0 : index
    %c0_48 = arith.constant 0 : index
    %32 = vector.load %arg2[%c0_45, %c0_46, %c0_47, %c0_48] : memref<2x8x8x32xbf16, #tpu.memory_space<vmem>>, vector<2x8x8x32xbf16>
    %33 = vector.shape_cast %32 : vector<2x8x8x32xbf16> to vector<128x32xbf16>
    %c0_49 = arith.constant 0 : index
    %c0_50 = arith.constant 0 : index
    %34 = vector.load %arg8[%c0_49, %c0_50] : memref<32x64xbf16, #tpu.memory_space<vmem>>, vector<32x64xbf16>
    %cst_51 = arith.constant dense<0.000000e+00> : vector<128x64xf32>
    %35 = tpu.matmul %33, %34, %cst_51 {dimension_numbers = #tpu.dot_dimension_numbers<[1], [0], [0], [1], [0, 0, 1, 1], [], []>} : vector<128x32xbf16>, vector<32x64xbf16>, vector<128x64xf32> -> vector<128x64xf32>
    %c0_52 = arith.constant 0 : index
    %c0_53 = arith.constant 0 : index
    %36 = vector.load %arg9[%c0_52, %c0_53] : memref<1x64xf32, #tpu.memory_space<vmem>>, vector<1x64xf32>
    %37 = vector.broadcast %36 : vector<1x64xf32> to vector<128x64xf32>
    %38 = arith.mulf %35, %37 : vector<128x64xf32>
    %c0_54 = arith.constant 0 : index
    %c0_55 = arith.constant 0 : index
    %39 = vector.load %arg10[%c0_54, %c0_55] : memref<1x64xf32, #tpu.memory_space<vmem>>, vector<1x64xf32>
    %40 = vector.broadcast %39 : vector<1x64xf32> to vector<128x64xf32>
    %41 = arith.addf %38, %40 : vector<128x64xf32>
    %42 = vector.shape_cast %41 : vector<128x64xf32> to vector<2x64x64xf32>
    %43 = vector.shape_cast %31 : vector<128x64xf32> to vector<2x64x64xf32>
    %cst_56 = arith.constant dense<0.000000e+00> : vector<2x64xf32>
    %44 = vector.multi_reduction <add>, %43, %cst_56 [1] : vector<2x64x64xf32> to vector<2x64xf32>
    %cst_57 = arith.constant 6.400000e+01 : f32
    %45 = vector.broadcast %cst_57 : f32 to vector<2x64xf32>
    %46 = arith.divf %44, %45 : vector<2x64xf32>
    %47 = arith.truncf %46 : vector<2x64xf32> to vector<2x64xbf16>
    %c0_58 = arith.constant 0 : index
    %c0_59 = arith.constant 0 : index
    %48 = vector.load %arg6[%c0_58, %c0_59] : memref<64x4xbf16, #tpu.memory_space<vmem>>, vector<64x4xbf16>
    %cst_60 = arith.constant dense<0.000000e+00> : vector<2x4xf32>
    %49 = tpu.matmul %47, %48, %cst_60 {dimension_numbers = #tpu.dot_dimension_numbers<[1], [0], [0], [1], [0, 0, 1, 1], [], []>} : vector<2x64xbf16>, vector<64x4xbf16>, vector<2x4xf32> -> vector<2x4xf32>
    %cst_61 = arith.constant 0.000000e+00 : f32
    %50 = vector.broadcast %cst_61 : f32 to vector<2x4xf32>
    %51 = arith.maximumf %49, %50 : vector<2x4xf32>
    %52 = arith.truncf %51 : vector<2x4xf32> to vector<2x4xbf16>
    %c0_62 = arith.constant 0 : index
    %c0_63 = arith.constant 0 : index
    %53 = vector.load %arg7[%c0_62, %c0_63] : memref<4x64xbf16, #tpu.memory_space<vmem>>, vector<4x64xbf16>
    %cst_64 = arith.constant dense<0.000000e+00> : vector<2x64xf32>
    %54 = tpu.matmul %52, %53, %cst_64 {dimension_numbers = #tpu.dot_dimension_numbers<[1], [0], [0], [1], [0, 0, 1, 1], [], []>} : vector<2x4xbf16>, vector<4x64xbf16>, vector<2x64xf32> -> vector<2x64xf32>
    %cst_65 = arith.constant 0.000000e+00 : f32
    %55 = vector.broadcast %cst_65 : f32 to vector<2x64xf32>
    %56 = arith.subf %55, %54 : vector<2x64xf32>
    %57 = math.exp %56 : vector<2x64xf32>
    %cst_66 = arith.constant 1.000000e+00 : f32
    %58 = vector.broadcast %cst_66 : f32 to vector<2x64xf32>
    %59 = arith.addf %58, %57 : vector<2x64xf32>
    %cst_67 = arith.constant 1.000000e+00 : f32
    %60 = vector.broadcast %cst_67 : f32 to vector<2x64xf32>
    %61 = arith.divf %60, %59 : vector<2x64xf32>
    %62 = vector.shape_cast %61 : vector<2x64xf32> to vector<2x1x64xf32>
    %63 = vector.broadcast %62 : vector<2x1x64xf32> to vector<2x64x64xf32>
    %64 = arith.mulf %43, %63 : vector<2x64x64xf32>
    %65 = arith.addf %64, %42 : vector<2x64x64xf32>
    %66 = arith.truncf %65 : vector<2x64x64xf32> to vector<2x64x64xbf16>
    %c0_68 = arith.constant 0 : index
    %c0_69 = arith.constant 0 : index
    %c0_70 = arith.constant 0 : index
    %67 = vector.load %arg11[%c0_68, %c0_69, %c0_70] : memref<2x64x64xbf16, #tpu.memory_space<vmem>>, vector<2x64x64xbf16>
    tpu.vector_store %arg11[%c0_68, %c0_69, %c0_70], %66 {strides = array<i32>} : memref<2x64x64xbf16, #tpu.memory_space<vmem>>, vector<2x64x64xbf16>,
    return
  }
  func.func @transform_0(%arg0: i32) -> (i32, i32, i32, i32) {
    %c0_i32 = arith.constant 0 : i32
    %c0_i32_0 = arith.constant 0 : i32
    %c0_i32_1 = arith.constant 0 : i32
    %c0_i32_2 = arith.constant 0 : i32
    return %arg0, %c0_i32, %c0_i32_0, %c0_i32_1 : i32, i32, i32, i32
  }
  func.func @transform_1(%arg0: i32) -> (i32, i32, i32, i32) {
    %c0_i32 = arith.constant 0 : i32
    %c0_i32_0 = arith.constant 0 : i32
    %c0_i32_1 = arith.constant 0 : i32
    %c0_i32_2 = arith.constant 0 : i32
    return %arg0, %c0_i32, %c0_i32_0, %c0_i32_1 : i32, i32, i32, i32
  }
  func.func @transform_2(%arg0: i32) -> (i32, i32, i32) {
    %c0_i32 = arith.constant 0 : i32
    %c0_i32_0 = arith.constant 0 : i32
    %c0_i32_1 = arith.constant 0 : i32
    %c0_i32_2 = arith.constant 0 : i32
    return %c0_i32, %c0_i32_0, %c0_i32_1 : i32, i32, i32
  }
  func.func @transform_3(%arg0: i32) -> (i32, i32) {
    %c0_i32 = arith.constant 0 : i32
    %c0_i32_0 = arith.constant 0 : i32
    %c0_i32_1 = arith.constant 0 : i32
    return %c0_i32, %c0_i32_0 : i32, i32
  }
  func.func @transform_4(%arg0: i32) -> (i32, i32) {
    %c0_i32 = arith.constant 0 : i32
    %c0_i32_0 = arith.constant 0 : i32
    %c0_i32_1 = arith.constant 0 : i32
    return %c0_i32, %c0_i32_0 : i32, i32
  }
  func.func @transform_5(%arg0: i32) -> (i32, i32) {
    %c0_i32 = arith.constant 0 : i32
    %c0_i32_0 = arith.constant 0 : i32
    %c0_i32_1 = arith.constant 0 : i32
    return %c0_i32, %c0_i32_0 : i32, i32
  }
  func.func @transform_6(%arg0: i32) -> (i32, i32) {
    %c0_i32 = arith.constant 0 : i32
    %c0_i32_0 = arith.constant 0 : i32
    %c0_i32_1 = arith.constant 0 : i32
    return %c0_i32, %c0_i32_0 : i32, i32
  }
  func.func @transform_7(%arg0: i32) -> (i32, i32) {
    %c0_i32 = arith.constant 0 : i32
    %c0_i32_0 = arith.constant 0 : i32
    %c0_i32_1 = arith.constant 0 : i32
    return %c0_i32, %c0_i32_0 : i32, i32
  }
  func.func @transform_8(%arg0: i32) -> (i32, i32) {
    %c0_i32 = arith.constant 0 : i32
    %c0_i32_0 = arith.constant 0 : i32
    %c0_i32_1 = arith.constant 0 : i32
    return %c0_i32, %c0_i32_0 : i32, i32
  }
  func.func @transform_9(%arg0: i32) -> (i32, i32) {
    %c0_i32 = arith.constant 0 : i32
    %c0_i32_0 = arith.constant 0 : i32
    %c0_i32_1 = arith.constant 0 : i32
    return %c0_i32, %c0_i32_0 : i32, i32
  }
  func.func @transform_10(%arg0: i32) -> (i32, i32, i32) {
    %c0_i32 = arith.constant 0 : i32
    %c0_i32_0 = arith.constant 0 : i32
    %c0_i32_1 = arith.constant 0 : i32
    return %arg0, %c0_i32, %c0_i32_0 : i32, i32, i32
  }
}

module attributes {stable_mosaic.version = 11 : i64} {
  func.func @kernel(%arg0: i32, %arg1: memref<2x8x8x64xbf16, #tpu.memory_space<vmem>>, %arg2: memref<3x192x64xbf16, #tpu.memory_space<vmem>>, %arg3: memref<3x192x64xbf16, #tpu.memory_space<vmem>>, %arg4: memref<1x64xf32, #tpu.memory_space<vmem>>, %arg5: memref<1x64xf32, #tpu.memory_space<vmem>>, %arg6: memref<1x64xf32, #tpu.memory_space<vmem>>, %arg7: memref<1x64xf32, #tpu.memory_space<vmem>>, %arg8: memref<1x64xf32, #tpu.memory_space<vmem>>, %arg9: memref<64x4xbf16, #tpu.memory_space<vmem>>, %arg10: memref<4x64xbf16, #tpu.memory_space<vmem>>, %arg11: memref<2x64x64xbf16, #tpu.memory_space<vmem>>, %arg12: memref<2x10x10x64xbf16, #tpu.memory_space<vmem>>, %arg13: memref<2x10x10x64xbf16, #tpu.memory_space<vmem>>) attributes {dimension_semantics = [#tpu.dimension_semantics<parallel>], iteration_bounds = array<i64: 1>, scalar_prefetch = 0 : i64, scratch_operands = 2 : i64, tpu.core_type = #tpu.core_type<tc>, window_params = [{transform_indices = @transform_0, window_bounds = array<i64: 2, 8, 8, 64>}, {pipeline_mode = #tpu.pipeline_mode<synchronous>, transform_indices = @transform_1, window_bounds = array<i64: 3, 192, 64>}, {pipeline_mode = #tpu.pipeline_mode<synchronous>, transform_indices = @transform_2, window_bounds = array<i64: 3, 192, 64>}, {pipeline_mode = #tpu.pipeline_mode<synchronous>, transform_indices = @transform_3, window_bounds = array<i64: 1, 64>}, {pipeline_mode = #tpu.pipeline_mode<synchronous>, transform_indices = @transform_4, window_bounds = array<i64: 1, 64>}, {pipeline_mode = #tpu.pipeline_mode<synchronous>, transform_indices = @transform_5, window_bounds = array<i64: 1, 64>}, {pipeline_mode = #tpu.pipeline_mode<synchronous>, transform_indices = @transform_6, window_bounds = array<i64: 1, 64>}, {pipeline_mode = #tpu.pipeline_mode<synchronous>, transform_indices = @transform_7, window_bounds = array<i64: 1, 64>}, {pipeline_mode = #tpu.pipeline_mode<synchronous>, transform_indices = @transform_8, window_bounds = array<i64: 64, 4>}, {pipeline_mode = #tpu.pipeline_mode<synchronous>, transform_indices = @transform_9, window_bounds = array<i64: 4, 64>}, {transform_indices = @transform_10, window_bounds = array<i64: 2, 64, 64>}]} {
    %c0 = arith.constant 0 : index
    %c0_0 = arith.constant 0 : index
    %c0_1 = arith.constant 0 : index
    %c0_2 = arith.constant 0 : index
    %0 = vector.load %arg1[%c0, %c0_0, %c0_1, %c0_2] : memref<2x8x8x64xbf16, #tpu.memory_space<vmem>>, vector<2x8x8x64xbf16>
    %1 = arith.extf %0 : vector<2x8x8x64xbf16> to vector<2x8x8x64xf32>
    %c0_3 = arith.constant 0 : index
    %c0_4 = arith.constant 0 : index
    %2 = vector.load %arg4[%c0_3, %c0_4] : memref<1x64xf32, #tpu.memory_space<vmem>>, vector<1x64xf32>
    %3 = vector.shape_cast %2 : vector<1x64xf32> to vector<1x1x1x64xf32>
    %4 = vector.broadcast %3 : vector<1x1x1x64xf32> to vector<2x8x8x64xf32>
    %5 = arith.mulf %1, %4 : vector<2x8x8x64xf32>
    %c0_5 = arith.constant 0 : index
    %c0_6 = arith.constant 0 : index
    %6 = vector.load %arg5[%c0_5, %c0_6] : memref<1x64xf32, #tpu.memory_space<vmem>>, vector<1x64xf32>
    %7 = vector.shape_cast %6 : vector<1x64xf32> to vector<1x1x1x64xf32>
    %8 = vector.broadcast %7 : vector<1x1x1x64xf32> to vector<2x8x8x64xf32>
    %9 = arith.addf %5, %8 : vector<2x8x8x64xf32>
    %cst = arith.constant 0.000000e+00 : f32
    %10 = vector.broadcast %cst : f32 to vector<2x8x1x64xf32>
    %11 = tpu.concatenate %10, %9, %10 in 2 : vector<2x8x1x64xf32>, vector<2x8x8x64xf32>, vector<2x8x1x64xf32> -> vector<2x8x10x64xf32>
    %cst_7 = arith.constant 0.000000e+00 : f32
    %12 = vector.broadcast %cst_7 : f32 to vector<2x1x10x64xf32>
    %13 = tpu.concatenate %12, %11, %12 in 1 : vector<2x1x10x64xf32>, vector<2x8x10x64xf32>, vector<2x1x10x64xf32> -> vector<2x10x10x64xf32>
    %14 = arith.truncf %13 : vector<2x10x10x64xf32> to vector<2x10x10x64xbf16>
    %c0_8 = arith.constant 0 : index
    %c0_9 = arith.constant 0 : index
    %c0_10 = arith.constant 0 : index
    %c0_11 = arith.constant 0 : index
    %15 = vector.load %arg12[%c0_8, %c0_9, %c0_10, %c0_11] : memref<2x10x10x64xbf16, #tpu.memory_space<vmem>>, vector<2x10x10x64xbf16>
    tpu.vector_store %arg12[%c0_8, %c0_9, %c0_10, %c0_11], %14 {strides = array<i32>} : memref<2x10x10x64xbf16, #tpu.memory_space<vmem>>, vector<2x10x10x64xbf16>,
    %c0_12 = arith.constant 0 : index
    %c0_13 = arith.constant 0 : index
    %c0_14 = arith.constant 0 : index
    %c0_15 = arith.constant 0 : index
    %16 = vector.load %arg12[%c0_12, %c0_13, %c0_14, %c0_15] : memref<2x10x10x64xbf16, #tpu.memory_space<vmem>>, vector<2x8x8x64xbf16>
    %c0_16 = arith.constant 0 : index
    %c0_17 = arith.constant 0 : index
    %c1 = arith.constant 1 : index
    %c0_18 = arith.constant 0 : index
    %17 = vector.load %arg12[%c0_16, %c0_17, %c1, %c0_18] : memref<2x10x10x64xbf16, #tpu.memory_space<vmem>>, vector<2x8x8x64xbf16>
    %c0_19 = arith.constant 0 : index
    %c0_20 = arith.constant 0 : index
    %c2 = arith.constant 2 : index
    %c0_21 = arith.constant 0 : index
    %18 = vector.load %arg12[%c0_19, %c0_20, %c2, %c0_21] : memref<2x10x10x64xbf16, #tpu.memory_space<vmem>>, vector<2x8x8x64xbf16>
    %19 = tpu.concatenate %16, %17, %18 in 3 : vector<2x8x8x64xbf16>, vector<2x8x8x64xbf16>, vector<2x8x8x64xbf16> -> vector<2x8x8x192xbf16>
    %20 = vector.shape_cast %19 : vector<2x8x8x192xbf16> to vector<128x192xbf16>
    %c0_22 = arith.constant 0 : index
    %c0_23 = arith.constant 0 : index
    %c0_24 = arith.constant 0 : index
    %21 = vector.load %arg2[%c0_22, %c0_23, %c0_24] : memref<3x192x64xbf16, #tpu.memory_space<vmem>>, vector<1x192x64xbf16>
    %22 = vector.shape_cast %21 : vector<1x192x64xbf16> to vector<192x64xbf16>
    %cst_25 = arith.constant dense<0.000000e+00> : vector<128x64xf32>
    %23 = tpu.matmul %20, %22, %cst_25 {dimension_numbers = #tpu.dot_dimension_numbers<[1], [0], [0], [1], [0, 0, 1, 1], [], []>} : vector<128x192xbf16>, vector<192x64xbf16>, vector<128x64xf32> -> vector<128x64xf32>
    %c0_26 = arith.constant 0 : index
    %c1_27 = arith.constant 1 : index
    %c0_28 = arith.constant 0 : index
    %c0_29 = arith.constant 0 : index
    %24 = vector.load %arg12[%c0_26, %c1_27, %c0_28, %c0_29] : memref<2x10x10x64xbf16, #tpu.memory_space<vmem>>, vector<2x8x8x64xbf16>
    %c0_30 = arith.constant 0 : index
    %c1_31 = arith.constant 1 : index
    %c1_32 = arith.constant 1 : index
    %c0_33 = arith.constant 0 : index
    %25 = vector.load %arg12[%c0_30, %c1_31, %c1_32, %c0_33] : memref<2x10x10x64xbf16, #tpu.memory_space<vmem>>, vector<2x8x8x64xbf16>
    %c0_34 = arith.constant 0 : index
    %c1_35 = arith.constant 1 : index
    %c2_36 = arith.constant 2 : index
    %c0_37 = arith.constant 0 : index
    %26 = vector.load %arg12[%c0_34, %c1_35, %c2_36, %c0_37] : memref<2x10x10x64xbf16, #tpu.memory_space<vmem>>, vector<2x8x8x64xbf16>
    %27 = tpu.concatenate %24, %25, %26 in 3 : vector<2x8x8x64xbf16>, vector<2x8x8x64xbf16>, vector<2x8x8x64xbf16> -> vector<2x8x8x192xbf16>
    %28 = vector.shape_cast %27 : vector<2x8x8x192xbf16> to vector<128x192xbf16>
    %c1_38 = arith.constant 1 : index
    %c0_39 = arith.constant 0 : index
    %c0_40 = arith.constant 0 : index
    %29 = vector.load %arg2[%c1_38, %c0_39, %c0_40] : memref<3x192x64xbf16, #tpu.memory_space<vmem>>, vector<1x192x64xbf16>
    %30 = vector.shape_cast %29 : vector<1x192x64xbf16> to vector<192x64xbf16>
    %cst_41 = arith.constant dense<0.000000e+00> : vector<128x64xf32>
    %31 = tpu.matmul %28, %30, %cst_41 {dimension_numbers = #tpu.dot_dimension_numbers<[1], [0], [0], [1], [0, 0, 1, 1], [], []>} : vector<128x192xbf16>, vector<192x64xbf16>, vector<128x64xf32> -> vector<128x64xf32>
    %32 = arith.addf %23, %31 : vector<128x64xf32>
    %c0_42 = arith.constant 0 : index
    %c2_43 = arith.constant 2 : index
    %c0_44 = arith.constant 0 : index
    %c0_45 = arith.constant 0 : index
    %33 = vector.load %arg12[%c0_42, %c2_43, %c0_44, %c0_45] : memref<2x10x10x64xbf16, #tpu.memory_space<vmem>>, vector<2x8x8x64xbf16>
    %c0_46 = arith.constant 0 : index
    %c2_47 = arith.constant 2 : index
    %c1_48 = arith.constant 1 : index
    %c0_49 = arith.constant 0 : index
    %34 = vector.load %arg12[%c0_46, %c2_47, %c1_48, %c0_49] : memref<2x10x10x64xbf16, #tpu.memory_space<vmem>>, vector<2x8x8x64xbf16>
    %c0_50 = arith.constant 0 : index
    %c2_51 = arith.constant 2 : index
    %c2_52 = arith.constant 2 : index
    %c0_53 = arith.constant 0 : index
    %35 = vector.load %arg12[%c0_50, %c2_51, %c2_52, %c0_53] : memref<2x10x10x64xbf16, #tpu.memory_space<vmem>>, vector<2x8x8x64xbf16>
    %36 = tpu.concatenate %33, %34, %35 in 3 : vector<2x8x8x64xbf16>, vector<2x8x8x64xbf16>, vector<2x8x8x64xbf16> -> vector<2x8x8x192xbf16>
    %37 = vector.shape_cast %36 : vector<2x8x8x192xbf16> to vector<128x192xbf16>
    %c2_54 = arith.constant 2 : index
    %c0_55 = arith.constant 0 : index
    %c0_56 = arith.constant 0 : index
    %38 = vector.load %arg2[%c2_54, %c0_55, %c0_56] : memref<3x192x64xbf16, #tpu.memory_space<vmem>>, vector<1x192x64xbf16>
    %39 = vector.shape_cast %38 : vector<1x192x64xbf16> to vector<192x64xbf16>
    %cst_57 = arith.constant dense<0.000000e+00> : vector<128x64xf32>
    %40 = tpu.matmul %37, %39, %cst_57 {dimension_numbers = #tpu.dot_dimension_numbers<[1], [0], [0], [1], [0, 0, 1, 1], [], []>} : vector<128x192xbf16>, vector<192x64xbf16>, vector<128x64xf32> -> vector<128x64xf32>
    %41 = arith.addf %32, %40 : vector<128x64xf32>
    %cst_58 = arith.constant 0.000000e+00 : f32
    %42 = vector.broadcast %cst_58 : f32 to vector<128x64xf32>
    %43 = arith.cmpf oge, %41, %42 : vector<128x64xf32>
    %c0_59 = arith.constant 0 : index
    %c0_60 = arith.constant 0 : index
    %44 = vector.load %arg6[%c0_59, %c0_60] : memref<1x64xf32, #tpu.memory_space<vmem>>, vector<1x64xf32>
    %45 = vector.broadcast %44 : vector<1x64xf32> to vector<128x64xf32>
    %46 = arith.mulf %41, %45 : vector<128x64xf32>
    %47 = arith.select %43, %41, %46 : vector<128x64xi1>, vector<128x64xf32>
    %48 = vector.shape_cast %47 : vector<128x64xf32> to vector<2x8x8x64xf32>
    %cst_61 = arith.constant 0.000000e+00 : f32
    %49 = vector.broadcast %cst_61 : f32 to vector<2x8x1x64xf32>
    %50 = tpu.concatenate %49, %48, %49 in 2 : vector<2x8x1x64xf32>, vector<2x8x8x64xf32>, vector<2x8x1x64xf32> -> vector<2x8x10x64xf32>
    %cst_62 = arith.constant 0.000000e+00 : f32
    %51 = vector.broadcast %cst_62 : f32 to vector<2x1x10x64xf32>
    %52 = tpu.concatenate %51, %50, %51 in 1 : vector<2x1x10x64xf32>, vector<2x8x10x64xf32>, vector<2x1x10x64xf32> -> vector<2x10x10x64xf32>
    %53 = arith.truncf %52 : vector<2x10x10x64xf32> to vector<2x10x10x64xbf16>
    %c0_63 = arith.constant 0 : index
    %c0_64 = arith.constant 0 : index
    %c0_65 = arith.constant 0 : index
    %c0_66 = arith.constant 0 : index
    %54 = vector.load %arg13[%c0_63, %c0_64, %c0_65, %c0_66] : memref<2x10x10x64xbf16, #tpu.memory_space<vmem>>, vector<2x10x10x64xbf16>
    tpu.vector_store %arg13[%c0_63, %c0_64, %c0_65, %c0_66], %53 {strides = array<i32>} : memref<2x10x10x64xbf16, #tpu.memory_space<vmem>>, vector<2x10x10x64xbf16>,
    %c0_67 = arith.constant 0 : index
    %c0_68 = arith.constant 0 : index
    %c0_69 = arith.constant 0 : index
    %c0_70 = arith.constant 0 : index
    %55 = vector.load %arg13[%c0_67, %c0_68, %c0_69, %c0_70] : memref<2x10x10x64xbf16, #tpu.memory_space<vmem>>, vector<2x8x8x64xbf16>
    %c0_71 = arith.constant 0 : index
    %c0_72 = arith.constant 0 : index
    %c1_73 = arith.constant 1 : index
    %c0_74 = arith.constant 0 : index
    %56 = vector.load %arg13[%c0_71, %c0_72, %c1_73, %c0_74] : memref<2x10x10x64xbf16, #tpu.memory_space<vmem>>, vector<2x8x8x64xbf16>
    %c0_75 = arith.constant 0 : index
    %c0_76 = arith.constant 0 : index
    %c2_77 = arith.constant 2 : index
    %c0_78 = arith.constant 0 : index
    %57 = vector.load %arg13[%c0_75, %c0_76, %c2_77, %c0_78] : memref<2x10x10x64xbf16, #tpu.memory_space<vmem>>, vector<2x8x8x64xbf16>
    %58 = tpu.concatenate %55, %56, %57 in 3 : vector<2x8x8x64xbf16>, vector<2x8x8x64xbf16>, vector<2x8x8x64xbf16> -> vector<2x8x8x192xbf16>
    %59 = vector.shape_cast %58 : vector<2x8x8x192xbf16> to vector<128x192xbf16>
    %c0_79 = arith.constant 0 : index
    %c0_80 = arith.constant 0 : index
    %c0_81 = arith.constant 0 : index
    %60 = vector.load %arg3[%c0_79, %c0_80, %c0_81] : memref<3x192x64xbf16, #tpu.memory_space<vmem>>, vector<1x192x64xbf16>
    %61 = vector.shape_cast %60 : vector<1x192x64xbf16> to vector<192x64xbf16>
    %cst_82 = arith.constant dense<0.000000e+00> : vector<128x64xf32>
    %62 = tpu.matmul %59, %61, %cst_82 {dimension_numbers = #tpu.dot_dimension_numbers<[1], [0], [0], [1], [0, 0, 1, 1], [], []>} : vector<128x192xbf16>, vector<192x64xbf16>, vector<128x64xf32> -> vector<128x64xf32>
    %c0_83 = arith.constant 0 : index
    %c1_84 = arith.constant 1 : index
    %c0_85 = arith.constant 0 : index
    %c0_86 = arith.constant 0 : index
    %63 = vector.load %arg13[%c0_83, %c1_84, %c0_85, %c0_86] : memref<2x10x10x64xbf16, #tpu.memory_space<vmem>>, vector<2x8x8x64xbf16>
    %c0_87 = arith.constant 0 : index
    %c1_88 = arith.constant 1 : index
    %c1_89 = arith.constant 1 : index
    %c0_90 = arith.constant 0 : index
    %64 = vector.load %arg13[%c0_87, %c1_88, %c1_89, %c0_90] : memref<2x10x10x64xbf16, #tpu.memory_space<vmem>>, vector<2x8x8x64xbf16>
    %c0_91 = arith.constant 0 : index
    %c1_92 = arith.constant 1 : index
    %c2_93 = arith.constant 2 : index
    %c0_94 = arith.constant 0 : index
    %65 = vector.load %arg13[%c0_91, %c1_92, %c2_93, %c0_94] : memref<2x10x10x64xbf16, #tpu.memory_space<vmem>>, vector<2x8x8x64xbf16>
    %66 = tpu.concatenate %63, %64, %65 in 3 : vector<2x8x8x64xbf16>, vector<2x8x8x64xbf16>, vector<2x8x8x64xbf16> -> vector<2x8x8x192xbf16>
    %67 = vector.shape_cast %66 : vector<2x8x8x192xbf16> to vector<128x192xbf16>
    %c1_95 = arith.constant 1 : index
    %c0_96 = arith.constant 0 : index
    %c0_97 = arith.constant 0 : index
    %68 = vector.load %arg3[%c1_95, %c0_96, %c0_97] : memref<3x192x64xbf16, #tpu.memory_space<vmem>>, vector<1x192x64xbf16>
    %69 = vector.shape_cast %68 : vector<1x192x64xbf16> to vector<192x64xbf16>
    %cst_98 = arith.constant dense<0.000000e+00> : vector<128x64xf32>
    %70 = tpu.matmul %67, %69, %cst_98 {dimension_numbers = #tpu.dot_dimension_numbers<[1], [0], [0], [1], [0, 0, 1, 1], [], []>} : vector<128x192xbf16>, vector<192x64xbf16>, vector<128x64xf32> -> vector<128x64xf32>
    %71 = arith.addf %62, %70 : vector<128x64xf32>
    %c0_99 = arith.constant 0 : index
    %c2_100 = arith.constant 2 : index
    %c0_101 = arith.constant 0 : index
    %c0_102 = arith.constant 0 : index
    %72 = vector.load %arg13[%c0_99, %c2_100, %c0_101, %c0_102] : memref<2x10x10x64xbf16, #tpu.memory_space<vmem>>, vector<2x8x8x64xbf16>
    %c0_103 = arith.constant 0 : index
    %c2_104 = arith.constant 2 : index
    %c1_105 = arith.constant 1 : index
    %c0_106 = arith.constant 0 : index
    %73 = vector.load %arg13[%c0_103, %c2_104, %c1_105, %c0_106] : memref<2x10x10x64xbf16, #tpu.memory_space<vmem>>, vector<2x8x8x64xbf16>
    %c0_107 = arith.constant 0 : index
    %c2_108 = arith.constant 2 : index
    %c2_109 = arith.constant 2 : index
    %c0_110 = arith.constant 0 : index
    %74 = vector.load %arg13[%c0_107, %c2_108, %c2_109, %c0_110] : memref<2x10x10x64xbf16, #tpu.memory_space<vmem>>, vector<2x8x8x64xbf16>
    %75 = tpu.concatenate %72, %73, %74 in 3 : vector<2x8x8x64xbf16>, vector<2x8x8x64xbf16>, vector<2x8x8x64xbf16> -> vector<2x8x8x192xbf16>
    %76 = vector.shape_cast %75 : vector<2x8x8x192xbf16> to vector<128x192xbf16>
    %c2_111 = arith.constant 2 : index
    %c0_112 = arith.constant 0 : index
    %c0_113 = arith.constant 0 : index
    %77 = vector.load %arg3[%c2_111, %c0_112, %c0_113] : memref<3x192x64xbf16, #tpu.memory_space<vmem>>, vector<1x192x64xbf16>
    %78 = vector.shape_cast %77 : vector<1x192x64xbf16> to vector<192x64xbf16>
    %cst_114 = arith.constant dense<0.000000e+00> : vector<128x64xf32>
    %79 = tpu.matmul %76, %78, %cst_114 {dimension_numbers = #tpu.dot_dimension_numbers<[1], [0], [0], [1], [0, 0, 1, 1], [], []>} : vector<128x192xbf16>, vector<192x64xbf16>, vector<128x64xf32> -> vector<128x64xf32>
    %80 = arith.addf %71, %79 : vector<128x64xf32>
    %c0_115 = arith.constant 0 : index
    %c0_116 = arith.constant 0 : index
    %81 = vector.load %arg7[%c0_115, %c0_116] : memref<1x64xf32, #tpu.memory_space<vmem>>, vector<1x64xf32>
    %82 = vector.broadcast %81 : vector<1x64xf32> to vector<128x64xf32>
    %83 = arith.mulf %80, %82 : vector<128x64xf32>
    %c0_117 = arith.constant 0 : index
    %c0_118 = arith.constant 0 : index
    %84 = vector.load %arg8[%c0_117, %c0_118] : memref<1x64xf32, #tpu.memory_space<vmem>>, vector<1x64xf32>
    %85 = vector.broadcast %84 : vector<1x64xf32> to vector<128x64xf32>
    %86 = arith.addf %83, %85 : vector<128x64xf32>
    %87 = vector.shape_cast %0 : vector<2x8x8x64xbf16> to vector<2x64x64xbf16>
    %88 = arith.extf %87 : vector<2x64x64xbf16> to vector<2x64x64xf32>
    %89 = vector.shape_cast %86 : vector<128x64xf32> to vector<2x64x64xf32>
    %cst_119 = arith.constant dense<0.000000e+00> : vector<2x64xf32>
    %90 = vector.multi_reduction <add>, %89, %cst_119 [1] : vector<2x64x64xf32> to vector<2x64xf32>
    %cst_120 = arith.constant 6.400000e+01 : f32
    %91 = vector.broadcast %cst_120 : f32 to vector<2x64xf32>
    %92 = arith.divf %90, %91 : vector<2x64xf32>
    %93 = arith.truncf %92 : vector<2x64xf32> to vector<2x64xbf16>
    %c0_121 = arith.constant 0 : index
    %c0_122 = arith.constant 0 : index
    %94 = vector.load %arg9[%c0_121, %c0_122] : memref<64x4xbf16, #tpu.memory_space<vmem>>, vector<64x4xbf16>
    %cst_123 = arith.constant dense<0.000000e+00> : vector<2x4xf32>
    %95 = tpu.matmul %93, %94, %cst_123 {dimension_numbers = #tpu.dot_dimension_numbers<[1], [0], [0], [1], [0, 0, 1, 1], [], []>} : vector<2x64xbf16>, vector<64x4xbf16>, vector<2x4xf32> -> vector<2x4xf32>
    %cst_124 = arith.constant 0.000000e+00 : f32
    %96 = vector.broadcast %cst_124 : f32 to vector<2x4xf32>
    %97 = arith.maximumf %95, %96 : vector<2x4xf32>
    %98 = arith.truncf %97 : vector<2x4xf32> to vector<2x4xbf16>
    %c0_125 = arith.constant 0 : index
    %c0_126 = arith.constant 0 : index
    %99 = vector.load %arg10[%c0_125, %c0_126] : memref<4x64xbf16, #tpu.memory_space<vmem>>, vector<4x64xbf16>
    %cst_127 = arith.constant dense<0.000000e+00> : vector<2x64xf32>
    %100 = tpu.matmul %98, %99, %cst_127 {dimension_numbers = #tpu.dot_dimension_numbers<[1], [0], [0], [1], [0, 0, 1, 1], [], []>} : vector<2x4xbf16>, vector<4x64xbf16>, vector<2x64xf32> -> vector<2x64xf32>
    %cst_128 = arith.constant 0.000000e+00 : f32
    %101 = vector.broadcast %cst_128 : f32 to vector<2x64xf32>
    %102 = arith.subf %101, %100 : vector<2x64xf32>
    %103 = math.exp %102 : vector<2x64xf32>
    %cst_129 = arith.constant 1.000000e+00 : f32
    %104 = vector.broadcast %cst_129 : f32 to vector<2x64xf32>
    %105 = arith.addf %104, %103 : vector<2x64xf32>
    %cst_130 = arith.constant 1.000000e+00 : f32
    %106 = vector.broadcast %cst_130 : f32 to vector<2x64xf32>
    %107 = arith.divf %106, %105 : vector<2x64xf32>
    %108 = vector.shape_cast %107 : vector<2x64xf32> to vector<2x1x64xf32>
    %109 = vector.broadcast %108 : vector<2x1x64xf32> to vector<2x64x64xf32>
    %110 = arith.mulf %89, %109 : vector<2x64x64xf32>
    %111 = arith.addf %110, %88 : vector<2x64x64xf32>
    %112 = arith.truncf %111 : vector<2x64x64xf32> to vector<2x64x64xbf16>
    %c0_131 = arith.constant 0 : index
    %c0_132 = arith.constant 0 : index
    %c0_133 = arith.constant 0 : index
    %113 = vector.load %arg11[%c0_131, %c0_132, %c0_133] : memref<2x64x64xbf16, #tpu.memory_space<vmem>>, vector<2x64x64xbf16>
    tpu.vector_store %arg11[%c0_131, %c0_132, %c0_133], %112 {strides = array<i32>} : memref<2x64x64xbf16, #tpu.memory_space<vmem>>, vector<2x64x64xbf16>,
    return
  }
  func.func @transform_0(%arg0: i32) -> (i32, i32, i32, i32) {
    %c0_i32 = arith.constant 0 : i32
    %c0_i32_0 = arith.constant 0 : i32
    %c0_i32_1 = arith.constant 0 : i32
    %c0_i32_2 = arith.constant 0 : i32
    return %arg0, %c0_i32, %c0_i32_0, %c0_i32_1 : i32, i32, i32, i32
  }
  func.func @transform_1(%arg0: i32) -> (i32, i32, i32) {
    %c0_i32 = arith.constant 0 : i32
    %c0_i32_0 = arith.constant 0 : i32
    %c0_i32_1 = arith.constant 0 : i32
    %c0_i32_2 = arith.constant 0 : i32
    return %c0_i32, %c0_i32_0, %c0_i32_1 : i32, i32, i32
  }
  func.func @transform_2(%arg0: i32) -> (i32, i32, i32) {
    %c0_i32 = arith.constant 0 : i32
    %c0_i32_0 = arith.constant 0 : i32
    %c0_i32_1 = arith.constant 0 : i32
    %c0_i32_2 = arith.constant 0 : i32
    return %c0_i32, %c0_i32_0, %c0_i32_1 : i32, i32, i32
  }
  func.func @transform_3(%arg0: i32) -> (i32, i32) {
    %c0_i32 = arith.constant 0 : i32
    %c0_i32_0 = arith.constant 0 : i32
    %c0_i32_1 = arith.constant 0 : i32
    return %c0_i32, %c0_i32_0 : i32, i32
  }
  func.func @transform_4(%arg0: i32) -> (i32, i32) {
    %c0_i32 = arith.constant 0 : i32
    %c0_i32_0 = arith.constant 0 : i32
    %c0_i32_1 = arith.constant 0 : i32
    return %c0_i32, %c0_i32_0 : i32, i32
  }
  func.func @transform_5(%arg0: i32) -> (i32, i32) {
    %c0_i32 = arith.constant 0 : i32
    %c0_i32_0 = arith.constant 0 : i32
    %c0_i32_1 = arith.constant 0 : i32
    return %c0_i32, %c0_i32_0 : i32, i32
  }
  func.func @transform_6(%arg0: i32) -> (i32, i32) {
    %c0_i32 = arith.constant 0 : i32
    %c0_i32_0 = arith.constant 0 : i32
    %c0_i32_1 = arith.constant 0 : i32
    return %c0_i32, %c0_i32_0 : i32, i32
  }
  func.func @transform_7(%arg0: i32) -> (i32, i32) {
    %c0_i32 = arith.constant 0 : i32
    %c0_i32_0 = arith.constant 0 : i32
    %c0_i32_1 = arith.constant 0 : i32
    return %c0_i32, %c0_i32_0 : i32, i32
  }
  func.func @transform_8(%arg0: i32) -> (i32, i32) {
    %c0_i32 = arith.constant 0 : i32
    %c0_i32_0 = arith.constant 0 : i32
    %c0_i32_1 = arith.constant 0 : i32
    return %c0_i32, %c0_i32_0 : i32, i32
  }
  func.func @transform_9(%arg0: i32) -> (i32, i32) {
    %c0_i32 = arith.constant 0 : i32
    %c0_i32_0 = arith.constant 0 : i32
    %c0_i32_1 = arith.constant 0 : i32
    return %c0_i32, %c0_i32_0 : i32, i32
  }
  func.func @transform_10(%arg0: i32) -> (i32, i32, i32) {
    %c0_i32 = arith.constant 0 : i32
    %c0_i32_0 = arith.constant 0 : i32
    %c0_i32_1 = arith.constant 0 : i32
    return %arg0, %c0_i32, %c0_i32_0 : i32, i32, i32
  }
}

</mosaic_0001>

<bundles_post_ra>
// kernel: fwd.4
= control target key start
LH: loop header
LB: loop body
LE: loop exit
PB: predicated region body
PF: predicated region fallthrough
CT: control target
= control target key end

     0   :  { %v2818_v0 = vmov 0   ;;  %vm260_vm0 = vcmask 523264   ;;  %vm1761_vm1 = vcmask 261120   ;;  %vm2820_vm2 = vmmov 0   ;;  %s3924_s2 = inlined_call_operand.vmem [shape: bf16[3,192,64], index: 2, kind: input, shape index: {}]   ;;  %s3925_s0 = inlined_call_operand.vmem [shape: bf16[2,9,9,256], index: 0, kind: input, shape index: {}]   ;;  %s3926_s7 = inlined_call_operand.vmem [shape: bf16[32,64], index: 7, kind: input, shape index: {}]   ;;  %s3927_s1 = inlined_call_operand.vmem [shape: bf16[2,8,8,32], index: 1, kind: input, shape index: {}]   ;;  %s3928_s5 = inlined_call_operand.vmem [shape: bf16[64,4], index: 5, kind: input, shape index: {}]   ;;  %s3929_s3 = inlined_call_operand.vmem [shape: f32[1,64], index: 3, kind: input, shape index: {}]   ;;  %s3930_s4 = inlined_call_operand.vmem [shape: f32[1,64], index: 4, kind: input, shape index: {}]   ;;  %s3931_s6 = inlined_call_operand.vmem [shape: bf16[4,64], index: 6, kind: input, shape index: {}]   ;;  %s3932_s8 = inlined_call_operand.vmem [shape: f32[1,64], index: 8, kind: input, shape index: {}]   ;;  %s3933_s9 = inlined_call_operand.vmem [shape: f32[1,64], index: 9, kind: input, shape index: {}]   ;;  %s3934_s10 = inlined_call_operand.vmem [shape: bf16[2,64,64], index: 10, kind: output, shape index: {}]  }
   0x1   :  { %999 = vmatprep.subr.bf16.mxu0 %v2818_v0  ;;  %v2881_v1 = vld [vmem:[%s3924_s2] sm:$0xff]   ;;  %782 = vmatprep.subr.bf16.mxu1 %v2818_v0  ;;  %v2888_v2 = vld [vmem:[%s3924_s2 + $0x8] sm:$0xff]   ;;  %v2895_v3 = vld [vmem:[%s3924_s2 + $0x10] sm:$0xff]   ;;  %vm1988_vm3 = vcmask 1041409   ;;  %vm2065_vm4 = vcmask 1041408   ;;  %vm2061_vm5 = vcmask 31744  }
   0x2   :  { %1000 = vmatpush1.bf16.msra.mxu0 %v2881_v1  ;;  %v2700_v4 = vld [vmem:[%s3924_s2 + $0x60] sm:$0xff]   ;;  %v2904_v5 = vld [vmem:[%s3924_s2 + $0x18] sm:$0xff]   ;;  %v2702_v6 = vld [vmem:[%s3924_s2 + $0x68] sm:$0xff]   ;;  %vm2244_vm6 = vcmask 519168  }
   0x3   :  { %1001 = vmatprep.subr.bf16.mxu0 %v2818_v0  ;;  %783 = vmatpush1.bf16.msra.mxu1 %v2700_v4  ;;  %v2915_v7 = vld [vmem:[%s3924_s2 + $0x20] sm:$0xff]   ;;  %v2704_v8 = vld [vmem:[%s3924_s2 + $0x70] sm:$0xff]   ;;  %v2926_v9 = vld [vmem:[%s3924_s2 + $0x28] sm:$0xff]  }
   0x4   :  { %784 = vmatprep.subr.bf16.mxu1 %v2818_v0  ;;  %v2706_v10 = vld [vmem:[%s3924_s2 + $0x78] sm:$0xff]   ;;  %v2934_v11 = vld [vmem:[%s3925_s0] sm:$0xf]  ;;  %v2939_v12 = vld [vmem:[%s3925_s0 + $0x10] sm:$0xf] }
   0x5   :  { %v52_v13 = vld [vmem:[%s3925_s0 + $0x8] sm:$0x1]  ;;  %v53_v14 = vld [vmem:[%s3925_s0 + $0x18] sm:$0x1]  ;;  %v2955_v17 = vld [vmem:[%s3924_s2 + $0x30] sm:$0xff]  }
   0x6   :  { %1002 = vmatpush1.bf16.msra.mxu0 %v2888_v2  ;;  %v2265_v15 = vcombine.low %v2934_v11, %v52_v13  ;;  %v2266_v16 = vcombine.low %v2939_v12, %v53_v14  ;;  %v2708_v22 = vld [vmem:[%s3924_s2 + $0x80] sm:$0xff]   ;;  %v2971_v26 = vld [vmem:[%s3925_s0 + $0x30] sm:$0xf]  ;;  %v54_v27 = vld [vmem:[%s3925_s0 + $0x28] sm:$0x1] }
   0x7   :  { %1003 = vmatprep.subr.bf16.mxu0 %v2818_v0  ;;  %785 = vmatpush1.bf16.msra.mxu1 %v2702_v6  ;;  %v2964_v24 = vld [vmem:[%s3925_s0 + $0x20] sm:$0xf]  ;;  %v55_v29 = vld [vmem:[%s3925_s0 + $0x38] sm:$0x1]  ;;  %v2713_v32 = vld [vmem:[%s3924_s2 + $0x88] sm:$0xff]  }
   0x8   :  { %786 = vmatprep.subr.bf16.mxu1 %v2818_v0  ;;  %v149_v18 = vshrl.u32 %v2265_v15, 16  ;;  %v151_v19 = vshll.u32 %v2265_v15, 16  ;;  %v156_v20 = vshrl.u32 %v2266_v16, 16  ;;  %v158_v21 = vshll.u32 %v2266_v16, 16  ;;  %v2982_v30 = vld [vmem:[%s3924_s2 + $0x38] sm:$0xff]   ;;  %v2995_v36 = vld [vmem:[%s3924_s2 + $0x40] sm:$0xff]  }
   0x9   :  { %v2267_v34 = vcombine.low %v2964_v24, %v54_v27  ;;  %v2268_v35 = vcombine.low %v2971_v26, %v55_v29  ;;  %v2715_v37 = vld [vmem:[%s3924_s2 + $0x90] sm:$0xff]   ;;  %v3007_v40 = vld [vmem:[%s3925_s0 + $0x40] sm:$0xf]  ;;  %v56_v42 = vld [vmem:[%s3925_s0 + $0x48] sm:$0x1] }
   0xa   :  { %1004 = vmatpush1.bf16.msra.mxu0 %v2895_v3  ;;  %v153_v23 = vrot.slane %v151_v19, 1  ;;  %v160_v25 = vrot.slane %v158_v21, 1  ;;  %v3012_v41 = vld [vmem:[%s3925_s0 + $0x50] sm:$0xf]  ;;  %v57_v43 = vld [vmem:[%s3925_s0 + $0x58] sm:$0x1]  ;;  %v3032_v50 = vcombine.low %v3007_v40, %v56_v42  ;;  %v2357_v21 = vcombine.low %v2934_v11, %v2939_v12 }
   0xb   :  { %1005 = vmatprep.subr.bf16.mxu0 %v2818_v0  ;;  %787 = vmatpush1.bf16.msra.mxu1 %v2704_v8  ;;  %v165_v38 = vshll.u32 %v2267_v34, 16  ;;  %v172_v39 = vshll.u32 %v2268_v35, 16  ;;  %v3024_v44 = vld [vmem:[%s3924_s2 + $0x48] sm:$0xff]   ;;  %v163_v45 = vshrl.u32 %v2267_v34, 16  ;;  %v170_v46 = vshrl.u32 %v2268_v35, 16  ;;  %v2719_v47 = vld [vmem:[%s3924_s2 + $0x98] sm:$0xff]  }
   0xc   :  { %788 = vmatprep.subr.bf16.mxu1 %v2818_v0  ;;  %v154_v28 = vor.u32 %v153_v23, %v149_v18  ;;  %v161_v31 = vor.u32 %v160_v25, %v156_v20  ;;  %v3035_v51 = vcombine.low %v3012_v41, %v57_v43  ;;  %v3040_v52 = vld [vmem:[%s3925_s0 + $0x4] sm:$0xf]  ;;  %v3045_v53 = vld [vmem:[%s3924_s2 + $0x50] sm:$0xff]   ;;  %v365_v56 = vld [vmem:[%s3925_s0 + $0xc] sm:$0x1]  ;;  %v179_v63 = vshll.u32 %v3032_v50, 16 }
   0xd   :  { %v167_v48 = vrot.slane %v165_v38, 1  ;;  %v174_v49 = vrot.slane %v172_v39, 1  ;;  %v2721_v54 = vld [vmem:[%s3924_s2 + $0xa0] sm:$0xff]   ;;  %v3053_v55 = vld [vmem:[%s3925_s0 + $0x14] sm:$0xf]  ;;  %v2281_v58 = vcombine.low %v3040_v52, %v365_v56  ;;  %v3069_v60 = vld [vmem:[%s3924_s2 + $0x58] sm:$0xff]  }
   0xe   :  { %1006 = vmatpush1.bf16.msra.mxu0 %v2904_v5  ;;  %v2358_v33 = vcombine.low %v154_v28, %v161_v31  ;;  %v366_v57 = vld [vmem:[%s3925_s0 + $0x1c] sm:$0x1]  ;;  %v186_v4 = vshll.u32 %v3035_v51, 16  ;;  %v2726_v6 = vld [vmem:[%s3924_s2 + $0xa8] sm:$0xff]   ;;  %v3079_v8 = vld [vmem:[%s3925_s0 + $0x60] sm:$0xf] }
   0xf   :  { %1007 = vmatprep.subr.bf16.mxu0 %v2818_v0  ;;  %789 = vmatpush1.bf16.msra.mxu1 %v2706_v10  ;;  %v2282_v59 = vcombine.low %v3053_v55, %v366_v57  ;;  %v168_v61 = vor.u32 %v167_v48, %v163_v45  ;;  %v175_v62 = vor.u32 %v174_v49, %v170_v46  ;;  %v58_v10 = vld [vmem:[%s3925_s0 + $0x68] sm:$0x1]  ;;  %v3087_v13 = vld [vmem:[%s3925_s0 + $0x70] sm:$0xf]  ;;  %v59_v14 = vld [vmem:[%s3925_s0 + $0x78] sm:$0x1] }
  0x10   :  { %790 = vmatprep.subr.bf16.mxu1 %v2818_v0  ;;  %2385 = vmatprep.mubr.msk.bf16.mxu0 %vm260_vm0, %v2358_v33  ;;  %v462_v15 = vshrl.u32 %v2281_v58, 16  ;;  %v464_v16 = vshll.u32 %v2281_v58, 16  ;;  %v3096_v20 = vld [vmem:[%s3925_s0 + $0x24] sm:$0xf]  ;;  %v3105_v23 = vld [vmem:[%s3925_s0 + $0x34] sm:$0xf]  ;;  %v3116_v12 = vcombine.low %v3079_v8, %v58_v10  ;;  %v3125_v39 = vcombine.low %v3087_v13, %v59_v14 }
  0x11   :  { %v469_v18 = vshrl.u32 %v2282_v59, 16  ;;  %v471_v19 = vshll.u32 %v2282_v59, 16  ;;  %v367_v25 = vld [vmem:[%s3925_s0 + $0x2c] sm:$0x1]  ;;  %v2360_v27 = vcombine.low %v168_v61, %v175_v62  ;;  %v177_v28 = vshrl.u32 %v3032_v50, 16  ;;  %v2712_v35 = vld [vmem:[%s3924_s2 + $0xc0] sm:$0xff]  }
  0x12   :  { %1008 = vmatpush1.bf16.msra.mxu0 %v2915_v7  ;;  %v184_v29 = vshrl.u32 %v3035_v51, 16  ;;  %v368_v11 = vld [vmem:[%s3925_s0 + $0x3c] sm:$0x1]  ;;  %v2283_v33 = vcombine.low %v3096_v20, %v367_v25  ;;  %v188_v38 = vrot.slane %v186_v4, 1  ;;  %v2728_v43 = vld [vmem:[%s3924_s2 + $0xb0] sm:$0xff]   ;;  %v193_v57 = vshll.u32 %v3116_v12, 16 }
  0x13   :  { %1009 = vmatprep.subr.bf16.mxu0 %v2818_v0  ;;  %791 = vmatpush1.bf16.msra.mxu1 %v2708_v22  ;;  %v466_v22 = vrot.slane %v464_v16, 1  ;;  %v473_v31 = vrot.slane %v471_v19, 1  ;;  %v2284_v34 = vcombine.low %v3105_v23, %v368_v11  ;;  %v3138_v49 = vld [vmem:[%s3925_s0 + $0x90] sm:$0xf]  ;;  %v3143_v50 = vld [vmem:[%s3925_s0 + $0xa0] sm:$0xf]  ;;  %v2359_v14 = vcombine.low %v2964_v24, %v2971_v26 }
  0x14   :  { %792 = vmatprep.subr.bf16.mxu1 %v2818_v0  ;;  %v476_v45 = vshrl.u32 %v2283_v33, 16  ;;  %v478_v46 = vshll.u32 %v2283_v33, 16  ;;  %v60_v51 = vld [vmem:[%s3925_s0 + $0x98] sm:$0x1]  ;;  %v3152_v59 = vld [vmem:[%s3925_s0 + $0x44] sm:$0xf]  ;;  %v189_v62 = vor.u32 %v188_v38, %v184_v29  ;;  %v2321_v38 = vcombine.low %v3040_v52, %v3053_v55 }
  0x15   :  { %v474_v42 = vor.u32 %v473_v31, %v469_v18  ;;  %v485_v56 = vshll.u32 %v2284_v34, 16  ;;  %v61_v4 = vld [vmem:[%s3925_s0 + $0xa8] sm:$0x1]  ;;  %v3162_v10 = vld [vmem:[%s3925_s0 + $0x54] sm:$0xf]  ;;  %v3186_v29 = vcombine.low %v3138_v49, %v60_v51  ;;  %v2361_v51 = vcombine.low %v3007_v40, %v3012_v41 }
  0x16   :  { %1010 = vmatpush1.bf16.msra.mxu0 %v2926_v9  ;;  %v480_v58 = vrot.slane %v478_v46, 1  ;;  %v369_v18 = vld [vmem:[%s3925_s0 + $0x4c] sm:$0x1]  ;;  %v370_v19 = vld [vmem:[%s3925_s0 + $0x5c] sm:$0x1]  ;;  %v2720_v25 = vld [vmem:[%s3924_s2 + $0xd0] sm:$0xff]   ;;  %v3189_v31 = vcombine.low %v3143_v50, %v61_v4 }
  0x17   :  { %1011 = vmatprep.subr.bf16.mxu0 %v2818_v0  ;;  %793 = vmatpush1.bf16.msra.mxu1 %v2713_v32  ;;  %v467_v32 = vor.u32 %v466_v22, %v462_v15  ;;  %v2733_v15 = vld [vmem:[%s3924_s2 + $0xb8] sm:$0xff]   ;;  %v2285_v26 = vcombine.low %v3152_v59, %v369_v18  ;;  %v2286_v22 = vcombine.low %v3162_v10, %v370_v19  ;;  %v3199_v33 = vld [vmem:[%s3925_s0 + $0xc0] sm:$0xf]  ;;  %v371_v52 = vld [vmem:[%s3925_s0 + $0x6c] sm:$0x1] }
  0x18   :  { %794 = vmatprep.subr.bf16.mxu1 %v2818_v0  ;;  %v481_v16 = vor.u32 %v480_v58, %v476_v45  ;;  %v3218_v45 = vld [vmem:[%s3925_s0 + $0x74] sm:$0xf]  ;;  %v372_v55 = vld [vmem:[%s3925_s0 + $0x7c] sm:$0x1] }
  0x19   :  { %v2322_v48 = vcombine.low %v467_v32, %v474_v42  ;;  %v3194_v32 = vld [vmem:[%s3925_s0 + $0xb0] sm:$0xf]  ;;  %v499_v42 = vshll.u32 %v2286_v22, 16  ;;  %v2724_v58 = vld [vmem:[%s3924_s2 + $0xd8] sm:$0xff]   ;;  %v2288_v4 = vcombine.low %v3218_v45, %v372_v55 }
  0x1a   :  { %1012 = vmatpush1.bf16.msra.mxu0 %v2955_v17 }
  0x1b   :  { %1013 = vmatprep.subr.bf16.mxu0 %v2818_v0  ;;  %795 = vmatpush1.bf16.msra.mxu1 %v2715_v37  ;;  %v181_v37 = vrot.slane %v179_v63, 1  ;;  %v200_v63 = vshll.u32 %v3125_v39, 16 }
  0x1c   :  { %796 = vmatprep.subr.bf16.mxu1 %v2818_v0  ;;  %2349 = vmatprep.mubr.msk.bf16.mxu1 %vm260_vm0, %v2322_v48  ;;  %v497_v48 = vshrl.u32 %v2286_v22, 16  ;;  %v3255_v22 = vld [vmem:[%s3925_s0 + $0x94] sm:$0xf] }
  0x1d   :  { %v182_v61 = vor.u32 %v181_v37, %v177_v28  ;;  %v198_v28 = vshrl.u32 %v3125_v39, 16  ;;  %v492_v37 = vshll.u32 %v2285_v26, 16  ;;  %v490_v39 = vshrl.u32 %v2285_v26, 16 }
  0x1e   :  { %1014 = vmatpush1.bf16.msra.mxu0 %v2982_v30  ;;  %v513_v26 = vshll.u32 %v2288_v4, 16 }
  0x1f   :  { %1015 = vmatprep.subr.bf16.mxu0 %v2818_v0  ;;  %797 = vmatpush1.bf16.msra.mxu1 %v2719_v47  ;;  %v2714_v47 = vld [vmem:[%s3924_s2 + $0xc8] sm:$0xff]   ;;  %v2362_v11 = vcombine.low %v182_v61, %v189_v62 }
  0x20   :  { %798 = vmatprep.subr.bf16.mxu1 %v2818_v0 }
  0x22   :  { %1016 = vmatpush1.bf16.msra.mxu0 %v2995_v36 }
  0x23   :  { %1017 = vmatprep.subr.bf16.mxu0 %v2818_v0  ;;  %799 = vmatpush1.bf16.msra.mxu1 %v2721_v54  ;;  %v483_v54 = vshrl.u32 %v2284_v34, 16  ;;  %v62_v34 = vld [vmem:[%s3925_s0 + $0xb8] sm:$0x1] }
  0x24   :  { %800 = vmatprep.subr.bf16.mxu1 %v2818_v0  ;;  %v3238_v40 = vcombine.low %v3194_v32, %v62_v34 }
  0x26   :  { %1018 = vmatpush1.bf16.msra.mxu0 %v3024_v44  ;;  %v219_v55 = vshrl.u32 %v3238_v40, 16 }
  0x27   :  { %1019 = vmatprep.subr.bf16.mxu0 %v2818_v0  ;;  %801 = vmatpush1.bf16.msra.mxu1 %v2726_v6  ;;  %v487_v6 = vrot.slane %v485_v56, 1  ;;  %v214_v56 = vshll.u32 %v3189_v31, 16 }
  0x28   :  { %802 = vmatprep.subr.bf16.mxu1 %v2818_v0 }
  0x29   :  { %v488_v24 = vor.u32 %v487_v6, %v483_v54  ;;  %v207_v54 = vshll.u32 %v3186_v29, 16  ;;  %v2727_v6 = vld [vmem:[%s3924_s2 + $0xe0] sm:$0xff]  }
  0x2a   :  { %1020 = vmatpush1.bf16.msra.mxu0 %v3045_v53 }
  0x2b   :  { %1021 = vmatprep.subr.bf16.mxu0 %v2818_v0  ;;  %803 = vmatpush1.bf16.msra.mxu1 %v2728_v43  ;;  %v3213_v43 = vld [vmem:[%s3925_s0 + $0x64] sm:$0xf]  ;;  %v2324_v46 = vcombine.low %v481_v16, %v488_v24  ;;  %v209_v19 = vrot.slane %v207_v54, 1  ;;  %v216_v24 = vrot.slane %v214_v56, 1 }
  0x2c   :  { %804 = vmatprep.subr.bf16.mxu1 %v2818_v0 }
  0x2e   :  { %1022 = vmatpush1.bf16.msra.mxu0 %v3069_v60 }
  0x2f   :  { %1530 = vmatprep.subr.bf16.mxu0 %v2818_v0  ;;  %805 = vmatpush1.bf16.msra.mxu1 %v2733_v15 }
  0x30   :  { %2616 = vmatprep.subr.bf16.mxu1 %v2818_v0 }
  0x31   :  { %1032 = vmatmul.mubr.bf16.vlgmr.msra.gmra.mrb[0].mxu0 %v2357_v21  ;;  %v191_v21 = vshrl.u32 %v3116_v12, 16  ;;  %v202_v12 = vrot.slane %v200_v63, 1  ;;  %v2287_v63 = vcombine.low %v3213_v43, %v371_v52  ;;  %v65_v52 = vld [vmem:[%s3925_s0 + $0xe8] sm:$0x1] }
  0x32   :  { %1531 = vmatpush1.bf16.msra.mxu0 %v2712_v35  ;;  %2386 = vmatprep.mubr.msk.bf16.mxu0 %vm260_vm0, %v2360_v27  ;;  %v195_v27 = vrot.slane %v193_v57, 1  ;;  %v63_v35 = vld [vmem:[%s3925_s0 + $0xc8] sm:$0x1]  ;;  %v501_v57 = vrot.slane %v499_v42, 1 }
  0x33   :  { %1532 = vmatprep.subr.bf16.mxu0 %v2818_v0  ;;  %v203_v62 = vor.u32 %v202_v12, %v198_v28  ;;  %815 = vmatmul.mubr.bf16.vlgmr.msra.gmra.mrb[0].mxu1 %v2321_v38  ;;  %v3241_v41 = vcombine.low %v3199_v33, %v63_v35  ;;  %v506_v18 = vshll.u32 %v2287_v63, 16  ;;  %v373_v28 = vld [vmem:[%s3925_s0 + $0x9c] sm:$0x1]  ;;  %v511_v35 = vshrl.u32 %v2288_v4, 16  ;;  %v2732_v38 = vld [vmem:[%s3924_s2 + $0xe8] sm:$0xff]  }
  0x34   :  { %v196_v61 = vor.u32 %v195_v27, %v191_v21  ;;  %2350 = vmatprep.mubr.msk.bf16.mxu1 %vm260_vm0, %v2324_v46  ;;  %v502_v16 = vor.u32 %v501_v57, %v497_v48  ;;  %2628 = vmatpush1.bf16.msra.mxu1 %v2881_v1  ;;  %v212_v21 = vshrl.u32 %v3189_v31, 16  ;;  %v2323_v27 = vcombine.low %v3096_v20, %v3105_v23  ;;  %v3262_v1 = vld [vmem:[%s3925_s0 + $0xa4] sm:$0xf]  ;;  %v64_v48 = vld [vmem:[%s3925_s0 + $0xd8] sm:$0x1] }
  0x35   :  { %2617 = vmatprep.subr.bf16.mxu1 %v2818_v0  ;;  %v221_v31 = vshll.u32 %v3238_v40, 16  ;;  %v504_v20 = vshrl.u32 %v2287_v63, 16  ;;  %v3274_v23 = vcombine.low %v3255_v22, %v373_v28  ;;  %v508_v34 = vrot.slane %v506_v18, 1  ;;  %v3308_v63 = vld [vmem:[%s3925_s0 + $0xb4] sm:$0xf] }
  0x36   :  { %1533 = vmatpush1.bf16.msra.mxu0 %v2714_v47  ;;  %v494_v47 = vrot.slane %v492_v37, 1  ;;  %v515_v37 = vrot.slane %v513_v26, 1  ;;  %v217_v46 = vor.u32 %v216_v24, %v212_v21  ;;  %v2363_v40 = vcombine.low %v3079_v8, %v3087_v13  ;;  %v376_v8 = vld [vmem:[%s3925_s0 + $0xcc] sm:$0x1]  ;;  %v2736_v13 = vld [vmem:[%s3924_s2 + $0xf0] sm:$0xff]  }
  0x37   :  { %1534 = vmatprep.subr.bf16.mxu0 %v2818_v0  ;;  %v520_v54 = vshll.u32 %v3274_v23, 16  ;;  %v223_v57 = vrot.slane %v221_v31, 1  ;;  %v3359_v31 = vld [vmem:[%s3925_s0 + $0x20] sm:$0xf] }
  0x38   :  { %v495_v15 = vor.u32 %v494_v47, %v490_v39  ;;  %2629 = vmatpush1.bf16.msra.mxu1 %v2888_v2  ;;  %v3283_v39 = vld [vmem:[%s3925_s0 + $0xd0] sm:$0xf]  ;;  %v3291_v47 = vld [vmem:[%s3925_s0 + $0xe0] sm:$0xf] }
  0x39   :  { %1040 = vmatmul.mubr.bf16.gmra.mrb[4].mxu0 %v2359_v14  ;;  %v205_v14 = vshrl.u32 %v3186_v29, 16  ;;  %v374_v29 = vld [vmem:[%s3925_s0 + $0xac] sm:$0x1]  ;;  %2618 = vmatprep.subr.bf16.mxu1 %v2818_v0  ;;  %v3316_v4 = vcombine.low %v3291_v47, %v65_v52  ;;  %v522_v18 = vrot.slane %v520_v54, 1 }
  0x3a   :  { %1535 = vmatpush1.bf16.msra.mxu0 %v2720_v25  ;;  %2387 = vmatprep.mubr.msk.bf16.mxu0 %vm260_vm0, %v2362_v11  ;;  %v2364_v25 = vcombine.low %v196_v61, %v203_v62  ;;  %v228_v11 = vshll.u32 %v3241_v41, 16  ;;  %v2326_v12 = vcombine.low %v495_v15, %v502_v16  ;;  %v2290_v42 = vcombine.low %v3262_v1, %v374_v29 }
  0x3b   :  { %1536 = vmatprep.subr.bf16.mxu0 %v2818_v0  ;;  %v210_v2 = vor.u32 %v209_v19, %v205_v14  ;;  %823 = vmatmul.mubr.bf16.gmra.mrb[4].mxu1 %v2323_v27  ;;  %v509_v61 = vor.u32 %v508_v34, %v504_v20  ;;  %v516_v62 = vor.u32 %v515_v37, %v511_v35  ;;  %v518_v16 = vshrl.u32 %v3274_v23, 16  ;;  %v2410_v20 = vld [vmem:[%s3925_s0 + $0x28] sm:$0x1]  ;;  %v3375_v37 = vld [vmem:[%s3925_s0 + $0xd4] sm:$0xf] }
  0x3c   :  { %v527_v56 = vshll.u32 %v2290_v42, 16  ;;  %2351 = vmatprep.mubr.msk.bf16.mxu1 %vm260_vm0, %v2326_v12  ;;  %2630 = vmatpush1.bf16.msra.mxu1 %v2895_v3  ;;  %v3322_v3 = vld [vmem:[%s3925_s0 + $0xc4] sm:$0xf]  ;;  %v2325_v15 = vcombine.low %v3152_v59, %v3162_v10  ;;  %v525_v19 = vshrl.u32 %v2290_v42, 16  ;;  %v2741_v59 = vld [vmem:[%s3924_s2 + $0xf8] sm:$0xff]   ;;  %v224_v10 = vor.u32 %v223_v57, %v219_v55 }
  0x3d   :  { %2619 = vmatprep.subr.bf16.mxu1 %v2818_v0  ;;  %v2366_v14 = vcombine.low %v210_v2, %v217_v46  ;;  %v2328_v24 = vcombine.low %v509_v61, %v516_v62  ;;  %v242_v29 = vshll.u32 %v3316_v4, 16  ;;  %v523_v23 = vor.u32 %v522_v18, %v518_v16  ;;  %v2412_v18 = vld [vmem:[%s3925_s0 + $0x48] sm:$0x1] }
  0x3e   :  { %1537 = vmatpush1.bf16.msra.mxu0 %v2724_v58  ;;  %v230_v58 = vrot.slane %v228_v11, 1  ;;  %v529_v21 = vrot.slane %v527_v56, 1  ;;  %v2409_v11 = vld [vmem:[%s3925_s0 + $0x18] sm:$0x1]  ;;  %v3383_v46 = vcombine.low %v3359_v31, %v2410_v20  ;;  %v2327_v56 = vcombine.low %v3213_v43, %v3218_v45  ;;  %v2749_v43 = vld [vmem:[%s3924_s2 + $0x108] sm:$0xff]  }
  0x3f   :  { %1538 = vmatprep.subr.bf16.mxu0 %v2818_v0  ;;  %v244_v54 = vrot.slane %v242_v29, 1  ;;  %v2367_v16 = vcombine.low %v3194_v32, %v3199_v33 }
  0x40   :  { %2631 = vmatpush1.bf16.msra.mxu1 %v2904_v5  ;;  %v3352_v5 = vld [vmem:[%s3925_s0 + $0x10] sm:$0xf]  ;;  %v530_v12 = vor.u32 %v529_v21, %v525_v19  ;;  %v3443_v19 = vld [vmem:[%s3925_s0 + $0xf4] sm:$0xf]  ;;  %v3448_v21 = vld [vmem:[%s3925_s0 + $0x104] sm:$0xf] }
  0x41   :  { %1048 = vmatmul.mubr.bf16.gmra.mrb[8].mxu0 %v2361_v51  ;;  %v226_v51 = vshrl.u32 %v3241_v41, 16  ;;  %v3313_v41 = vcombine.low %v3283_v39, %v64_v48  ;;  %2620 = vmatprep.subr.bf16.mxu1 %v2818_v0  ;;  %v3380_v2 = vcombine.low %v3352_v5, %v2409_v11  ;;  %v377_v48 = vld [vmem:[%s3925_s0 + $0xdc] sm:$0x1]  ;;  %v2756_v11 = vld [vmem:[%s3924_s2 + $0x110] sm:$0xff]  }
  0x42   :  { %1539 = vmatpush1.bf16.msra.mxu0 %v2727_v6  ;;  %2388 = vmatprep.mubr.msk.bf16.mxu0 %vm260_vm0, %v2364_v25  ;;  %v375_v6 = vld [vmem:[%s3925_s0 + $0xbc] sm:$0x1]  ;;  %v3342_v25 = vcombine.low %v3322_v3, %v376_v8  ;;  %v2330_v57 = vcombine.low %v523_v23, %v530_v12  ;;  %v2329_v12 = vcombine.low %v3255_v22, %v3262_v1 }
  0x43   :  { %1540 = vmatprep.subr.bf16.mxu0 %v2818_v0  ;;  %v3339_v26 = vcombine.low %v3308_v63, %v375_v6  ;;  %v231_v27 = vor.u32 %v230_v58, %v226_v51  ;;  %v235_v28 = vshll.u32 %v3313_v41, 16  ;;  %831 = vmatmul.mubr.bf16.gmra.mrb[8].mxu1 %v2325_v15  ;;  %v233_v52 = vshrl.u32 %v3313_v41, 16  ;;  %v2411_v15 = vld [vmem:[%s3925_s0 + $0x38] sm:$0x1] }
  0x44   :  { %2352 = vmatprep.mubr.msk.bf16.mxu1 %vm260_vm0, %v2328_v24  ;;  %2632 = vmatpush1.bf16.msra.mxu1 %v2915_v7  ;;  %v541_v35 = vshll.u32 %v3342_v25, 16  ;;  %v3389_v7 = vld [vmem:[%s3925_s0 + $0xe4] sm:$0xf]  ;;  %v240_v51 = vshrl.u32 %v3316_v4, 16  ;;  %v539_v61 = vshrl.u32 %v3342_v25, 16  ;;  %v3409_v41 = vcombine.low %v3375_v37, %v377_v48  ;;  %v2759_v22 = vld [vmem:[%s3924_s2 + $0x118] sm:$0xff]  }
  0x45   :  { %v534_v34 = vshll.u32 %v3339_v26, 16  ;;  %v2368_v42 = vcombine.low %v224_v10, %v231_v27  ;;  %2621 = vmatprep.subr.bf16.mxu1 %v2818_v0  ;;  %v237_v55 = vrot.slane %v235_v28, 1  ;;  %v532_v58 = vshrl.u32 %v3339_v26, 16  ;;  %v379_v25 = vld [vmem:[%s3925_s0 + $0xfc] sm:$0x1] }
  0x46   :  { %1541 = vmatpush1.bf16.msra.mxu0 %v2732_v38  ;;  %v2365_v38 = vcombine.low %v3138_v49, %v3143_v50  ;;  %v378_v49 = vld [vmem:[%s3925_s0 + $0xec] sm:$0x1]  ;;  %v2747_v50 = vld [vmem:[%s3924_s2 + $0x100] sm:$0xff]   ;;  %v1212_v45 = vshll.u32 %v3380_v2, 16  ;;  %v1219_v6 = vshll.u32 %v3383_v46, 16  ;;  %v245_v8 = vor.u32 %v244_v54, %v240_v51 }
  0x47   :  { %1542 = vmatprep.subr.bf16.mxu0 %v2818_v0  ;;  %v536_v62 = vrot.slane %v534_v34, 1  ;;  %v3412_v4 = vcombine.low %v3389_v7, %v378_v49  ;;  %v548_v24 = vshll.u32 %v3409_v41, 16  ;;  %v1210_v10 = vshrl.u32 %v3380_v2, 16  ;;  %v2413_v51 = vld [vmem:[%s3925_s0 + $0x58] sm:$0x1] }
  0x48   :  { %2633 = vmatpush1.bf16.msra.mxu1 %v2926_v9  ;;  %v238_v9 = vor.u32 %v237_v55, %v233_v52  ;;  %v1214_v27 = vrot.slane %v1212_v45, 1  ;;  %v1217_v28 = vshrl.u32 %v3383_v46, 16  ;;  %v1221_v29 = vrot.slane %v1219_v6, 1  ;;  %v3491_v52 = vld [vmem:[%s3925_s0 + $0x60] sm:$0xf] }
  0x49   :  { %1056 = vmatmul.mubr.bf16.gmra.mrb[12].mxu0 %v2363_v40  ;;  %v543_v40 = vrot.slane %v541_v35, 1  ;;  %2622 = vmatprep.subr.bf16.mxu1 %v2818_v0  ;;  %v537_v32 = vor.u32 %v536_v62, %v532_v58  ;;  %v555_v26 = vshll.u32 %v3412_v4, 16  ;;  %v546_v34 = vshrl.u32 %v3409_v41, 16  ;;  %v2414_v54 = vld [vmem:[%s3925_s0 + $0x68] sm:$0x1] }
  0x4a   :  { %1543 = vmatpush1.bf16.msra.mxu0 %v2736_v13  ;;  %2389 = vmatprep.mubr.msk.bf16.mxu0 %vm260_vm0, %v2366_v14  ;;  %v3424_v13 = vld [vmem:[%s3925_s0 + $0x30] sm:$0xf]  ;;  %v3429_v14 = vld [vmem:[%s3925_s0 + $0x40] sm:$0xf]  ;;  %v3473_v35 = vcombine.low %v3443_v19, %v379_v25  ;;  %v550_v2 = vrot.slane %v548_v24, 1  ;;  %v553_v46 = vshrl.u32 %v3412_v4, 16  ;;  %v1215_v1 = vor.u32 %v1214_v27, %v1210_v10 }
  0x4b   :  { %1544 = vmatprep.subr.bf16.mxu0 %v2818_v0  ;;  %839 = vmatmul.mubr.bf16.gmra.mrb[12].mxu1 %v2327_v56  ;;  %v544_v33 = vor.u32 %v543_v40, %v539_v61  ;;  %v2427_v20 = vcombine.low %v3424_v13, %v2411_v15  ;;  %v2428_v23 = vcombine.low %v3429_v14, %v2412_v18  ;;  %v557_v48 = vrot.slane %v555_v26, 1  ;;  %v3509_v40 = vld [vmem:[%s3925_s0 + $0xf0] sm:$0xf]  ;;  %v3519_v6 = vld [vmem:[%s3925_s0 + $0x100] sm:$0xf] }
  0x4c   :  { %2353 = vmatprep.mubr.msk.bf16.mxu1 %vm260_vm0, %v2330_v57  ;;  %2634 = vmatpush1.bf16.msra.mxu1 %v2955_v17  ;;  %v2370_v17 = vcombine.low %v238_v9, %v245_v8  ;;  %v1222_v49 = vor.u32 %v1221_v29, %v1217_v28  ;;  %v562_v56 = vshll.u32 %v3473_v35, 16  ;;  %v551_v61 = vor.u32 %v550_v2, %v546_v34  ;;  %v3539_v27 = vld [vmem:[%s3925_s0 + $0x70] sm:$0xf]  ;;  %v2415_v28 = vld [vmem:[%s3925_s0 + $0x78] sm:$0x1] }
  0x4d   :  { %2623 = vmatprep.subr.bf16.mxu1 %v2818_v0  ;;  %v1233_v55 = vshll.u32 %v2428_v23, 16  ;;  %v1224_v58 = vshrl.u32 %v2427_v20, 16  ;;  %v558_v62 = vor.u32 %v557_v48, %v553_v46  ;;  %v2369_v41 = vcombine.low %v3283_v39, %v3291_v47  ;;  %v67_v39 = vld [vmem:[%s3925_s0 + $0x108] sm:$0x1] }
  0x4e   :  { %1545 = vmatpush1.bf16.msra.mxu0 %v2741_v59  ;;  %v380_v59 = vld [vmem:[%s3925_s0 + $0x10c] sm:$0x1]  ;;  %v2466_v4 = vcombine.low %v1215_v1, %v1222_v49  ;;  %v2430_v45 = vcombine.low %v3491_v52, %v2414_v54  ;;  %v1231_v9 = vshrl.u32 %v2428_v23, 16  ;;  %v2331_v15 = vcombine.low %v3308_v63, %v3322_v3  ;;  %v2416_v29 = vld [vmem:[%s3925_s0 + $0x88] sm:$0x1] }
  0x4f   :  { %1546 = vmatprep.subr.bf16.mxu0 %v2818_v0  ;;  %v1235_v8 = vrot.slane %v1233_v55, 1  ;;  %v564_v18 = vrot.slane %v562_v56, 1  ;;  %v2334_v24 = vcombine.low %v551_v61, %v558_v62  ;;  %v2280_v25 = vcombine.low %v3519_v6, %v67_v39  ;;  %v3566_v54 = vld [vmem:[%s3925_s0 + $0xa0] sm:$0xf] }
  0x50   :  { %2635 = vmatpush1.bf16.msra.mxu1 %v2982_v30  ;;  %v1226_v30 = vshll.u32 %v2427_v20, 16  ;;  %v1247_v10 = vshll.u32 %v2430_v45, 16  ;;  %v2465_v20 = vcombine.low %v3352_v5, %v3359_v31  ;;  %v2431_v46 = vcombine.low %v3539_v27, %v2415_v28 }
  0x51   :  { %1064 = vmatmul.mubr.bf16.gmra.mrb[16].mxu0 %v2365_v38  ;;  %v3476_v38 = vcombine.low %v3448_v21, %v380_v59  ;;  %2624 = vmatprep.subr.bf16.mxu1 %v2818_v0  ;;  %v1236_v3 = vor.u32 %v1235_v8, %v1231_v9  ;;  %v2333_v5 = vcombine.low %v3375_v37, %v3389_v7  ;;  %v254_v1 = vshrl.u32 %v2280_v25, 16  ;;  %v2417_v37 = vld [vmem:[%s3925_s0 + $0xa8] sm:$0x1]  ;;  %v2418_v7 = vld [vmem:[%s3925_s0 + $0xb8] sm:$0x1] }
  0x52   :  { %2390 = vmatprep.mubr.msk.bf16.mxu0 %vm260_vm0, %v2368_v42  ;;  %1547 = vmatpush1.bf16.msra.mxu0 %v2747_v50  ;;  %v2332_v42 = vcombine.low %v537_v32, %v544_v33  ;;  %v3486_v50 = vld [vmem:[%s3925_s0 + $0x50] sm:$0xf]  ;;  %v1228_v47 = vrot.slane %v1226_v30, 1  ;;  %v1252_v62 = vshrl.u32 %v2431_v46, 16  ;;  %v2335_v39 = vcombine.low %v3443_v19, %v3448_v21  ;;  %v3589_v9 = vld [vmem:[%s3925_s0 + $0xc0] sm:$0xf] }
  0x53   :  { %1548 = vmatprep.subr.bf16.mxu0 %v2818_v0  ;;  %847 = vmatmul.mubr.bf16.gmra.mrb[16].mxu1 %v2329_v12  ;;  %v569_v57 = vshll.u32 %v3476_v38, 16  ;;  %v567_v32 = vshrl.u32 %v3476_v38, 16  ;;  %v256_v12 = vshll.u32 %v2280_v25, 16  ;;  %v1245_v38 = vshrl.u32 %v2430_v45, 16  ;;  %v2419_v19 = vld [vmem:[%s3925_s0 + $0xc8] sm:$0x1] }
  0x54   :  { %2354 = vmatprep.mubr.msk.bf16.mxu1 %vm260_vm0, %v2332_v42  ;;  %2636 = vmatpush1.bf16.msra.mxu1 %v2995_v36  ;;  %v66_v36 = vld [vmem:[%s3925_s0 + $0xf8] sm:$0x1]  ;;  %v1229_v63 = vor.u32 %v1228_v47, %v1224_v58  ;;  %v1249_v42 = vrot.slane %v1247_v10, 1  ;;  %v2467_v58 = vcombine.low %v3424_v13, %v3429_v14  ;;  %v2433_v45 = vcombine.low %v3566_v54, %v2417_v37  ;;  %v3594_v13 = vld [vmem:[%s3925_s0 + $0xd0] sm:$0xf] }
  0x55   :  { %2625 = vmatprep.subr.bf16.mxu1 %v2818_v0  ;;  %v571_v33 = vrot.slane %v569_v57, 1  ;;  %v2279_v26 = vcombine.low %v3509_v40, %v66_v36  ;;  %v258_v49 = vrot.slane %v256_v12, 1  ;;  %v2420_v21 = vld [vmem:[%s3925_s0 + $0xd8] sm:$0x1] }
  0x56   :  { %1549 = vmatpush1.bf16.msra.mxu0 %v2749_v43  ;;  %v2429_v43 = vcombine.low %v3486_v50, %v2413_v51  ;;  %v2468_v2 = vcombine.low %v1229_v63, %v1236_v3  ;;  %v1250_v55 = vor.u32 %v1249_v42, %v1245_v38 }
  0x57   :  { %1550 = vmatprep.subr.bf16.mxu0 %v2818_v0  ;;  %v249_v23 = vshll.u32 %v2279_v26, 16  ;;  %v259_v57 = vor.u32 %v258_v49, %v254_v1 }
  0x58   :  { %2637 = vmatpush1.bf16.msra.mxu1 %v3024_v44  ;;  %v1240_v59 = vshll.u32 %v2429_v43, 16  ;;  %v3544_v44 = vld [vmem:[%s3925_s0 + $0x80] sm:$0xf]  ;;  %v1238_v34 = vshrl.u32 %v2429_v43, 16 }
  0x59   :  { %1072 = vmatmul.mubr.bf16.gmra.mrb[20].mxu0 %v2367_v16  ;;  %v560_v16 = vshrl.u32 %v3473_v35, 16  ;;  %2626 = vmatprep.subr.bf16.mxu1 %v2818_v0  ;;  %v2432_v48 = vcombine.low %v3544_v44, %v2416_v29 }
  0x5a   :  { %2391 = vmatprep.mubr.msk.bf16.mxu0 %vm260_vm0, %v2370_v17  ;;  %1551 = vmatpush1.bf16.msra.mxu0 %v2756_v11  ;;  %v572_v11 = vor.u32 %v571_v33, %v567_v32  ;;  %v1242_v35 = vrot.slane %v1240_v59, 1  ;;  %v1266_v32 = vshrl.u32 %v2433_v45, 16  ;;  %v2435_v33 = vcombine.low %v3589_v9, %v2419_v19 }
  0x5b   :  { %1552 = vmatprep.subr.bf16.mxu0 %v2818_v0  ;;  %855 = vmatmul.mubr.bf16.gmra.mrb[20].mxu1 %v2331_v15  ;;  %v565_v17 = vor.u32 %v564_v18, %v560_v16  ;;  %v1261_v51 = vshll.u32 %v2432_v48, 16  ;;  %v1268_v15 = vshll.u32 %v2433_v45, 16  ;;  %v2469_v18 = vcombine.low %v3486_v50, %v3491_v52  ;;  %v2405_v50 = vld [vmem:[%s3925_s0 + $0xe0] sm:$0xf] }
  0x5c   :  { %2355 = vmatprep.mubr.msk.bf16.mxu1 %vm260_vm0, %v2334_v24  ;;  %2638 = vmatpush1.bf16.msra.mxu1 %v3045_v53  ;;  %v247_v53 = vshrl.u32 %v2279_v26, 16  ;;  %v1243_v30 = vor.u32 %v1242_v35, %v1238_v34  ;;  %v2436_v24 = vcombine.low %v3594_v13, %v2420_v21  ;;  %v1282_v63 = vshll.u32 %v2435_v33, 16  ;;  %v2808_v21 = vld [vmem:[%s3927_s1 + $0x20] sm:$0xff]  }
  0x5d   :  { %2627 = vmatprep.subr.bf16.mxu1 %v2818_v0  ;;  %v2336_v31 = vcombine.low %v565_v17, %v572_v11  ;;  %v1254_v0 = vshll.u32 %v2431_v46, 16  ;;  %v1263_v43 = vrot.slane %v1261_v51, 1  ;;  %v1270_v25 = vrot.slane %v1268_v15, 1  ;;  %v2406_v17 = vld [vmem:[%s3925_s0 + $0xf0] sm:$0xf] }
  0x5e   :  { %1553 = vmatpush1.bf16.msra.mxu0 %v2759_v22  ;;  %v251_v22 = vrot.slane %v249_v23, 1  ;;  %v2470_v61 = vcombine.low %v1243_v30, %v1250_v55  ;;  %v1289_v3 = vshll.u32 %v2436_v24, 16  ;;  %v2371_v52 = vcombine.low %v3509_v40, %v3519_v6  ;;  %v2421_v11 = vld [vmem:[%s3925_s0 + $0xe8] sm:$0x1]  ;;  %v2805_v15 = vld [vmem:[%s3927_s1 + $0x10] sm:$0xff]  }
  0x5f   :  { %v1271_v28 = vor.u32 %v1270_v25, %v1266_v32  ;;  %v2471_v23 = vcombine.low %v3539_v27, %v3544_v44  ;;  %v1280_v12 = vshrl.u32 %v2435_v33, 16  ;;  %v1284_v34 = vrot.slane %v1282_v63, 1  ;;  %v2423_v27 = vld [vmem:[%s3925_s0 + $0x108] sm:$0x1]  ;;  %v2408_v44 = vld [vmem:[%s3925_s0 + $0x110] sm:$0xf] }
  0x60   :  { %2639 = vmatpush1.bf16.msra.mxu1 %v3069_v60  ;;  %v3571_v60 = vld [vmem:[%s3925_s0 + $0xb0] sm:$0xf]  ;;  %v252_v56 = vor.u32 %v251_v22, %v247_v53  ;;  %v1287_v35 = vshrl.u32 %v2436_v24, 16  ;;  %v1291_v38 = vrot.slane %v1289_v3, 1  ;;  %v2437_v6 = vcombine.low %v2405_v50, %v2421_v11  ;;  %v2424_v53 = vld [vmem:[%s3925_s0 + $0x118] sm:$0x1] }
  0x61   :  { %1080 = vmatmul.mubr.bf16.gmra.mrb[24].mxu0 %v2369_v41  ;;  %v1259_v41 = vshrl.u32 %v2432_v48, 16  ;;  %v2434_v36 = vcombine.low %v3571_v60, %v2418_v7  ;;  %v2473_v22 = vcombine.low %v3566_v54, %v3571_v60  ;;  %v2440_v37 = vcombine.low %v2408_v44, %v2424_v53  ;;  %v2804_v32 = vld [vmem:[%s3928_s5] sm:$0xff]   ;;  %v2811_v33 = vld [vmem:[%s3927_s1 + $0x30] sm:$0xff]   ;;  %v2807_v24 = vld [vmem:[%s3928_s5 + $0x8] sm:$0xff]  }
  0x62   :  { %2493 = vmatprep.mubr.msk.bf16.mxu0 %vm260_vm0, %v2466_v4  ;;  %v1256_v4 = vrot.slane %v1254_v0, 1  ;;  %v2372_v47 = vcombine.low %v252_v56, %v259_v57  ;;  %v1292_v46 = vor.u32 %v1291_v38, %v1287_v35  ;;  %v1296_v48 = vshll.u32 %v2437_v6, 16  ;;  %v2810_v25 = vld [vmem:[%s3928_s5 + $0x10] sm:$0xff]   ;;  %v2813_v3 = vld [vmem:[%s3928_s5 + $0x18] sm:$0xff]  }
  0x63   :  { %863 = vmatmul.mubr.bf16.gmra.mrb[24].mxu1 %v2333_v5  ;;  %v1264_v8 = vor.u32 %v1263_v43, %v1259_v41  ;;  %v1275_v16 = vshll.u32 %v2434_v36, 16  ;;  %v1273_v59 = vshrl.u32 %v2434_v36, 16  ;;  %v1294_v49 = vshrl.u32 %v2437_v6, 16 }
  0x64   :  { %2356 = vmatprep.mubr.msk.bf16.mxu1 %vm260_vm0, %v2336_v31  ;;  %v1257_v14 = vor.u32 %v1256_v4, %v1252_v62  ;;  %v2407_v31 = vld [vmem:[%s3925_s0 + $0x100] sm:$0xf]  ;;  %v1298_v55 = vrot.slane %v1296_v48, 1  ;;  %v1315_v60 = vshrl.u32 %v2440_v37, 16  ;;  %v2477_v36 = vcombine.low %v2405_v50, %v2406_v17 }
  0x65   :  { %v1277_v10 = vrot.slane %v1275_v16, 1  ;;  %v2439_v30 = vcombine.low %v2407_v31, %v2423_v27  ;;  %v2806_v16 = vld [vmem:[%s3927_s1 + $0x18] sm:$0xff]   ;;  %v2819_v19 = vmov 0.0  }
  0x66   :  { %v2472_v26 = vcombine.low %v1257_v14, %v1264_v8  ;;  %v1299_v7 = vor.u32 %v1298_v55, %v1294_v49  ;;  %v2802_v14 = vld [vmem:[%s3927_s1] sm:$0xff]   ;;  %v2803_v8 = vld [vmem:[%s3927_s1 + $0x8] sm:$0xff]  }
  0x67   :  { %v1278_v29 = vor.u32 %v1277_v10, %v1273_v59  ;;  %v1310_v57 = vshll.u32 %v2439_v30, 16  ;;  %v1308_v62 = vshrl.u32 %v2439_v30, 16 }
  0x69   :  { %1563 = vmatmul.mubr.bf16.vlgmr.msra.gmra.mrb[0].mxu0 %v2465_v20  ;;  %v2422_v20 = vld [vmem:[%s3925_s0 + $0xf8] sm:$0x1]  ;;  %v2474_v40 = vcombine.low %v1271_v28, %v1278_v29  ;;  %v1312_v54 = vrot.slane %v1310_v57, 1 }
  0x6a   :  { %2494 = vmatprep.mubr.msk.bf16.mxu0 %vm260_vm0, %v2468_v2  ;;  %v2438_v42 = vcombine.low %v2406_v17, %v2422_v20  ;;  %v1285_v2 = vor.u32 %v1284_v34, %v1280_v12 }
  0x6b   :  { %871 = vmatmul.mubr.bf16.gmra.mrb[28].mxu1 %v2335_v39  ;;  %v1313_v43 = vor.u32 %v1312_v54, %v1308_v62 }
  0x6c   :  { %2392 = vmatprep.mubr.msk.bf16.mxu1 %vm260_vm0, %v2372_v47  ;;  %v1303_v5 = vshll.u32 %v2438_v42, 16  ;;  %v2476_v1 = vcombine.low %v1285_v2, %v1292_v46  ;;  %v1301_v0 = vshrl.u32 %v2438_v42, 16  ;;  %v2479_v47 = vcombine.low %v2407_v31, %v2408_v44 }
  0x6e   :  { %v1305_v51 = vrot.slane %v1303_v5, 1 }
  0x70   :  { %v1306_v56 = vor.u32 %v1305_v51, %v1301_v0 }
  0x71   :  { %1571 = vmatmul.mubr.bf16.gmra.mrb[4].mxu0 %v2467_v58  ;;  %v1317_v58 = vshll.u32 %v2440_v37, 16 }
  0x72   :  { %2495 = vmatprep.mubr.msk.bf16.mxu0 %vm260_vm0, %v2470_v61  ;;  %v2475_v61 = vcombine.low %v3589_v9, %v3594_v13  ;;  %v2478_v41 = vcombine.low %v1299_v7, %v1306_v56  ;;  %v2800_v9 = vld [vmem:[%s3926_s7] sm:$0xff]   ;;  %v2801_v13 = vld [vmem:[%s3926_s7 + $0x8] sm:$0xff]  }
  0x73   :  { %v1319_v4 = vrot.slane %v1317_v58, 1  ;;  %2578 = vmatprep.subr.bf16.mxu1 %v2800_v9 }
  0x75   :  { %v1320_v45 = vor.u32 %v1319_v4, %v1315_v60  ;;  %v3717_v4 = vld [vmem:[%s3929_s3] ss:$0 sm:$0xff] }
  0x77   :  { %1088 = vmatmul.mubr.bf16.vlgmr.msra.gmra.mrb[28].mxu1 %v2371_v52  ;;  %v2480_v39 = vcombine.low %v1313_v43, %v1320_v45 }
  0x78   :  { %2579 = vmatpush3.bf16.msra.mxu1 %v2800_v9  ;;  %2582 = vmatprep.mubr.msk.bf16.mxu1 %vm1761_vm1, %v2802_v14 }
  0x79   :  { %1579 = vmatmul.mubr.bf16.gmra.mrb[8].mxu0 %v2469_v18  ;;  %2580 = vmatprep.subr.bf16.mxu1 %v2801_v13  ;;  %v2809_v18 = vld [vmem:[%s3927_s1 + $0x28] sm:$0xff]  }
  0x7a   :  { %2496 = vmatprep.mubr.msk.bf16.mxu0 %vm260_vm0, %v2472_v26  ;;  %v2812_v26 = vld [vmem:[%s3927_s1 + $0x38] sm:$0xff]  }
  0x7c   :  { %2581 = vmatpush3.bf16.msra.mxu1 %v2801_v13  ;;  %v3725_v13 = vld [vmem:[%s3930_s4] ss:$0 sm:$0xff] }
  0x7d   :  { %2598 = vmatprep.subr.bf16.mxu1 %v2819_v19 }
  0x7f   :  { %2583 = vmatmul.mubr.msk.bf16.vlgmr.msra.gmra.mrb[32].mxu1 %vm1761_vm1, %v2803_v8 }
  0x80   :  { %2586 = vmatprep.mubr.msk.bf16.mxu1 %vm1761_vm1, %v2805_v15  ;;  %2599 = vmatpush3.bf16.msra.mxu1 %v2804_v32 }
  0x81   :  { %1587 = vmatmul.mubr.bf16.gmra.mrb[12].mxu0 %v2471_v23  ;;  %2600 = vmatprep.subr.bf16.mxu1 %v2819_v19 }
  0x82   :  { %2497 = vmatprep.mubr.msk.bf16.mxu0 %vm260_vm0, %v2474_v40 }
  0x84   :  { %2601 = vmatpush3.bf16.msra.mxu1 %v2807_v24 }
  0x85   :  { %2602 = vmatprep.subr.bf16.mxu1 %v2819_v19 }
  0x87   :  { %2587 = vmatmul.mubr.msk.bf16.gmra.mrb[36].mxu1 %vm1761_vm1, %v2806_v16 }
  0x88   :  { %2590 = vmatprep.mubr.msk.bf16.mxu1 %vm1761_vm1, %v2808_v21  ;;  %2603 = vmatpush3.bf16.msra.mxu1 %v2810_v25 }
  0x89   :  { %1595 = vmatmul.mubr.bf16.gmra.mrb[16].mxu0 %v2473_v22  ;;  %2604 = vmatprep.subr.bf16.mxu1 %v2819_v19 }
  0x8a   :  { %2498 = vmatprep.mubr.msk.bf16.mxu0 %vm260_vm0, %v2476_v1 }
  0x8c   :  { %2605 = vmatpush3.bf16.msra.mxu1 %v2813_v3 }
  0x8d   :  { %2610 = vmatprep.subr.bf16.mxu1 %v2819_v19 }
  0x8f   :  { %2591 = vmatmul.mubr.msk.bf16.gmra.mrb[40].mxu1 %vm1761_vm1, %v2809_v18 }
  0x90   :  { %2594 = vmatprep.mubr.msk.bf16.mxu1 %vm1761_vm1, %v2811_v33 }
  0x91   :  { %1603 = vmatmul.mubr.bf16.gmra.mrb[20].mxu0 %v2475_v61 }
  0x92   :  { %2499 = vmatprep.mubr.msk.bf16.mxu0 %vm260_vm0, %v2478_v41 }
  0x97   :  { %2595 = vmatmul.mubr.msk.bf16.gmra.mrb[44].mxu1 %vm1761_vm1, %v2812_v26 }
  0x98   :  { %2606 = vmatprep.mubr.msk.bf16.mxu1 %vm2820_vm2, %v2819_v19 }
  0x99   :  { %1611 = vmatmul.mubr.bf16.gmra.mrb[24].mxu0 %v2477_v36 }
  0x9a   :  { %2500 = vmatprep.mubr.msk.bf16.mxu0 %vm260_vm0, %v2480_v39 }
  0xa1   :  { %1619 = vmatmul.mubr.bf16.gmra.mrb[28].mxu0 %v2479_v47 }
 0x106   :  { %v816_v59 = vpop.f32.mrb[0].mxu1 }
 0x107   :  { %v818_v10 = vpop.f32.mrb[1].mxu1 }
 0x108   :  { %v819_v63 = vpop.f32.mrb[2].mxu1 }
 0x109   :  { %v821_v28 = vpop.f32.mrb[3].mxu1 }
 0x10e   :  { %v824_v29 = vpop.f32.mrb[4].mxu1 }
 0x10f   :  { %v826_v50 = vpop.f32.mrb[5].mxu1 }
 0x110   :  { %v827_v52 = vpop.f32.mrb[6].mxu1 }
 0x111   :  { %v829_v17 = vpop.f32.mrb[7].mxu1 }
 0x116   :  { %v832_v11 = vpop.f32.mrb[8].mxu1 }
 0x117   :  { %v834_v20 = vpop.f32.mrb[9].mxu1 }
 0x118   :  { %v835_v23 = vpop.f32.mrb[10].mxu1 }
 0x119   :  { %v837_v12 = vpop.f32.mrb[11].mxu1 }
 0x11e   :  { %v840_v34 = vpop.f32.mrb[12].mxu1 }
 0x11f   :  { %v842_v35 = vpop.f32.mrb[13].mxu1 }
 0x120   :  { %v843_v38 = vpop.f32.mrb[14].mxu1 }
 0x121   :  { %v845_v40 = vpop.f32.mrb[15].mxu1 }
 0x126   :  { %v3702_v6 = vpop.f32.mrb[16].mxu1 }
 0x127   :  { %v850_v42 = vpop.f32.mrb[17].mxu1 }
 0x128   :  { %v3704_v2 = vpop.f32.mrb[18].mxu1 }
 0x129   :  { %v853_v46 = vpop.f32.mrb[19].mxu1 }
 0x12e   :  { %v3706_v48 = vpop.f32.mrb[20].mxu1 }
 0x12f   :  { %v858_v5 = vpop.f32.mrb[21].mxu1 }
 0x130   :  { %v3708_v31 = vpop.f32.mrb[22].mxu1 }
 0x131   :  { %v861_v27 = vpop.f32.mrb[23].mxu1 }
 0x136   :  { %v3710_v49 = vpop.f32.mrb[24].mxu1 }
 0x137   :  { %v866_v0 = vpop.f32.mrb[25].mxu1 }
 0x138   :  { %v3712_v51 = vpop.f32.mrb[26].mxu1 }
 0x139   :  { %v869_v37 = vpop.f32.mrb[27].mxu1 }
 0x13c   :  { %v1564_v44 = vpop.f32.mrb[0].mxu0 }
 0x13d   :  { %v2640_v53 = vadd.f32 %v1564_v44, %v816_v59  ;;  %v1566_v22 = vpop.f32.mrb[1].mxu0 }
 0x13e   :  { %v1567_v1 = vpop.f32.mrb[2].mxu0 }
 0x13f   :  { %v2641_v30 = vadd.f32 %v1567_v1, %v819_v63  ;;  %v1569_v55 = vpop.f32.mrb[3].mxu0  ;;  %v1650_v47 = vmul.f32 %v2640_v53, %v3717_v4 }
 0x141   :  { %v1651_v45 = vmul.f32 %v2641_v30, %v3717_v4  ;;  %v3735_v18 = vadd.f32 %v3725_v13, %v1650_v47 }
 0x143   :  { %v3730_v8 = vadd.f32 %v3725_v13, %v1651_v45 }
 0x144   :  { %v1572_v7 = vpop.f32.mrb[4].mxu0 }
 0x145   :  { %v2642_v56 = vadd.f32 %v1572_v7, %v824_v29  ;;  %v1574_v57 = vpop.f32.mrb[5].mxu0  ;;  %v1930_v10 = vsel %vm260_vm0, %v3730_v8, 0.0  ;;  %v1929_v29 = vsel %vm260_vm0, %v3735_v18, 0.0 }
 0x146   :  { %v1575_v58 = vpop.f32.mrb[6].mxu0  ;;  %v1931_v17 = vadd.f32 %v1930_v10, %v1929_v29 }
 0x147   :  { %v2643_v61 = vadd.f32 %v1575_v58, %v827_v52  ;;  %v1577_v62 = vpop.f32.mrb[7].mxu0  ;;  %v1652_v9 = vmul.f32 %v2642_v56, %v3717_v4 }
 0x149   :  { %v3738_v32 = vadd.f32 %v3725_v13, %v1652_v9  ;;  %v1653_v33 = vmul.f32 %v2643_v61, %v3717_v4 }
 0x14a   :  { %v3727_v14 = vpop.f32.mrb[28].mxu1 }
 0x14b   :  { %v1091_v15 = vpop.f32.mrb[29].mxu1  ;;  %v1932_v50 = vsel %vm260_vm0, %v3738_v32, 0.0  ;;  %v3749_v52 = vadd.f32 %v3725_v13, %v1653_v33 }
 0x14c   :  { %v1580_v41 = vpop.f32.mrb[8].mxu0  ;;  %v3732_v21 = vpop.f32.mrb[30].mxu1 }
 0x14d   :  { %v2644_v54 = vadd.f32 %v1580_v41, %v832_v11  ;;  %v1582_v60 = vpop.f32.mrb[9].mxu0  ;;  %v1094_v25 = vpop.f32.mrb[31].mxu1 }
 0x14e   :  { %v1583_v43 = vpop.f32.mrb[10].mxu0 }
 0x14f   :  { %v2645_v36 = vadd.f32 %v1583_v43, %v835_v23  ;;  %v1585_v39 = vpop.f32.mrb[11].mxu0  ;;  %v1654_v63 = vmul.f32 %v2644_v54, %v3717_v4  ;;  %v1933_v23 = vadd.f32 %v1932_v50, %v1931_v17 }
 0x151   :  { %v3752_v11 = vadd.f32 %v3725_v13, %v1654_v63  ;;  %v1655_v20 = vmul.f32 %v2645_v36, %v3717_v4 }
 0x153   :  { %v1936_v46 = vsel %vm260_vm0, %v3752_v11, 0.0  ;;  %v3762_v5 = vadd.f32 %v3725_v13, %v1655_v20 }
 0x154   :  { %v1588_v16 = vpop.f32.mrb[12].mxu0 }
 0x155   :  { %v2646_v24 = vadd.f32 %v1588_v16, %v840_v34  ;;  %v1590_v26 = vpop.f32.mrb[13].mxu0  ;;  %v1934_v34 = vsel %vm260_vm0, %v3749_v52, 0.0 }
 0x156   :  { %v1591_v59 = vpop.f32.mrb[14].mxu0  ;;  %v1935_v53 = vadd.f32 %v1934_v34, %v1933_v23 }
 0x157   :  { %v2647_v3 = vadd.f32 %v1591_v59, %v843_v38  ;;  %v1593_v28 = vpop.f32.mrb[15].mxu0  ;;  %v1656_v35 = vmul.f32 %v2646_v24, %v3717_v4 }
 0x158   :  { %v1937_v30 = vadd.f32 %v1936_v46, %v1935_v53 }
 0x159   :  { %v3766_v22 = vadd.f32 %v3725_v13, %v1656_v35  ;;  %v1657_v1 = vmul.f32 %v2647_v3, %v3717_v4 }
 0x15b   :  { %v1940_v37 = vsel %vm260_vm0, %v3766_v22, 0.0  ;;  %v3775_v7 = vadd.f32 %v3725_v13, %v1657_v1 }
 0x15c   :  { %v1596_v12 = vpop.f32.mrb[16].mxu0 }
 0x15d   :  { %v2648_v38 = vadd.f32 %v1596_v12, %v3702_v6  ;;  %v1598_v40 = vpop.f32.mrb[17].mxu0  ;;  %v1938_v6 = vsel %vm260_vm0, %v3762_v5, 0.0  ;;  %v1942_v45 = vsel %vm260_vm0, %v3775_v7, 0.0 }
 0x15e   :  { %v1599_v42 = vpop.f32.mrb[18].mxu0  ;;  %v1939_v58 = vadd.f32 %v1938_v6, %v1937_v30 }
 0x15f   :  { %v2649_v27 = vadd.f32 %v1599_v42, %v3704_v2  ;;  %v1601_v44 = vpop.f32.mrb[19].mxu0  ;;  %v1658_v2 = vmul.f32 %v2648_v38, %v3717_v4 }
 0x160   :  { %v1941_v43 = vadd.f32 %v1940_v37, %v1939_v58 }
 0x161   :  { %v1659_v55 = vmul.f32 %v2649_v27, %v3717_v4  ;;  %v3787_v36 = vadd.f32 %v3725_v13, %v1658_v2 }
 0x162   :  { %v1943_v9 = vadd.f32 %v1942_v45, %v1941_v43 }
 0x163   :  { %v3780_v62 = vadd.f32 %v3725_v13, %v1659_v55 }
 0x164   :  { %v1604_v0 = vpop.f32.mrb[20].mxu0  ;;  %v1944_v28 = vrot.slane %v1943_v9, 4 }
 0x165   :  { %v2650_v56 = vadd.f32 %v1604_v0, %v3706_v48  ;;  %v1606_v57 = vpop.f32.mrb[21].mxu0  ;;  %v1951_v47 = vsel %vm260_vm0, %v3780_v62, 0.0 }
 0x166   :  { %v1607_v61 = vpop.f32.mrb[22].mxu0  ;;  %v1945_v12 = vadd.f32 %v1944_v28, %v1943_v9 }
 0x167   :  { %v1660_v41 = vmul.f32 %v2650_v56, %v3717_v4  ;;  %v2651_v54 = vadd.f32 %v1607_v61, %v3708_v31  ;;  %v1609_v60 = vpop.f32.mrb[23].mxu0  ;;  %v1950_v31 = vsel %vm260_vm0, %v3787_v36, 0.0 }
 0x168   :  { %v1952_v25 = vadd.f32 %v1951_v47, %v1950_v31  ;;  %v1946_v1 = vrot.slane %v1945_v12, 2  ;;  %v2060_v31 = vld [vmem:[%s3931_s6] sm:$0x3] }
 0x169   :  { %v3790_v48 = vadd.f32 %v3725_v13, %v1660_v41  ;;  %v1661_v39 = vmul.f32 %v2651_v54, %v3717_v4 }
 0x16a   :  { %v1947_v37 = vadd.f32 %v1946_v1, %v1945_v12 }
 0x16b   :  { %v1953_v16 = vsel %vm260_vm0, %v3790_v48, 0.0  ;;  %v3800_v33 = vadd.f32 %v3725_v13, %v1661_v39 }
 0x16c   :  { %v1612_v15 = vpop.f32.mrb[24].mxu0  ;;  %v1954_v29 = vadd.f32 %v1953_v16, %v1952_v25  ;;  %v1948_v57 = vrot.slane %v1947_v37, 1  ;;  %v2584_v25 = vpop.f32.mrb[32].mxu1 }
 0x16d   :  { %v2652_v24 = vadd.f32 %v1612_v15, %v3710_v49  ;;  %v1614_v26 = vpop.f32.mrb[25].mxu0  ;;  %v1955_v50 = vsel %vm260_vm0, %v3800_v33, 0.0 }
 0x16e   :  { %v1615_v59 = vpop.f32.mrb[26].mxu0  ;;  %v1956_v34 = vadd.f32 %v1955_v50, %v1954_v29  ;;  %v1949_v41 = vadd.f32 %v1948_v57, %v1947_v37  ;;  %v2067_v26 = vsel %vm2065_vm4, %v2060_v31, 0  ;;  %v2821_v57 = vmov 1966171168  }
 0x16f   :  { %v1662_v10 = vmul.f32 %v2652_v24, %v3717_v4  ;;  %v2653_v63 = vadd.f32 %v1615_v59, %v3712_v51  ;;  %v1617_v3 = vpop.f32.mrb[27].mxu0  ;;  %v1820_v59 = vpop.f32.mrb[33].mxu1 }
 0x171   :  { %v3808_v17 = vadd.f32 %v3725_v13, %v1662_v10  ;;  %v1663_v20 = vmul.f32 %v2653_v63, %v3717_v4  ;;  %v2585_v10 = vpop.f32.mrb[34].mxu1 }
 0x172   :  { %v1823_v63 = vpop.f32.mrb[35].mxu1 }
 0x173   :  { %v1957_v49 = vsel %vm260_vm0, %v3808_v17, 0.0  ;;  %v3814_v23 = vadd.f32 %v3725_v13, %v1663_v20  ;;  %v2588_v3 = vpop.f32.mrb[36].mxu1 }
 0x174   :  { %v1620_v51 = vpop.f32.mrb[28].mxu0  ;;  %v1958_v40 = vadd.f32 %v1957_v49, %v1956_v34  ;;  %v1836_v28 = vpop.f32.mrb[37].mxu1 }
 0x175   :  { %v2654_v35 = vadd.f32 %v1620_v51, %v3727_v14  ;;  %v1622_v38 = vpop.f32.mrb[29].mxu0  ;;  %v1959_v46 = vsel %vm260_vm0, %v3814_v23, 0.0  ;;  %v2589_v29 = vpop.f32.mrb[38].mxu1 }
 0x176   :  { %v1623_v42 = vpop.f32.mrb[30].mxu0  ;;  %v1960_v55 = vadd.f32 %v1959_v46, %v1958_v40  ;;  %v1839_v50 = vpop.f32.mrb[39].mxu1 }
 0x177   :  { %v1664_v27 = vmul.f32 %v2654_v35, %v3717_v4  ;;  %v2655_v44 = vadd.f32 %v1623_v42, %v3732_v21  ;;  %v1625_v53 = vpop.f32.mrb[31].mxu0  ;;  %v2592_v20 = vpop.f32.mrb[40].mxu1 }
 0x178   :  { %v1852_v49 = vpop.f32.mrb[41].mxu1 }
 0x179   :  { %v3822_v30 = vadd.f32 %v3725_v13, %v1664_v27  ;;  %v1665_v6 = vmul.f32 %v2655_v44, %v3717_v4  ;;  %v1972_v4 = vmul.f32 0.015625, %v1949_v41  ;;  %v2593_v12 = vpop.f32.mrb[42].mxu1  ;;  %v2521_v41 = vld [vmem:[%s3932_s8] ss:$0 sm:$0xff] }
 0x17a   :  { %v1855_v34 = vpop.f32.mrb[43].mxu1  ;;  %v1896_v31 = vmul.f32 %v2588_v3, %v2521_v41 }
 0x17b   :  { %v1961_v14 = vsel %vm260_vm0, %v3822_v30, 0.0  ;;  %v3828_v0 = vadd.f32 %v3725_v13, %v1665_v6  ;;  %v1974_v39 = vpack.c.bf16 %v1972_v4, %v1972_v4  ;;  %v2596_v51 = vpop.f32.mrb[44].mxu1  ;;  %v1892_v4 = vmul.f32 %v2584_v25, %v2521_v41 }
 0x17c   :  { %v1962_v2 = vadd.f32 %v1961_v14, %v1960_v55  ;;  %v1868_v35 = vpop.f32.mrb[45].mxu1  ;;  %v1901_v25 = vmul.f32 %v2593_v12, %v2521_v41 }
 0x17d   :  { %v1963_v56 = vsel %vm260_vm0, %v3828_v0, 0.0  ;;  %v1986_v13 = vunpack.c.l.b16 %v1974_v39  ;;  %v2597_v38 = vpop.f32.mrb[46].mxu1  ;;  %v1893_v39 = vmul.f32 %v2585_v10, %v2521_v41  ;;  %v1902_v10 = vmul.f32 %v2521_v41, %v1868_v35 }
 0x17e   :  { %v1964_v21 = vadd.f32 %v1963_v56, %v1962_v2  ;;  %v1871_v40 = vpop.f32.mrb[47].mxu1 }
 0x180   :  { %v1965_v58 = vrot.slane %v1964_v21, 4 }
 0x182   :  { %v1966_v61 = vadd.f32 %v1965_v58, %v1964_v21  ;;  %v2117_v58 = vunpack.c.l.s4 %v2821_v57 }
 0x184   :  { %v1967_v54 = vrot.slane %v1966_v61, 2 }
 0x186   :  { %v1968_v60 = vadd.f32 %v1967_v54, %v1966_v61  ;;  %v2119_v61 = vlaneseq  ;;  %v2118_v54 = vunpack.c.0.s8 %v2117_v58 }
 0x188   :  { %v1969_v43 = vrot.slane %v1968_v60, 1 }
 0x18a   :  { %v1970_v45 = vadd.f32 %v1969_v43, %v1968_v60  ;;  %v2120_v60 = vshrl.u32 %v2119_v61, 7  ;;  %v1890_v43 = vmul.f32 %v2521_v41, %v1820_v59  ;;  %v1899_v59 = vmul.f32 %v2521_v41, %v1855_v34 }
 0x18c   :  { %v1973_v47 = vmul.f32 0.015625, %v1970_v45  ;;  %v2522_v45 = vld [vmem:[%s3933_s9] ss:$0 sm:$0xff] }
 0x18d   :  { %v1924_v57 = vadd.f32 %v2522_v45, %v1901_v25  ;;  %v1925_v34 = vadd.f32 %v2522_v45, %v1902_v10 }
 0x18e   :  { %v1975_v9 = vpack.c.bf16 %v1973_v47, %v1973_v47  ;;  %v1891_v47 = vmul.f32 %v2521_v41, %v1823_v63  ;;  %v1905_v63 = vmul.f32 %v2597_v38, %v2521_v41 }
 0x190   :  { %v1987_v15 = vunpack.c.l.b16 %v1975_v9  ;;  %v2121_v9 = vsub.s32 %v2118_v54, %v2120_v60 }
 0x192   :  { %v1989_v16 = vsel %vm1988_vm3, %v1987_v15, %v1986_v13  ;;  %v1915_v13 = vadd.f32 %v2522_v45, %v1892_v4  ;;  %v1913_v15 = vadd.f32 %v2522_v45, %v1890_v43 }
 0x193   :  { %v1990_v24 = vpack.c.b16 %v1989_v16, %v1989_v16  ;;  %v1916_v16 = vadd.f32 %v2522_v45, %v1893_v39 }
 0x195   :  { %2607 = vmatmul.mubr.msk.bf16.vlgmr.msra.gmra.mrb[48].mxu1 %vm260_vm0, %v1990_v24  ;;  %v1914_v24 = vadd.f32 %v2522_v45, %v1891_v47 }
 0x196   :  { %2611 = vmatpush3.bf16.msra.mxu1 %v2067_v26  ;;  %2612 = vmatprep.mubr.msk.bf16.mxu1 %vm2820_vm2, %v2819_v19  ;;  %v1894_v26 = vmul.f32 %v2521_v41, %v1836_v28 }
 0x268   :  { %v2052_v42 = vpop.f32.mrb[48].mxu1 }
 0x269   :  { %v2058_v46 = vmax.f32 %v2052_v42, 0.0  ;;  %v2608_v27 = vpop.f32.mrb[49].mxu1  ;;  %v1897_v42 = vmul.f32 %v2589_v29, %v2521_v41 }
 0x26a   :  { %v2055_v19 = vpop.f32.mrb[50].mxu1  ;;  %v1895_v27 = vmul.f32 %v2521_v41, %v1839_v50  ;;  %v1922_v50 = vadd.f32 %v2522_v45, %v1899_v59 }
 0x26b   :  { %v2059_v44 = vpack.c.bf16 %v2058_v46, %v2058_v46  ;;  %v2609_v53 = vpop.f32.mrb[51].mxu1  ;;  %v1900_v19 = vmul.f32 %v2592_v20, %v2521_v41 }
 0x26c   :  { %v1904_v53 = vmul.f32 %v2596_v51, %v2521_v41  ;;  %v1928_v51 = vadd.f32 %v2522_v45, %v1905_v63 }
 0x26d   :  { %2613 = vmatmul.mubr.msk.bf16.vlgmr.msra.gmra.mrb[52].mxu1 %vm2061_vm5, %v2059_v44  ;;  %v1898_v44 = vmul.f32 %v2521_v41, %v1852_v49  ;;  %v1923_v28 = vadd.f32 %v2522_v45, %v1900_v19 }
 0x26e   :  { %v1927_v20 = vadd.f32 %v2522_v45, %v1904_v53 }
 0x26f   :  { %v1921_v29 = vadd.f32 %v2522_v45, %v1898_v44 }
 0x340   :  { %v2103_v1 = vpop.f32.mrb[52].mxu1 }
 0x341   :  { %v2109_v6 = vsub.f32 0.0, %v2103_v1  ;;  %v2614_v55 = vpop.f32.mrb[53].mxu1 }
 0x342   :  { %v2106_v14 = vpop.f32.mrb[54].mxu1  ;;  %v1919_v55 = vadd.f32 %v2522_v45, %v1896_v31 }
 0x343   :  { %v2110_v37 = vmul.f32 1.442695, %v2109_v6  ;;  %v2615_v2 = vpop.f32.mrb[55].mxu1  ;;  %v2140_v6 = vsub.s32 0, %v2120_v60  ;;  %v1903_v14 = vmul.f32 %v2521_v41, %v1871_v40 }
 0x344   :  { %v1920_v2 = vadd.f32 %v2522_v45, %v1897_v42 }
 0x345   :  { %2814 = vpow2.f32 %v2110_v37  ;;  %v1917_v37 = vadd.f32 %v2522_v45, %v1894_v26  ;;  %v1926_v58 = vadd.f32 %v2522_v45, %v1903_v14 }
 0x34f   :  { %v2815_v56 = vpop.eup %2814 }
 0x350   :  { %v2112_v21 = vadd.f32 1.0, %v2815_v56 }
 0x352   :  { %2816 = vrcp.f32 %v2112_v21  ;;  %v1918_v21 = vadd.f32 %v2522_v45, %v1895_v27 }
 0x35c   :  { %v2817_v46 = vpop.eup %2816 }
 0x35d   :  { %v2122_v1 = vrot.slane %v2817_v46, %v2121_v9 }
 0x35f   :  { %v2123_v3 = vcombine.high %v2122_v1, %v2122_v1  ;;  %v2130_v56 = vrot.slane %v2122_v1, %v2121_v9 }
 0x361   :  { %v2137_v49 = vrot.slane %v2123_v3, %v2121_v9  ;;  %v2141_v12 = vrot.slane %v2130_v56, %v2140_v6 }
 0x363   :  { %v2145_v61 = vrot.slane %v2137_v49, %v2140_v6  ;;  %v2148_v35 = vmul.f32 %v2141_v12, %v3735_v18  ;;  %v2149_v38 = vmul.f32 %v2141_v12, %v3730_v8  ;;  %v2150_v40 = vmul.f32 %v2141_v12, %v3738_v32 }
 0x364   :  { %v2151_v41 = vmul.f32 %v2141_v12, %v3749_v52  ;;  %v2152_v54 = vmul.f32 %v2141_v12, %v3752_v11  ;;  %v2153_v60 = vmul.f32 %v2141_v12, %v3762_v5  ;;  %v2154_v4 = vmul.f32 %v2141_v12, %v3766_v22 }
 0x365   :  { %v2155_v43 = vmul.f32 %v2141_v12, %v3775_v7  ;;  %v2156_v45 = vmul.f32 %v2145_v61, %v3787_v36  ;;  %v2157_v39 = vmul.f32 %v2145_v61, %v3780_v62  ;;  %v2158_v18 = vmul.f32 %v2145_v61, %v3790_v48 }
 0x366   :  { %v2159_v8 = vmul.f32 %v2145_v61, %v3800_v33  ;;  %v2160_v32 = vmul.f32 %v2145_v61, %v3808_v17  ;;  %v2161_v52 = vmul.f32 %v2145_v61, %v3814_v23  ;;  %v2162_v11 = vmul.f32 %v2145_v61, %v3822_v30 }
 0x367   :  { %v2163_v5 = vmul.f32 %v2145_v61, %v3828_v0  ;;  %v2164_v47 = vadd.f32 %v2148_v35, %v1913_v15  ;;  %v2165_v22 = vadd.f32 %v2149_v38, %v1914_v24  ;;  %v2166_v9 = vadd.f32 %v2150_v40, %v1915_v13 }
 0x368   :  { %v2167_v7 = vadd.f32 %v2151_v41, %v1916_v16  ;;  %v2168_v31 = vadd.f32 %v2152_v54, %v1917_v37  ;;  %v2169_v36 = vadd.f32 %v2153_v60, %v1918_v21  ;;  %v2170_v26 = vadd.f32 %v2154_v4, %v1919_v55 }
 0x369   :  { %v2171_v62 = vadd.f32 %v2155_v43, %v1920_v2  ;;  %v2172_v42 = vadd.f32 %v2156_v45, %v1921_v29  ;;  %v2173_v48 = vadd.f32 %v2157_v39, %v1922_v50  ;;  %v2174_v46 = vadd.f32 %v2158_v18, %v1923_v28 }
 0x36a   :  { %v2175_v33 = vadd.f32 %v2159_v8, %v1924_v57  ;;  %v2176_v27 = vadd.f32 %v2160_v32, %v1925_v34  ;;  %v2177_v17 = vadd.f32 %v2161_v52, %v1926_v58  ;;  %v2178_v19 = vadd.f32 %v2162_v11, %v1927_v20 }
 0x36b   :  { %v2179_v23 = vadd.f32 %v2163_v5, %v1928_v51  ;;  %v2545_v44 = vpack.c.bf16 %v2164_v47, %v2164_v47  ;;  %v2546_v30 = vpack.c.bf16 %v2165_v22, %v2165_v22  ;;  %v2547_v25 = vpack.c.bf16 %v2166_v9, %v2166_v9 }
 0x36c   :  { %v2548_v0 = vpack.c.bf16 %v2167_v7, %v2167_v7  ;;  %v2549_v15 = vpack.c.bf16 %v2168_v31, %v2168_v31  ;;  %v2550_v24 = vpack.c.bf16 %v2169_v36, %v2169_v36  ;;  %v2551_v13 = vpack.c.bf16 %v2170_v26, %v2170_v26 }
 0x36d   :  { %v2552_v16 = vpack.c.bf16 %v2171_v62, %v2171_v62  ;;  %v2553_v59 = vpack.c.bf16 %v2172_v42, %v2172_v42  ;;  %v2554_v53 = vpack.c.bf16 %v2173_v48, %v2173_v48  ;;  %v2555_v1 = vpack.c.bf16 %v2174_v46, %v2174_v46  ;;  %2245 = vst.msk [vmem:[%s3934_s10] sm:$0xf] %vm2244_vm6, %v2545_v44 }
 0x36e   :  { %2246 = vst.msk [vmem:[%s3934_s10 + $0x4] sm:$0xf] %vm2244_vm6, %v2546_v30  ;;  %2247 = vst.msk [vmem:[%s3934_s10 + $0x8] sm:$0xf] %vm2244_vm6, %v2547_v25  ;;  %v2556_v6 = vpack.c.bf16 %v2175_v33, %v2175_v33  ;;  %v2557_v55 = vpack.c.bf16 %v2176_v27, %v2176_v27  ;;  %v2558_v10 = vpack.c.bf16 %v2177_v17, %v2177_v17 }
 0x36f   :  { %v2559_v63 = vpack.c.bf16 %v2178_v19, %v2178_v19  ;;  %2248 = vst.msk [vmem:[%s3934_s10 + $0xc] sm:$0xf] %vm2244_vm6, %v2548_v0  ;;  %2249 = vst.msk [vmem:[%s3934_s10 + $0x10] sm:$0xf] %vm2244_vm6, %v2549_v15  ;;  %v2560_v14 = vpack.c.bf16 %v2179_v23, %v2179_v23 }
 0x370   :  { %2250 = vst.msk [vmem:[%s3934_s10 + $0x14] sm:$0xf] %vm2244_vm6, %v2550_v24  ;;  %2251 = vst.msk [vmem:[%s3934_s10 + $0x18] sm:$0xf] %vm2244_vm6, %v2551_v13 }
 0x371   :  { %2252 = vst.msk [vmem:[%s3934_s10 + $0x1c] sm:$0xf] %vm2244_vm6, %v2552_v16  ;;  %2253 = vst.msk [vmem:[%s3934_s10 + $0x20] sm:$0xf] %vm2244_vm6, %v2553_v59 }
 0x372   :  { %2254 = vst.msk [vmem:[%s3934_s10 + $0x24] sm:$0xf] %vm2244_vm6, %v2554_v53  ;;  %2255 = vst.msk [vmem:[%s3934_s10 + $0x28] sm:$0xf] %vm2244_vm6, %v2555_v1 }
 0x373   :  { %2256 = vst.msk [vmem:[%s3934_s10 + $0x2c] sm:$0xf] %vm2244_vm6, %v2556_v6  ;;  %2257 = vst.msk [vmem:[%s3934_s10 + $0x30] sm:$0xf] %vm2244_vm6, %v2557_v55 }
 0x374   :  { %2258 = vst.msk [vmem:[%s3934_s10 + $0x34] sm:$0xf] %vm2244_vm6, %v2558_v10  ;;  %2259 = vst.msk [vmem:[%s3934_s10 + $0x38] sm:$0xf] %vm2244_vm6, %v2559_v63 }
 0x375   :  { %2260 = vst.msk [vmem:[%s3934_s10 + $0x3c] sm:$0xf] %vm2244_vm6, %v2560_v14 }

// kernel: fwd.5
= control target key start
LH: loop header
LB: loop body
LE: loop exit
PB: predicated region body
PF: predicated region fallthrough
CT: control target
= control target key end

     0   :  { %vm162_vm0 = vcmask 1040384   ;;  %v6322_v2 = vmov 0.0|0.0   ;;  %vm331_vm1 = vcmask 519168   ;;  %vm333_vm2 = vcmask 516096   ;;  %s6324_s23 = smov 64   ;;  %s8500_s0 = inlined_call_operand.vmem [shape: bf16[2,8,8,64], index: 0, kind: input, shape index: {}]   ;;  %s8501_s3 = inlined_call_operand.vmem [shape: f32[1,64], index: 3, kind: input, shape index: {}]   ;;  %s8502_s4 = inlined_call_operand.vmem [shape: f32[1,64], index: 4, kind: input, shape index: {}]   ;;  %s8503_s1 = inlined_call_operand.vmem [shape: bf16[3,192,64], index: 1, kind: input, shape index: {}]   ;;  %s8504_s2 = inlined_call_operand.vmem [shape: bf16[3,192,64], index: 2, kind: input, shape index: {}]   ;;  %s8505_s5 = inlined_call_operand.vmem [shape: f32[1,64], index: 5, kind: input, shape index: {}]   ;;  %s8506_s8 = inlined_call_operand.vmem [shape: bf16[64,4], index: 8, kind: input, shape index: {}]   ;;  %s8507_s9 = inlined_call_operand.vmem [shape: bf16[4,64], index: 9, kind: input, shape index: {}]   ;;  %s8508_s6 = inlined_call_operand.vmem [shape: f32[1,64], index: 6, kind: input, shape index: {}]   ;;  %s8509_s7 = inlined_call_operand.vmem [shape: f32[1,64], index: 7, kind: input, shape index: {}]   ;;  %s8510_s10 = inlined_call_operand.vmem [shape: bf16[2,64,64], index: 10, kind: output, shape index: {}]  }
   0x1   :  { %v6386_v0 = vld [vmem:[%s8500_s0] sm:$0xff]   ;;  %v5138_v3 = vcombine.low %v6322_v2, %v6322_v2  ;;  %v5139_v4 = vcombine.high %v6322_v2, %v6322_v2  ;;  %v6398_v7 = vld [vmem:[%s8500_s0 + $0x8] sm:$0xff]   ;;  %v6403_v8 = vld [vmem:[%s8500_s0 + $0x10] sm:$0xff]   ;;  %v8527_v10 = vmov 0   ;;  %vm709_vm3 = vcmask 523264  }
   0x2   :  { %8599 = vst [vmem:[#allocation4_spill] sm:$0xff] %v6386_v0  ;;  %v6391_v1 = vld [vmem:[%s8501_s3] ss:$0 sm:$0xff]  ;;  %v8526_v5 = vunpack.c.l.bf16 %v6386_v0  ;;  %v8525_v6 = vunpack.c.h.bf16 %v6386_v0  ;;  %8600 = vst [vmem:[#allocation5_spill] sm:$0xff] %v6398_v7  ;;  %v6408_v9 = vld [vmem:[%s8500_s0 + $0x18] sm:$0xff]   ;;  %1408 = vmatprep.subr.bf16.mxu0 %v8527_v10  ;;  %3750 = vmatprep.subr.bf16.mxu1 %v8527_v10  ;;  %v8524_v12 = vunpack.c.l.bf16 %v6398_v7  ;;  %v8523_v13 = vunpack.c.h.bf16 %v6398_v7 }
   0x3   :  { %8601 = vst [vmem:[#allocation6_spill] sm:$0xff] %v6403_v8  ;;  %8602 = vst [vmem:[#allocation7_spill] sm:$0xff] %v6408_v9  ;;  %v6415_v11 = vld [vmem:[%s8502_s4] ss:$0 sm:$0xff]  ;;  %v8521_v14 = vunpack.c.h.bf16 %v6403_v8  ;;  %v8522_v15 = vunpack.c.l.bf16 %v6403_v8  ;;  %v8519_v18 = vunpack.c.h.bf16 %v6408_v9  ;;  %v8520_v19 = vunpack.c.l.bf16 %v6408_v9  ;;  %v6033_v33 = vld [vmem:[%s8503_s1 + $0x68] sm:$0xff]  }
   0x4   :  { %332 = vst.msk [vmem:[#allocation2] sm:$0xf] %vm331_vm1, %v5138_v3  ;;  %351 = vst.msk [vmem:[#allocation2 + $0x48] sm:$0xf] %vm331_vm1, %v5138_v3  ;;  %v75_v16 = vmul.f32 %v8526_v5, %v6391_v1  ;;  %v76_v17 = vmul.f32 %v8525_v6, %v6391_v1  ;;  %v77_v20 = vmul.f32 %v8524_v12, %v6391_v1  ;;  %v6030_v24 = vld [vmem:[%s8503_s1 + $0x60] sm:$0xff]   ;;  %v6034_v50 = vld [vmem:[%s8503_s1 + $0x70] sm:$0xff]  }
   0x5   :  { %334 = vst.msk [vmem:[#allocation2 + $0x4] sm:$0x1] %vm333_vm2, %v5139_v4  ;;  %352 = vst.msk [vmem:[#allocation2 + $0x4c] sm:$0x1] %vm333_vm2, %v5139_v4  ;;  %v78_v21 = vmul.f32 %v8523_v13, %v6391_v1  ;;  %v80_v22 = vmul.f32 %v8521_v14, %v6391_v1  ;;  %v79_v23 = vmul.f32 %v8522_v15, %v6391_v1  ;;  %1409 = vmatpush1.bf16.msra.mxu0 %v6030_v24  ;;  %v6490_v55 = vld [vmem:[%s8500_s0 + $0x20] sm:$0xff]   ;;  %v6506_v2 = vld [vmem:[%s8500_s0 + $0x28] sm:$0xff]  }
   0x6   :  { %353 = vst.msk [vmem:[#allocation2 + $0x50] sm:$0xf] %vm331_vm1, %v5138_v3  ;;  %371 = vst.msk [vmem:[#allocation2 + $0x98] sm:$0xf] %vm331_vm1, %v5138_v3  ;;  %v98_v25 = vadd.f32 %v6415_v11, %v75_v16  ;;  %v99_v26 = vadd.f32 %v6415_v11, %v76_v17  ;;  %v82_v27 = vmul.f32 %v8519_v18, %v6391_v1  ;;  %1410 = vmatprep.subr.bf16.mxu0 %v8527_v10 }
   0x7   :  { %354 = vst.msk [vmem:[#allocation2 + $0x54] sm:$0x1] %vm333_vm2, %v5139_v4  ;;  %372 = vst.msk [vmem:[#allocation2 + $0x9c] sm:$0x1] %vm333_vm2, %v5139_v4  ;;  %v81_v28 = vmul.f32 %v8520_v19, %v6391_v1  ;;  %v100_v29 = vadd.f32 %v6415_v11, %v77_v20  ;;  %v101_v30 = vadd.f32 %v6415_v11, %v78_v21  ;;  %v8518_v24 = vunpack.c.l.bf16 %v6490_v55 }
   0x8   :  { %2676 = vst.msk [vmem:[#allocation3] sm:$0xf] %vm331_vm1, %v5138_v3  ;;  %2694 = vst.msk [vmem:[#allocation3 + $0x48] sm:$0xf] %vm331_vm1, %v5138_v3  ;;  %v103_v31 = vadd.f32 %v6415_v11, %v80_v22  ;;  %v102_v32 = vadd.f32 %v6415_v11, %v79_v23  ;;  %v130_v34 = vrot.slane %v98_v25, 7  ;;  %v131_v35 = vrot.slane %v99_v26, 7 }
   0x9   :  { %2677 = vst.msk [vmem:[#allocation3 + $0x4] sm:$0x1] %vm333_vm2, %v5139_v4  ;;  %2695 = vst.msk [vmem:[#allocation3 + $0x4c] sm:$0x1] %vm333_vm2, %v5139_v4  ;;  %v105_v36 = vadd.f32 %v6415_v11, %v82_v27  ;;  %v104_v37 = vadd.f32 %v6415_v11, %v81_v28  ;;  %v132_v38 = vrot.slane %v100_v29, 7  ;;  %v133_v39 = vrot.slane %v101_v30, 7  ;;  %1411 = vmatpush1.bf16.msra.mxu0 %v6033_v33 }
   0xa   :  { %2696 = vst.msk [vmem:[#allocation3 + $0x50] sm:$0xf] %vm331_vm1, %v5138_v3  ;;  %2714 = vst.msk [vmem:[#allocation3 + $0x98] sm:$0xf] %vm331_vm1, %v5138_v3  ;;  %v135_v40 = vrot.slane %v103_v31, 7  ;;  %v134_v41 = vrot.slane %v102_v32, 7  ;;  %1412 = vmatprep.subr.bf16.mxu0 %v8527_v10  ;;  %v8517_v23 = vunpack.c.h.bf16 %v6490_v55 }
   0xb   :  { %2697 = vst.msk [vmem:[#allocation3 + $0x54] sm:$0x1] %vm333_vm2, %v5139_v4  ;;  %2715 = vst.msk [vmem:[#allocation3 + $0x9c] sm:$0x1] %vm333_vm2, %v5139_v4  ;;  %v163_v42 = vsel %vm162_vm0, 0.0, %v130_v34  ;;  %v179_v43 = vsel %vm162_vm0, %v130_v34, 0.0 }
   0xc   :  { %v164_v44 = vsel %vm162_vm0, 0.0, %v131_v35  ;;  %v180_v45 = vsel %vm162_vm0, %v131_v35, 0.0  ;;  %v5733_v46 = vpack.c.bf16 %v163_v42, %v163_v42  ;;  %v5734_v47 = vpack.c.bf16 %v179_v43, %v179_v43  ;;  %8603 = vst [vmem:[#allocation8_spill] sm:$0xff] %v6490_v55  ;;  %8604 = vst [vmem:[#allocation9_spill] sm:$0xff] %v6506_v2  ;;  %v6037_v3 = vld [vmem:[%s8503_s1 + $0x78] sm:$0xff]   ;;  %v6522_v25 = vld [vmem:[%s8500_s0 + $0x30] sm:$0xff]  }
   0xd   :  { %v165_v48 = vsel %vm162_vm0, 0.0, %v132_v38  ;;  %v181_v49 = vsel %vm162_vm0, %v132_v38, 0.0  ;;  %v5735_v53 = vpack.c.bf16 %v164_v44, %v164_v44  ;;  %v5736_v54 = vpack.c.bf16 %v180_v45, %v180_v45  ;;  %1413 = vmatpush1.bf16.msra.mxu0 %v6034_v50  ;;  %8605 = vst [vmem:[#allocation10_spill] sm:$0xff] %v6522_v25  ;;  %v6534_v34 = vld [vmem:[%s8500_s0 + $0x38] sm:$0xff]  }
   0xe   :  { %v5737_v51 = vpack.c.bf16 %v165_v48, %v165_v48  ;;  %v5738_v52 = vpack.c.bf16 %v181_v49, %v181_v49  ;;  %335 = vst.msk [vmem:[#allocation2 + $0x8] sm:$0xf] %vm331_vm1, %v5733_v46  ;;  %v166_v56 = vsel %vm162_vm0, 0.0, %v133_v39  ;;  %v182_v57 = vsel %vm162_vm0, %v133_v39, 0.0  ;;  %1414 = vmatprep.subr.bf16.mxu0 %v8527_v10  ;;  %8606 = vst [vmem:[#allocation11_spill] sm:$0xff] %v6534_v34  ;;  %v6038_v39 = vld [vmem:[%s8503_s1 + $0x80] sm:$0xff]  }
   0xf   :  { %336 = vst.msk [vmem:[#allocation2 + $0xc] sm:$0x1] %vm333_vm2, %v5734_v47  ;;  %v168_v58 = vsel %vm162_vm0, 0.0, %v135_v40  ;;  %v184_v59 = vsel %vm162_vm0, %v135_v40, 0.0  ;;  %338 = vst.msk [vmem:[#allocation2 + $0x14] sm:$0x1] %vm333_vm2, %v5736_v54  ;;  %v5739_v60 = vpack.c.bf16 %v166_v56, %v166_v56  ;;  %v5740_v61 = vpack.c.bf16 %v182_v57, %v182_v57 }
  0x10   :  { %339 = vst.msk [vmem:[#allocation2 + $0x18] sm:$0xf] %vm331_vm1, %v5737_v51  ;;  %337 = vst.msk [vmem:[#allocation2 + $0x10] sm:$0xf] %vm331_vm1, %v5735_v53  ;;  %v5743_v62 = vpack.c.bf16 %v168_v58, %v168_v58  ;;  %v5744_v63 = vpack.c.bf16 %v184_v59, %v184_v59  ;;  %v167_v4 = vsel %vm162_vm0, 0.0, %v134_v41  ;;  %v183_v16 = vsel %vm162_vm0, %v134_v41, 0.0 }
  0x11   :  { %340 = vst.msk [vmem:[#allocation2 + $0x1c] sm:$0x1] %vm333_vm2, %v5738_v52  ;;  %v137_v17 = vrot.slane %v105_v36, 7  ;;  %v136_v20 = vrot.slane %v104_v37, 7  ;;  %342 = vst.msk [vmem:[#allocation2 + $0x24] sm:$0x1] %vm333_vm2, %v5740_v61  ;;  %v5741_v21 = vpack.c.bf16 %v167_v4, %v167_v4  ;;  %v5742_v22 = vpack.c.bf16 %v183_v16, %v183_v16  ;;  %1415 = vmatpush1.bf16.msra.mxu0 %v6037_v3 }
  0x12   :  { %341 = vst.msk [vmem:[#allocation2 + $0x20] sm:$0xf] %vm331_vm1, %v5739_v60  ;;  %345 = vst.msk [vmem:[#allocation2 + $0x30] sm:$0xf] %vm331_vm1, %v5743_v62  ;;  %v84_v35 = vmul.f32 %v8517_v23, %v6391_v1  ;;  %v83_v36 = vmul.f32 %v8518_v24, %v6391_v1  ;;  %v8515_v37 = vunpack.c.h.bf16 %v6506_v2  ;;  %v8516_v38 = vunpack.c.l.bf16 %v6506_v2  ;;  %1416 = vmatprep.subr.bf16.mxu0 %v8527_v10  ;;  %v6041_v57 = vld [vmem:[%s8503_s1 + $0x88] sm:$0xff]  }
  0x13   :  { %346 = vst.msk [vmem:[#allocation2 + $0x34] sm:$0x1] %vm333_vm2, %v5744_v63  ;;  %v170_v26 = vsel %vm162_vm0, 0.0, %v137_v17  ;;  %v186_v27 = vsel %vm162_vm0, %v137_v17, 0.0  ;;  %v169_v28 = vsel %vm162_vm0, 0.0, %v136_v20  ;;  %v185_v29 = vsel %vm162_vm0, %v136_v20, 0.0 }
  0x14   :  { %343 = vst.msk [vmem:[#allocation2 + $0x28] sm:$0xf] %vm331_vm1, %v5741_v21  ;;  %v5747_v30 = vpack.c.bf16 %v170_v26, %v170_v26  ;;  %v5748_v31 = vpack.c.bf16 %v186_v27, %v186_v27  ;;  %v5745_v32 = vpack.c.bf16 %v169_v28, %v169_v28  ;;  %v5746_v33 = vpack.c.bf16 %v185_v29, %v185_v29  ;;  %v381_v23 = vld [vmem:[#allocation2 + $0x50] sm:$0xf] }
  0x15   :  { %344 = vst.msk [vmem:[#allocation2 + $0x2c] sm:$0x1] %vm333_vm2, %v5742_v22  ;;  %v831_v40 = vld [vmem:[#allocation2 + $0x8] sm:$0xf]  ;;  %v8513_v42 = vunpack.c.h.bf16 %v6522_v25  ;;  %v8514_v43 = vunpack.c.l.bf16 %v6522_v25  ;;  %v107_v47 = vadd.f32 %v6415_v11, %v84_v35  ;;  %v86_v48 = vmul.f32 %v8515_v37, %v6391_v1  ;;  %1417 = vmatpush1.bf16.msra.mxu0 %v6038_v39  ;;  %v6042_v35 = vld [vmem:[%s8503_s1 + $0x90] sm:$0xff]  }
  0x16   :  { %v6547_v41 = vld [vmem:[#allocation2 + $0xc] sm:$0x1]  ;;  %349 = vst.msk [vmem:[#allocation2 + $0x40] sm:$0xf] %vm331_vm1, %v5747_v30  ;;  %347 = vst.msk [vmem:[#allocation2 + $0x38] sm:$0xf] %vm331_vm1, %v5745_v32  ;;  %v8511_v49 = vunpack.c.h.bf16 %v6534_v34  ;;  %v6568_v53 = vadd.f32 %v6415_v11, %v83_v36  ;;  %v85_v54 = vmul.f32 %v8516_v38, %v6391_v1  ;;  %v8512_v56 = vunpack.c.l.bf16 %v6534_v34  ;;  %1418 = vmatprep.subr.bf16.mxu0 %v8527_v10 }
  0x17   :  { %350 = vst.msk [vmem:[#allocation2 + $0x44] sm:$0x1] %vm333_vm2, %v5748_v31  ;;  %348 = vst.msk [vmem:[#allocation2 + $0x3c] sm:$0x1] %vm333_vm2, %v5746_v33  ;;  %v5204_v44 = vcombine.low %v831_v40, %v6547_v41  ;;  %v833_v45 = vld [vmem:[#allocation2 + $0x18] sm:$0xf]  ;;  %v6583_v63 = vmul.f32 %v8513_v42, %v6391_v1  ;;  %v6587_v20 = vadd.f32 %v6415_v11, %v86_v48 }
  0x18   :  { %v6557_v46 = vld [vmem:[#allocation2 + $0x1c] sm:$0x1]  ;;  %v832_v51 = vld [vmem:[#allocation2 + $0x10] sm:$0xf]  ;;  %v6565_v52 = vld [vmem:[#allocation2 + $0x14] sm:$0x1]  ;;  %v108_v48 = vadd.f32 %v6415_v11, %v85_v54 }
  0x19   :  { %v5206_v50 = vcombine.low %v833_v45, %v6557_v46  ;;  %v960_v58 = vshrl.u32 %v5204_v44, 16  ;;  %v962_v59 = vshll.u32 %v5204_v44, 16  ;;  %v5205_v60 = vcombine.low %v832_v51, %v6565_v52  ;;  %v834_v61 = vld [vmem:[#allocation2 + $0x20] sm:$0xf]  ;;  %v6578_v62 = vld [vmem:[#allocation2 + $0x24] sm:$0x1]  ;;  %1419 = vmatpush1.bf16.msra.mxu0 %v6041_v57 }
  0x1a   :  { %v5207_v16 = vcombine.low %v834_v61, %v6578_v62  ;;  %v836_v17 = vld [vmem:[#allocation2 + $0x30] sm:$0xf]  ;;  %v6590_v27 = vld [vmem:[#allocation2 + $0x34] sm:$0x1]  ;;  %v139_v28 = vrot.slane %v107_v47, 7  ;;  %1420 = vmatprep.subr.bf16.mxu0 %v8527_v10 }
  0x1b   :  { %v974_v3 = vshrl.u32 %v5206_v50, 16  ;;  %v976_v4 = vshll.u32 %v5206_v50, 16  ;;  %v964_v21 = vrot.slane %v962_v59, 1  ;;  %v967_v22 = vshrl.u32 %v5205_v60, 16  ;;  %v835_v33 = vld [vmem:[#allocation2 + $0x28] sm:$0xf] }
  0x1c   :  { %v969_v26 = vshll.u32 %v5205_v60, 16  ;;  %v981_v30 = vshrl.u32 %v5207_v16, 16  ;;  %v983_v31 = vshll.u32 %v5207_v16, 16  ;;  %v5209_v32 = vcombine.low %v836_v17, %v6590_v27  ;;  %v6596_v40 = vld [vmem:[#allocation2 + $0x2c] sm:$0x1] }
  0x1d   :  { %v978_v29 = vrot.slane %v976_v4, 1  ;;  %v965_v36 = vor.u32 %v964_v21, %v960_v58  ;;  %v838_v44 = vld [vmem:[#allocation2 + $0x40] sm:$0xf]  ;;  %v172_v45 = vsel %vm162_vm0, 0.0, %v139_v28  ;;  %v5208_v61 = vcombine.low %v835_v33, %v6596_v40  ;;  %v837_v16 = vld [vmem:[#allocation2 + $0x38] sm:$0xf]  ;;  %1421 = vmatpush1.bf16.msra.mxu0 %v6042_v35 }
  0x1e   :  { %v971_v39 = vrot.slane %v969_v26, 1  ;;  %v985_v50 = vrot.slane %v983_v31, 1  ;;  %v995_v51 = vshrl.u32 %v5209_v32, 16  ;;  %v997_v59 = vshll.u32 %v5209_v32, 16  ;;  %v6600_v60 = vld [vmem:[#allocation2 + $0x44] sm:$0x1]  ;;  %1422 = vmatprep.subr.bf16.mxu0 %v8527_v10 }
  0x1f   :  { %v979_v47 = vor.u32 %v978_v29, %v974_v3  ;;  %1071 = vrot.lane.b32.xlu0 %v965_v36, %s6324_s23  ;;  %v5211_v4 = vcombine.low %v838_v44, %v6600_v60  ;;  %v6606_v17 = vld [vmem:[#allocation2 + $0x3c] sm:$0x1]  ;;  %v188_v54 = vsel %vm162_vm0, %v139_v28, 0.0  ;;  %v5751_v26 = vpack.c.bf16 %v172_v45, %v172_v45  ;;  %v379_v38 = vld [vmem:[#allocation2 + $0x30] sm:$0xf] }
  0x20   :  { %v972_v58 = vor.u32 %v971_v39, %v967_v22  ;;  %v986_v57 = vor.u32 %v985_v50, %v981_v30  ;;  %v999_v3 = vrot.slane %v997_v59, 1  ;;  %v5210_v21 = vcombine.low %v837_v16, %v6606_v17  ;;  %v6045_v33 = vld [vmem:[%s8503_s1 + $0x98] sm:$0xff]   ;;  %v863_v14 = vld [vmem:[#allocation2 + $0x8] sm:$0xe]  ;;  %v864_v15 = vld [vmem:[#allocation2 + $0x10] sm:$0xe] }
  0x21   :  { %1075 = vrot.lane.b32.xlu1 %v979_v47, %s6324_s23  ;;  %v988_v29 = vshrl.u32 %v5208_v61, 16  ;;  %v990_v31 = vshll.u32 %v5208_v61, 16  ;;  %v1009_v32 = vshrl.u32 %v5211_v4, 16  ;;  %v1011_v22 = vshll.u32 %v5211_v4, 16  ;;  %357 = vst.msk [vmem:[#allocation2 + $0x60] sm:$0xf] %vm331_vm1, %v5751_v26  ;;  %1423 = vmatpush1.bf16.msra.mxu0 %v6045_v33 }
  0x22   :  { %v1000_v36 = vor.u32 %v999_v3, %v995_v51  ;;  %v1002_v39 = vshrl.u32 %v5210_v21, 16  ;;  %v1004_v44 = vshll.u32 %v5210_v21, 16  ;;  %v5752_v28 = vpack.c.bf16 %v188_v54, %v188_v54  ;;  %1424 = vmatprep.subr.bf16.mxu0 %v8527_v10  ;;  %v867_v8 = vld [vmem:[#allocation2 + $0x28] sm:$0xe] }
  0x23   :  { %1073 = vrot.lane.b32.xlu0 %v972_v58, %s6324_s23  ;;  %v992_v30 = vrot.slane %v990_v31, 1  ;;  %v1013_v45 = vrot.slane %v1011_v22, 1  ;;  %v138_v47 = vrot.slane %v6568_v53, 7  ;;  %v141_v35 = vrot.slane %v6587_v20, 7  ;;  %v6046_v20 = vld [vmem:[%s8503_s1 + $0xa0] sm:$0xff]  }
  0x24   :  { %v1006_v50 = vrot.slane %v1004_v44, 1  ;;  %358 = vst.msk [vmem:[#allocation2 + $0x64] sm:$0x1] %vm333_vm2, %v5752_v28  ;;  %v140_v51 = vrot.slane %v108_v48, 7  ;;  %v111_v59 = vadd.f32 %v6415_v11, %v6583_v63  ;;  %v87_v61 = vmul.f32 %v8514_v43, %v6391_v1 }
  0x25   :  { %1077 = vrot.lane.b32.xlu1 %v986_v57, %s6324_s23  ;;  %v993_v58 = vor.u32 %v992_v30, %v988_v29  ;;  %v1014_v4 = vor.u32 %v1013_v45, %v1009_v32  ;;  %v171_v16 = vsel %vm162_vm0, 0.0, %v138_v47  ;;  %v187_v53 = vsel %vm162_vm0, %v138_v47, 0.0  ;;  %1425 = vmatpush1.bf16.msra.mxu0 %v6046_v20  ;;  %v6050_v20 = vld [vmem:[%s8503_s1 + $0xb0] sm:$0xff]  }
  0x26   :  { %v1007_v54 = vor.u32 %v1006_v50, %v1002_v39  ;;  %v5749_v48 = vpack.c.bf16 %v171_v16, %v171_v16  ;;  %v5750_v57 = vpack.c.bf16 %v187_v53, %v187_v53  ;;  %v174_v63 = vsel %vm162_vm0, 0.0, %v141_v35  ;;  %1426 = vmatprep.subr.bf16.mxu0 %v8527_v10 }
  0x27   :  { %1079 = vrot.lane.b32.xlu0 %v993_v58, %s6324_s23  ;;  %v190_v3 = vsel %vm162_vm0, %v141_v35, 0.0  ;;  %v5755_v21 = vpack.c.bf16 %v174_v63, %v174_v63  ;;  %v173_v26 = vsel %vm162_vm0, 0.0, %v140_v51  ;;  %v189_v29 = vsel %vm162_vm0, %v140_v51, 0.0 }
  0x28   :  { %355 = vst.msk [vmem:[#allocation2 + $0x58] sm:$0xf] %vm331_vm1, %v5749_v48  ;;  %v5756_v31 = vpack.c.bf16 %v190_v3, %v190_v3  ;;  %v5753_v32 = vpack.c.bf16 %v173_v26, %v173_v26  ;;  %v5754_v22 = vpack.c.bf16 %v189_v29, %v189_v29  ;;  %v143_v33 = vrot.slane %v111_v59, 7  ;;  %v840_v39 = vld [vmem:[#allocation2 + $0x60] sm:$0xf] }
  0x29   :  { %1081 = vrot.lane.b32.xlu1 %v1000_v36, %s6324_s23  ;;  %356 = vst.msk [vmem:[#allocation2 + $0x5c] sm:$0x1] %vm333_vm2, %v5750_v57  ;;  %v110_v44 = vadd.f32 %v6415_v11, %v87_v61  ;;  %v90_v28 = vmul.f32 %v8511_v49, %v6391_v1  ;;  %v6049_v36 = vld [vmem:[%s8503_s1 + $0xa8] sm:$0xff]   ;;  %v89_v47 = vmul.f32 %v8512_v56, %v6391_v1  ;;  %v6730_v56 = vld [vmem:[#allocation2 + $0x14] sm:$0x1] }
  0x2a   :  { %361 = vst.msk [vmem:[#allocation2 + $0x70] sm:$0xf] %vm331_vm1, %v5755_v21  ;;  %359 = vst.msk [vmem:[#allocation2 + $0x68] sm:$0xf] %vm331_vm1, %v5753_v32  ;;  %v176_v30 = vsel %vm162_vm0, 0.0, %v143_v33  ;;  %v192_v45 = vsel %vm162_vm0, %v143_v33, 0.0  ;;  %1427 = vmatpush1.bf16.msra.mxu0 %v6049_v36 }
  0x2b   :  { %362 = vst.msk [vmem:[#allocation2 + $0x74] sm:$0x1] %vm333_vm2, %v5756_v31  ;;  %360 = vst.msk [vmem:[#allocation2 + $0x6c] sm:$0x1] %vm333_vm2, %v5754_v22  ;;  %1083 = vrot.lane.b32.xlu0 %v1007_v54, %s6324_s23  ;;  %v6658_v35 = vld [vmem:[#allocation2 + $0x64] sm:$0x1]  ;;  %v5759_v50 = vpack.c.bf16 %v176_v30, %v176_v30  ;;  %v5760_v51 = vpack.c.bf16 %v192_v45, %v192_v45  ;;  %v113_v61 = vadd.f32 %v6415_v11, %v90_v28 }
  0x2c   :  { %v142_v59 = vrot.slane %v110_v44, 7  ;;  %v5213_v58 = vcombine.low %v840_v39, %v6658_v35  ;;  %1428 = vmatprep.subr.bf16.mxu0 %v8527_v10  ;;  %v112_v29 = vadd.f32 %v6415_v11, %v89_v47  ;;  %v374_v31 = vld [vmem:[#allocation2 + $0x8] sm:$0xf]  ;;  %v6679_v28 = vld [vmem:[#allocation2 + $0xc] sm:$0x1]  ;;  %v6053_v36 = vld [vmem:[%s8503_s1 + $0xb8] sm:$0xff]  }
  0x2d   :  { %1085 = vrot.lane.b32.xlu1 %v1014_v4, %s6324_s23  ;;  %365 = vst.msk [vmem:[#allocation2 + $0x80] sm:$0xf] %vm331_vm1, %v5759_v50  ;;  %v145_v53 = vrot.slane %v113_v61, 7  ;;  %v383_v12 = vld [vmem:[#allocation2 + $0x60] sm:$0xf] }
  0x2e   :  { %366 = vst.msk [vmem:[#allocation2 + $0x84] sm:$0x1] %vm333_vm2, %v5760_v51  ;;  %v175_v1 = vsel %vm162_vm0, 0.0, %v142_v59  ;;  %v191_v16 = vsel %vm162_vm0, %v142_v59, 0.0  ;;  %v1023_v54 = vshrl.u32 %v5213_v58, 16  ;;  %v1025_v48 = vshll.u32 %v5213_v58, 16  ;;  %1429 = vmatpush1.bf16.msra.mxu0 %v6050_v20 }
  0x2f   :  { %v5757_v57 = vpack.c.bf16 %v175_v1, %v175_v1  ;;  %v5758_v4 = vpack.c.bf16 %v191_v16, %v191_v16  ;;  %v839_v63 = vld [vmem:[#allocation2 + $0x58] sm:$0xf]  ;;  %v178_v21 = vsel %vm162_vm0, 0.0, %v145_v53  ;;  %v194_v26 = vsel %vm162_vm0, %v145_v53, 0.0  ;;  %1430 = vmatprep.subr.bf16.mxu0 %v8527_v10  ;;  %v6775_v6 = vld [vmem:[#allocation2 + $0x64] sm:$0x1] }
  0x30   :  { %v6671_v3 = vld [vmem:[#allocation2 + $0x5c] sm:$0x1]  ;;  %v1027_v32 = vrot.slane %v1025_v48, 1  ;;  %v5763_v39 = vpack.c.bf16 %v178_v21, %v178_v21  ;;  %v5764_v44 = vpack.c.bf16 %v194_v26, %v194_v26  ;;  %v144_v58 = vrot.slane %v112_v29, 7  ;;  %v6694_v48 = vld [vmem:[#allocation2 + $0x4] sm:$0x1] }
  0x31   :  { %v5212_v22 = vcombine.low %v839_v63, %v6671_v3  ;;  %v842_v33 = vld [vmem:[#allocation2 + $0x70] sm:$0xf]  ;;  %363 = vst.msk [vmem:[#allocation2 + $0x78] sm:$0xf] %vm331_vm1, %v5757_v57  ;;  %v841_v11 = vld [vmem:[#allocation2 + $0x68] sm:$0xf]  ;;  %v6697_v57 = vcombine.low %v374_v31, %v6679_v28 }
  0x32   :  { %364 = vst.msk [vmem:[#allocation2 + $0x7c] sm:$0x1] %vm333_vm2, %v5758_v4  ;;  %v6684_v30 = vld [vmem:[#allocation2 + $0x74] sm:$0x1]  ;;  %v6686_v45 = vld [vmem:[#allocation2 + $0x6c] sm:$0x1]  ;;  %v1028_v47 = vor.u32 %v1027_v32, %v1023_v54  ;;  %1431 = vmatpush1.bf16.msra.mxu0 %v6053_v36 }
  0x33   :  { %v1016_v50 = vshrl.u32 %v5212_v22, 16  ;;  %v1018_v51 = vshll.u32 %v5212_v22, 16  ;;  %v5215_v59 = vcombine.low %v842_v33, %v6684_v30  ;;  %369 = vst.msk [vmem:[#allocation2 + $0x90] sm:$0xf] %vm331_vm1, %v5763_v39  ;;  %v5214_v61 = vcombine.low %v841_v11, %v6686_v45  ;;  %v373_v54 = vld [vmem:[#allocation2] sm:$0xf]  ;;  %1625 = vmatprep.subr.bf16.mxu0 %v8527_v10 }
  0x34   :  { %370 = vst.msk [vmem:[#allocation2 + $0x94] sm:$0x1] %vm333_vm2, %v5764_v44  ;;  %1089 = vrot.lane.b32.xlu1 %v1028_v47, %s6324_s23  ;;  %v844_v20 = vld [vmem:[#allocation2 + $0x80] sm:$0xf]  ;;  %v177_v26 = vsel %vm162_vm0, 0.0, %v144_v58  ;;  %v193_v29 = vsel %vm162_vm0, %v144_v58, 0.0 }
  0x35   :  { %v1020_v1 = vrot.slane %v1018_v51, 1  ;;  %v1037_v16 = vshrl.u32 %v5215_v59, 16  ;;  %v1039_v53 = vshll.u32 %v5215_v59, 16  ;;  %v1030_v4 = vshrl.u32 %v5214_v61, 16  ;;  %v6699_v21 = vld [vmem:[#allocation2 + $0x84] sm:$0x1] }
  0x36   :  { %v1032_v63 = vshll.u32 %v5214_v61, 16  ;;  %v5217_v33 = vcombine.low %v844_v20, %v6699_v21  ;;  %v5761_v39 = vpack.c.bf16 %v177_v26, %v177_v26  ;;  %v376_v44 = vld [vmem:[#allocation2 + $0x18] sm:$0xf]  ;;  %v392_v11 = vld [vmem:[#allocation2 + $0x1c] sm:$0x1]  ;;  %v5762_v59 = vpack.c.bf16 %v193_v29, %v193_v29 }
  0x37   :  { %v1021_v32 = vor.u32 %v1020_v1, %v1016_v50  ;;  %v1041_v22 = vrot.slane %v1039_v53, 1  ;;  %v865_v61 = vld [vmem:[#allocation2 + $0x18] sm:$0xe]  ;;  %v378_v53 = vld [vmem:[#allocation2 + $0x28] sm:$0xf]  ;;  %v6719_v29 = vcombine.low %v373_v54, %v6694_v48  ;;  %v509_v43 = vshrl.u32 %v6697_v57, 16 }
  0x38   :  { %v1034_v31 = vrot.slane %v1032_v63, 1  ;;  %v6705_v47 = vld [vmem:[#allocation2 + $0x78] sm:$0xf]  ;;  %v1051_v36 = vshrl.u32 %v5217_v33, 16  ;;  %v1053_v50 = vshll.u32 %v5217_v33, 16  ;;  %v5222_v49 = vcombine.low %v865_v61, %v6557_v46 }
  0x39   :  { %v6707_v51 = vld [vmem:[#allocation2 + $0x7c] sm:$0x1]  ;;  %1087 = vrot.lane.b32.xlu0 %v1021_v32, %s6324_s23  ;;  %v1042_v58 = vor.u32 %v1041_v22, %v1037_v16  ;;  %367 = vst.msk [vmem:[#allocation2 + $0x88] sm:$0xf] %vm331_vm1, %v5761_v39  ;;  %v511_v16 = vshll.u32 %v6697_v57, 16  ;;  %v6722_v32 = vcombine.low %v376_v44, %v392_v11  ;;  %v502_v18 = vshrl.u32 %v6719_v29, 16 }
  0x3a   :  { %v5216_v1 = vcombine.low %v6705_v47, %v6707_v51  ;;  %v1035_v20 = vor.u32 %v1034_v31, %v1030_v4  ;;  %v6713_v26 = vld [vmem:[#allocation2 + $0x90] sm:$0xf]  ;;  %368 = vst.msk [vmem:[#allocation2 + $0x8c] sm:$0x1] %vm333_vm2, %v5762_v59  ;;  %v1055_v22 = vrot.slane %v1053_v50, 1  ;;  %v6746_v24 = vrot.slane %v5222_v49, 1 }
  0x3b   :  { %v6715_v63 = vld [vmem:[#allocation2 + $0x94] sm:$0x1]  ;;  %1093 = vrot.lane.b32.xlu1 %v1042_v58, %s6324_s23  ;;  %v6727_v31 = vld [vmem:[#allocation2 + $0x2c] sm:$0x1]  ;;  %v375_v59 = vld [vmem:[#allocation2 + $0x10] sm:$0xf] }
  0x3c   :  { %v1044_v33 = vshrl.u32 %v5216_v1, 16  ;;  %v1046_v39 = vshll.u32 %v5216_v1, 16  ;;  %v5219_v4 = vcombine.low %v6713_v26, %v6715_v63  ;;  %v1056_v54 = vor.u32 %v1055_v22, %v1051_v36  ;;  %v377_v58 = vld [vmem:[#allocation2 + $0x20] sm:$0xf]  ;;  %v6733_v50 = vld [vmem:[#allocation2 + $0x24] sm:$0x1] }
  0x3d   :  { %1091 = vrot.lane.b32.xlu0 %v1035_v20, %s6324_s23  ;;  %v504_v1 = vshll.u32 %v6719_v29, 16  ;;  %v6738_v37 = vcombine.low %v378_v53, %v6727_v31  ;;  %v380_v46 = vld [vmem:[#allocation2 + $0x38] sm:$0xf]  ;;  %v6740_v61 = vld [vmem:[#allocation2 + $0x3c] sm:$0x1]  ;;  %v513_v22 = vrot.slane %v511_v16, 1 }
  0x3e   :  { %v1048_v44 = vrot.slane %v1046_v39, 1  ;;  %v1065_v11 = vshrl.u32 %v5219_v4, 16  ;;  %v1067_v42 = vshll.u32 %v5219_v4, 16  ;;  %v525_v39 = vshll.u32 %v6722_v32, 16  ;;  %v382_v19 = vld [vmem:[#allocation2 + $0x58] sm:$0xf] }
  0x3f   :  { %1097 = vrot.lane.b32.xlu1 %v1056_v54, %s6324_s23  ;;  %v6753_v54 = vcombine.low %v375_v59, %v6730_v56  ;;  %v6763_v49 = vcombine.low %v380_v46, %v6740_v61  ;;  %v514_v29 = vor.u32 %v513_v22, %v509_v43  ;;  %v523_v59 = vshrl.u32 %v6722_v32, 16  ;;  %v6773_v46 = vld [vmem:[#allocation2 + $0x5c] sm:$0x1]  ;;  %v6784_v10 = vld [vmem:[#allocation2 + $0x6c] sm:$0x1] }
  0x40   :  { %v1049_v20 = vor.u32 %v1048_v44, %v1044_v33  ;;  %v1069_v36 = vrot.slane %v1067_v42, 1  ;;  %v6744_v4 = vld [vmem:[#allocation2 + $0x88] sm:$0xf]  ;;  %v6755_v42 = vld [vmem:[#allocation2 + $0x34] sm:$0x1]  ;;  %v506_v33 = vrot.slane %v504_v1, 1  ;;  %v6760_v44 = vcombine.low %v377_v58, %v6733_v50 }
  0x41   :  { %v6749_v53 = vld [vmem:[#allocation2 + $0x8c] sm:$0x1]  ;;  %v6771_v58 = vcombine.low %v379_v38, %v6755_v42  ;;  %8607 = vst [vmem:[#allocation12_spill] sm:$0xff] %v6773_v46  ;;  %v516_v43 = vshrl.u32 %v6753_v54, 16  ;;  %v518_v32 = vshll.u32 %v6753_v54, 16  ;;  %v537_v38 = vshrl.u32 %v6738_v37, 16 }
  0x42   :  { %1095 = vrot.lane.b32.xlu0 %v1049_v20, %s6324_s23  ;;  %v1070_v57 = vor.u32 %v1069_v36, %v1065_v11  ;;  %v5218_v16 = vcombine.low %v6744_v4, %v6749_v53  ;;  %v6765_v11 = vld [vmem:[#allocation2 + $0x54] sm:$0x1]  ;;  %v527_v20 = vrot.slane %v525_v39, 1  ;;  %v539_v36 = vshll.u32 %v6738_v37, 16  ;;  %v384_v39 = vld [vmem:[#allocation2 + $0x68] sm:$0xf] }
  0x43   :  { %v6780_v22 = vcombine.low %v381_v23, %v6765_v11  ;;  %v507_v5 = vor.u32 %v506_v33, %v502_v18  ;;  %v553_v2 = vshll.u32 %v6763_v49, 16  ;;  %v6789_v54 = vcombine.low %v382_v19, %v6773_v46  ;;  %v866_v37 = vld [vmem:[#allocation2 + $0x20] sm:$0xe]  ;;  %v6803_v19 = vld [vmem:[#allocation2 + $0x74] sm:$0x1] }
  0x44   :  { %1101 = vrot.lane.b32.xlu1 %v1070_v57, %s6324_s23  ;;  %v1058_v1 = vshrl.u32 %v5218_v16, 16  ;;  %v1060_v13 = vshll.u32 %v5218_v16, 16  ;;  %v532_v16 = vshll.u32 %v6760_v44, 16  ;;  %v528_v34 = vor.u32 %v527_v20, %v523_v59  ;;  %v6801_v20 = vld [vmem:[#allocation2 + $0x70] sm:$0xf] }
  0x45   :  { %v541_v25 = vrot.slane %v539_v36, 1  ;;  %v5220_v18 = vcombine.low %v863_v14, %v6547_v41  ;;  %v5221_v33 = vcombine.low %v864_v15, %v6565_v52  ;;  %v520_v55 = vrot.slane %v518_v32, 1  ;;  %8608 = vst [vmem:[#allocation13_spill] sm:$0xff] %v6801_v20  ;;  %v6808_v41 = vld [vmem:[#allocation2 + $0x78] sm:$0xf] }
  0x46   :  { %v1062_v57 = vrot.slane %v1060_v13, 1  ;;  %v546_v13 = vshll.u32 %v6771_v58, 16  ;;  %v530_v9 = vshrl.u32 %v6760_v44, 16  ;;  %v6799_v59 = vcombine.low %v384_v39, %v6784_v10  ;;  %8609 = vst [vmem:[#allocation14_spill] sm:$0xff] %v6808_v41  ;;  %v6812_v32 = vld [vmem:[#allocation2 + $0x7c] sm:$0x1] }
  0x47   :  { %v534_v36 = vrot.slane %v532_v16, 1  ;;  %v551_v14 = vshrl.u32 %v6763_v49, 16  ;;  %v560_v15 = vshll.u32 %v6780_v22, 16  ;;  %v1151_v52 = vrot.slane %v5220_v18, 1 }
  0x48   :  { %615 = vrot.lane.b32.xlu1 %v514_v29, %s6324_s23  ;;  %v1063_v23 = vor.u32 %v1062_v57, %v1058_v1  ;;  %v6796_v29 = vcombine.low %v383_v12, %v6775_v6  ;;  %v542_v12 = vor.u32 %v541_v25, %v537_v38  ;;  %v555_v44 = vrot.slane %v553_v2, 1  ;;  %v868_v2 = vld [vmem:[#allocation2 + $0x30] sm:$0xe] }
  0x49   :  { %v567_v1 = vshll.u32 %v6789_v54, 16  ;;  %v1152_v39 = vrot.slane %v5221_v33, 1  ;;  %v544_v57 = vshrl.u32 %v6771_v58, 16  ;;  %v5223_v49 = vcombine.low %v866_v37, %v6578_v62  ;;  %v6828_v62 = vld [vmem:[#allocation2 + $0x80] sm:$0xf] }
  0x4a   :  { %1099 = vrot.lane.b32.xlu0 %v1063_v23, %s6324_s23  ;;  %v548_v23 = vrot.slane %v546_v13, 1  ;;  %v521_v7 = vor.u32 %v520_v55, %v516_v43  ;;  %v574_v18 = vshll.u32 %v6796_v29, 16  ;;  %v562_v38 = vrot.slane %v560_v15, 1  ;;  %8610 = vst [vmem:[#allocation15_spill] sm:$0xff] %v6828_v62  ;;  %v6830_v55 = vld [vmem:[#allocation2 + $0x84] sm:$0x1] }
  0x4b   :  { %v5261_v25 = vcombine.low %v1151_v52, %v1152_v39  ;;  %v6822_v33 = vcombine.low %v6801_v20, %v6803_v19  ;;  %v6826_v58 = vcombine.low %v6808_v41, %v6812_v32  ;;  %v6832_v43 = vld [vmem:[#allocation2 + $0x88] sm:$0xf]  ;;  %v6834_v13 = vrot.slane %v5223_v49, 1  ;;  %v6840_v39 = vld [vmem:[#allocation2 + $0x8c] sm:$0x1] }
  0x4c   :  { %619 = vrot.lane.b32.xlu1 %v528_v34, %s6324_s23  ;;  %v581_v34 = vshll.u32 %v6799_v59, 16  ;;  %8611 = vst [vmem:[#allocation16_spill] sm:$0xff] %v6832_v43  ;;  %v565_v37 = vshrl.u32 %v6789_v54, 16  ;;  %v569_v15 = vrot.slane %v567_v1, 1  ;;  %v579_v16 = vshrl.u32 %v6799_v59, 16 }
  0x4d   :  { %5288 = vmatprep.mubr.msk.bf16.mxu0 %vm709_vm3, %v5261_v25  ;;  %v5224_v49 = vcombine.low %v867_v8, %v6596_v40  ;;  %v5225_v41 = vcombine.low %v868_v2, %v6590_v27  ;;  %v870_v1 = vld [vmem:[#allocation2 + $0x40] sm:$0xe]  ;;  %v588_v25 = vshll.u32 %v6822_v33, 16  ;;  %v595_v52 = vshll.u32 %v6826_v58, 16  ;;  %v6865_v40 = vld [vmem:[#allocation2 + $0x1c] sm:$0x1] }
  0x4e   :  { %613 = vrot.lane.b32.xlu0 %v507_v5, %s6324_s23  ;;  %v556_v5 = vor.u32 %v555_v44, %v551_v14  ;;  %v535_v14 = vor.u32 %v534_v36, %v530_v9  ;;  %v576_v44 = vrot.slane %v574_v18, 1  ;;  %v583_v54 = vrot.slane %v581_v34, 1  ;;  %8613 = vst [vmem:[#allocation18_spill] sm:$0xff] %v6865_v40  ;;  %v871_v18 = vld [vmem:[#allocation2 + $0x58] sm:$0xe] }
  0x4f   :  { %v6850_v20 = vrot.slane %v5224_v49, 1  ;;  %v6852_v59 = vrot.slane %v5225_v41, 1  ;;  %v570_v8 = vor.u32 %v569_v15, %v565_v37  ;;  %v6857_v27 = vcombine.low %v6828_v62, %v6830_v55  ;;  %v6868_v34 = vld [vmem:[#allocation2 + $0x10] sm:$0xf]  ;;  %v6870_v2 = vld [vmem:[#allocation2 + $0x14] sm:$0x1] }
  0x50   :  { %623 = vrot.lane.b32.xlu1 %v542_v12, %s6324_s23  ;;  %v869_v12 = vld [vmem:[#allocation2 + $0x38] sm:$0xe]  ;;  %v6861_v9 = vcombine.low %v6832_v43, %v6840_v39  ;;  %v549_v41 = vor.u32 %v548_v23, %v544_v57  ;;  %8614 = vst [vmem:[#allocation19_spill] sm:$0xff] %v6868_v34  ;;  %8615 = vst [vmem:[#allocation20_spill] sm:$0xff] %v6870_v2  ;;  %v5227_v37 = vcombine.low %v870_v1, %v6600_v60  ;;  %v872_v15 = vld [vmem:[#allocation2 + $0x60] sm:$0xe] }
  0x51   :  { %v5226_v36 = vcombine.low %v869_v12, %v6606_v17  ;;  %v584_v49 = vor.u32 %v583_v54, %v579_v16  ;;  %v586_v0 = vshrl.u32 %v6822_v33, 16  ;;  %v593_v43 = vshrl.u32 %v6826_v58, 16  ;;  %v6877_v62 = vld [vmem:[#allocation2 + $0x28] sm:$0xf]  ;;  %v6893_v58 = vld [vmem:[#allocation2 + $0x20] sm:$0xf] }
  0x52   :  { %617 = vrot.lane.b32.xlu0 %v521_v7, %s6324_s23  ;;  %v6863_v7 = vld [vmem:[#allocation2 + $0x18] sm:$0xf]  ;;  %8616 = vst [vmem:[#allocation21_spill] sm:$0xff] %v6877_v62  ;;  %v590_v57 = vrot.slane %v588_v25, 1  ;;  %v597_v23 = vrot.slane %v595_v52, 1  ;;  %v6888_v60 = vrot.slane %v5227_v37, 1  ;;  %v5228_v52 = vcombine.low %v871_v18, %v6671_v3 }
  0x53   :  { %8612 = vst [vmem:[#allocation17_spill] sm:$0xff] %v6863_v7  ;;  %v6879_v17 = vrot.slane %v5226_v36, 1  ;;  %v6884_v12 = vcombine.low %v6863_v7, %v6865_v40  ;;  %v602_v16 = vshll.u32 %v6857_v27, 16  ;;  %v609_v33 = vshll.u32 %v6861_v9, 16  ;;  %8618 = vst [vmem:[#allocation23_spill] sm:$0xff] %v6893_v58 }
  0x54   :  { %627 = vrot.lane.b32.xlu1 %v556_v5, %s6324_s23  ;;  %v6886_v5 = vld [vmem:[#allocation2 + $0x2c] sm:$0x1]  ;;  %v6895_v54 = vld [vmem:[#allocation2 + $0x24] sm:$0x1]  ;;  %v8620_v1 = vshrl.u32 %v6780_v22, 16  ;;  %v6906_v40 = vcombine.low %v6868_v34, %v6870_v2  ;;  %v6916_v22 = vrot.slane %v5228_v52, 1 }
  0x55   :  { %8617 = vst [vmem:[#allocation22_spill] sm:$0xff] %v6886_v5  ;;  %8619 = vst [vmem:[#allocation24_spill] sm:$0xff] %v6895_v54  ;;  %v873_v37 = vld [vmem:[#allocation2 + $0x68] sm:$0xe]  ;;  %v6910_v46 = vcombine.low %v6877_v62, %v6886_v5  ;;  %v6912_v3 = vld [vmem:[#allocation2 + $0x30] sm:$0xf] }
  0x56   :  { %621 = vrot.lane.b32.xlu0 %v535_v14, %s6324_s23  ;;  %v5229_v14 = vcombine.low %v872_v15, %v6658_v35  ;;  %v563_v25 = vor.u32 %v562_v38, %v8620_v1  ;;  %8621 = vst [vmem:[#allocation25_spill] sm:$0xff] %v6912_v3  ;;  %v6914_v35 = vld [vmem:[#allocation2 + $0x34] sm:$0x1]  ;;  %v598_v38 = vor.u32 %v597_v23, %v593_v43  ;;  %v607_v18 = vshrl.u32 %v6861_v9, 16  ;;  %v6921_v1 = vld [vmem:[#allocation2 + $0x38] sm:$0xf] }
  0x57   :  { %8622 = vst [vmem:[#allocation26_spill] sm:$0xff] %v6914_v35  ;;  %v1861_v15 = vshll.u32 %v6884_v12, 16  ;;  %8623 = vst [vmem:[#allocation27_spill] sm:$0xff] %v6921_v1  ;;  %v604_v7 = vrot.slane %v602_v16, 1  ;;  %v611_v62 = vrot.slane %v609_v33, 1  ;;  %v5230_v52 = vcombine.low %v873_v37, %v6686_v45 }
  0x58   :  { %631 = vrot.lane.b32.xlu1 %v570_v8, %s6324_s23  ;;  %v874_v8 = vld [vmem:[#allocation2 + $0x70] sm:$0xe]  ;;  %v6923_v36 = vrot.slane %v5229_v14, 1  ;;  %v6926_v34 = vld [vmem:[#allocation2 + $0x3c] sm:$0x1]  ;;  %v8625_v43 = vshrl.u32 %v6796_v29, 16  ;;  %v6934_v9 = vcombine.low %v6893_v58, %v6895_v54  ;;  %v6946_v29 = vcombine.low %v6912_v3, %v6914_v35 }
  0x59   :  { %8624 = vst [vmem:[#allocation28_spill] sm:$0xff] %v6926_v34  ;;  %v5231_v5 = vcombine.low %v874_v8, %v6684_v30  ;;  %v875_v14 = vld [vmem:[#allocation2 + $0x78] sm:$0xe]  ;;  %v1854_v16 = vshll.u32 %v6906_v40, 16  ;;  %v1859_v33 = vshrl.u32 %v6884_v12, 16  ;;  %v1875_v45 = vshll.u32 %v6910_v46, 16 }
  0x5a   :  { %625 = vrot.lane.b32.xlu0 %v549_v41, %s6324_s23  ;;  %v577_v41 = vor.u32 %v576_v44, %v8625_v43  ;;  %v6941_v37 = vrot.slane %v5230_v52, 1  ;;  %v1863_v30 = vrot.slane %v1861_v15, 1  ;;  %v6950_v44 = vcombine.low %v6921_v1, %v6926_v34  ;;  %v6952_v8 = vld [vmem:[#allocation2 + $0x40] sm:$0xf]  ;;  %v6954_v43 = vld [vmem:[#allocation2 + $0x44] sm:$0x1] }
  0x5b   :  { %8626 = vst [vmem:[#allocation29_spill] sm:$0xff] %v6952_v8  ;;  %8627 = vst [vmem:[#allocation30_spill] sm:$0xff] %v6954_v43  ;;  %v6956_v12 = vrot.slane %v5231_v5, 1  ;;  %v612_v52 = vor.u32 %v611_v62, %v607_v18  ;;  %v6959_v23 = vld [vmem:[#allocation2 + $0x48] sm:$0xf]  ;;  %v5232_v15 = vcombine.low %v875_v14, %v6707_v51  ;;  %v591_v58 = vor.u32 %v590_v57, %v586_v0 }
  0x5c   :  { %635 = vrot.lane.b32.xlu1 %v584_v49, %s6324_s23  ;;  %v876_v49 = vld [vmem:[#allocation2 + $0x80] sm:$0xe]  ;;  %8628 = vst [vmem:[#allocation31_spill] sm:$0xff] %v6959_v23  ;;  %v1852_v1 = vshrl.u32 %v6906_v40, 16  ;;  %v1868_v34 = vshll.u32 %v6934_v9, 16  ;;  %v1877_v62 = vrot.slane %v1875_v45, 1  ;;  %v6972_v18 = vcombine.low %v6952_v8, %v6954_v43 }
  0x5d   :  { %v5233_v3 = vcombine.low %v876_v49, %v6699_v21  ;;  %v877_v35 = vld [vmem:[#allocation2 + $0x88] sm:$0xe]  ;;  %v6974_v54 = vrot.slane %v5232_v15, 1  ;;  %v878_v51 = vld [vmem:[#allocation2 + $0x90] sm:$0xe]  ;;  %v1856_v0 = vrot.slane %v1854_v16, 1 }
  0x5e   :  { %629 = vrot.lane.b32.xlu0 %v563_v25, %s6324_s23  ;;  %v6961_v25 = vld [vmem:[#allocation2 + $0x4c] sm:$0x1]  ;;  %v1882_v21 = vshll.u32 %v6946_v29, 16  ;;  %v1889_v40 = vshll.u32 %v6950_v44, 16  ;;  %v1866_v14 = vshrl.u32 %v6934_v9, 16  ;;  %v1870_v16 = vrot.slane %v1868_v34, 1 }
  0x5f   :  { %8629 = vst [vmem:[#allocation32_spill] sm:$0xff] %v6961_v25  ;;  %v6979_v57 = vrot.slane %v5233_v3, 1  ;;  %v5339_v49 = vcombine.low %v6959_v23, %v6961_v25  ;;  %v6985_v45 = vld [vmem:[#allocation2 + $0x60] sm:$0xf]  ;;  %v6987_v15 = vld [vmem:[#allocation2 + $0x64] sm:$0x1]  ;;  %v5235_v9 = vcombine.low %v878_v51, %v6715_v63 }
  0x60   :  { %639 = vrot.lane.b32.xlu1 %v598_v38, %s6324_s23  ;;  %v1873_v38 = vshrl.u32 %v6910_v46, 16  ;;  %v1864_v46 = vor.u32 %v1863_v30, %v1859_v33  ;;  %8630 = vst [vmem:[#allocation33_spill] sm:$0xff] %v6985_v45  ;;  %v6991_v8 = vld [vmem:[#allocation2 + $0x68] sm:$0xf]  ;;  %v6993_v3 = vld [vmem:[#allocation2 + $0x6c] sm:$0x1] }
  0x61   :  { %8631 = vst [vmem:[#allocation34_spill] sm:$0xff] %v6991_v8  ;;  %8632 = vst [vmem:[#allocation35_spill] sm:$0xff] %v6993_v3  ;;  %v8633_v30 = vshrl.u32 %v6857_v27, 16  ;;  %v1896_v25 = vshll.u32 %v6972_v18, 16  ;;  %v1887_v34 = vshrl.u32 %v6950_v44, 16  ;;  %v7005_v5 = vrot.slane %v5235_v9, 1 }
  0x62   :  { %633 = vrot.lane.b32.xlu0 %v577_v41, %s6324_s23  ;;  %v5234_v41 = vcombine.low %v877_v35, %v6749_v53  ;;  %v1878_v23 = vor.u32 %v1877_v62, %v1873_v38  ;;  %v1884_v53 = vrot.slane %v1882_v21, 1  ;;  %v1891_v35 = vrot.slane %v1889_v40, 1  ;;  %v405_v2 = vld [vmem:[#allocation2] sm:$0xe]  ;;  %v406_v38 = vld [vmem:[#allocation2 + $0x8] sm:$0xe] }
  0x63   :  { %v1903_v27 = vshll.u32 %v5339_v49, 16  ;;  %v5188_v62 = vcombine.low %v405_v2, %v6694_v48  ;;  %v7016_v44 = vld [vmem:[#allocation2 + $0x78] sm:$0xf]  ;;  %v7018_v51 = vld [vmem:[#allocation2 + $0x7c] sm:$0x1]  ;;  %v5189_v40 = vcombine.low %v406_v38, %v6679_v28  ;;  %v1857_v2 = vor.u32 %v1856_v0, %v1852_v1 }
  0x64   :  { %643 = vrot.lane.b32.xlu1 %v612_v52, %s6324_s23  ;;  %v605_v52 = vor.u32 %v604_v7, %v8633_v30  ;;  %v7001_v43 = vrot.slane %v5234_v41, 1  ;;  %v5341_v7 = vcombine.low %v6991_v8, %v6993_v3  ;;  %8634 = vst [vmem:[#allocation36_spill] sm:$0xff] %v7016_v44  ;;  %8635 = vst [vmem:[#allocation37_spill] sm:$0xff] %v7018_v51  ;;  %v7023_v41 = vld [vmem:[#allocation2 + $0x70] sm:$0xf]  ;;  %v1901_v63 = vshrl.u32 %v5339_v49, 16 }
  0x65   :  { %8636 = vst [vmem:[#allocation38_spill] sm:$0xff] %v7023_v41  ;;  %v7025_v9 = vld [vmem:[#allocation2 + $0x88] sm:$0xf]  ;;  %v7027_v30 = vld [vmem:[#allocation2 + $0x8c] sm:$0x1]  ;;  %v7029_v48 = vrot.slane %v5188_v62, 1  ;;  %v1892_v33 = vor.u32 %v1891_v35, %v1887_v34  ;;  %v5343_v21 = vcombine.low %v7016_v44, %v7018_v51  ;;  %v1871_v34 = vor.u32 %v1870_v16, %v1866_v14 }
  0x66   :  { %637 = vrot.lane.b32.xlu0 %v591_v58, %s6324_s23  ;;  %v7014_v58 = vcombine.low %v6985_v45, %v6987_v15  ;;  %8637 = vst [vmem:[#allocation39_spill] sm:$0xff] %v7025_v9  ;;  %8638 = vst [vmem:[#allocation40_spill] sm:$0xff] %v7027_v30  ;;  %v7032_v8 = vld [vmem:[#allocation2 + $0x74] sm:$0x1]  ;;  %v7034_v45 = vrot.slane %v5189_v40, 1  ;;  %v1905_v28 = vrot.slane %v1903_v27, 1  ;;  %v5345_v1 = vcombine.low %v7025_v9, %v7027_v30 }
  0x67   :  { %v1917_v38 = vshll.u32 %v5341_v7, 16  ;;  %v1915_v3 = vshrl.u32 %v5341_v7, 16  ;;  %v7045_v49 = vld [vmem:[#allocation2 + $0x98] sm:$0xf]  ;;  %v5342_v35 = vcombine.low %v7023_v41, %v7032_v8  ;;  %v7050_v27 = vld [vmem:[#allocation2 + $0x9c] sm:$0x1] }
  0x68   :  { %1965 = vrot.lane.b32.xlu1 %v1864_v46, %s6324_s23  ;;  %v1898_v46 = vrot.slane %v1896_v25, 1  ;;  %v1908_v25 = vshrl.u32 %v7014_v58, 16  ;;  %v1910_v62 = vshll.u32 %v7014_v58, 16  ;;  %v1906_v40 = vor.u32 %v1905_v28, %v1901_v63  ;;  %v411_v14 = vld [vmem:[#allocation2 + $0x30] sm:$0xe] }
  0x69   :  { %v1919_v0 = vrot.slane %v1917_v38, 1  ;;  %v1931_v9 = vshll.u32 %v5343_v21, 16  ;;  %v1945_v30 = vshll.u32 %v5345_v1, 16  ;;  %v8639_v16 = vshrl.u32 %v6946_v29, 16  ;;  %v7065_v28 = vld [vmem:[#allocation2 + $0x80] sm:$0xf] }
  0x6a   :  { %641 = vrot.lane.b32.xlu0 %v605_v52, %s6324_s23  ;;  %v409_v52 = vld [vmem:[#allocation2 + $0x20] sm:$0xe]  ;;  %v1912_v44 = vrot.slane %v1910_v62, 1  ;;  %v1929_v63 = vshrl.u32 %v5343_v21, 16  ;;  %v7067_v38 = vld [vmem:[#allocation2 + $0x84] sm:$0x1] }
  0x6b   :  { %v5192_v7 = vcombine.low %v409_v52, %v6733_v50  ;;  %v1885_v41 = vor.u32 %v1884_v53, %v8639_v16  ;;  %v5347_v50 = vcombine.low %v7045_v49, %v7050_v27  ;;  %v412_v52 = vld [vmem:[#allocation2 + $0x38] sm:$0xe]  ;;  %v1920_v53 = vor.u32 %v1919_v0, %v1915_v3  ;;  %v7077_v21 = vld [vmem:[#allocation2 + $0x90] sm:$0xf] }
  0x6c   :  { %1969 = vrot.lane.b32.xlu1 %v1878_v23, %s6324_s23  ;;  %v410_v23 = vld [vmem:[#allocation2 + $0x28] sm:$0xe]  ;;  %v5195_v29 = vcombine.low %v412_v52, %v6740_v61  ;;  %v8640_v62 = vshrl.u32 %v6972_v18, 16  ;;  %v5344_v3 = vcombine.low %v7065_v28, %v7067_v38  ;;  %v415_v18 = vld [vmem:[#allocation2 + $0x60] sm:$0xe] }
  0x6d   :  { %v5193_v58 = vcombine.low %v410_v23, %v6727_v31  ;;  %v7055_v51 = vrot.slane %v5192_v7, 1  ;;  %v5194_v31 = vcombine.low %v411_v14, %v6755_v42  ;;  %v1933_v23 = vrot.slane %v1931_v9, 1  ;;  %v7079_v14 = vld [vmem:[#allocation2 + $0x94] sm:$0x1] }
  0x6e   :  { %1963 = vrot.lane.b32.xlu0 %v1857_v2, %s6324_s23  ;;  %v1943_v42 = vshrl.u32 %v5345_v1, 16  ;;  %v1959_v16 = vshll.u32 %v5347_v50, 16  ;;  %v1899_v61 = vor.u32 %v1898_v46, %v8640_v62  ;;  %v1938_v52 = vshll.u32 %v5344_v3, 16 }
  0x6f   :  { %v7057_v2 = vrot.slane %v5193_v58, 1  ;;  %v7073_v7 = vrot.slane %v5194_v31, 1  ;;  %v7075_v58 = vrot.slane %v5195_v29, 1  ;;  %v1934_v1 = vor.u32 %v1933_v23, %v1929_v63  ;;  %v416_v29 = vld [vmem:[#allocation2 + $0x68] sm:$0xe] }
  0x70   :  { %1973 = vrot.lane.b32.xlu1 %v1892_v33, %s6324_s23  ;;  %v1924_v33 = vshll.u32 %v5342_v35, 16  ;;  %v1957_v31 = vshrl.u32 %v5347_v50, 16  ;;  %v1961_v62 = vrot.slane %v1959_v16, 1  ;;  %v5198_v9 = vcombine.low %v415_v18, %v6775_v6  ;;  %v417_v16 = vld [vmem:[#allocation2 + $0x70] sm:$0xe] }
  0x71   :  { %v5199_v63 = vcombine.low %v416_v29, %v6784_v10 }
  0x72   :  { %1967 = vrot.lane.b32.xlu0 %v1871_v34, %s6324_s23  ;;  %v1947_v34 = vrot.slane %v1945_v30, 1  ;;  %v1922_v30 = vshrl.u32 %v5342_v35, 16  ;;  %v1926_v0 = vrot.slane %v1924_v33, 1  ;;  %v7095_v33 = vrot.slane %v5198_v9, 1 }
  0x73   :  { %v7098_v23 = vrot.slane %v5199_v63, 1 }
  0x74   :  { %1977 = vrot.lane.b32.xlu1 %v1906_v40, %s6324_s23  ;;  %v1913_v40 = vor.u32 %v1912_v44, %v1908_v25  ;;  %v1948_v46 = vor.u32 %v1947_v34, %v1943_v42  ;;  %v1927_v35 = vor.u32 %v1926_v0, %v1922_v30  ;;  %v1936_v44 = vshrl.u32 %v5344_v3, 16 }
  0x75   :  { %v1940_v25 = vrot.slane %v1938_v52, 1  ;;  %v1962_v42 = vor.u32 %v1961_v62, %v1957_v31  ;;  %v5307_v50 = vcombine.low %v7095_v33, %v7098_v23  ;;  %v5200_v3 = vcombine.low %v417_v16, %v6803_v19  ;;  %v419_v52 = vld [vmem:[#allocation2 + $0x80] sm:$0xe]  ;;  %v6262_v16 = vld [vmem:[#allocation2 + $0x18] sm:$0xf]  ;;  %v8653_v33 = vld [vmem:[#allocation13_spill] sm:$0xff] }
  0x76   :  { %1971 = vrot.lane.b32.xlu0 %v1885_v41, %s6324_s23  ;;  %v5346_v41 = vcombine.low %v7077_v21, %v7079_v14  ;;  %v5202_v18 = vcombine.low %v419_v52, %v6830_v55  ;;  %v6054_v55 = vld [vmem:[%s8503_s1] sm:$0xff]  }
  0x77   :  { %v1941_v6 = vor.u32 %v1940_v25, %v1936_v44  ;;  %v6261_v25 = vld [vmem:[#allocation2 + $0x10] sm:$0xf] }
  0x78   :  { %1981 = vrot.lane.b32.xlu1 %v1920_v53, %s6324_s23  ;;  %v1952_v53 = vshll.u32 %v5346_v41, 16  ;;  %v1950_v10 = vshrl.u32 %v5346_v41, 16  ;;  %v420_v41 = vld [vmem:[#allocation2 + $0x88] sm:$0xe] }
  0x79   :  { %v5203_v19 = vcombine.low %v420_v41, %v6840_v39 }
  0x7a   :  { %1975 = vrot.lane.b32.xlu0 %v1899_v61, %s6324_s23  ;;  %v1954_v34 = vrot.slane %v1952_v53, 1  ;;  %v418_v61 = vld [vmem:[#allocation2 + $0x78] sm:$0xe] }
  0x7b   :  { %v5201_v9 = vcombine.low %v418_v61, %v6812_v32  ;;  %v7119_v32 = vrot.slane %v5203_v19, 1  ;;  %v6265_v19 = vld [vmem:[#allocation2 + $0x28] sm:$0xf] }
  0x7c   :  { %1985 = vrot.lane.b32.xlu1 %v1934_v1, %s6324_s23  ;;  %v7107_v1 = vrot.slane %v5200_v3, 1  ;;  %v1955_v0 = vor.u32 %v1954_v34, %v1950_v10  ;;  %v8641_v10 = vcombine.low %v6746_v24, %v6834_v13  ;;  %v8642_v34 = vmov 0   ;;  %v6263_v3 = vld [vmem:[#allocation2 + $0x20] sm:$0xf]  ;;  %v6264_v13 = vld [vmem:[#allocation2 + $0x30] sm:$0xf] }
  0x7d   :  { %v7109_v30 = vrot.slane %v5201_v9, 1 }
  0x7e   :  { %1979 = vrot.lane.b32.xlu0 %v1913_v40, %s6324_s23 }
  0x7f   :  { %v5309_v40 = vcombine.low %v7107_v1, %v7109_v30  ;;  %v8657_v1 = vld [vmem:[#allocation15_spill] sm:$0xff] }
  0x80   :  { %1989 = vrot.lane.b32.xlu1 %v1948_v46, %s6324_s23  ;;  %v7117_v46 = vrot.slane %v5202_v18, 1 }
  0x82   :  { %1983 = vrot.lane.b32.xlu0 %v1927_v35, %s6324_s23  ;;  %v5311_v31 = vcombine.low %v7117_v46, %v7119_v32  ;;  %v6260_v35 = vld [vmem:[#allocation2 + $0x8] sm:$0xf] }
  0x84   :  { %1993 = vrot.lane.b32.xlu1 %v1962_v42, %s6324_s23 }
  0x86   :  { %1987 = vrot.lane.b32.xlu0 %v1941_v6, %s6324_s23  ;;  %v6057_v6 = vld [vmem:[%s8503_s1 + $0x8] sm:$0xff]  }
  0x8a   :  { %1991 = vrot.lane.b32.xlu0 %v1955_v0, %s6324_s23  ;;  %v6060_v0 = vld [vmem:[%s8503_s1 + $0x10] sm:$0xff]  }
  0x91   :  { %v1072_v62 = vpop.permute.xlu0 %1071 }
  0x92   :  { %v1169_v44 = vsel %vm709_vm3, %v6260_v35, %v1072_v62 }
  0x93   :  { %v1076_v29 = vpop.permute.xlu1 %1075 }
  0x94   :  { %v1175_v61 = vsel %vm709_vm3, %v6262_v16, %v1076_v29  ;;  %v8643_v29 = vcombine.low %v6850_v20, %v6852_v59  ;;  %v6266_v20 = vld [vmem:[#allocation2 + $0x40] sm:$0xf]  ;;  %v6068_v16 = vld [vmem:[%s8503_s1 + $0x30] sm:$0xff]  }
  0x95   :  { %v1074_v63 = vpop.permute.xlu0 %1073 }
  0x96   :  { %v1172_v53 = vsel %vm709_vm3, %v6261_v25, %v1074_v63  ;;  %v6061_v63 = vld [vmem:[%s8503_s1 + $0x18] sm:$0xff]  }
  0x97   :  { %v5260_v39 = vcombine.low %v1169_v44, %v1172_v53  ;;  %v1078_v42 = vpop.permute.xlu1 %1077  ;;  %v6064_v44 = vld [vmem:[%s8503_s1 + $0x20] sm:$0xff]  }
  0x98   :  { %v1178_v9 = vsel %vm709_vm3, %v6263_v3, %v1078_v42  ;;  %v8644_v42 = vcombine.low %v6879_v17, %v6888_v60  ;;  %v6268_v17 = vld [vmem:[#allocation2 + $0x60] sm:$0xf] }
  0x99   :  { %1441 = vmatmul.mubr.bf16.vlgmr.msra.gmra.mrb[0].mxu0 %v5260_v39  ;;  %v5262_v52 = vcombine.low %v1175_v61, %v1178_v9  ;;  %v1080_v24 = vpop.permute.xlu0 %1079  ;;  %v6269_v9 = vld [vmem:[#allocation2 + $0x58] sm:$0xf] }
  0x9a   :  { %1626 = vmatpush1.bf16.msra.mxu0 %v6054_v55  ;;  %5289 = vmatprep.mubr.msk.bf16.mxu0 %vm709_vm3, %v8641_v10  ;;  %v1181_v62 = vsel %vm709_vm3, %v6265_v19, %v1080_v24  ;;  %v6267_v55 = vld [vmem:[#allocation2 + $0x38] sm:$0xf] }
  0x9b   :  { %1627 = vmatprep.subr.bf16.mxu0 %v8642_v34  ;;  %v1082_v41 = vpop.permute.xlu1 %1081 }
  0x9c   :  { %v1184_v18 = vsel %vm709_vm3, %v6264_v13, %v1082_v41  ;;  %v6071_v41 = vld [vmem:[%s8503_s1 + $0x38] sm:$0xff]   ;;  %v6074_v13 = vld [vmem:[%s8503_s1 + $0x40] sm:$0xff]  }
  0x9d   :  { %v5264_v35 = vcombine.low %v1181_v62, %v1184_v18  ;;  %v1084_v53 = vpop.permute.xlu0 %1083  ;;  %v6271_v62 = vld [vmem:[#allocation2 + $0x68] sm:$0xf] }
  0x9e   :  { %1628 = vmatpush1.bf16.msra.mxu0 %v6057_v6  ;;  %v1187_v39 = vsel %vm709_vm3, %v6267_v55, %v1084_v53  ;;  %v6067_v6 = vld [vmem:[%s8503_s1 + $0x28] sm:$0xff]   ;;  %v8647_v55 = vcombine.low %v6974_v54, %v6979_v57  ;;  %v8648_v57 = vcombine.low %v7001_v43, %v7005_v5  ;;  %v8649_v43 = vcombine.low %v7029_v48, %v7034_v45 }
  0x9f   :  { %1629 = vmatprep.subr.bf16.mxu0 %v8642_v34  ;;  %v1086_v25 = vpop.permute.xlu1 %1085  ;;  %v6086_v48 = vld [vmem:[%s8503_s1 + $0xc8] sm:$0xff]  }
  0xa0   :  { %v1190_v59 = vsel %vm709_vm3, %v6266_v20, %v1086_v25  ;;  %v6078_v25 = vld [vmem:[%s8503_s1 + $0x50] sm:$0xff]  }
  0xa1   :  { %1449 = vmatmul.mubr.bf16.gmra.mrb[4].mxu0 %v5262_v52  ;;  %v5266_v10 = vcombine.low %v1187_v39, %v1190_v59  ;;  %v8645_v52 = vcombine.low %v6916_v22, %v6923_v36  ;;  %v6270_v36 = vld [vmem:[#allocation2 + $0x70] sm:$0xf]  ;;  %v6081_v39 = vld [vmem:[%s8503_s1 + $0x58] sm:$0xff]  }
  0xa2   :  { %1630 = vmatpush1.bf16.msra.mxu0 %v6060_v0  ;;  %5290 = vmatprep.mubr.msk.bf16.mxu0 %vm709_vm3, %v8643_v29 }
  0xa3   :  { %1631 = vmatprep.subr.bf16.mxu0 %v8642_v34 }
  0xa6   :  { %1632 = vmatpush1.bf16.msra.mxu0 %v6061_v63  ;;  %v1090_v61 = vpop.permute.xlu1 %1089  ;;  %v8646_v63 = vcombine.low %v6941_v37, %v6956_v12  ;;  %v6272_v37 = vld [vmem:[#allocation2 + $0x80] sm:$0xf] }
  0xa7   :  { %1633 = vmatprep.subr.bf16.mxu0 %v8642_v34  ;;  %v1196_v60 = vsel %vm709_vm3, %v6268_v17, %v1090_v61  ;;  %v408_v61 = vld [vmem:[#allocation2 + $0x18] sm:$0xe] }
  0xa9   :  { %1457 = vmatmul.mubr.bf16.gmra.mrb[8].mxu0 %v5264_v35  ;;  %v6075_v35 = vld [vmem:[%s8503_s1 + $0x48] sm:$0xff]  }
  0xaa   :  { %1634 = vmatpush1.bf16.msra.mxu0 %v6064_v44  ;;  %5291 = vmatprep.mubr.msk.bf16.mxu0 %vm709_vm3, %v8644_v42 }
  0xab   :  { %1635 = vmatprep.subr.bf16.mxu0 %v8642_v34  ;;  %v1088_v3 = vpop.permute.xlu0 %1087 }
  0xac   :  { %v1193_v0 = vsel %vm709_vm3, %v6269_v9, %v1088_v3 }
  0xad   :  { %v5268_v24 = vcombine.low %v1193_v0, %v1196_v60  ;;  %v1094_v18 = vpop.permute.xlu1 %1093  ;;  %v6273_v60 = vld [vmem:[#allocation2 + $0x1c] sm:$0x1] }
  0xae   :  { %1636 = vmatpush1.bf16.msra.mxu0 %v6067_v6  ;;  %v1202_v22 = vsel %vm709_vm3, %v6270_v36, %v1094_v18  ;;  %v5191_v9 = vcombine.low %v408_v61, %v6273_v60  ;;  %v6280_v61 = vld [vmem:[#allocation2 + $0x30] sm:$0xf] }
  0xaf   :  { %1637 = vmatprep.subr.bf16.mxu0 %v8642_v34  ;;  %v1092_v19 = vpop.permute.xlu0 %1091 }
  0xb0   :  { %v1199_v29 = vsel %vm709_vm3, %v6271_v62, %v1092_v19  ;;  %v6276_v62 = vld [vmem:[#allocation2 + $0x10] sm:$0xf] }
  0xb1   :  { %1465 = vmatmul.mubr.bf16.gmra.mrb[12].mxu0 %v5266_v10  ;;  %v5270_v44 = vcombine.low %v1199_v29, %v1202_v22  ;;  %v1098_v53 = vpop.permute.xlu1 %1097 }
  0xb2   :  { %5292 = vmatprep.mubr.msk.bf16.mxu0 %vm709_vm3, %v8645_v52  ;;  %1638 = vmatpush1.bf16.msra.mxu0 %v6068_v16  ;;  %v1208_v12 = vsel %vm709_vm3, %v6272_v37, %v1098_v53  ;;  %v407_v16 = vld [vmem:[#allocation2 + $0x10] sm:$0xe] }
  0xb3   :  { %1639 = vmatprep.subr.bf16.mxu0 %v8642_v34  ;;  %v5190_v17 = vcombine.low %v407_v16, %v6730_v56  ;;  %v6083_v56 = vld [vmem:[%s8503_s1 + $0xc0] sm:$0xff]  }
  0xb4   :  { %v1096_v20 = vpop.permute.xlu0 %1095 }
  0xb5   :  { %v1205_v59 = vsel %vm709_vm3, %v6705_v47, %v1096_v20  ;;  %v695_v5 = vrot.slane %v5190_v17, 1  ;;  %v6278_v20 = vld [vmem:[#allocation2 + $0x20] sm:$0xf]  ;;  %v6281_v17 = vld [vmem:[#allocation2 + $0x38] sm:$0xf] }
  0xb6   :  { %1640 = vmatpush1.bf16.msra.mxu0 %v6071_v41  ;;  %v5272_v42 = vcombine.low %v1205_v59, %v1208_v12  ;;  %v1102_v6 = vpop.permute.xlu1 %1101  ;;  %v6274_v41 = vld [vmem:[#allocation2] sm:$0xf]  ;;  %v6279_v12 = vld [vmem:[#allocation2 + $0x28] sm:$0xf] }
  0xb7   :  { %1641 = vmatprep.subr.bf16.mxu0 %v8642_v34  ;;  %v1214_v47 = vsel %vm709_vm3, %v6713_v26, %v1102_v6  ;;  %v414_v6 = vld [vmem:[#allocation2 + $0x58] sm:$0xe] }
  0xb9   :  { %1473 = vmatmul.mubr.bf16.gmra.mrb[16].mxu0 %v5268_v24  ;;  %v6275_v24 = vld [vmem:[#allocation2 + $0x8] sm:$0xf] }
  0xba   :  { %5293 = vmatprep.mubr.msk.bf16.mxu0 %vm709_vm3, %v8646_v63  ;;  %1642 = vmatpush1.bf16.msra.mxu0 %v6074_v13  ;;  %v616_v52 = vpop.permute.xlu1 %615  ;;  %v696_v13 = vrot.slane %v5191_v9, 1  ;;  %v6277_v63 = vld [vmem:[#allocation2 + $0x18] sm:$0xf]  ;;  %v8652_v9 = vcombine.low %v7073_v7, %v7075_v58  ;;  %v6282_v7 = vld [vmem:[#allocation2 + $0x50] sm:$0xf] }
  0xbb   :  { %1643 = vmatprep.subr.bf16.mxu0 %v8642_v34 }
  0xbc   :  { %v1100_v10 = vpop.permute.xlu0 %1099  ;;  %v5299_v19 = vcombine.low %v695_v5, %v696_v13  ;;  %v6283_v5 = vld [vmem:[#allocation2 + $0x58] sm:$0xf] }
  0xbd   :  { %v1211_v54 = vsel %vm709_vm3, %v6744_v4, %v1100_v10  ;;  %v715_v4 = vsel %vm709_vm3, %v6275_v24, %v616_v52  ;;  %v6099_v24 = vld [vmem:[%s8503_s1 + $0xf0] sm:$0xff]  }
  0xbe   :  { %1644 = vmatpush1.bf16.msra.mxu0 %v6075_v35  ;;  %v5274_v3 = vcombine.low %v1211_v54, %v1214_v47  ;;  %v620_v22 = vpop.permute.xlu1 %619  ;;  %v6093_v47 = vld [vmem:[%s8503_s1 + $0xe0] sm:$0xff]  }
  0xbf   :  { %1645 = vmatprep.subr.bf16.mxu0 %v8642_v34  ;;  %v721_v45 = vsel %vm709_vm3, %v6277_v63, %v620_v22  ;;  %v6285_v63 = vld [vmem:[#allocation2 + $0x68] sm:$0xf] }
  0xc0   :  { %v614_v0 = vpop.permute.xlu0 %613 }
  0xc1   :  { %1481 = vmatmul.mubr.bf16.gmra.mrb[20].mxu0 %v5270_v44  ;;  %v712_v26 = vsel %vm709_vm3, %v6274_v41, %v614_v0  ;;  %v6089_v44 = vld [vmem:[%s8503_s1 + $0xd0] sm:$0xff]  }
  0xc2   :  { %5294 = vmatprep.mubr.msk.bf16.mxu0 %vm709_vm3, %v8647_v55  ;;  %1646 = vmatpush1.bf16.msra.mxu0 %v6078_v25  ;;  %v5296_v18 = vcombine.low %v712_v26, %v715_v4  ;;  %v624_v53 = vpop.permute.xlu1 %623  ;;  %v8650_v55 = vcombine.low %v7055_v51, %v7057_v2 }
  0xc3   :  { %1647 = vmatprep.subr.bf16.mxu0 %v8642_v34  ;;  %v727_v59 = vsel %vm709_vm3, %v6279_v12, %v624_v53  ;;  %v1755_v12 = vld [vmem:[#allocation2 + $0x10] sm:$0xe] }
  0xc4   :  { %v618_v36 = vpop.permute.xlu0 %617 }
  0xc5   :  { %v718_v29 = vsel %vm709_vm3, %v6276_v62, %v618_v36  ;;  %v6284_v62 = vld [vmem:[#allocation2 + $0x60] sm:$0xf] }
  0xc6   :  { %1648 = vmatpush1.bf16.msra.mxu0 %v6081_v39  ;;  %v5298_v35 = vcombine.low %v718_v29, %v721_v45  ;;  %v6092_v39 = vld [vmem:[%s8503_s1 + $0xd8] sm:$0xff]   ;;  %v628_v16 = vpop.permute.xlu1 %627 }
  0xc7   :  { %2300 = vmatprep.subr.bf16.mxu0 %v8642_v34  ;;  %v733_v60 = vsel %vm709_vm3, %v6281_v17, %v628_v16  ;;  %v1757_v16 = vld [vmem:[#allocation2 + $0x20] sm:$0xe] }
  0xc8   :  { %v622_v25 = vpop.permute.xlu0 %621 }
  0xc9   :  { %1489 = vmatmul.mubr.bf16.gmra.mrb[24].mxu0 %v5272_v42  ;;  %v724_v37 = vsel %vm709_vm3, %v6278_v20, %v622_v25  ;;  %v413_v42 = vld [vmem:[#allocation2 + $0x50] sm:$0xe] }
  0xca   :  { %5295 = vmatprep.mubr.msk.bf16.mxu0 %vm709_vm3, %v8648_v57  ;;  %v5300_v10 = vcombine.low %v724_v37, %v727_v59  ;;  %v5196_v54 = vcombine.low %v413_v42, %v6765_v11  ;;  %v8651_v57 = vld [vmem:[#allocation12_spill] sm:$0xff]  ;;  %v6096_v11 = vld [vmem:[%s8503_s1 + $0xe8] sm:$0xff]   ;;  %v6110_v37 = vld [vmem:[%s8503_s1 + $0x118] sm:$0xff]  }
  0xcb   :  { %v5197_v51 = vcombine.low %v414_v6, %v8651_v57  ;;  %v1756_v59 = vld [vmem:[#allocation2 + $0x18] sm:$0xe]  ;;  %v8656_v6 = vld [vmem:[#allocation18_spill] sm:$0xff] }
  0xcc   :  { %v626_v2 = vpop.permute.xlu0 %625  ;;  %v701_v0 = vrot.slane %v5196_v54, 1 }
  0xcd   :  { %v702_v52 = vrot.slane %v5197_v51, 1 }
  0xcf   :  { %v5305_v26 = vcombine.low %v701_v0, %v702_v52 }
  0xd0   :  { %v630_v4 = vpop.permute.xlu0 %629 }
  0xd1   :  { %1497 = vmatmul.mubr.bf16.gmra.mrb[28].mxu0 %v5274_v3  ;;  %v730_v3 = vsel %vm709_vm3, %v6280_v61, %v626_v2  ;;  %v736_v58 = vsel %vm709_vm3, %v6282_v7, %v630_v4  ;;  %v1758_v61 = vld [vmem:[#allocation2 + $0x28] sm:$0xe]  ;;  %v1760_v7 = vld [vmem:[#allocation2 + $0x38] sm:$0xe] }
  0xd2   :  { %5324 = vmatprep.mubr.msk.bf16.mxu0 %vm709_vm3, %v8649_v43  ;;  %v5302_v41 = vcombine.low %v730_v3, %v733_v60  ;;  %v632_v43 = vpop.permute.xlu1 %631  ;;  %v8659_v60 = vld [vmem:[#allocation24_spill] sm:$0xff]  ;;  %v8662_v4 = vld [vmem:[#allocation17_spill] sm:$0xff] }
  0xd3   :  { %v739_v13 = vsel %vm709_vm3, %v6283_v5, %v632_v43  ;;  %v1759_v43 = vld [vmem:[#allocation2 + $0x30] sm:$0xe] }
  0xd4   :  { %v634_v36 = vpop.permute.xlu0 %633 }
  0xd5   :  { %v742_v29 = vsel %vm709_vm3, %v6284_v62, %v634_v36  ;;  %v8665_v62 = vld [vmem:[#allocation23_spill] sm:$0xff] }
  0xd6   :  { %v636_v22 = vpop.permute.xlu1 %635 }
  0xd7   :  { %v745_v45 = vsel %vm709_vm3, %v6285_v63, %v636_v22  ;;  %v8666_v63 = vld [vmem:[#allocation21_spill] sm:$0xff] }
  0xd8   :  { %v638_v25 = vpop.permute.xlu0 %637 }
  0xd9   :  { %1658 = vmatmul.mubr.bf16.vlgmr.msra.gmra.mrb[0].mxu0 %v5296_v18  ;;  %v6100_v18 = vld [vmem:[%s8503_s1 + $0xf8] sm:$0xff]   ;;  %v748_v23 = vsel %vm709_vm3, %v8653_v33, %v638_v25  ;;  %v1762_v25 = vld [vmem:[#allocation2 + $0x48] sm:$0xe] }
  0xda   :  { %2301 = vmatpush1.bf16.msra.mxu0 %v6083_v56  ;;  %5325 = vmatprep.mubr.msk.bf16.mxu0 %vm709_vm3, %v5299_v19  ;;  %v5304_v56 = vcombine.low %v736_v58, %v739_v13  ;;  %v6103_v19 = vld [vmem:[%s8503_s1 + $0x100] sm:$0xff]   ;;  %v640_v53 = vpop.permute.xlu1 %639  ;;  %v8663_v13 = vld [vmem:[#allocation26_spill] sm:$0xff] }
  0xdb   :  { %2302 = vmatprep.subr.bf16.mxu0 %v8642_v34 }
  0xde   :  { %2303 = vmatpush1.bf16.msra.mxu0 %v6086_v48  ;;  %v6106_v48 = vld [vmem:[%s8503_s1 + $0x108] sm:$0xff]   ;;  %v644_v54 = vpop.permute.xlu1 %643 }
  0xdf   :  { %2304 = vmatprep.subr.bf16.mxu0 %v8642_v34 }
  0xe1   :  { %1666 = vmatmul.mubr.bf16.gmra.mrb[4].mxu0 %v5298_v35  ;;  %v5306_v35 = vcombine.low %v742_v29, %v745_v45 }
  0xe2   :  { %2305 = vmatpush1.bf16.msra.mxu0 %v6089_v44  ;;  %5326 = vmatprep.mubr.msk.bf16.mxu0 %vm709_vm3, %v8650_v55  ;;  %v6107_v44 = vld [vmem:[%s8503_s1 + $0x110] sm:$0xff]  }
  0xe3   :  { %2306 = vmatprep.subr.bf16.mxu0 %v8642_v34 }
  0xe6   :  { %2307 = vmatpush1.bf16.msra.mxu0 %v6092_v39  ;;  %v8655_v39 = vld [vmem:[#allocation20_spill] sm:$0xff] }
  0xe7   :  { %2308 = vmatprep.subr.bf16.mxu0 %v8642_v34  ;;  %v5348_v42 = vcombine.low %v1755_v12, %v8655_v39 }
  0xe9   :  { %1674 = vmatmul.mubr.bf16.gmra.mrb[8].mxu0 %v5300_v10  ;;  %v5349_v10 = vcombine.low %v1756_v59, %v8656_v6  ;;  %v2043_v51 = vrot.slane %v5348_v42, 1  ;;  %v8670_v42 = vld [vmem:[#allocation27_spill] sm:$0xff] }
  0xea   :  { %2309 = vmatpush1.bf16.msra.mxu0 %v6093_v47  ;;  %5327 = vmatprep.mubr.msk.bf16.mxu0 %vm709_vm3, %v8652_v9  ;;  %v642_v47 = vpop.permute.xlu0 %641  ;;  %v5350_v9 = vcombine.low %v1757_v16, %v8659_v60  ;;  %v8673_v60 = vld [vmem:[#allocation31_spill] sm:$0xff] }
  0xeb   :  { %2310 = vmatprep.subr.bf16.mxu0 %v8642_v34  ;;  %v754_v30 = vsel %vm709_vm3, %v8657_v1, %v642_v47  ;;  %v2044_v2 = vrot.slane %v5349_v10, 1  ;;  %v1764_v1 = vld [vmem:[#allocation2 + $0x68] sm:$0xe] }
  0xec   :  { %v2045_v32 = vrot.slane %v5350_v9, 1 }
  0xed   :  { %v5389_v17 = vcombine.low %v2043_v51, %v2044_v2  ;;  %v8671_v51 = vld [vmem:[#allocation35_spill] sm:$0xff] }
  0xee   :  { %2311 = vmatpush1.bf16.msra.mxu0 %v6096_v11  ;;  %v8660_v11 = vld [vmem:[#allocation22_spill] sm:$0xff]  ;;  %v1964_v52 = vpop.permute.xlu0 %1963  ;;  %v5357_v2 = vcombine.low %v1764_v1, %v8671_v51  ;;  %v6154_v51 = vld [vmem:[%s8504_s2 + $0x68] sm:$0xff]  }
  0xef   :  { %2312 = vmatprep.subr.bf16.mxu0 %v8642_v34  ;;  %v5351_v0 = vcombine.low %v1758_v61, %v8660_v11 }
  0xf1   :  { %1682 = vmatmul.mubr.bf16.gmra.mrb[12].mxu0 %v5302_v41  ;;  %v1966_v41 = vpop.permute.xlu1 %1965 }
  0xf2   :  { %5328 = vmatprep.mubr.msk.bf16.mxu0 %vm709_vm3, %v5305_v26  ;;  %2313 = vmatpush1.bf16.msra.mxu0 %v6099_v24  ;;  %v8661_v26 = vld [vmem:[#allocation19_spill] sm:$0xff]  ;;  %v2064_v46 = vsel %vm709_vm3, %v8662_v4, %v1966_v41  ;;  %v1968_v36 = vpop.permute.xlu0 %1967  ;;  %v8674_v4 = vld [vmem:[#allocation37_spill] sm:$0xff] }
  0xf3   :  { %2314 = vmatprep.subr.bf16.mxu0 %v8642_v34  ;;  %v2061_v24 = vsel %vm709_vm3, %v8661_v26, %v1964_v52  ;;  %v2067_v29 = vsel %vm709_vm3, %v8665_v62, %v1968_v36  ;;  %v1765_v52 = vld [vmem:[#allocation2 + $0x70] sm:$0xe]  ;;  %v1766_v41 = vld [vmem:[#allocation2 + $0x78] sm:$0xe]  ;;  %v8677_v62 = vld [vmem:[#allocation40_spill] sm:$0xff] }
  0xf4   :  { %v5388_v58 = vcombine.low %v2061_v24, %v2064_v46  ;;  %v5359_v46 = vcombine.low %v1766_v41, %v8674_v4 }
  0xf5   :  { %v1970_v22 = vpop.permute.xlu1 %1969 }
  0xf6   :  { %2315 = vmatpush1.bf16.msra.mxu0 %v6100_v18  ;;  %v5352_v18 = vcombine.low %v1759_v43, %v8663_v13  ;;  %v2070_v45 = vsel %vm709_vm3, %v8666_v63, %v1970_v22  ;;  %v1972_v12 = vpop.permute.xlu0 %1971  ;;  %v8675_v43 = vld [vmem:[#allocation33_spill] sm:$0xff] }
  0xf7   :  { %2316 = vmatprep.subr.bf16.mxu0 %v8642_v34 }
  0xf9   :  { %1690 = vmatmul.mubr.bf16.gmra.mrb[16].mxu0 %v5304_v56  ;;  %v8664_v56 = vld [vmem:[#allocation28_spill] sm:$0xff]  ;;  %v1974_v59 = vpop.permute.xlu1 %1973 }
  0xfa   :  { %5329 = vmatprep.mubr.msk.bf16.mxu0 %vm709_vm3, %v5307_v50  ;;  %2317 = vmatpush1.bf16.msra.mxu0 %v6103_v19  ;;  %v8654_v50 = vld [vmem:[#allocation14_spill] sm:$0xff]  ;;  %v5353_v19 = vcombine.low %v1760_v7, %v8664_v56  ;;  %v2076_v6 = vsel %vm709_vm3, %v8670_v42, %v1974_v59  ;;  %v1976_v16 = vpop.permute.xlu0 %1975  ;;  %v1767_v56 = vld [vmem:[#allocation2 + $0x80] sm:$0xe]  ;;  %v8680_v42 = vld [vmem:[#allocation39_spill] sm:$0xff] }
  0xfb   :  { %2318 = vmatprep.subr.bf16.mxu0 %v8642_v34  ;;  %v751_v20 = vsel %vm709_vm3, %v8654_v50, %v640_v53  ;;  %v5390_v53 = vcombine.low %v2067_v29, %v2070_v45 }
  0xfc   :  { %v5308_v55 = vcombine.low %v748_v23, %v751_v20  ;;  %v8667_v23 = vld [vmem:[#allocation30_spill] sm:$0xff]  ;;  %v8668_v20 = vld [vmem:[#allocation32_spill] sm:$0xff] }
  0xfd   :  { %v1978_v61 = vpop.permute.xlu1 %1977 }
  0xfe   :  { %2319 = vmatpush1.bf16.msra.mxu0 %v6106_v48  ;;  %v2047_v48 = vrot.slane %v5352_v18, 1  ;;  %v2082_v9 = vsel %vm709_vm3, %v8673_v60, %v1978_v61  ;;  %v2054_v18 = vrot.slane %v5359_v46, 1  ;;  %v6169_v61 = vld [vmem:[%s8504_s2 + $0x90] sm:$0xff]   ;;  %v6175_v60 = vld [vmem:[%s8504_s2 + $0xa0] sm:$0xff]  }
  0xff   :  { %2320 = vmatprep.subr.bf16.mxu0 %v8642_v34 }
 0x101   :  { %1698 = vmatmul.mubr.bf16.gmra.mrb[20].mxu0 %v5306_v35  ;;  %v2048_v35 = vrot.slane %v5353_v19, 1  ;;  %v1768_v19 = vld [vmem:[#allocation2 + $0x88] sm:$0xe] }
 0x102   :  { %5330 = vmatprep.mubr.msk.bf16.mxu0 %vm709_vm3, %v5309_v40  ;;  %2321 = vmatpush1.bf16.msra.mxu0 %v6107_v44  ;;  %v8658_v40 = vld [vmem:[#allocation16_spill] sm:$0xff]  ;;  %v5361_v29 = vcombine.low %v1768_v19, %v8677_v62 }
 0x103   :  { %2322 = vmatprep.subr.bf16.mxu0 %v8642_v34  ;;  %v757_v57 = vsel %vm709_vm3, %v8658_v40, %v644_v54  ;;  %v1761_v44 = vld [vmem:[#allocation2 + $0x40] sm:$0xe]  ;;  %v5393_v33 = vcombine.low %v2047_v48, %v2048_v35  ;;  %v8678_v48 = vld [vmem:[#allocation38_spill] sm:$0xff] }
 0x104   :  { %v5310_v3 = vcombine.low %v754_v30, %v757_v57  ;;  %v5354_v50 = vcombine.low %v1761_v44, %v8667_v23  ;;  %v1763_v54 = vld [vmem:[#allocation2 + $0x60] sm:$0xe]  ;;  %v1769_v23 = vld [vmem:[#allocation2 + $0x90] sm:$0xe] }
 0x105   :  { %v5356_v57 = vcombine.low %v1763_v54, %v6987_v15  ;;  %v5358_v15 = vcombine.low %v1765_v52, %v7032_v8  ;;  %v5360_v8 = vcombine.low %v1767_v56, %v7067_v38  ;;  %v8679_v44 = vld [vmem:[#allocation36_spill] sm:$0xff]  ;;  %v5362_v38 = vcombine.low %v1769_v23, %v7079_v14 }
 0x106   :  { %2323 = vmatpush1.bf16.msra.mxu0 %v6110_v37  ;;  %v5355_v37 = vcombine.low %v1762_v25, %v8668_v20  ;;  %v2049_v10 = vrot.slane %v5354_v50, 1  ;;  %v1770_v50 = vld [vmem:[#allocation2 + $0x98] sm:$0xe] }
 0x107   :  { %v2051_v11 = vrot.slane %v5356_v57, 1  ;;  %v2053_v13 = vrot.slane %v5358_v15, 1  ;;  %v6151_v57 = vld [vmem:[%s8504_s2 + $0x60] sm:$0xff]   ;;  %v6178_v15 = vld [vmem:[%s8504_s2 + $0xa8] sm:$0xff]  }
 0x108   :  { %v2050_v47 = vrot.slane %v5355_v37, 1  ;;  %3751 = vmatpush1.bf16.msra.mxu1 %v6151_v57 }
 0x109   :  { %1706 = vmatmul.mubr.bf16.gmra.mrb[24].mxu0 %v5308_v55  ;;  %v8669_v55 = vld [vmem:[#allocation25_spill] sm:$0xff]  ;;  %v5399_v22 = vcombine.low %v2053_v13, %v2054_v18  ;;  %3752 = vmatprep.subr.bf16.mxu1 %v8642_v34 }
 0x10a   :  { %5331 = vmatprep.mubr.msk.bf16.mxu0 %vm709_vm3, %v5311_v31  ;;  %v2046_v31 = vrot.slane %v5351_v0, 1  ;;  %v2073_v39 = vsel %vm709_vm3, %v8669_v55, %v1972_v12  ;;  %v5395_v40 = vcombine.low %v2049_v10, %v2050_v47  ;;  %v2052_v0 = vrot.slane %v5357_v2, 1  ;;  %v6163_v2 = vld [vmem:[%s8504_s2 + $0x80] sm:$0xff]  }
 0x10b   :  { %v5392_v30 = vcombine.low %v2073_v39, %v2076_v6  ;;  %v5363_v12 = vcombine.low %v1770_v50, %v7050_v27  ;;  %v2057_v10 = vrot.slane %v5362_v38, 1 }
 0x10c   :  { %v5391_v5 = vcombine.low %v2045_v32, %v2046_v31  ;;  %v5397_v24 = vcombine.low %v2051_v11, %v2052_v0  ;;  %v1980_v32 = vpop.permute.xlu0 %1979  ;;  %v1982_v31 = vpop.permute.xlu1 %1981  ;;  %3753 = vmatpush1.bf16.msra.mxu1 %v6154_v51 }
 0x10d   :  { %v2085_v7 = vsel %vm709_vm3, %v8675_v43, %v1980_v32  ;;  %v2058_v47 = vrot.slane %v5363_v12, 1  ;;  %3754 = vmatprep.subr.bf16.mxu1 %v8642_v34 }
 0x10f   :  { %v5403_v1 = vcombine.low %v2057_v10, %v2058_v47 }
 0x110   :  { %v1984_v63 = vpop.permute.xlu0 %1983  ;;  %v1986_v45 = vpop.permute.xlu1 %1985 }
 0x111   :  { %1714 = vmatmul.mubr.bf16.gmra.mrb[28].mxu0 %v5310_v3  ;;  %v8672_v3 = vld [vmem:[#allocation29_spill] sm:$0xff]  ;;  %v2091_v35 = vsel %vm709_vm3, %v8678_v48, %v1984_v63  ;;  %v2094_v25 = vsel %vm709_vm3, %v8679_v44, %v1986_v45  ;;  %v6184_v44 = vld [vmem:[%s8504_s2 + $0xb8] sm:$0xff]  }
 0x112   :  { %5416 = vmatprep.mubr.msk.bf16.mxu0 %vm709_vm3, %v5389_v17  ;;  %v2079_v17 = vsel %vm709_vm3, %v8672_v3, %v1976_v16  ;;  %v5398_v20 = vcombine.low %v2091_v35, %v2094_v25  ;;  %v6166_v16 = vld [vmem:[%s8504_s2 + $0x88] sm:$0xff]   ;;  %v6172_v3 = vld [vmem:[%s8504_s2 + $0x98] sm:$0xff]  }
 0x113   :  { %v5394_v26 = vcombine.low %v2079_v17, %v2082_v9  ;;  %v7404_v17 = vld [vmem:[%s8505_s5] ss:$0 sm:$0xff] }
 0x114   :  { %v1988_v59 = vpop.permute.xlu0 %1987  ;;  %v1990_v55 = vpop.permute.xlu1 %1989 }
 0x115   :  { %v2097_v39 = vsel %vm709_vm3, %v7065_v28, %v1988_v59  ;;  %v2100_v6 = vsel %vm709_vm3, %v8680_v42, %v1990_v55 }
 0x116   :  { %v5400_v54 = vcombine.low %v2097_v39, %v2100_v6 }
 0x119   :  { %2333 = vmatmul.mubr.bf16.vlgmr.msra.gmra.mrb[0].mxu0 %v5388_v58  ;;  %v8676_v58 = vld [vmem:[#allocation34_spill] sm:$0xff] }
 0x11a   :  { %5417 = vmatprep.mubr.msk.bf16.mxu0 %vm709_vm3, %v5391_v5  ;;  %v2088_v5 = vsel %vm709_vm3, %v8676_v58, %v1982_v31 }
 0x11b   :  { %v5396_v36 = vcombine.low %v2085_v7, %v2088_v5  ;;  %v6181_v5 = vld [vmem:[%s8504_s2 + $0xb0] sm:$0xff]  }
 0x121   :  { %2341 = vmatmul.mubr.bf16.gmra.mrb[4].mxu0 %v5390_v53  ;;  %v2055_v53 = vrot.slane %v5360_v8, 1 }
 0x122   :  { %5418 = vmatprep.mubr.msk.bf16.mxu0 %vm709_vm3, %v5393_v33  ;;  %v2056_v33 = vrot.slane %v5361_v29, 1 }
 0x124   :  { %v5401_v37 = vcombine.low %v2055_v53, %v2056_v33 }
 0x129   :  { %2349 = vmatmul.mubr.bf16.gmra.mrb[8].mxu0 %v5392_v30  ;;  %v1992_v30 = vpop.permute.xlu0 %1991 }
 0x12a   :  { %5419 = vmatprep.mubr.msk.bf16.mxu0 %vm709_vm3, %v5395_v40  ;;  %v1994_v40 = vpop.permute.xlu1 %1993  ;;  %v2103_v27 = vsel %vm709_vm3, %v7077_v21, %v1992_v30  ;;  %v6160_v21 = vld [vmem:[%s8504_s2 + $0x78] sm:$0xff]  }
 0x12b   :  { %v2106_v14 = vsel %vm709_vm3, %v7045_v49, %v1994_v40  ;;  %v6157_v49 = vld [vmem:[%s8504_s2 + $0x70] sm:$0xff]  }
 0x12c   :  { %v5402_v28 = vcombine.low %v2103_v27, %v2106_v14  ;;  %3755 = vmatpush1.bf16.msra.mxu1 %v6157_v49 }
 0x12d   :  { %3756 = vmatprep.subr.bf16.mxu1 %v8642_v34 }
 0x130   :  { %3757 = vmatpush1.bf16.msra.mxu1 %v6160_v21 }
 0x131   :  { %2357 = vmatmul.mubr.bf16.gmra.mrb[12].mxu0 %v5394_v26  ;;  %3758 = vmatprep.subr.bf16.mxu1 %v8642_v34 }
 0x132   :  { %5420 = vmatprep.mubr.msk.bf16.mxu0 %vm709_vm3, %v5397_v24 }
 0x134   :  { %3759 = vmatpush1.bf16.msra.mxu1 %v6163_v2 }
 0x135   :  { %3760 = vmatprep.subr.bf16.mxu1 %v8642_v34 }
 0x138   :  { %3761 = vmatpush1.bf16.msra.mxu1 %v6166_v16 }
 0x139   :  { %2365 = vmatmul.mubr.bf16.gmra.mrb[16].mxu0 %v5396_v36  ;;  %3762 = vmatprep.subr.bf16.mxu1 %v8642_v34 }
 0x13a   :  { %5421 = vmatprep.mubr.msk.bf16.mxu0 %vm709_vm3, %v5399_v22 }
 0x13c   :  { %3763 = vmatpush1.bf16.msra.mxu1 %v6169_v61 }
 0x13d   :  { %3764 = vmatprep.subr.bf16.mxu1 %v8642_v34 }
 0x140   :  { %3765 = vmatpush1.bf16.msra.mxu1 %v6172_v3 }
 0x141   :  { %2373 = vmatmul.mubr.bf16.gmra.mrb[20].mxu0 %v5398_v20  ;;  %3766 = vmatprep.subr.bf16.mxu1 %v8642_v34 }
 0x142   :  { %5422 = vmatprep.mubr.msk.bf16.mxu0 %vm709_vm3, %v5401_v37 }
 0x144   :  { %3767 = vmatpush1.bf16.msra.mxu1 %v6175_v60 }
 0x145   :  { %3768 = vmatprep.subr.bf16.mxu1 %v8642_v34 }
 0x148   :  { %3769 = vmatpush1.bf16.msra.mxu1 %v6178_v15 }
 0x149   :  { %2381 = vmatmul.mubr.bf16.gmra.mrb[24].mxu0 %v5400_v54  ;;  %3770 = vmatprep.subr.bf16.mxu1 %v8642_v34 }
 0x14a   :  { %5423 = vmatprep.mubr.msk.bf16.mxu0 %vm709_vm3, %v5403_v1 }
 0x14c   :  { %3771 = vmatpush1.bf16.msra.mxu1 %v6181_v5 }
 0x14d   :  { %3772 = vmatprep.subr.bf16.mxu1 %v8642_v34 }
 0x150   :  { %3773 = vmatpush1.bf16.msra.mxu1 %v6184_v44 }
 0x151   :  { %2389 = vmatmul.mubr.bf16.gmra.mrb[28].mxu0 %v5402_v28  ;;  %3967 = vmatprep.subr.bf16.mxu1 %v8642_v34 }
 0x1ec   :  { %v2334_v9 = vpop.f32.mrb[0].mxu0 }
 0x1ed   :  { %vm2413_vm4 = vcmp.ge.f32.partialorder %v2334_v9, 0.0  ;;  %v2436_v11 = vmul.f32 %v7404_v17, %v2334_v9  ;;  %v2336_v0 = vpop.f32.mrb[1].mxu0 }
 0x1ee   :  { %v2337_v52 = vpop.f32.mrb[2].mxu0 }
 0x1ef   :  { %v2452_v41 = vsel %vm2413_vm4, %v2334_v9, %v2436_v11  ;;  %vm2414_vm5 = vcmp.ge.f32.partialorder %v2337_v52, 0.0  ;;  %v2437_v26 = vmul.f32 %v7404_v17, %v2337_v52  ;;  %v2339_v24 = vpop.f32.mrb[3].mxu0 }
 0x1f0   :  { %v2484_v4 = vrot.slane %v2452_v41, 7 }
 0x1f1   :  { %v2453_v46 = vsel %vm2414_vm5, %v2337_v52, %v2437_v26 }
 0x1f2   :  { %v2516_v32 = vsel %vm162_vm0, 0.0, %v2484_v4  ;;  %v2532_v31 = vsel %vm162_vm0, %v2484_v4, 0.0  ;;  %v2485_v43 = vrot.slane %v2453_v46, 7 }
 0x1f3   :  { %v5765_v7 = vpack.c.bf16 %v2516_v32, %v2516_v32  ;;  %v5766_v58 = vpack.c.bf16 %v2532_v31, %v2532_v31 }
 0x1f4   :  { %v2517_v13 = vsel %vm162_vm0, 0.0, %v2485_v43  ;;  %v2533_v18 = vsel %vm162_vm0, %v2485_v43, 0.0  ;;  %v2342_v56 = vpop.f32.mrb[4].mxu0 }
 0x1f5   :  { %2678 = vst.msk [vmem:[#allocation3 + $0x8] sm:$0xf] %vm331_vm1, %v5765_v7  ;;  %v5767_v19 = vpack.c.bf16 %v2517_v13, %v2517_v13  ;;  %v5768_v36 = vpack.c.bf16 %v2533_v18, %v2533_v18  ;;  %vm2415_vm6 = vcmp.ge.f32.partialorder %v2342_v56, 0.0  ;;  %v2438_v22 = vmul.f32 %v7404_v17, %v2342_v56  ;;  %v2344_v8 = vpop.f32.mrb[5].mxu0 }
 0x1f6   :  { %2679 = vst.msk [vmem:[#allocation3 + $0xc] sm:$0x1] %vm333_vm2, %v5766_v58  ;;  %v2345_v62 = vpop.f32.mrb[6].mxu0 }
 0x1f7   :  { %2680 = vst.msk [vmem:[#allocation3 + $0x10] sm:$0xf] %vm331_vm1, %v5767_v19  ;;  %v2454_v29 = vsel %vm2415_vm6, %v2342_v56, %v2438_v22  ;;  %vm2416_vm7 = vcmp.ge.f32.partialorder %v2345_v62, 0.0  ;;  %v2439_v63 = vmul.f32 %v7404_v17, %v2345_v62  ;;  %v2347_v45 = vpop.f32.mrb[7].mxu0 }
 0x1f8   :  { %2681 = vst.msk [vmem:[#allocation3 + $0x14] sm:$0x1] %vm333_vm2, %v5768_v36  ;;  %v2486_v48 = vrot.slane %v2454_v29, 7 }
 0x1f9   :  { %v2455_v35 = vsel %vm2416_vm7, %v2345_v62, %v2439_v63 }
 0x1fa   :  { %v2518_v25 = vsel %vm162_vm0, 0.0, %v2486_v48  ;;  %v2534_v53 = vsel %vm162_vm0, %v2486_v48, 0.0  ;;  %v2487_v33 = vrot.slane %v2455_v35, 7 }
 0x1fb   :  { %v5769_v23 = vpack.c.bf16 %v2518_v25, %v2518_v25  ;;  %v5770_v50 = vpack.c.bf16 %v2534_v53, %v2534_v53 }
 0x1fc   :  { %v2519_v20 = vsel %vm162_vm0, 0.0, %v2487_v33  ;;  %v2535_v37 = vsel %vm162_vm0, %v2487_v33, 0.0  ;;  %v2350_v38 = vpop.f32.mrb[8].mxu0  ;;  %v3173_v12 = vld [vmem:[#allocation3 + $0x8] sm:$0xf] }
 0x1fd   :  { %2682 = vst.msk [vmem:[#allocation3 + $0x18] sm:$0xf] %vm331_vm1, %v5769_v23  ;;  %v5771_v59 = vpack.c.bf16 %v2519_v20, %v2519_v20  ;;  %v5772_v55 = vpack.c.bf16 %v2535_v37, %v2535_v37  ;;  %vm2417_vm8 = vcmp.ge.f32.partialorder %v2350_v38, 0.0  ;;  %v2440_v39 = vmul.f32 %v7404_v17, %v2350_v38  ;;  %v2352_v42 = vpop.f32.mrb[9].mxu0  ;;  %v3189_v6 = vld [vmem:[#allocation3 + $0xc] sm:$0x1] }
 0x1fe   :  { %2683 = vst.msk [vmem:[#allocation3 + $0x1c] sm:$0x1] %vm333_vm2, %v5770_v50  ;;  %v3205_v10 = vld [vmem:[#allocation3 + $0x8] sm:$0xe]  ;;  %v2353_v47 = vpop.f32.mrb[10].mxu0  ;;  %v5489_v54 = vcombine.low %v3173_v12, %v3189_v6 }
 0x1ff   :  { %v3174_v1 = vld [vmem:[#allocation3 + $0x10] sm:$0xf]  ;;  %v3190_v30 = vld [vmem:[#allocation3 + $0x14] sm:$0x1]  ;;  %v5505_v40 = vcombine.low %v3205_v10, %v3189_v6  ;;  %2684 = vst.msk [vmem:[#allocation3 + $0x20] sm:$0xf] %vm331_vm1, %v5771_v59  ;;  %v2456_v27 = vsel %vm2417_vm8, %v2350_v38, %v2440_v39  ;;  %v2441_v14 = vmul.f32 %v7404_v17, %v2353_v47 }
 0x200   :  { %2685 = vst.msk [vmem:[#allocation3 + $0x24] sm:$0x1] %vm333_vm2, %v5772_v55  ;;  %vm2418_vm9 = vcmp.ge.f32.partialorder %v2353_v47, 0.0  ;;  %v2355_v28 = vpop.f32.mrb[11].mxu0  ;;  %v3206_v57 = vld [vmem:[#allocation3 + $0x10] sm:$0xe]  ;;  %v5490_v51 = vcombine.low %v3174_v1, %v3190_v30 }
 0x201   :  { %v2488_v49 = vrot.slane %v2456_v27, 7  ;;  %v3304_v21 = vshll.u32 %v5489_v54, 16  ;;  %v5506_v2 = vcombine.low %v3206_v57, %v3190_v30  ;;  %v2457_v16 = vsel %vm2418_vm9, %v2353_v47, %v2441_v14 }
 0x202   :  { %v3302_v61 = vshrl.u32 %v5489_v54, 16  ;;  %v3493_v3 = vrot.slane %v5505_v40, 1  ;;  %v3311_v60 = vshll.u32 %v5490_v51, 16  ;;  %v2489_v0 = vrot.slane %v2457_v16, 7 }
 0x203   :  { %v2520_v9 = vsel %vm162_vm0, 0.0, %v2488_v49  ;;  %v2536_v11 = vsel %vm162_vm0, %v2488_v49, 0.0  ;;  %v3306_v52 = vrot.slane %v3304_v21, 1  ;;  %v3494_v24 = vrot.slane %v5506_v2, 1 }
 0x204   :  { %v5773_v41 = vpack.c.bf16 %v2520_v9, %v2520_v9  ;;  %v5774_v26 = vpack.c.bf16 %v2536_v11, %v2536_v11  ;;  %v3313_v15 = vrot.slane %v3311_v60, 1  ;;  %v2521_v4 = vsel %vm162_vm0, 0.0, %v2489_v0  ;;  %v2358_v32 = vpop.f32.mrb[12].mxu0  ;;  %v3175_v7 = vld [vmem:[#allocation3 + $0x18] sm:$0xf] }
 0x205   :  { %v2537_v46 = vsel %vm162_vm0, %v2489_v0, 0.0  ;;  %v3307_v31 = vor.u32 %v3306_v52, %v3302_v61  ;;  %v3309_v43 = vshrl.u32 %v5490_v51, 16  ;;  %v5775_v58 = vpack.c.bf16 %v2521_v4, %v2521_v4  ;;  %v2360_v18 = vpop.f32.mrb[13].mxu0  ;;  %v3191_v56 = vld [vmem:[#allocation3 + $0x1c] sm:$0x1] }
 0x206   :  { %2686 = vst.msk [vmem:[#allocation3 + $0x28] sm:$0xf] %vm331_vm1, %v5773_v41  ;;  %v5776_v5 = vpack.c.bf16 %v2537_v46, %v2537_v46  ;;  %vm2419_vm10 = vcmp.ge.f32.partialorder %v2358_v32, 0.0  ;;  %v2442_v13 = vmul.f32 %v7404_v17, %v2358_v32  ;;  %v5546_v19 = vcombine.low %v3493_v3, %v3494_v24  ;;  %v2361_v36 = vpop.f32.mrb[14].mxu0  ;;  %v3176_v62 = vld [vmem:[#allocation3 + $0x20] sm:$0xf] }
 0x207   :  { %2687 = vst.msk [vmem:[#allocation3 + $0x2c] sm:$0x1] %vm333_vm2, %v5774_v26  ;;  %3413 = vrot.lane.b32.xlu0 %v3307_v31, %s6324_s23  ;;  %v3314_v22 = vor.u32 %v3313_v15, %v3309_v43  ;;  %v5491_v8 = vcombine.low %v3175_v7, %v3191_v56  ;;  %v3192_v29 = vld [vmem:[#allocation3 + $0x24] sm:$0x1]  ;;  %vm2420_vm11 = vcmp.ge.f32.partialorder %v2361_v36, 0.0  ;;  %v2443_v45 = vmul.f32 %v7404_v17, %v2361_v36  ;;  %v2363_v48 = vpop.f32.mrb[15].mxu0 }
 0x208   :  { %2688 = vst.msk [vmem:[#allocation3 + $0x30] sm:$0xf] %vm331_vm1, %v5775_v58  ;;  %v2458_v63 = vsel %vm2419_vm10, %v2358_v32, %v2442_v13  ;;  %v5492_v35 = vcombine.low %v3176_v62, %v3192_v29  ;;  %5573 = vmatprep.mubr.msk.bf16.mxu1 %vm709_vm3, %v5546_v19  ;;  %vm4860_vm8 = vcmask 1041409   ;;  %vm4933_vm9 = vcmask 31744  }
 0x209   :  { %2689 = vst.msk [vmem:[#allocation3 + $0x34] sm:$0x1] %vm333_vm2, %v5776_v5  ;;  %v2490_v44 = vrot.slane %v2458_v63, 7  ;;  %3415 = vrot.lane.b32.xlu1 %v3314_v22, %s6324_s23  ;;  %v3318_v25 = vshll.u32 %v5491_v8, 16  ;;  %v2459_v53 = vsel %vm2420_vm11, %v2361_v36, %v2443_v45  ;;  %v3316_v33 = vshrl.u32 %v5491_v8, 16 }
 0x20a   :  { %v3325_v23 = vshll.u32 %v5492_v35, 16  ;;  %v2491_v37 = vrot.slane %v2459_v53, 7  ;;  %v3323_v47 = vshrl.u32 %v5492_v35, 16 }
 0x20b   :  { %v2522_v50 = vsel %vm162_vm0, 0.0, %v2490_v44  ;;  %v2538_v20 = vsel %vm162_vm0, %v2490_v44, 0.0  ;;  %v3320_v38 = vrot.slane %v3318_v25, 1 }
 0x20c   :  { %v5777_v12 = vpack.c.bf16 %v2522_v50, %v2522_v50  ;;  %v5778_v59 = vpack.c.bf16 %v2538_v20, %v2538_v20  ;;  %v3327_v55 = vrot.slane %v3325_v23, 1  ;;  %v2523_v39 = vsel %vm162_vm0, 0.0, %v2491_v37  ;;  %v2366_v6 = vpop.f32.mrb[16].mxu0 }
 0x20d   :  { %v2539_v42 = vsel %vm162_vm0, %v2491_v37, 0.0  ;;  %v3321_v10 = vor.u32 %v3320_v38, %v3316_v33  ;;  %v3177_v54 = vld [vmem:[#allocation3 + $0x28] sm:$0xf]  ;;  %v5779_v1 = vpack.c.bf16 %v2523_v39, %v2523_v39  ;;  %vm2421_vm12 = vcmp.ge.f32.partialorder %v2366_v6, 0.0  ;;  %v2368_v27 = vpop.f32.mrb[17].mxu0 }
 0x20e   :  { %2690 = vst.msk [vmem:[#allocation3 + $0x38] sm:$0xf] %vm331_vm1, %v5777_v12  ;;  %v5780_v30 = vpack.c.bf16 %v2539_v42, %v2539_v42  ;;  %v2444_v40 = vmul.f32 %v7404_v17, %v2366_v6  ;;  %v3193_v14 = vld [vmem:[#allocation3 + $0x2c] sm:$0x1]  ;;  %v2369_v28 = vpop.f32.mrb[18].mxu0  ;;  %v3328_v57 = vor.u32 %v3327_v55, %v3323_v47 }
 0x20f   :  { %2691 = vst.msk [vmem:[#allocation3 + $0x3c] sm:$0x1] %vm333_vm2, %v5778_v59  ;;  %3417 = vrot.lane.b32.xlu0 %v3321_v10, %s6324_s23  ;;  %v5493_v51 = vcombine.low %v3177_v54, %v3193_v14  ;;  %v3178_v49 = vld [vmem:[#allocation3 + $0x30] sm:$0xf]  ;;  %vm2422_vm13 = vcmp.ge.f32.partialorder %v2369_v28, 0.0  ;;  %v2445_v16 = vmul.f32 %v7404_v17, %v2369_v28  ;;  %v2371_v61 = vpop.f32.mrb[19].mxu0 }
 0x210   :  { %v3194_v21 = vld [vmem:[#allocation3 + $0x34] sm:$0x1]  ;;  %2692 = vst.msk [vmem:[#allocation3 + $0x40] sm:$0xf] %vm331_vm1, %v5779_v1  ;;  %v2460_v2 = vsel %vm2421_vm12, %v2366_v6, %v2444_v40  ;;  %3419 = vrot.lane.b32.xlu1 %v3328_v57, %s6324_s23  ;;  %v2716_v6 = vld [vmem:[#allocation3] sm:$0xf] }
 0x211   :  { %2693 = vst.msk [vmem:[#allocation3 + $0x44] sm:$0x1] %vm333_vm2, %v5780_v30  ;;  %v5494_v3 = vcombine.low %v3178_v49, %v3194_v21  ;;  %v2492_v60 = vrot.slane %v2460_v2, 7  ;;  %v3332_v9 = vshll.u32 %v5493_v51, 16  ;;  %v2461_v11 = vsel %vm2422_vm13, %v2369_v28, %v2445_v16  ;;  %v2732_v49 = vld [vmem:[#allocation3 + $0x4] sm:$0x1] }
 0x212   :  { %v3330_v0 = vshrl.u32 %v5493_v51, 16  ;;  %v2493_v24 = vrot.slane %v2461_v11, 7 }
 0x213   :  { %v3339_v52 = vshll.u32 %v5494_v3, 16  ;;  %v2524_v41 = vsel %vm162_vm0, 0.0, %v2492_v60  ;;  %v2540_v26 = vsel %vm162_vm0, %v2492_v60, 0.0  ;;  %v3334_v15 = vrot.slane %v3332_v9, 1 }
 0x214   :  { %v5781_v4 = vpack.c.bf16 %v2524_v41, %v2524_v41  ;;  %v5782_v46 = vpack.c.bf16 %v2540_v26, %v2540_v26  ;;  %v2525_v31 = vsel %vm162_vm0, 0.0, %v2493_v24  ;;  %v2541_v43 = vsel %vm162_vm0, %v2493_v24, 0.0  ;;  %v2374_v7 = vpop.f32.mrb[20].mxu0 }
 0x215   :  { %v3341_v32 = vrot.slane %v3339_v52, 1  ;;  %v3335_v58 = vor.u32 %v3334_v15, %v3330_v0  ;;  %v3337_v5 = vshrl.u32 %v5494_v3, 16  ;;  %v3179_v13 = vld [vmem:[#allocation3 + $0x38] sm:$0xf]  ;;  %v5783_v18 = vpack.c.bf16 %v2525_v31, %v2525_v31  ;;  %v2376_v36 = vpop.f32.mrb[21].mxu0 }
 0x216   :  { %2698 = vst.msk [vmem:[#allocation3 + $0x58] sm:$0xf] %vm331_vm1, %v5781_v4  ;;  %v5784_v56 = vpack.c.bf16 %v2541_v43, %v2541_v43  ;;  %vm2423_vm14 = vcmp.ge.f32.partialorder %v2374_v7, 0.0  ;;  %v2446_v19 = vmul.f32 %v7404_v17, %v2374_v7  ;;  %v7477_v22 = vld [vmem:[#allocation3 + $0x3c] sm:$0x1]  ;;  %v2377_v8 = vpop.f32.mrb[22].mxu0  ;;  %v7501_v60 = vcombine.low %v2716_v6, %v2732_v49 }
 0x217   :  { %2699 = vst.msk [vmem:[#allocation3 + $0x5c] sm:$0x1] %vm333_vm2, %v5782_v46  ;;  %3421 = vrot.lane.b32.xlu0 %v3335_v58, %s6324_s23  ;;  %v3342_v62 = vor.u32 %v3341_v32, %v3337_v5  ;;  %v5495_v29 = vcombine.low %v3179_v13, %v7477_v22  ;;  %v3180_v63 = vld [vmem:[#allocation3 + $0x40] sm:$0xf]  ;;  %vm2424_vm15 = vcmp.ge.f32.partialorder %v2377_v8, 0.0  ;;  %v2447_v35 = vmul.f32 %v7404_v17, %v2377_v8  ;;  %v2379_v44 = vpop.f32.mrb[23].mxu0 }
 0x218   :  { %v7481_v45 = vld [vmem:[#allocation3 + $0x44] sm:$0x1]  ;;  %2700 = vst.msk [vmem:[#allocation3 + $0x60] sm:$0xf] %vm331_vm1, %v5783_v18  ;;  %v2462_v48 = vsel %vm2423_vm14, %v2374_v7, %v2446_v19  ;;  %v2847_v13 = vshll.u32 %v7501_v60, 16 }
 0x219   :  { %2701 = vst.msk [vmem:[#allocation3 + $0x64] sm:$0x1] %vm333_vm2, %v5784_v56  ;;  %v5496_v25 = vcombine.low %v3180_v63, %v7481_v45  ;;  %v2494_v53 = vrot.slane %v2462_v48, 7  ;;  %3423 = vrot.lane.b32.xlu1 %v3342_v62, %s6324_s23  ;;  %v3346_v33 = vshll.u32 %v5495_v29, 16  ;;  %v2463_v23 = vsel %vm2424_vm15, %v2377_v8, %v2447_v35  ;;  %v2724_v18 = vld [vmem:[#allocation3 + $0x50] sm:$0xf] }
 0x21a   :  { %v3344_v50 = vshrl.u32 %v5495_v29, 16  ;;  %v2495_v12 = vrot.slane %v2463_v23, 7 }
 0x21b   :  { %v3353_v20 = vshll.u32 %v5496_v25, 16  ;;  %v2526_v37 = vsel %vm162_vm0, 0.0, %v2494_v53  ;;  %v2542_v38 = vsel %vm162_vm0, %v2494_v53, 0.0  ;;  %v3348_v59 = vrot.slane %v3346_v33, 1  ;;  %v4072_v53 = vld [vmem:[#allocation3 + $0x48] sm:$0xf] }
 0x21c   :  { %v5785_v55 = vpack.c.bf16 %v2526_v37, %v2526_v37  ;;  %v5786_v39 = vpack.c.bf16 %v2542_v38, %v2542_v38  ;;  %v2527_v10 = vsel %vm162_vm0, 0.0, %v2495_v12  ;;  %v2543_v47 = vsel %vm162_vm0, %v2495_v12, 0.0  ;;  %v2382_v54 = vpop.f32.mrb[24].mxu0 }
 0x21d   :  { %v3355_v42 = vrot.slane %v3353_v20, 1  ;;  %v3349_v1 = vor.u32 %v3348_v59, %v3344_v50  ;;  %v3351_v30 = vshrl.u32 %v5496_v25, 16  ;;  %v3181_v40 = vld [vmem:[#allocation3 + $0x58] sm:$0xf]  ;;  %v5787_v27 = vpack.c.bf16 %v2527_v10, %v2527_v10  ;;  %v2384_v57 = vpop.f32.mrb[25].mxu0 }
 0x21e   :  { %2702 = vst.msk [vmem:[#allocation3 + $0x68] sm:$0xf] %vm331_vm1, %v5785_v55  ;;  %v5788_v14 = vpack.c.bf16 %v2543_v47, %v2543_v47  ;;  %vm2425_vm4 = vcmp.ge.f32.partialorder %v2382_v54, 0.0  ;;  %v2448_v28 = vmul.f32 %v7404_v17, %v2382_v54  ;;  %v7495_v51 = vld [vmem:[#allocation3 + $0x5c] sm:$0x1]  ;;  %v2385_v21 = vpop.f32.mrb[26].mxu0 }
 0x21f   :  { %2703 = vst.msk [vmem:[#allocation3 + $0x6c] sm:$0x1] %vm333_vm2, %v5786_v39  ;;  %3425 = vrot.lane.b32.xlu0 %v3349_v1, %s6324_s23  ;;  %v3356_v2 = vor.u32 %v3355_v42, %v3351_v30  ;;  %v5497_v16 = vcombine.low %v3181_v40, %v7495_v51  ;;  %v3182_v61 = vld [vmem:[#allocation3 + $0x60] sm:$0xf]  ;;  %vm2426_vm5 = vcmp.ge.f32.partialorder %v2385_v21, 0.0  ;;  %v2449_v11 = vmul.f32 %v7404_v17, %v2385_v21  ;;  %v2387_v0 = vpop.f32.mrb[27].mxu0 }
 0x220   :  { %v7499_v3 = vld [vmem:[#allocation3 + $0x64] sm:$0x1]  ;;  %2704 = vst.msk [vmem:[#allocation3 + $0x70] sm:$0xf] %vm331_vm1, %v5787_v27  ;;  %v2464_v9 = vsel %vm2425_vm4, %v2382_v54, %v2448_v28  ;;  %v2845_v38 = vshrl.u32 %v7501_v60, 16  ;;  %v7528_v47 = vrot.slane %v2847_v13, 1 }
 0x221   :  { %2705 = vst.msk [vmem:[#allocation3 + $0x74] sm:$0x1] %vm333_vm2, %v5788_v14  ;;  %v5498_v52 = vcombine.low %v3182_v61, %v7499_v3  ;;  %v2496_v41 = vrot.slane %v2464_v9, 7  ;;  %3427 = vrot.lane.b32.xlu1 %v3356_v2, %s6324_s23  ;;  %v3360_v26 = vshll.u32 %v5497_v16, 16  ;;  %v2465_v24 = vsel %vm2426_vm5, %v2385_v21, %v2449_v11  ;;  %v2740_v42 = vld [vmem:[#allocation3 + $0x54] sm:$0x1] }
 0x222   :  { %v3358_v15 = vshrl.u32 %v5497_v16, 16  ;;  %v2497_v31 = vrot.slane %v2465_v24, 7  ;;  %v7530_v54 = vcombine.low %v2724_v18, %v2740_v42  ;;  %v7532_v1 = vld [vmem:[#allocation3 + $0x4c] sm:$0x1]  ;;  %v2717_v14 = vld [vmem:[#allocation3 + $0x8] sm:$0xf] }
 0x223   :  { %v3367_v4 = vshll.u32 %v5498_v52, 16  ;;  %v2528_v46 = vsel %vm162_vm0, 0.0, %v2496_v41  ;;  %v2544_v32 = vsel %vm162_vm0, %v2496_v41, 0.0  ;;  %v3362_v43 = vrot.slane %v3360_v26, 1  ;;  %v2733_v28 = vld [vmem:[#allocation3 + $0xc] sm:$0x1] }
 0x224   :  { %v5789_v7 = vpack.c.bf16 %v2528_v46, %v2528_v46  ;;  %v5790_v58 = vpack.c.bf16 %v2544_v32, %v2544_v32  ;;  %v2529_v56 = vsel %vm162_vm0, 0.0, %v2497_v31  ;;  %v2545_v19 = vsel %vm162_vm0, %v2497_v31, 0.0  ;;  %v2390_v36 = vpop.f32.mrb[28].mxu0  ;;  %v2756_v16 = vld [vmem:[#allocation3 + $0x50] sm:$0xe] }
 0x225   :  { %v3369_v5 = vrot.slane %v3367_v4, 1  ;;  %v3363_v8 = vor.u32 %v3362_v43, %v3358_v15  ;;  %v3365_v62 = vshrl.u32 %v5498_v52, 16  ;;  %v3183_v29 = vld [vmem:[#allocation3 + $0x68] sm:$0xf]  ;;  %v5791_v63 = vpack.c.bf16 %v2529_v56, %v2529_v56  ;;  %v2392_v44 = vpop.f32.mrb[29].mxu0 }
 0x226   :  { %2706 = vst.msk [vmem:[#allocation3 + $0x78] sm:$0xf] %vm331_vm1, %v5789_v7  ;;  %v5792_v48 = vpack.c.bf16 %v2545_v19, %v2545_v19  ;;  %vm2427_vm6 = vcmp.ge.f32.partialorder %v2390_v36, 0.0  ;;  %v2450_v35 = vmul.f32 %v7404_v17, %v2390_v36  ;;  %v7516_v25 = vld [vmem:[#allocation3 + $0x6c] sm:$0x1]  ;;  %v2393_v33 = vpop.f32.mrb[30].mxu0  ;;  %v7545_v32 = vcombine.low %v2717_v14, %v2733_v28 }
 0x227   :  { %2707 = vst.msk [vmem:[#allocation3 + $0x7c] sm:$0x1] %vm333_vm2, %v5790_v58  ;;  %3429 = vrot.lane.b32.xlu0 %v3363_v8, %s6324_s23  ;;  %v3370_v23 = vor.u32 %v3369_v5, %v3365_v62  ;;  %v5499_v50 = vcombine.low %v3183_v29, %v7516_v25  ;;  %v3184_v20 = vld [vmem:[#allocation3 + $0x70] sm:$0xf]  ;;  %vm2428_vm7 = vcmp.ge.f32.partialorder %v2393_v33, 0.0  ;;  %v2451_v59 = vmul.f32 %v7404_v17, %v2393_v33  ;;  %v2395_v55 = vpop.f32.mrb[31].mxu0 }
 0x228   :  { %v7520_v37 = vld [vmem:[#allocation3 + $0x74] sm:$0x1]  ;;  %2708 = vst.msk [vmem:[#allocation3 + $0x80] sm:$0xf] %vm331_vm1, %v5791_v63  ;;  %v2466_v12 = vsel %vm2427_vm6, %v2390_v36, %v2450_v35  ;;  %v7535_v17 = vcombine.low %v4072_v53, %v7532_v1  ;;  %v2718_v52 = vld [vmem:[#allocation3 + $0x10] sm:$0xf]  ;;  %v5481_v19 = vcombine.low %v2756_v16, %v2740_v42 }
 0x229   :  { %2709 = vst.msk [vmem:[#allocation3 + $0x84] sm:$0x1] %vm333_vm2, %v5792_v48  ;;  %v5500_v39 = vcombine.low %v3184_v20, %v7520_v37  ;;  %v2498_v6 = vrot.slane %v2466_v12, 7  ;;  %3431 = vrot.lane.b32.xlu1 %v3370_v23, %s6324_s23  ;;  %v3374_v10 = vshll.u32 %v5499_v50, 16  ;;  %v2467_v30 = vsel %vm2428_vm7, %v2393_v33, %v2451_v59  ;;  %v2734_v41 = vld [vmem:[#allocation3 + $0x14] sm:$0x1] }
 0x22a   :  { %v3372_v40 = vshrl.u32 %v5499_v50, 16  ;;  %v2499_v21 = vrot.slane %v2467_v30, 7  ;;  %v2903_v18 = vshll.u32 %v7530_v54, 16  ;;  %v4245_v56 = vshll.u32 %v7535_v17, 16  ;;  %v2719_v63 = vld [vmem:[#allocation3 + $0x18] sm:$0xf] }
 0x22b   :  { %v3381_v27 = vshll.u32 %v5500_v39, 16  ;;  %v2530_v57 = vsel %vm162_vm0, 0.0, %v2498_v6  ;;  %v2546_v49 = vsel %vm162_vm0, %v2498_v6, 0.0  ;;  %v3376_v2 = vrot.slane %v3374_v10, 1  ;;  %v7566_v48 = vld [vmem:[#allocation3 + $0x1c] sm:$0x1] }
 0x22c   :  { %v5793_v61 = vpack.c.bf16 %v2530_v57, %v2530_v57  ;;  %v5794_v9 = vpack.c.bf16 %v2546_v49, %v2546_v49  ;;  %v3379_v11 = vshrl.u32 %v5500_v39, 16  ;;  %v2531_v26 = vsel %vm162_vm0, 0.0, %v2499_v21  ;;  %8683 = vst [vmem:[#allocation14_spill] sm:$0xff] %v7566_v48  ;;  %v2720_v35 = vld [vmem:[#allocation3 + $0x20] sm:$0xf] }
 0x22d   :  { %v3383_v0 = vrot.slane %v3381_v27, 1  ;;  %v2547_v24 = vsel %vm162_vm0, %v2499_v21, 0.0  ;;  %v3377_v15 = vor.u32 %v3376_v2, %v3372_v40  ;;  %v7541_v4 = vld [vmem:[#allocation3 + $0x78] sm:$0xf]  ;;  %v5795_v31 = vpack.c.bf16 %v2531_v26, %v2531_v26  ;;  %v7569_v50 = vld [vmem:[#allocation3 + $0x24] sm:$0x1] }
 0x22e   :  { %8681 = vst [vmem:[#allocation12_spill] sm:$0xff] %v7541_v4  ;;  %v7543_v46 = vld [vmem:[#allocation3 + $0x7c] sm:$0x1]  ;;  %2710 = vst.msk [vmem:[#allocation3 + $0x88] sm:$0xf] %vm331_vm1, %v5793_v61  ;;  %v5796_v43 = vpack.c.bf16 %v2547_v24, %v2547_v24  ;;  %v7563_v62 = vcombine.low %v2718_v52, %v2734_v41  ;;  %v2901_v29 = vshrl.u32 %v7530_v54, 16  ;;  %v7582_v14 = vcombine.low %v2719_v63, %v7566_v48 }
 0x22f   :  { %2711 = vst.msk [vmem:[#allocation3 + $0x8c] sm:$0x1] %vm333_vm2, %v5794_v9  ;;  %v3384_v7 = vor.u32 %v3383_v0, %v3379_v11  ;;  %v5501_v58 = vcombine.low %v7541_v4, %v7543_v46  ;;  %3433 = vrot.lane.b32.xlu0 %v3377_v15, %s6324_s23  ;;  %v7552_v5 = vld [vmem:[#allocation3 + $0x80] sm:$0xf]  ;;  %v2854_v23 = vshll.u32 %v7545_v32, 16  ;;  %8684 = vst [vmem:[#allocation20_spill] sm:$0xff] %v7569_v50 }
 0x230   :  { %8682 = vst [vmem:[#allocation13_spill] sm:$0xff] %v7552_v5  ;;  %v7554_v13 = vld [vmem:[#allocation3 + $0x84] sm:$0x1]  ;;  %2712 = vst.msk [vmem:[#allocation3 + $0x90] sm:$0xf] %vm331_vm1, %v5795_v31  ;;  %v2905_v20 = vrot.slane %v2903_v18, 1  ;;  %v7585_v28 = vcombine.low %v2720_v35, %v7569_v50 }
 0x231   :  { %2713 = vst.msk [vmem:[#allocation3 + $0x94] sm:$0x1] %vm333_vm2, %v5796_v43  ;;  %3435 = vrot.lane.b32.xlu1 %v3384_v7, %s6324_s23  ;;  %v3388_v36 = vshll.u32 %v5501_v58, 16  ;;  %v5502_v8 = vcombine.low %v7552_v5, %v7554_v13  ;;  %v3386_v44 = vshrl.u32 %v5501_v58, 16  ;;  %v7572_v59 = vrot.slane %v4245_v56, 1 }
 0x232   :  { %v7574_v55 = vrot.slane %v5481_v19, 1  ;;  %v2861_v10 = vshll.u32 %v7563_v62, 16  ;;  %v2721_v30 = vld [vmem:[#allocation3 + $0x28] sm:$0xf]  ;;  %v7587_v57 = vld [vmem:[#allocation3 + $0x2c] sm:$0x1] }
 0x233   :  { %v3390_v53 = vrot.slane %v3388_v36, 1  ;;  %v3395_v33 = vshll.u32 %v5502_v8, 16  ;;  %v3393_v42 = vshrl.u32 %v5502_v8, 16  ;;  %8686 = vst [vmem:[#allocation15_spill] sm:$0xff] %v7587_v57  ;;  %v2852_v2 = vshrl.u32 %v7545_v32, 16 }
 0x234   :  { %v2856_v16 = vrot.slane %v2854_v23, 1  ;;  %v2722_v61 = vld [vmem:[#allocation3 + $0x30] sm:$0xf]  ;;  %v7597_v0 = vld [vmem:[#allocation3 + $0x34] sm:$0x1]  ;;  %v2859_v26 = vshrl.u32 %v7563_v62, 16  ;;  %v7604_v24 = vcombine.low %v2721_v30, %v7587_v57 }
 0x235   :  { %v3391_v39 = vor.u32 %v3390_v53, %v3386_v44  ;;  %v3397_v6 = vrot.slane %v3395_v33, 1  ;;  %v7577_v40 = vld [vmem:[#allocation3 + $0x88] sm:$0xf]  ;;  %v2863_v15 = vrot.slane %v2861_v10, 1  ;;  %v2866_v32 = vshrl.u32 %v7582_v14, 16 }
 0x236   :  { %8685 = vst [vmem:[#allocation18_spill] sm:$0xff] %v7577_v40  ;;  %v7579_v27 = vld [vmem:[#allocation3 + $0x8c] sm:$0x1]  ;;  %v2868_v31 = vshll.u32 %v7582_v14, 16  ;;  %v2875_v43 = vshll.u32 %v7585_v28, 16  ;;  %v7612_v19 = vcombine.low %v2722_v61, %v7597_v0  ;;  %v2882_v23 = vshll.u32 %v7604_v24, 16 }
 0x237   :  { %3437 = vrot.lane.b32.xlu0 %v3391_v39, %s6324_s23  ;;  %v3398_v49 = vor.u32 %v3397_v6, %v3393_v42  ;;  %v5503_v21 = vcombine.low %v7577_v40, %v7579_v27  ;;  %v7593_v9 = vld [vmem:[#allocation3 + $0x90] sm:$0xf]  ;;  %v7609_v7 = vld [vmem:[#allocation3 + $0x38] sm:$0xf]  ;;  %v7614_v36 = vld [vmem:[#allocation3 + $0x3c] sm:$0x1]  ;;  %v2850_v42 = vor.u32 %v7528_v47, %v2845_v38  ;;  %v7639_v47 = vor.u32 %v2905_v20, %v2901_v29 }
 0x238   :  { %8687 = vst [vmem:[#allocation16_spill] sm:$0xff] %v7593_v9  ;;  %v7595_v11 = vld [vmem:[#allocation3 + $0x94] sm:$0x1]  ;;  %8688 = vst [vmem:[#allocation24_spill] sm:$0xff] %v7609_v7  ;;  %v4104_v8 = vld [vmem:[#allocation3 + $0x48] sm:$0xe]  ;;  %v7626_v6 = vcombine.low %v7609_v7, %v7614_v36 }
 0x239   :  { %3439 = vrot.lane.b32.xlu1 %v3398_v49, %s6324_s23  ;;  %v3402_v52 = vshll.u32 %v5503_v21, 16  ;;  %v5504_v41 = vcombine.low %v7593_v9, %v7595_v11  ;;  %v3400_v58 = vshrl.u32 %v5503_v21, 16  ;;  %v2725_v62 = vld [vmem:[#allocation3 + $0x58] sm:$0xf]  ;;  %v7616_v63 = vld [vmem:[#allocation3 + $0x5c] sm:$0x1] }
 0x23a   :  { %v2726_v35 = vld [vmem:[#allocation3 + $0x60] sm:$0xf]  ;;  %v7619_v39 = vld [vmem:[#allocation3 + $0x64] sm:$0x1]  ;;  %v2727_v10 = vld [vmem:[#allocation3 + $0x68] sm:$0xf] }
 0x23b   :  { %v3404_v18 = vrot.slane %v3402_v52, 1  ;;  %v3409_v56 = vshll.u32 %v5504_v41, 16  ;;  %v3407_v53 = vshrl.u32 %v5504_v41, 16  ;;  %v7628_v30 = vld [vmem:[#allocation3 + $0x6c] sm:$0x1]  ;;  %v2870_v21 = vrot.slane %v2868_v31, 1 }
 0x23c   :  { %v2728_v14 = vld [vmem:[#allocation3 + $0x70] sm:$0xf]  ;;  %v2889_v61 = vshll.u32 %v7612_v19, 16  ;;  %v7633_v52 = vcombine.low %v2725_v62, %v7616_v63  ;;  %v7635_v60 = vld [vmem:[#allocation3 + $0x74] sm:$0x1]  ;;  %v7642_v41 = vcombine.low %v2726_v35, %v7619_v39  ;;  %v5640_v31 = vcombine.low %v4104_v8, %v7532_v1 }
 0x23d   :  { %v3405_v44 = vor.u32 %v3404_v18, %v3400_v58  ;;  %v3411_v33 = vrot.slane %v3409_v56, 1  ;;  %v2729_v38 = vld [vmem:[#allocation3 + $0x78] sm:$0xf]  ;;  %v7644_v58 = vld [vmem:[#allocation3 + $0x7c] sm:$0x1]  ;;  %v2857_v62 = vor.u32 %v2856_v16, %v2852_v2  ;;  %v8689_v54 = vshrl.u32 %v7535_v17, 16 }
 0x23e   :  { %v2730_v18 = vld [vmem:[#allocation3 + $0x80] sm:$0xf]  ;;  %v7646_v56 = vld [vmem:[#allocation3 + $0x84] sm:$0x1]  ;;  %v7650_v12 = vld [vmem:[#allocation3 + $0x8c] sm:$0x1]  ;;  %v7660_v7 = vcombine.low %v2727_v10, %v7628_v30  ;;  %v7663_v1 = vcombine.low %v2728_v14, %v7635_v60  ;;  %v7669_v17 = vcombine.low %v2729_v38, %v7644_v58 }
 0x23f   :  { %3441 = vrot.lane.b32.xlu0 %v3405_v44, %s6324_s23  ;;  %v3412_v49 = vor.u32 %v3411_v33, %v3407_v53  ;;  %v2877_v44 = vrot.slane %v2875_v43, 1  ;;  %v2884_v53 = vrot.slane %v2882_v23, 1  ;;  %v2731_v33 = vld [vmem:[#allocation3 + $0x88] sm:$0xf]  ;;  %v7655_v29 = vor.u32 %v7572_v59, %v8689_v54  ;;  %v4065_v23 = vld [vmem:[#allocation3 + $0x10] sm:$0xf] }
 0x240   :  { %v2873_v20 = vshrl.u32 %v7585_v28, 16  ;;  %v2896_v35 = vshll.u32 %v7626_v6, 16  ;;  %v2880_v2 = vshrl.u32 %v7604_v24, 16  ;;  %v2910_v16 = vshll.u32 %v7633_v52, 16  ;;  %v7681_v38 = vld [vmem:[#allocation3 + $0x14] sm:$0x1] }
 0x241   :  { %3443 = vrot.lane.b32.xlu1 %v3412_v49, %s6324_s23  ;;  %8690 = vst [vmem:[#allocation22_spill] sm:$0xff] %v7655_v29  ;;  %v7672_v59 = vcombine.low %v2730_v18, %v7646_v56  ;;  %v2891_v28 = vrot.slane %v2889_v61, 1  ;;  %v2917_v43 = vshll.u32 %v7642_v41, 16  ;;  %v7676_v8 = vcombine.low %v2731_v33, %v7650_v12  ;;  %v7683_v54 = vld [vmem:[#allocation3 + $0x18] sm:$0xf] }
 0x242   :  { %v7678_v10 = vrot.slane %v5640_v31, 1  ;;  %v2864_v24 = vor.u32 %v2863_v15, %v2859_v26  ;;  %v2878_v14 = vor.u32 %v2877_v44, %v2873_v20  ;;  %v2885_v49 = vor.u32 %v2884_v53, %v2880_v2  ;;  %8692 = vst [vmem:[#allocation17_spill] sm:$0xff] %v7683_v54  ;;  %v7685_v18 = vld [vmem:[#allocation3 + $0x1c] sm:$0x1]  ;;  %v7690_v57 = vld [vmem:[#allocation3 + $0x20] sm:$0xf] }
 0x243   :  { %2956 = vrot.lane.b32.xlu0 %v2850_v42, %s6324_s23  ;;  %v2871_v42 = vor.u32 %v2870_v21, %v2866_v32  ;;  %v2887_v61 = vshrl.u32 %v7612_v19, 16  ;;  %v2898_v50 = vrot.slane %v2896_v35, 1  ;;  %v2924_v33 = vshll.u32 %v7660_v7, 16  ;;  %8693 = vst [vmem:[#allocation26_spill] sm:$0xff] %v7690_v57  ;;  %v7702_v35 = vld [vmem:[#allocation3 + $0x28] sm:$0xf] }
 0x244   :  { %8691 = vst [vmem:[#allocation19_spill] sm:$0xff] %v7678_v10  ;;  %v2931_v31 = vshll.u32 %v7663_v1, 16  ;;  %v2894_v26 = vshrl.u32 %v7626_v6, 16  ;;  %v2912_v15 = vrot.slane %v2910_v16, 1  ;;  %v2938_v32 = vshll.u32 %v7669_v17, 16  ;;  %8694 = vst [vmem:[#allocation28_spill] sm:$0xff] %v7702_v35 }
 0x245   :  { %2958 = vrot.lane.b32.xlu1 %v2857_v62, %s6324_s23  ;;  %v2945_v21 = vshll.u32 %v7672_v59, 16  ;;  %v7696_v62 = vld [vmem:[#allocation3 + $0x24] sm:$0x1]  ;;  %v2892_v44 = vor.u32 %v2891_v28, %v2887_v61  ;;  %v2919_v19 = vrot.slane %v2917_v43, 1  ;;  %v2952_v53 = vshll.u32 %v7676_v8, 16 }
 0x246   :  { %v7700_v20 = vcombine.low %v4065_v23, %v7681_v38  ;;  %v7704_v2 = vld [vmem:[#allocation3 + $0x2c] sm:$0x1]  ;;  %v2908_v6 = vshrl.u32 %v7633_v52, 16  ;;  %v2915_v16 = vshrl.u32 %v7642_v41, 16  ;;  %v7712_v28 = vcombine.low %v7683_v54, %v7685_v18  ;;  %v7718_v9 = vld [vmem:[#allocation3 + $0x30] sm:$0xf] }
 0x247   :  { %2960 = vrot.lane.b32.xlu0 %v2864_v24, %s6324_s23  ;;  %v2922_v24 = vshrl.u32 %v7660_v7, 16  ;;  %v2899_v43 = vor.u32 %v2898_v50, %v2894_v26  ;;  %v2926_v61 = vrot.slane %v2924_v33, 1  ;;  %v2933_v23 = vrot.slane %v2931_v31, 1  ;;  %8695 = vst [vmem:[#allocation23_spill] sm:$0xff] %v7718_v9  ;;  %v3211_v40 = vld [vmem:[#allocation3 + $0x38] sm:$0xe] }
 0x248   :  { %v7716_v48 = vcombine.low %v7690_v57, %v7696_v62  ;;  %v2913_v52 = vor.u32 %v2912_v15, %v2908_v6  ;;  %v2940_v41 = vrot.slane %v2938_v32, 1  ;;  %v2947_v7 = vrot.slane %v2945_v21, 1  ;;  %v7731_v57 = vld [vmem:[#allocation3 + $0x38] sm:$0xf]  ;;  %v3212_v5 = vld [vmem:[#allocation3 + $0x40] sm:$0xe] }
 0x249   :  { %2962 = vrot.lane.b32.xlu1 %v2871_v42, %s6324_s23  ;;  %v7720_v42 = vld [vmem:[#allocation3 + $0x34] sm:$0x1]  ;;  %v7725_v54 = vcombine.low %v7702_v35, %v7704_v2  ;;  %v7727_v50 = vor.u32 %v2919_v19, %v2915_v16  ;;  %v2929_v33 = vshrl.u32 %v7663_v1, 16  ;;  %v2954_v31 = vrot.slane %v2952_v53, 1  ;;  %8697 = vst [vmem:[#allocation30_spill] sm:$0xff] %v7731_v57 }
 0x24a   :  { %8696 = vst [vmem:[#allocation21_spill] sm:$0xff] %v7720_v42  ;;  %v4196_v26 = vshll.u32 %v7700_v20, 16  ;;  %v2943_v15 = vshrl.u32 %v7672_v59, 16  ;;  %v4203_v32 = vshll.u32 %v7712_v28, 16  ;;  %v7739_v21 = vcombine.low %v7718_v9, %v7720_v42  ;;  %v7741_v19 = vld [vmem:[#allocation3 + $0x3c] sm:$0x1] }
 0x24b   :  { %2964 = vrot.lane.b32.xlu0 %v2878_v14, %s6324_s23  ;;  %v2936_v14 = vshrl.u32 %v7669_v17, 16  ;;  %v7743_v1 = vor.u32 %v2926_v61, %v2922_v24  ;;  %v7745_v53 = vor.u32 %v2933_v23, %v2929_v33  ;;  %v2950_v6 = vshrl.u32 %v7676_v8, 16  ;;  %v7749_v16 = vld [vmem:[#allocation3 + $0x40] sm:$0xf]  ;;  %v7751_v17 = vld [vmem:[#allocation3 + $0x44] sm:$0x1] }
 0x24c   :  { %8698 = vst [vmem:[#allocation32_spill] sm:$0xff] %v7749_v16  ;;  %v7753_v59 = vld [vmem:[#allocation3 + $0x60] sm:$0xf]  ;;  %v7755_v35 = vld [vmem:[#allocation3 + $0x64] sm:$0x1]  ;;  %v7760_v24 = vor.u32 %v2947_v7, %v2943_v15  ;;  %v4194_v61 = vshrl.u32 %v7700_v20, 16  ;;  %v7777_v15 = vcombine.low %v7731_v57, %v7741_v19 }
 0x24d   :  { %2966 = vrot.lane.b32.xlu1 %v2885_v49, %s6324_s23  ;;  %v4210_v49 = vshll.u32 %v7716_v48, 16  ;;  %8699 = vst [vmem:[#allocation25_spill] sm:$0xff] %v7753_v59  ;;  %v7758_v9 = vor.u32 %v2940_v41, %v2936_v14  ;;  %v4217_v8 = vshll.u32 %v7725_v54, 16  ;;  %v7764_v23 = vld [vmem:[#allocation3 + $0x68] sm:$0xf]  ;;  %v7768_v4 = vor.u32 %v2954_v31, %v2950_v6 }
 0x24e   :  { %8700 = vst [vmem:[#allocation27_spill] sm:$0xff] %v7764_v23  ;;  %v7766_v33 = vld [vmem:[#allocation3 + $0x6c] sm:$0x1]  ;;  %v4198_v34 = vrot.slane %v4196_v26, 1  ;;  %v4201_v29 = vshrl.u32 %v7712_v28, 16  ;;  %v4205_v7 = vrot.slane %v4203_v32, 1  ;;  %v5511_v28 = vcombine.low %v3211_v40, %v7477_v22 }
 0x24f   :  { %2968 = vrot.lane.b32.xlu0 %v2892_v44, %s6324_s23  ;;  %v4208_v44 = vshrl.u32 %v7716_v48, 16  ;;  %v3213_v41 = vld [vmem:[#allocation3 + $0x58] sm:$0xe]  ;;  %v4215_v20 = vshrl.u32 %v7725_v54, 16  ;;  %v4224_v14 = vshll.u32 %v7739_v21, 16  ;;  %v4212_v31 = vrot.slane %v4210_v49, 1 }
 0x250   :  { %v3214_v10 = vld [vmem:[#allocation3 + $0x60] sm:$0xe]  ;;  %v4222_v26 = vshrl.u32 %v7739_v21, 16  ;;  %v5512_v48 = vcombine.low %v3212_v5, %v7481_v45  ;;  %v3215_v6 = vld [vmem:[#allocation3 + $0x68] sm:$0xe]  ;;  %v4219_v54 = vrot.slane %v4217_v8, 1  ;;  %v7790_v32 = vcombine.low %v7753_v59, %v7755_v35 }
 0x251   :  { %2970 = vrot.lane.b32.xlu1 %v2899_v43, %s6324_s23  ;;  %v3216_v42 = vld [vmem:[#allocation3 + $0x70] sm:$0xe]  ;;  %v7786_v43 = vcombine.low %v7749_v16, %v7751_v17  ;;  %v5513_v21 = vcombine.low %v3213_v41, %v7495_v51  ;;  %v3217_v49 = vld [vmem:[#allocation3 + $0x78] sm:$0xe]  ;;  %v7795_v22 = vcombine.low %v7764_v23, %v7766_v33  ;;  %v7797_v45 = vrot.slane %v5511_v28, 1 }
 0x252   :  { %v7799_v5 = vrot.slane %v5512_v48, 1  ;;  %v5514_v40 = vcombine.low %v3214_v10, %v7499_v3  ;;  %v3219_v8 = vld [vmem:[#allocation3 + $0x88] sm:$0xe]  ;;  %v4226_v16 = vrot.slane %v4224_v14, 1  ;;  %v4229_v59 = vshrl.u32 %v7777_v15, 16 }
 0x253   :  { %2972 = vrot.lane.b32.xlu0 %v7639_v47, %s6324_s23  ;;  %v3218_v47 = vld [vmem:[#allocation3 + $0x80] sm:$0xe]  ;;  %v5515_v51 = vcombine.low %v3215_v6, %v7516_v25  ;;  %v5516_v41 = vcombine.low %v3216_v42, %v7520_v37  ;;  %v3220_v57 = vld [vmem:[#allocation3 + $0x90] sm:$0xe]  ;;  %v7808_v23 = vrot.slane %v5513_v21, 1  ;;  %v5517_v3 = vcombine.low %v3217_v49, %v7543_v46 }
 0x254   :  { %v7810_v48 = vrot.slane %v5514_v40, 1  ;;  %v5518_v25 = vcombine.low %v3218_v47, %v7554_v13  ;;  %v5519_v37 = vcombine.low %v3219_v8, %v7579_v27  ;;  %v4231_v42 = vshll.u32 %v7777_v15, 16  ;;  %v2754_v21 = vld [vmem:[#allocation3 + $0x30] sm:$0xe]  ;;  %v7831_v13 = vld [vmem:[#allocation3 + $0x74] sm:$0x1] }
 0x255   :  { %2974 = vrot.lane.b32.xlu1 %v2913_v52, %s6324_s23  ;;  %v7815_v10 = vrot.slane %v5515_v51, 1  ;;  %v7817_v52 = vrot.slane %v5516_v41, 1  ;;  %v5520_v46 = vcombine.low %v3220_v57, %v7595_v11  ;;  %v7829_v49 = vld [vmem:[#allocation3 + $0x70] sm:$0xf]  ;;  %v7835_v40 = vrot.slane %v5517_v3, 1 }
 0x256   :  { %v7837_v47 = vrot.slane %v5518_v25, 1  ;;  %v4199_v8 = vor.u32 %v4198_v34, %v4194_v61  ;;  %v7839_v51 = vor.u32 %v4205_v7, %v4201_v29  ;;  %v7841_v57 = vrot.slane %v5519_v37, 1  ;;  %v2757_v41 = vld [vmem:[#allocation3 + $0x58] sm:$0xe]  ;;  %v2758_v29 = vld [vmem:[#allocation3 + $0x60] sm:$0xe] }
 0x257   :  { %2976 = vrot.lane.b32.xlu0 %v7727_v50, %s6324_s23  ;;  %v4238_v50 = vshll.u32 %v7786_v43, 16  ;;  %v7843_v11 = vrot.slane %v5520_v46, 1  ;;  %v7847_v6 = vor.u32 %v4212_v31, %v4208_v44  ;;  %v7849_v28 = vor.u32 %v4219_v54, %v4215_v20  ;;  %v2759_v61 = vld [vmem:[#allocation3 + $0x68] sm:$0xe]  ;;  %v2760_v7 = vld [vmem:[#allocation3 + $0x70] sm:$0xe] }
 0x258   :  { %v5479_v34 = vcombine.low %v2754_v21, %v7597_v0  ;;  %v7854_v25 = vor.u32 %v4226_v16, %v4222_v26  ;;  %v7856_v37 = vrot.slane %v4231_v42, 1  ;;  %v2761_v44 = vld [vmem:[#allocation3 + $0x78] sm:$0xe]  ;;  %v5482_v16 = vcombine.low %v2757_v41, %v7616_v63  ;;  %v2762_v26 = vld [vmem:[#allocation3 + $0x80] sm:$0xe] }
 0x259   :  { %2978 = vrot.lane.b32.xlu1 %v7743_v1, %s6324_s23  ;;  %v2755_v1 = vld [vmem:[#allocation3 + $0x38] sm:$0xe]  ;;  %v7863_v20 = vrot.slane %v4238_v50, 1  ;;  %v7870_v54 = vcombine.low %v7829_v49, %v7831_v13  ;;  %v5483_v42 = vcombine.low %v2758_v29, %v7619_v39  ;;  %v5484_v21 = vcombine.low %v2759_v61, %v7628_v30  ;;  %v4097_v50 = vld [vmem:[#allocation3 + $0x10] sm:$0xe] }
 0x25a   :  { %v5480_v31 = vcombine.low %v2755_v1, %v7614_v36  ;;  %v4098_v3 = vld [vmem:[#allocation3 + $0x18] sm:$0xe]  ;;  %v7877_v36 = vrot.slane %v5479_v34, 1  ;;  %v7881_v1 = vrot.slane %v5482_v16, 1  ;;  %v5486_v41 = vcombine.low %v2761_v44, %v7644_v58  ;;  %v4099_v27 = vld [vmem:[#allocation3 + $0x20] sm:$0xe] }
 0x25b   :  { %2980 = vrot.lane.b32.xlu0 %v7745_v53, %s6324_s23  ;;  %v5485_v53 = vcombine.low %v2760_v7, %v7635_v60  ;;  %v7884_v39 = vrot.slane %v5483_v42, 1  ;;  %v7886_v30 = vrot.slane %v5484_v21, 1  ;;  %v5487_v29 = vcombine.low %v2762_v26, %v7646_v56  ;;  %v4100_v61 = vld [vmem:[#allocation3 + $0x28] sm:$0xe]  ;;  %v4101_v44 = vld [vmem:[#allocation3 + $0x30] sm:$0xe] }
 0x25c   :  { %v7879_v63 = vrot.slane %v5480_v31, 1  ;;  %v7897_v58 = vrot.slane %v5486_v41, 1  ;;  %v4102_v31 = vld [vmem:[#allocation3 + $0x38] sm:$0xe]  ;;  %v5633_v16 = vcombine.low %v4097_v50, %v7681_v38  ;;  %v4103_v26 = vld [vmem:[#allocation3 + $0x40] sm:$0xe] }
 0x25d   :  { %2982 = vrot.lane.b32.xlu1 %v7758_v9, %s6324_s23  ;;  %v2763_v9 = vld [vmem:[#allocation3 + $0x88] sm:$0xe]  ;;  %v7888_v60 = vrot.slane %v5485_v53, 1  ;;  %v7902_v56 = vrot.slane %v5487_v29, 1  ;;  %v7907_v42 = vld [vmem:[#allocation3 + $0x78] sm:$0xf]  ;;  %v5635_v53 = vcombine.low %v4099_v27, %v7696_v62  ;;  %v5636_v29 = vcombine.low %v4100_v61, %v7704_v2 }
 0x25e   :  { %v5488_v7 = vcombine.low %v2763_v9, %v7650_v12  ;;  %v4092_v21 = vld [vmem:[#allocation3 + $0x7c] sm:$0x1]  ;;  %v4093_v41 = vld [vmem:[#allocation3 + $0x84] sm:$0x1]  ;;  %v4105_v34 = vld [vmem:[#allocation3 + $0x60] sm:$0xe]  ;;  %v5639_v61 = vcombine.low %v4103_v26, %v7751_v17 }
 0x25f   :  { %2984 = vrot.lane.b32.xlu0 %v7760_v24, %s6324_s23  ;;  %v7915_v38 = vld [vmem:[#allocation3 + $0x8c] sm:$0x1]  ;;  %v5638_v24 = vcombine.low %v4102_v31, %v7741_v19  ;;  %v4106_v0 = vld [vmem:[#allocation3 + $0x68] sm:$0xe]  ;;  %v4107_v14 = vld [vmem:[#allocation3 + $0x70] sm:$0xe] }
 0x260   :  { %v7911_v9 = vrot.slane %v5488_v7, 1  ;;  %v7925_v7 = vld [vmem:[#allocation3 + $0x9c] sm:$0x1]  ;;  %v7929_v2 = vrot.slane %v5635_v53, 1  ;;  %v7931_v27 = vrot.slane %v5636_v29, 1  ;;  %v7945_v17 = vrot.slane %v5639_v61, 1 }
 0x261   :  { %2986 = vrot.lane.b32.xlu1 %v7768_v4, %s6324_s23  ;;  %v5634_v4 = vcombine.low %v4098_v3, %v7685_v18  ;;  %v7917_v18 = vrot.slane %v5633_v16, 1  ;;  %v4108_v16 = vld [vmem:[#allocation3 + $0x78] sm:$0xe]  ;;  %v4110_v12 = vld [vmem:[#allocation3 + $0x88] sm:$0xe]  ;;  %v5642_v26 = vcombine.low %v4106_v0, %v7766_v33  ;;  %v5643_v29 = vcombine.low %v4107_v14, %v7831_v13 }
 0x262   :  { %v4111_v19 = vld [vmem:[#allocation3 + $0x90] sm:$0xe]  ;;  %v5646_v14 = vcombine.low %v4110_v12, %v7915_v38  ;;  %v7961_v13 = vld [vmem:[#allocation3 + $0x80] sm:$0xf]  ;;  %vm6326_vm0 = vmmov 0   ;;  %vm4937_vm2 = vcmask 1041408  }
 0x263   :  { %4305 = vrot.lane.b32.xlu0 %v4199_v8, %s6324_s23  ;;  %v7919_v3 = vrot.slane %v5634_v4, 1  ;;  %v8701_v8 = vld [vmem:[#allocation21_spill] sm:$0xff]  ;;  %v4095_v4 = vld [vmem:[#allocation3 + $0x94] sm:$0x1]  ;;  %v7958_v33 = vrot.slane %v5642_v26, 1  ;;  %8703 = vst [vmem:[#allocation35_spill] sm:$0xff] %v7961_v13 }
 0x264   :  { %v5637_v50 = vcombine.low %v4101_v44, %v8701_v8  ;;  %v4109_v44 = vld [vmem:[#allocation3 + $0x80] sm:$0xe]  ;;  %v5641_v8 = vcombine.low %v4105_v34, %v7755_v35  ;;  %v5644_v34 = vcombine.low %v4108_v16, %v4092_v21  ;;  %v7963_v0 = vrot.slane %v5643_v29, 1 }
 0x265   :  { %4307 = vrot.lane.b32.xlu1 %v7839_v51, %s6324_s23  ;;  %v7938_v51 = vrot.slane %v5638_v24, 1  ;;  %v5628_v24 = vcombine.low %v7907_v42, %v4092_v21  ;;  %v5645_v62 = vcombine.low %v4109_v44, %v4093_v41  ;;  %v5647_v21 = vcombine.low %v4111_v19, %v4095_v4  ;;  %v7981_v19 = vld [vmem:[#allocation3 + $0x88] sm:$0xf] }
 0x266   :  { %v7936_v31 = vrot.slane %v5637_v50, 1  ;;  %v4112_v50 = vld [vmem:[#allocation3 + $0x98] sm:$0xe]  ;;  %v7956_v53 = vrot.slane %v5641_v8, 1  ;;  %v7965_v46 = vrot.slane %v5644_v34, 1  ;;  %v7977_v8 = vrot.slane %v5646_v14, 1 }
 0x267   :  { %4309 = vrot.lane.b32.xlu0 %v7847_v6, %s6324_s23  ;;  %v8702_v6 = vld [vmem:[#allocation19_spill] sm:$0xff]  ;;  %v5648_v16 = vcombine.low %v4112_v50, %v7925_v7  ;;  %v7975_v12 = vrot.slane %v5645_v62, 1  ;;  %v8704_v26 = vshll.u32 %v7790_v32, 16  ;;  %8705 = vst [vmem:[#allocation29_spill] sm:$0xff] %v7981_v19  ;;  %v4266_v62 = vshll.u32 %v7870_v54, 16  ;;  %v8712_v50 = vld [vmem:[#allocation22_spill] sm:$0xff] }
 0x268   :  { %v5629_v34 = vcombine.low %v7961_v13, %v4093_v41  ;;  %v8007_v41 = vld [vmem:[#allocation3 + $0x98] sm:$0xf]  ;;  %v4257_v14 = vshrl.u32 %v7795_v22, 16 }
 0x269   :  { %4311 = vrot.lane.b32.xlu1 %v7849_v28, %s6324_s23  ;;  %v4234_v28 = vor.u32 %v7856_v37, %v4229_v59  ;;  %v4254_v29 = vrot.slane %v8704_v26, 1  ;;  %v7987_v15 = vrot.slane %v5648_v16, 1  ;;  %v8708_v59 = vshrl.u32 %v7786_v43, 16  ;;  %v7997_v26 = vld [vmem:[#allocation3 + $0x90] sm:$0xf]  ;;  %8711 = vst [vmem:[#allocation34_spill] sm:$0xff] %v8007_v41 }
 0x26a   :  { %8709 = vst [vmem:[#allocation33_spill] sm:$0xff] %v7997_v26  ;;  %v4250_v16 = vshrl.u32 %v7790_v32, 16  ;;  %v8710_v43 = vshll.u32 %v7795_v22, 16  ;;  %v4280_v61 = vshll.u32 %v5629_v34, 16  ;;  %v5632_v32 = vcombine.low %v8007_v41, %v7925_v7  ;;  %v6287_v41 = vld [vmem:[#allocation3 + $0x1c] sm:$0x1] }
 0x26b   :  { %4313 = vrot.lane.b32.xlu0 %v7854_v25, %s6324_s23  ;;  %v7985_v25 = vrot.slane %v5647_v21, 1  ;;  %8707 = vst [vmem:[#allocation37_spill] sm:$0xff] %v7987_v15  ;;  %v4241_v37 = vor.u32 %v7863_v20, %v8708_v59  ;;  %v4273_v20 = vshll.u32 %v5628_v24, 16  ;;  %v5630_v59 = vcombine.low %v7981_v19, %v7915_v38 }
 0x26c   :  { %v4255_v44 = vor.u32 %v4254_v29, %v4250_v16  ;;  %v4268_v21 = vrot.slane %v4266_v62, 1  ;;  %v4264_v38 = vshrl.u32 %v7870_v54, 16  ;;  %v4282_v29 = vrot.slane %v4280_v61, 1  ;;  %v3207_v16 = vld [vmem:[#allocation3 + $0x18] sm:$0xe] }
 0x26d   :  { %8706 = vst [vmem:[#allocation31_spill] sm:$0xff] %v7985_v25  ;;  %4315 = vrot.lane.b32.xlu1 %v4234_v28, %s6324_s23  ;;  %v4261_v28 = vrot.slane %v8710_v43, 1  ;;  %v4275_v35 = vrot.slane %v4273_v20, 1  ;;  %v4287_v15 = vshll.u32 %v5630_v59, 16  ;;  %v3208_v25 = vld [vmem:[#allocation3 + $0x20] sm:$0xe] }
 0x26e   :  { %v4269_v22 = vor.u32 %v4268_v21, %v4264_v38  ;;  %v4301_v13 = vshll.u32 %v5632_v32, 16  ;;  %v4278_v7 = vshrl.u32 %v5629_v34, 16  ;;  %v3210_v34 = vld [vmem:[#allocation3 + $0x30] sm:$0xe] }
 0x26f   :  { %4317 = vrot.lane.b32.xlu0 %v4241_v37, %s6324_s23  ;;  %v5631_v37 = vcombine.low %v7997_v26, %v4095_v4  ;;  %v4262_v43 = vor.u32 %v4261_v28, %v4257_v14  ;;  %v4289_v26 = vrot.slane %v4287_v15, 1  ;;  %v4285_v28 = vshrl.u32 %v5630_v59, 16  ;;  %v6288_v15 = vld [vmem:[#allocation3 + $0x8] sm:$0xf] }
 0x270   :  { %v4283_v54 = vor.u32 %v4282_v29, %v4278_v7  ;;  %v4303_v61 = vrot.slane %v4301_v13, 1  ;;  %v6188_v13 = vld [vmem:[%s8504_s2] sm:$0xff]   ;;  %v6291_v7 = vld [vmem:[#allocation3 + $0x2c] sm:$0x1] }
 0x271   :  { %4319 = vrot.lane.b32.xlu1 %v8712_v50, %s6324_s23  ;;  %v4271_v50 = vshrl.u32 %v5628_v24, 16  ;;  %v4294_v62 = vshll.u32 %v5631_v37, 16  ;;  %v4299_v24 = vshrl.u32 %v5632_v32, 16  ;;  %v4290_v38 = vor.u32 %v4289_v26, %v4285_v28 }
 0x272   :  { %v4292_v19 = vshrl.u32 %v5631_v37, 16  ;;  %v3209_v37 = vld [vmem:[#allocation3 + $0x28] sm:$0xe] }
 0x273   :  { %4321 = vrot.lane.b32.xlu0 %v4255_v44, %s6324_s23  ;;  %v4276_v4 = vor.u32 %v4275_v35, %v4271_v50  ;;  %v6286_v44 = vld [vmem:[#allocation3 + $0x24] sm:$0x1]  ;;  %v4296_v20 = vrot.slane %v4294_v62, 1  ;;  %v6289_v50 = vld [vmem:[#allocation3 + $0x10] sm:$0xf]  ;;  %v4304_v26 = vor.u32 %v4303_v61, %v4299_v24 }
 0x274   :  { %v5508_v14 = vcombine.low %v3208_v25, %v6286_v44  ;;  %v5509_v44 = vcombine.low %v3209_v37, %v6291_v7  ;;  %v6293_v24 = vld [vmem:[#allocation3 + $0x20] sm:$0xf]  ;;  %v8714_v37 = vcombine.low %v7797_v45, %v7799_v5  ;;  %v6196_v45 = vld [vmem:[%s8504_s2 + $0x30] sm:$0xff]  }
 0x275   :  { %4323 = vrot.lane.b32.xlu1 %v4262_v43, %s6324_s23  ;;  %v5507_v43 = vcombine.low %v3207_v16, %v6287_v41  ;;  %v4297_v59 = vor.u32 %v4296_v20, %v4292_v19  ;;  %v6290_v16 = vld [vmem:[#allocation3 + $0x34] sm:$0x1]  ;;  %v6190_v19 = vld [vmem:[%s8504_s2 + $0x8] sm:$0xff]  }
 0x277   :  { %4325 = vrot.lane.b32.xlu0 %v4269_v22, %s6324_s23  ;;  %v3496_v22 = vrot.slane %v5508_v14, 1  ;;  %v3495_v41 = vrot.slane %v5507_v43, 1  ;;  %v6292_v43 = vld [vmem:[#allocation3 + $0x18] sm:$0xf] }
 0x279   :  { %4327 = vrot.lane.b32.xlu1 %v4276_v4, %s6324_s23  ;;  %v3414_v21 = vpop.permute.xlu0 %3413  ;;  %v5548_v62 = vcombine.low %v3495_v41, %v3496_v22  ;;  %v5510_v4 = vcombine.low %v3210_v34, %v6290_v16  ;;  %v6191_v22 = vld [vmem:[%s8504_s2 + $0x10] sm:$0xff]  }
 0x27a   :  { %v3511_v25 = vsel %vm709_vm3, %v6288_v15, %v3414_v21  ;;  %v6192_v15 = vld [vmem:[%s8504_s2 + $0x18] sm:$0xff]  }
 0x27b   :  { %4329 = vrot.lane.b32.xlu0 %v4283_v54, %s6324_s23  ;;  %v3416_v35 = vpop.permute.xlu1 %3415  ;;  %v8713_v54 = vmov 0   ;;  %v3498_v28 = vrot.slane %v5510_v4, 1 }
 0x27c   :  { %v3514_v29 = vsel %vm709_vm3, %v6289_v50, %v3416_v35 }
 0x27d   :  { %4331 = vrot.lane.b32.xlu1 %v4290_v38, %s6324_s23  ;;  %v5545_v32 = vcombine.low %v3511_v25, %v3514_v29  ;;  %v3497_v38 = vrot.slane %v5509_v44, 1  ;;  %v6294_v29 = vld [vmem:[#allocation3 + $0x28] sm:$0xf]  ;;  %v6297_v44 = vld [vmem:[#allocation3 + $0x40] sm:$0xf] }
 0x27f   :  { %4333 = vrot.lane.b32.xlu0 %v4297_v59, %s6324_s23  ;;  %3783 = vmatmul.mubr.bf16.vlgmr.msra.gmra.mrb[0].mxu1 %v5545_v32  ;;  %v5550_v34 = vcombine.low %v3497_v38, %v3498_v28  ;;  %v6193_v32 = vld [vmem:[%s8504_s2 + $0x20] sm:$0xff]   ;;  %v8715_v28 = vcombine.low %v7808_v23, %v7810_v48 }
 0x280   :  { %3968 = vmatpush1.bf16.msra.mxu1 %v6188_v13  ;;  %5574 = vmatprep.mubr.msk.bf16.mxu1 %vm709_vm3, %v5548_v62  ;;  %v6295_v13 = vld [vmem:[#allocation3 + $0x30] sm:$0xf]  ;;  %v6195_v62 = vld [vmem:[%s8504_s2 + $0x28] sm:$0xff]   ;;  %v6299_v38 = vld [vmem:[#allocation3 + $0x60] sm:$0xf] }
 0x281   :  { %v3418_v14 = vpop.permute.xlu0 %3417  ;;  %4335 = vrot.lane.b32.xlu1 %v4304_v26, %s6324_s23  ;;  %3969 = vmatprep.subr.bf16.mxu1 %v8713_v54  ;;  %v6202_v23 = vld [vmem:[%s8504_s2 + $0x40] sm:$0xff]  }
 0x282   :  { %v3420_v20 = vpop.permute.xlu1 %3419  ;;  %v3517_v21 = vsel %vm709_vm3, %v6292_v43, %v3418_v14 }
 0x283   :  { %v3520_v61 = vsel %vm709_vm3, %v6293_v24, %v3420_v20  ;;  %v6199_v20 = vld [vmem:[%s8504_s2 + $0x38] sm:$0xff]  }
 0x284   :  { %3970 = vmatpush1.bf16.msra.mxu1 %v6190_v19  ;;  %v5547_v35 = vcombine.low %v3517_v21, %v3520_v61  ;;  %v6296_v19 = vld [vmem:[#allocation3 + $0x38] sm:$0xf] }
 0x285   :  { %3971 = vmatprep.subr.bf16.mxu1 %v8713_v54  ;;  %v6298_v24 = vld [vmem:[#allocation3 + $0x58] sm:$0xf] }
 0x287   :  { %3791 = vmatmul.mubr.bf16.gmra.mrb[4].mxu1 %v5547_v35  ;;  %v8716_v35 = vcombine.low %v7815_v10, %v7817_v52  ;;  %v6206_v10 = vld [vmem:[%s8504_s2 + $0x50] sm:$0xff]   ;;  %v8717_v52 = vcombine.low %v7835_v40, %v7837_v47  ;;  %v6302_v47 = vld [vmem:[#allocation3 + $0x4] sm:$0x1] }
 0x288   :  { %5575 = vmatprep.mubr.msk.bf16.mxu1 %vm709_vm3, %v5550_v34  ;;  %3972 = vmatpush1.bf16.msra.mxu1 %v6191_v22  ;;  %v6203_v34 = vld [vmem:[%s8504_s2 + $0x48] sm:$0xff]  }
 0x289   :  { %v3422_v25 = vpop.permute.xlu0 %3421  ;;  %3973 = vmatprep.subr.bf16.mxu1 %v8713_v54 }
 0x28a   :  { %v3523_v59 = vsel %vm709_vm3, %v6294_v29, %v3422_v25 }
 0x28b   :  { %v3424_v50 = vpop.permute.xlu1 %3423 }
 0x28c   :  { %v3526_v41 = vsel %vm709_vm3, %v6295_v13, %v3424_v50  ;;  %3974 = vmatpush1.bf16.msra.mxu1 %v6192_v15  ;;  %v6300_v50 = vld [vmem:[#allocation3 + $0x68] sm:$0xf] }
 0x28d   :  { %v5549_v26 = vcombine.low %v3523_v59, %v3526_v41  ;;  %3975 = vmatprep.subr.bf16.mxu1 %v8713_v54  ;;  %v6301_v59 = vld [vmem:[#allocation3 + $0x70] sm:$0xf] }
 0x28f   :  { %3799 = vmatmul.mubr.bf16.gmra.mrb[8].mxu1 %v5549_v26  ;;  %v6209_v26 = vld [vmem:[%s8504_s2 + $0x58] sm:$0xff]  }
 0x290   :  { %5576 = vmatprep.mubr.msk.bf16.mxu1 %vm709_vm3, %v8714_v37  ;;  %3976 = vmatpush1.bf16.msra.mxu1 %v6193_v32 }
 0x291   :  { %v3426_v16 = vpop.permute.xlu0 %3425  ;;  %3977 = vmatprep.subr.bf16.mxu1 %v8713_v54 }
 0x292   :  { %v3529_v7 = vsel %vm709_vm3, %v6296_v19, %v3426_v16 }
 0x293   :  { %v3428_v4 = vpop.permute.xlu1 %3427 }
 0x294   :  { %v3532_v14 = vsel %vm709_vm3, %v6297_v44, %v3428_v4  ;;  %3978 = vmatpush1.bf16.msra.mxu1 %v6195_v62  ;;  %v8718_v62 = vld [vmem:[#allocation12_spill] sm:$0xff]  ;;  %v8719_v4 = vld [vmem:[#allocation13_spill] sm:$0xff] }
 0x295   :  { %v5551_v5 = vcombine.low %v3529_v7, %v3532_v14  ;;  %3979 = vmatprep.subr.bf16.mxu1 %v8713_v54  ;;  %v2748_v7 = vld [vmem:[#allocation3] sm:$0xe]  ;;  %v2749_v44 = vld [vmem:[#allocation3 + $0x8] sm:$0xe] }
 0x296   :  { %v5473_v14 = vcombine.low %v2748_v7, %v6302_v47  ;;  %v8724_v7 = vld [vmem:[#allocation15_spill] sm:$0xff]  ;;  %v6213_v47 = vld [vmem:[%s8504_s2 + $0xc8] sm:$0xff]  }
 0x297   :  { %3807 = vmatmul.mubr.bf16.gmra.mrb[12].mxu1 %v5551_v5 }
 0x298   :  { %5577 = vmatprep.mubr.msk.bf16.mxu1 %vm709_vm3, %v8715_v28  ;;  %3980 = vmatpush1.bf16.msra.mxu1 %v6196_v45  ;;  %v6303_v45 = vld [vmem:[#allocation3 + $0xc] sm:$0x1]  ;;  %v8720_v28 = vcombine.low %v7841_v57, %v7843_v11  ;;  %v6304_v11 = vld [vmem:[#allocation3 + $0x14] sm:$0x1] }
 0x299   :  { %v3430_v43 = vpop.permute.xlu0 %3429  ;;  %3981 = vmatprep.subr.bf16.mxu1 %v8713_v54  ;;  %v5474_v5 = vcombine.low %v2749_v44, %v6303_v45 }
 0x29a   :  { %v3535_v61 = vsel %vm709_vm3, %v6298_v24, %v3430_v43 }
 0x29b   :  { %v3432_v21 = vpop.permute.xlu1 %3431  ;;  %v3037_v24 = vrot.slane %v5474_v5, 1 }
 0x29c   :  { %v3538_v22 = vsel %vm709_vm3, %v6299_v38, %v3432_v21  ;;  %3982 = vmatpush1.bf16.msra.mxu1 %v6199_v20  ;;  %v3036_v21 = vrot.slane %v5473_v14, 1  ;;  %v8725_v14 = vld [vmem:[#allocation20_spill] sm:$0xff] }
 0x29d   :  { %v5553_v48 = vcombine.low %v3535_v61, %v3538_v22  ;;  %3983 = vmatprep.subr.bf16.mxu1 %v8713_v54  ;;  %v8721_v61 = vld [vmem:[#allocation18_spill] sm:$0xff]  ;;  %v8722_v22 = vld [vmem:[#allocation16_spill] sm:$0xff] }
 0x29f   :  { %3815 = vmatmul.mubr.bf16.gmra.mrb[16].mxu1 %v5553_v48  ;;  %v2751_v48 = vld [vmem:[#allocation3 + $0x18] sm:$0xe] }
 0x2a0   :  { %5578 = vmatprep.mubr.msk.bf16.mxu1 %vm709_vm3, %v8716_v35  ;;  %3984 = vmatpush1.bf16.msra.mxu1 %v6202_v23 }
 0x2a1   :  { %v3434_v15 = vpop.permute.xlu0 %3433  ;;  %3985 = vmatprep.subr.bf16.mxu1 %v8713_v54 }
 0x2a2   :  { %v3541_v29 = vsel %vm709_vm3, %v6300_v50, %v3434_v15  ;;  %v5582_v15 = vcombine.low %v3036_v21, %v3037_v24  ;;  %v6308_v21 = vld [vmem:[#allocation3 + $0x10] sm:$0xf] }
 0x2a3   :  { %v3436_v25 = vpop.permute.xlu1 %3435 }
 0x2a4   :  { %v3544_v13 = vsel %vm709_vm3, %v6301_v59, %v3436_v25  ;;  %3986 = vmatpush1.bf16.msra.mxu1 %v6203_v34  ;;  %v2750_v34 = vld [vmem:[#allocation3 + $0x10] sm:$0xe] }
 0x2a5   :  { %v5555_v41 = vcombine.low %v3541_v29, %v3544_v13  ;;  %3987 = vmatprep.subr.bf16.mxu1 %v8713_v54  ;;  %v8723_v25 = vld [vmem:[#allocation14_spill] sm:$0xff]  ;;  %v5475_v29 = vcombine.low %v2750_v34, %v6304_v11  ;;  %v6305_v13 = vld [vmem:[#allocation3] sm:$0xf] }
 0x2a6   :  { %v5476_v50 = vcombine.low %v2751_v48, %v8723_v25  ;;  %v6220_v11 = vld [vmem:[%s8504_s2 + $0xe0] sm:$0xff]  }
 0x2a7   :  { %3823 = vmatmul.mubr.bf16.gmra.mrb[20].mxu1 %v5555_v41 }
 0x2a8   :  { %5579 = vmatprep.mubr.msk.bf16.mxu1 %vm709_vm3, %v8717_v52  ;;  %3988 = vmatpush1.bf16.msra.mxu1 %v6206_v10  ;;  %v6306_v10 = vld [vmem:[#allocation3 + $0x8] sm:$0xf] }
 0x2a9   :  { %v3438_v32 = vpop.permute.xlu0 %3437  ;;  %3989 = vmatprep.subr.bf16.mxu1 %v8713_v54 }
 0x2aa   :  { %v3547_v16 = vsel %vm709_vm3, %v8718_v62, %v3438_v32  ;;  %v3039_v32 = vrot.slane %v5476_v50, 1  ;;  %v3038_v62 = vrot.slane %v5475_v29, 1  ;;  %v6310_v50 = vld [vmem:[#allocation3 + $0x20] sm:$0xf] }
 0x2ab   :  { %v3440_v37 = vpop.permute.xlu1 %3439 }
 0x2ac   :  { %v3550_v19 = vsel %vm709_vm3, %v8719_v4, %v3440_v37  ;;  %3990 = vmatpush1.bf16.msra.mxu1 %v6209_v26  ;;  %v2753_v26 = vld [vmem:[#allocation3 + $0x28] sm:$0xe]  ;;  %v6210_v37 = vld [vmem:[%s8504_s2 + $0xc0] sm:$0xff]  }
 0x2ad   :  { %v5557_v40 = vcombine.low %v3547_v16, %v3550_v19  ;;  %4642 = vmatprep.subr.bf16.mxu1 %v8713_v54  ;;  %v2752_v4 = vld [vmem:[#allocation3 + $0x20] sm:$0xe]  ;;  %v5584_v19 = vcombine.low %v3038_v62, %v3039_v32  ;;  %v5478_v44 = vcombine.low %v2753_v26, %v8724_v7  ;;  %v6311_v26 = vld [vmem:[#allocation3 + $0x30] sm:$0xf] }
 0x2ae   :  { %v5477_v45 = vcombine.low %v2752_v4, %v8725_v14  ;;  %v6227_v4 = vld [vmem:[%s8504_s2 + $0xf8] sm:$0xff]   ;;  %v6312_v7 = vld [vmem:[#allocation3 + $0x50] sm:$0xf] }
 0x2af   :  { %3831 = vmatmul.mubr.bf16.gmra.mrb[24].mxu1 %v5557_v40 }
 0x2b0   :  { %5580 = vmatprep.mubr.msk.bf16.mxu1 %vm709_vm3, %v8720_v28  ;;  %v6307_v28 = vld [vmem:[#allocation3 + $0x18] sm:$0xf] }
 0x2b1   :  { %v3442_v20 = vpop.permute.xlu0 %3441 }
 0x2b2   :  { %v3553_v38 = vsel %vm709_vm3, %v8721_v61, %v3442_v20  ;;  %v3040_v61 = vrot.slane %v5477_v45, 1  ;;  %v8729_v45 = vcombine.low %v7884_v39, %v7886_v30  ;;  %v6234_v39 = vld [vmem:[%s8504_s2 + $0x110] sm:$0xff]  }
 0x2b3   :  { %v3444_v43 = vpop.permute.xlu1 %3443 }
 0x2b4   :  { %v3556_v23 = vsel %vm709_vm3, %v8722_v22, %v3444_v43  ;;  %v3041_v43 = vrot.slane %v5478_v44, 1 }
 0x2b5   :  { %v5559_v35 = vcombine.low %v3553_v38, %v3556_v23  ;;  %v2957_v59 = vpop.permute.xlu0 %2956  ;;  %v6216_v38 = vld [vmem:[%s8504_s2 + $0xd0] sm:$0xff]  }
 0x2b6   :  { %v3054_v41 = vsel %vm709_vm3, %v6305_v13, %v2957_v59  ;;  %v5586_v23 = vcombine.low %v3040_v61, %v3041_v43  ;;  %v8726_v13 = vcombine.low %v7877_v36, %v7879_v63  ;;  %v6224_v36 = vld [vmem:[%s8504_s2 + $0xf0] sm:$0xff]  }
 0x2b7   :  { %3839 = vmatmul.mubr.bf16.gmra.mrb[28].mxu1 %v5559_v35  ;;  %v2959_v57 = vpop.permute.xlu1 %2958  ;;  %v6217_v35 = vld [vmem:[%s8504_s2 + $0xd8] sm:$0xff]  }
 0x2b8   :  { %5609 = vmatprep.mubr.msk.bf16.mxu1 %vm709_vm3, %v5582_v15  ;;  %v3057_v52 = vsel %vm709_vm3, %v6306_v10, %v2959_v57  ;;  %v6309_v15 = vld [vmem:[#allocation3 + $0x28] sm:$0xf] }
 0x2b9   :  { %v5581_v16 = vcombine.low %v3054_v41, %v3057_v52  ;;  %v2961_v5 = vpop.permute.xlu0 %2960  ;;  %v6223_v41 = vld [vmem:[%s8504_s2 + $0xe8] sm:$0xff]   ;;  %v8727_v52 = vld [vmem:[#allocation24_spill] sm:$0xff] }
 0x2ba   :  { %v3060_v24 = vsel %vm709_vm3, %v6308_v21, %v2961_v5  ;;  %v6231_v5 = vld [vmem:[%s8504_s2 + $0x108] sm:$0xff]   ;;  %v6315_v21 = vld [vmem:[#allocation3 + $0x60] sm:$0xf] }
 0x2bb   :  { %v2963_v40 = vpop.permute.xlu1 %2962 }
 0x2bc   :  { %v3063_v20 = vsel %vm709_vm3, %v6307_v28, %v2963_v40  ;;  %v6313_v40 = vld [vmem:[#allocation3 + $0x58] sm:$0xf] }
 0x2bd   :  { %v5583_v22 = vcombine.low %v3060_v24, %v3063_v20  ;;  %v2965_v34 = vpop.permute.xlu0 %2964  ;;  %v6314_v20 = vld [vmem:[#allocation3 + $0x68] sm:$0xf] }
 0x2be   :  { %v3066_v57 = vsel %vm709_vm3, %v6310_v50, %v2965_v34  ;;  %v6317_v34 = vld [vmem:[#allocation3 + $0x70] sm:$0xf] }
 0x2bf   :  { %4000 = vmatmul.mubr.bf16.vlgmr.msra.gmra.mrb[0].mxu1 %v5581_v16  ;;  %v2967_v48 = vpop.permute.xlu1 %2966  ;;  %v8728_v16 = vcombine.low %v7574_v55, %v7881_v1  ;;  %v6230_v55 = vld [vmem:[%s8504_s2 + $0x100] sm:$0xff]  }
 0x2c0   :  { %4643 = vmatpush1.bf16.msra.mxu1 %v6210_v37  ;;  %5610 = vmatprep.mubr.msk.bf16.mxu1 %vm709_vm3, %v5584_v19  ;;  %v3069_v25 = vsel %vm709_vm3, %v6309_v15, %v2967_v48  ;;  %v6316_v48 = vld [vmem:[#allocation3 + $0x78] sm:$0xf] }
 0x2c1   :  { %4644 = vmatprep.subr.bf16.mxu1 %v8713_v54  ;;  %v5585_v29 = vcombine.low %v3066_v57, %v3069_v25  ;;  %v2969_v10 = vpop.permute.xlu0 %2968  ;;  %v6318_v57 = vld [vmem:[#allocation3 + $0x88] sm:$0xf] }
 0x2c2   :  { %v3072_v37 = vsel %vm709_vm3, %v6311_v26, %v2969_v10 }
 0x2c3   :  { %v2971_v59 = vpop.permute.xlu1 %2970 }
 0x2c4   :  { %4645 = vmatpush1.bf16.msra.mxu1 %v6213_v47  ;;  %v3075_v32 = vsel %vm709_vm3, %v8727_v52, %v2971_v59  ;;  %v8733_v52 = vld [vmem:[#allocation17_spill] sm:$0xff] }
 0x2c5   :  { %4646 = vmatprep.subr.bf16.mxu1 %v8713_v54  ;;  %v5587_v63 = vcombine.low %v3072_v37, %v3075_v32  ;;  %v2973_v19 = vpop.permute.xlu0 %2972 }
 0x2c6   :  { %v3078_v44 = vsel %vm709_vm3, %v6312_v7, %v2973_v19  ;;  %v8737_v7 = vcombine.low %v7936_v31, %v7938_v51  ;;  %v8741_v51 = vld [vmem:[#allocation32_spill] sm:$0xff] }
 0x2c7   :  { %4008 = vmatmul.mubr.bf16.gmra.mrb[4].mxu1 %v5583_v22  ;;  %v2975_v62 = vpop.permute.xlu1 %2974  ;;  %v6237_v22 = vld [vmem:[%s8504_s2 + $0x118] sm:$0xff]  }
 0x2c8   :  { %5611 = vmatprep.mubr.msk.bf16.mxu1 %vm709_vm3, %v5586_v23  ;;  %4647 = vmatpush1.bf16.msra.mxu1 %v6216_v38  ;;  %v3081_v47 = vsel %vm709_vm3, %v6313_v40, %v2975_v62  ;;  %v8730_v38 = vcombine.low %v7888_v60, %v7897_v58  ;;  %v8731_v60 = vcombine.low %v7902_v56, %v7911_v9  ;;  %v6320_v9 = vld [vmem:[#allocation3 + $0x10] sm:$0xf]  ;;  %v8735_v62 = vld [vmem:[#allocation28_spill] sm:$0xff] }
 0x2c9   :  { %4648 = vmatprep.subr.bf16.mxu1 %v8713_v54  ;;  %v5589_v1 = vcombine.low %v3078_v44, %v3081_v47  ;;  %v2977_v28 = vpop.permute.xlu0 %2976  ;;  %v8738_v40 = vld [vmem:[#allocation30_spill] sm:$0xff] }
 0x2ca   :  { %v3084_v24 = vsel %vm709_vm3, %v6315_v21, %v2977_v28  ;;  %v8742_v21 = vcombine.low %v7956_v53, %v7958_v33 }
 0x2cb   :  { %v2979_v14 = vpop.permute.xlu1 %2978 }
 0x2cc   :  { %4649 = vmatpush1.bf16.msra.mxu1 %v6217_v35  ;;  %v3087_v43 = vsel %vm709_vm3, %v6314_v20, %v2979_v14  ;;  %v8740_v14 = vcombine.low %v7945_v17, %v8702_v6  ;;  %v8744_v6 = vld [vmem:[#allocation25_spill] sm:$0xff] }
 0x2cd   :  { %4650 = vmatprep.subr.bf16.mxu1 %v8713_v54  ;;  %v5591_v30 = vcombine.low %v3084_v24, %v3087_v43  ;;  %v2981_v23 = vpop.permute.xlu0 %2980 }
 0x2ce   :  { %v3090_v15 = vsel %vm709_vm3, %v6317_v34, %v2981_v23  ;;  %v8746_v34 = vcombine.low %v7975_v12, %v7977_v8  ;;  %v8753_v8 = vld [vmem:[#allocation33_spill] sm:$0xff] }
 0x2cf   :  { %4016 = vmatmul.mubr.bf16.gmra.mrb[8].mxu1 %v5585_v29  ;;  %v2983_v61 = vpop.permute.xlu1 %2982 }
 0x2d0   :  { %5612 = vmatprep.mubr.msk.bf16.mxu1 %vm709_vm3, %v8726_v13  ;;  %4651 = vmatpush1.bf16.msra.mxu1 %v6220_v11  ;;  %v3093_v35 = vsel %vm709_vm3, %v6316_v48, %v2983_v61 }
 0x2d1   :  { %4652 = vmatprep.subr.bf16.mxu1 %v8713_v54  ;;  %v5593_v25 = vcombine.low %v3090_v15, %v3093_v35  ;;  %v2985_v58 = vpop.permute.xlu0 %2984 }
 0x2d3   :  { %v2987_v50 = vpop.permute.xlu1 %2986 }
 0x2d4   :  { %4653 = vmatpush1.bf16.msra.mxu1 %v6223_v41  ;;  %v3099_v11 = vsel %vm709_vm3, %v6318_v57, %v2987_v50  ;;  %v8732_v41 = vcombine.low %v7917_v18, %v7919_v3  ;;  %v8736_v3 = vld [vmem:[#allocation26_spill] sm:$0xff] }
 0x2d5   :  { %4654 = vmatprep.subr.bf16.mxu1 %v8713_v54  ;;  %v4306_v10 = vpop.permute.xlu0 %4305 }
 0x2d6   :  { %v4403_v32 = vsel %vm709_vm3, %v6320_v9, %v4306_v10  ;;  %v6253_v10 = vld [vmem:[%s8506_s8 + $0x8] sm:$0xff]   ;;  %v4932_v9 = vld [vmem:[%s8507_s9] sm:$0x3] }
 0x2d7   :  { %4024 = vmatmul.mubr.bf16.gmra.mrb[12].mxu1 %v5587_v63  ;;  %v4308_v13 = vpop.permute.xlu1 %4307 }
 0x2d8   :  { %5613 = vmatprep.mubr.msk.bf16.mxu1 %vm709_vm3, %v8728_v16  ;;  %4655 = vmatpush1.bf16.msra.mxu1 %v6224_v36  ;;  %v4406_v56 = vsel %vm709_vm3, %v8733_v52, %v4308_v13  ;;  %v8734_v36 = vcombine.low %v7929_v2, %v7931_v27  ;;  %v8739_v27 = vld [vmem:[#allocation23_spill] sm:$0xff]  ;;  %v6325_v13 = vmov 0.0   ;;  %v6254_v52 = vld [vmem:[%s8506_s8 + $0x10] sm:$0xff]  }
 0x2d9   :  { %4656 = vmatprep.subr.bf16.mxu1 %v8713_v54  ;;  %v5673_v26 = vcombine.low %v4403_v32, %v4406_v56  ;;  %v4310_v63 = vpop.permute.xlu0 %4309  ;;  %5859 = vmatprep.subr.bf16.mxu0 %v6325_v13  ;;  %v6255_v56 = vld [vmem:[%s8506_s8 + $0x18] sm:$0xff]   ;;  %v4939_v32 = vsel %vm4937_vm2, %v4932_v9, 0 }
 0x2da   :  { %v4409_v16 = vsel %vm709_vm3, %v8736_v3, %v4310_v63  ;;  %5867 = vmatprep.mubr.msk.bf16.mxu0 %vm6326_vm0, %v6325_v13 }
 0x2db   :  { %v4312_v37 = vpop.permute.xlu1 %4311 }
 0x2dc   :  { %4657 = vmatpush1.bf16.msra.mxu1 %v6227_v4  ;;  %v4412_v18 = vsel %vm709_vm3, %v8735_v62, %v4312_v37 }
 0x2dd   :  { %4658 = vmatprep.subr.bf16.mxu1 %v8713_v54  ;;  %v5675_v4 = vcombine.low %v4409_v16, %v4412_v18  ;;  %v4314_v44 = vpop.permute.xlu0 %4313 }
 0x2de   :  { %v4415_v47 = vsel %vm709_vm3, %v8739_v27, %v4314_v44 }
 0x2df   :  { %4032 = vmatmul.mubr.bf16.gmra.mrb[16].mxu1 %v5589_v1  ;;  %v4316_v19 = vpop.permute.xlu1 %4315 }
 0x2e0   :  { %5614 = vmatprep.mubr.msk.bf16.mxu1 %vm709_vm3, %v8729_v45  ;;  %4659 = vmatpush1.bf16.msra.mxu1 %v6230_v55  ;;  %v4418_v2 = vsel %vm709_vm3, %v8738_v40, %v4316_v19 }
 0x2e1   :  { %4660 = vmatprep.subr.bf16.mxu1 %v8713_v54  ;;  %v5677_v55 = vcombine.low %v4415_v47, %v4418_v2  ;;  %v4318_v45 = vpop.permute.xlu0 %4317 }
 0x2e2   :  { %v4421_v28 = vsel %vm709_vm3, %v8741_v51, %v4318_v45 }
 0x2e3   :  { %v4320_v1 = vpop.permute.xlu1 %4319 }
 0x2e4   :  { %4661 = vmatpush1.bf16.msra.mxu1 %v6231_v5  ;;  %v6321_v5 = vld [vmem:[#allocation3 + $0x48] sm:$0xf] }
 0x2e5   :  { %4662 = vmatprep.subr.bf16.mxu1 %v8713_v54  ;;  %v4424_v31 = vsel %vm709_vm3, %v6321_v5, %v4320_v1  ;;  %v4322_v24 = vpop.permute.xlu0 %4321 }
 0x2e6   :  { %v5679_v20 = vcombine.low %v4421_v28, %v4424_v31 }
 0x2e7   :  { %4040 = vmatmul.mubr.bf16.gmra.mrb[20].mxu1 %v5591_v30  ;;  %v4324_v43 = vpop.permute.xlu1 %4323  ;;  %v4427_v30 = vsel %vm709_vm3, %v8744_v6, %v4322_v24 }
 0x2e8   :  { %5615 = vmatprep.mubr.msk.bf16.mxu1 %vm709_vm3, %v8730_v38  ;;  %4663 = vmatpush1.bf16.msra.mxu1 %v6234_v39  ;;  %v8743_v39 = vld [vmem:[#allocation27_spill] sm:$0xff] }
 0x2e9   :  { %4664 = vmatprep.subr.bf16.mxu1 %v8713_v54  ;;  %v6319_v54 = vld [vmem:[#allocation3 + $0x80] sm:$0xf]  ;;  %v4430_v17 = vsel %vm709_vm3, %v8743_v39, %v4324_v43  ;;  %v4326_v23 = vpop.permute.xlu0 %4325 }
 0x2ea   :  { %v3096_v29 = vsel %vm709_vm3, %v6319_v54, %v2985_v58  ;;  %v5681_v61 = vcombine.low %v4427_v30, %v4430_v17  ;;  %v4433_v33 = vsel %vm709_vm3, %v7829_v49, %v4326_v23  ;;  %v8749_v58 = vld [vmem:[#allocation31_spill] sm:$0xff]  ;;  %v8750_v49 = vld [vmem:[#allocation37_spill] sm:$0xff]  ;;  %v8752_v54 = vld [vmem:[#allocation34_spill] sm:$0xff] }
 0x2eb   :  { %v5595_v59 = vcombine.low %v3096_v29, %v3099_v11  ;;  %v4328_v38 = vpop.permute.xlu1 %4327  ;;  %v8751_v57 = vcombine.low %v8749_v58, %v8750_v49 }
 0x2ec   :  { %4665 = vmatpush1.bf16.msra.mxu1 %v6237_v22  ;;  %v8745_v22 = vcombine.low %v7963_v0, %v7965_v46  ;;  %v4436_v53 = vsel %vm709_vm3, %v7907_v42, %v4328_v38  ;;  %v8748_v0 = vld [vmem:[#allocation35_spill] sm:$0xff] }
 0x2ed   :  { %v5683_v48 = vcombine.low %v4433_v33, %v4436_v53  ;;  %v4330_v15 = vpop.permute.xlu0 %4329  ;;  %5871 = vmatprep.subr.bf16.mxu1 %v6325_v13 }
 0x2ee   :  { %v4439_v50 = vsel %vm709_vm3, %v8748_v0, %v4330_v15 }
 0x2ef   :  { %4048 = vmatmul.mubr.bf16.gmra.mrb[24].mxu1 %v5593_v25  ;;  %v4332_v35 = vpop.permute.xlu1 %4331  ;;  %v8747_v25 = vld [vmem:[#allocation29_spill] sm:$0xff] }
 0x2f0   :  { %5616 = vmatprep.mubr.msk.bf16.mxu1 %vm709_vm3, %v8731_v60  ;;  %v4442_v46 = vsel %vm709_vm3, %v8747_v25, %v4332_v35 }
 0x2f1   :  { %v5685_v60 = vcombine.low %v4439_v50, %v4442_v46  ;;  %v4334_v11 = vpop.permute.xlu0 %4333 }
 0x2f2   :  { %v4445_v29 = vsel %vm709_vm3, %v8753_v8, %v4334_v11 }
 0x2f3   :  { %v4336_v42 = vpop.permute.xlu1 %4335 }
 0x2f4   :  { %v4448_v12 = vsel %vm709_vm3, %v8752_v54, %v4336_v42 }
 0x2f7   :  { %4056 = vmatmul.mubr.bf16.gmra.mrb[28].mxu1 %v5595_v59  ;;  %v5687_v59 = vcombine.low %v4445_v29, %v4448_v12 }
 0x2f8   :  { %5701 = vmatprep.mubr.msk.bf16.mxu1 %vm709_vm3, %v8732_v41  ;;  %v6252_v41 = vld [vmem:[%s8506_s8] sm:$0xff]  }
 0x2f9   :  { %5860 = vmatpush3.bf16.msra.mxu0 %v6252_v41 }
 0x2fa   :  { %5861 = vmatprep.subr.bf16.mxu0 %v6325_v13 }
 0x2fd   :  { %5862 = vmatpush3.bf16.msra.mxu0 %v6253_v10 }
 0x2fe   :  { %5863 = vmatprep.subr.bf16.mxu0 %v6325_v13 }
 0x2ff   :  { %4675 = vmatmul.mubr.bf16.vlgmr.msra.gmra.mrb[0].mxu1 %v5673_v26 }
 0x300   :  { %5702 = vmatprep.mubr.msk.bf16.mxu1 %vm709_vm3, %v8734_v36  ;;  %5872 = vmatpush3.bf16.msra.mxu1 %v4939_v32 }
 0x301   :  { %5864 = vmatpush3.bf16.msra.mxu0 %v6254_v52 }
 0x302   :  { %5865 = vmatprep.subr.bf16.mxu0 %v6325_v13 }
 0x305   :  { %5866 = vmatpush3.bf16.msra.mxu0 %v6255_v56 }
 0x307   :  { %4683 = vmatmul.mubr.bf16.gmra.mrb[4].mxu1 %v5675_v4  ;;  %v8284_v4 = vld [vmem:[%s8508_s6] ss:$0 sm:$0xff] }
 0x308   :  { %5703 = vmatprep.mubr.msk.bf16.mxu1 %vm709_vm3, %v8737_v7 }
 0x30f   :  { %4691 = vmatmul.mubr.bf16.gmra.mrb[8].mxu1 %v5677_v55  ;;  %v8292_v55 = vld [vmem:[%s8509_s7] ss:$0 sm:$0xff] }
 0x310   :  { %5704 = vmatprep.mubr.msk.bf16.mxu1 %vm709_vm3, %v8740_v14 }
 0x317   :  { %4699 = vmatmul.mubr.bf16.gmra.mrb[12].mxu1 %v5679_v20 }
 0x318   :  { %5705 = vmatprep.mubr.msk.bf16.mxu1 %vm709_vm3, %v8742_v21 }
 0x31f   :  { %4707 = vmatmul.mubr.bf16.gmra.mrb[16].mxu1 %v5681_v61 }
 0x320   :  { %5706 = vmatprep.mubr.msk.bf16.mxu1 %vm709_vm3, %v8745_v22 }
 0x327   :  { %4715 = vmatmul.mubr.bf16.gmra.mrb[20].mxu1 %v5683_v48 }
 0x328   :  { %5707 = vmatprep.mubr.msk.bf16.mxu1 %vm709_vm3, %v8746_v34 }
 0x32f   :  { %4723 = vmatmul.mubr.bf16.gmra.mrb[24].mxu1 %v5685_v60 }
 0x330   :  { %5708 = vmatprep.mubr.msk.bf16.mxu1 %vm709_vm3, %v8751_v57 }
 0x337   :  { %4731 = vmatmul.mubr.bf16.gmra.mrb[28].mxu1 %v5687_v59 }
 0x338   :  { %5873 = vmatprep.mubr.msk.bf16.mxu1 %vm6326_vm0, %v6325_v13 }
 0x3d2   :  { %v4676_v26 = vpop.f32.mrb[0].mxu1 }
 0x3d3   :  { %v4678_v37 = vpop.f32.mrb[1].mxu1  ;;  %v4762_v2 = vmul.f32 %v8284_v4, %v4676_v26 }
 0x3d4   :  { %v4679_v36 = vpop.f32.mrb[2].mxu1 }
 0x3d5   :  { %v4681_v63 = vpop.f32.mrb[3].mxu1  ;;  %v4763_v7 = vmul.f32 %v8284_v4, %v4679_v36  ;;  %v8298_v14 = vadd.f32 %v8292_v55, %v4762_v2 }
 0x3d7   :  { %v8295_v1 = vadd.f32 %v8292_v55, %v4763_v7  ;;  %v4801_v21 = vsel %vm709_vm3, %v8298_v14, 0.0 }
 0x3d9   :  { %v4802_v51 = vsel %vm709_vm3, %v8295_v1, 0.0 }
 0x3da   :  { %v4684_v62 = vpop.f32.mrb[4].mxu1  ;;  %v4803_v6 = vadd.f32 %v4802_v51, %v4801_v21 }
 0x3db   :  { %v4686_v18 = vpop.f32.mrb[5].mxu1  ;;  %v4764_v27 = vmul.f32 %v8284_v4, %v4684_v62 }
 0x3dc   :  { %v4687_v3 = vpop.f32.mrb[6].mxu1 }
 0x3dd   :  { %v4689_v16 = vpop.f32.mrb[7].mxu1  ;;  %v8301_v45 = vadd.f32 %v8292_v55, %v4764_v27  ;;  %v4765_v5 = vmul.f32 %v8284_v4, %v4687_v3 }
 0x3df   :  { %v4804_v24 = vsel %vm709_vm3, %v8301_v45, 0.0  ;;  %v8312_v39 = vadd.f32 %v8292_v55, %v4765_v5 }
 0x3e0   :  { %v4805_v38 = vadd.f32 %v4804_v24, %v4803_v6 }
 0x3e1   :  { %v4806_v22 = vsel %vm709_vm3, %v8312_v39, 0.0 }
 0x3e2   :  { %v4692_v19 = vpop.f32.mrb[8].mxu1  ;;  %v4807_v34 = vadd.f32 %v4806_v22, %v4805_v38 }
 0x3e3   :  { %v4694_v44 = vpop.f32.mrb[9].mxu1  ;;  %v4766_v28 = vmul.f32 %v8284_v4, %v4692_v19 }
 0x3e4   :  { %v4695_v40 = vpop.f32.mrb[10].mxu1 }
 0x3e5   :  { %v4697_v47 = vpop.f32.mrb[11].mxu1  ;;  %v8315_v30 = vadd.f32 %v8292_v55, %v4766_v28  ;;  %v4767_v61 = vmul.f32 %v8284_v4, %v4695_v40 }
 0x3e7   :  { %v4808_v33 = vsel %vm709_vm3, %v8315_v30, 0.0  ;;  %v8324_v48 = vadd.f32 %v8292_v55, %v4767_v61 }
 0x3e8   :  { %v4809_v50 = vadd.f32 %v4808_v33, %v4807_v34 }
 0x3e9   :  { %v4810_v60 = vsel %vm709_vm3, %v8324_v48, 0.0 }
 0x3ea   :  { %v4700_v31 = vpop.f32.mrb[12].mxu1  ;;  %v4811_v11 = vadd.f32 %v4810_v60, %v4809_v50 }
 0x3eb   :  { %v4702_v20 = vpop.f32.mrb[13].mxu1  ;;  %v4768_v23 = vmul.f32 %v8284_v4, %v4700_v31 }
 0x3ec   :  { %v4703_v43 = vpop.f32.mrb[14].mxu1 }
 0x3ed   :  { %v4705_v17 = vpop.f32.mrb[15].mxu1  ;;  %v8327_v25 = vadd.f32 %v8292_v55, %v4768_v23  ;;  %v4769_v46 = vmul.f32 %v8284_v4, %v4703_v43 }
 0x3ef   :  { %v4812_v58 = vsel %vm709_vm3, %v8327_v25, 0.0  ;;  %v8336_v49 = vadd.f32 %v8292_v55, %v4769_v46 }
 0x3f0   :  { %v4813_v59 = vadd.f32 %v4812_v58, %v4811_v11 }
 0x3f1   :  { %v4814_v41 = vsel %vm709_vm3, %v8336_v49, 0.0 }
 0x3f2   :  { %v4708_v53 = vpop.f32.mrb[16].mxu1  ;;  %v4815_v26 = vadd.f32 %v4814_v41, %v4813_v59 }
 0x3f3   :  { %v4710_v35 = vpop.f32.mrb[17].mxu1  ;;  %v4770_v57 = vmul.f32 %v8284_v4, %v4708_v53 }
 0x3f4   :  { %v4711_v15 = vpop.f32.mrb[18].mxu1  ;;  %v4816_v19 = vrot.slane %v4815_v26, 4 }
 0x3f5   :  { %v4713_v0 = vpop.f32.mrb[19].mxu1  ;;  %v4771_v42 = vmul.f32 %v8284_v4, %v4711_v15  ;;  %v8346_v10 = vadd.f32 %v8292_v55, %v4770_v57 }
 0x3f6   :  { %v4817_v51 = vadd.f32 %v4816_v19, %v4815_v26 }
 0x3f7   :  { %v8340_v12 = vadd.f32 %v8292_v55, %v4771_v42  ;;  %v4822_v37 = vsel %vm709_vm3, %v8346_v10, 0.0 }
 0x3f8   :  { %v4818_v6 = vrot.slane %v4817_v51, 2 }
 0x3f9   :  { %v4823_v32 = vsel %vm709_vm3, %v8340_v12, 0.0 }
 0x3fa   :  { %v4716_v54 = vpop.f32.mrb[20].mxu1  ;;  %v4824_v62 = vadd.f32 %v4823_v32, %v4822_v37  ;;  %v4819_v34 = vadd.f32 %v4818_v6, %v4817_v51 }
 0x3fb   :  { %v4772_v8 = vmul.f32 %v8284_v4, %v4716_v54  ;;  %v4718_v29 = vpop.f32.mrb[21].mxu1 }
 0x3fc   :  { %v4719_v13 = vpop.f32.mrb[22].mxu1  ;;  %v4820_v50 = vrot.slane %v4819_v34, 1 }
 0x3fd   :  { %v8349_v52 = vadd.f32 %v8292_v55, %v4772_v8  ;;  %v4773_v56 = vmul.f32 %v8284_v4, %v4719_v13  ;;  %v4721_v9 = vpop.f32.mrb[23].mxu1 }
 0x3fe   :  { %v4821_v58 = vadd.f32 %v4820_v50, %v4819_v34 }
 0x3ff   :  { %v4825_v36 = vsel %vm709_vm3, %v8349_v52, 0.0  ;;  %v8359_v63 = vadd.f32 %v8292_v55, %v4773_v56 }
 0x400   :  { %v4826_v7 = vadd.f32 %v4825_v36, %v4824_v62  ;;  %v4844_v11 = vmul.f32 0.015625, %v4821_v58 }
 0x401   :  { %v4827_v40 = vsel %vm709_vm3, %v8359_v63, 0.0 }
 0x402   :  { %v4724_v18 = vpop.f32.mrb[24].mxu1  ;;  %v4828_v28 = vadd.f32 %v4827_v40, %v4826_v7  ;;  %v4846_v29 = vpack.c.bf16 %v4844_v11, %v4844_v11  ;;  %v8754_v11 = vld [vmem:[#allocation4_spill] sm:$0xff] }
 0x403   :  { %v4774_v3 = vmul.f32 %v8284_v4, %v4724_v18  ;;  %v4726_v16 = vpop.f32.mrb[25].mxu1 }
 0x404   :  { %v4727_v44 = vpop.f32.mrb[26].mxu1 }
 0x405   :  { %v8365_v2 = vadd.f32 %v8292_v55, %v4774_v3  ;;  %v4775_v27 = vmul.f32 %v8284_v4, %v4727_v44  ;;  %v4729_v47 = vpop.f32.mrb[27].mxu1 }
 0x407   :  { %v4829_v5 = vsel %vm709_vm3, %v8365_v2, 0.0  ;;  %v8371_v31 = vadd.f32 %v8292_v55, %v4775_v27 }
 0x408   :  { %v4830_v20 = vadd.f32 %v4829_v5, %v4828_v28  ;;  %v6327_v5 = vmov 1966171168   ;;  %v4991_v28 = vlaneseq }
 0x409   :  { %v4831_v21 = vsel %vm709_vm3, %v8371_v31, 0.0  ;;  %v4989_v51 = vunpack.c.l.s4 %v6327_v5 }
 0x40a   :  { %v4732_v43 = vpop.f32.mrb[28].mxu1  ;;  %v4832_v53 = vadd.f32 %v4831_v21, %v4830_v20 }
 0x40b   :  { %v4776_v24 = vmul.f32 %v8284_v4, %v4732_v43  ;;  %v4734_v17 = vpop.f32.mrb[29].mxu1  ;;  %v4990_v20 = vunpack.c.0.s8 %v4989_v51  ;;  %v4992_v43 = vshrl.u32 %v4991_v28, 7  ;;  %v8775_v51 = vld [vmem:[#allocation11_spill] sm:$0xff] }
 0x40c   :  { %v4735_v61 = vpop.f32.mrb[30].mxu1  ;;  %v8776_v28 = vunpack.c.l.bf16 %v8775_v51 }
 0x40d   :  { %v8377_v38 = vadd.f32 %v8292_v55, %v4776_v24  ;;  %v4777_v22 = vmul.f32 %v8284_v4, %v4735_v61  ;;  %v4737_v23 = vpop.f32.mrb[31].mxu1  ;;  %v4993_v21 = vsub.s32 %v4990_v20, %v4992_v43  ;;  %v5012_v6 = vsub.s32 0, %v4992_v43 }
 0x40e   :  { %v8777_v43 = vunpack.c.h.bf16 %v8775_v51 }
 0x40f   :  { %v4833_v33 = vsel %vm709_vm3, %v8377_v38, 0.0  ;;  %v8383_v35 = vadd.f32 %v8292_v55, %v4777_v22  ;;  %v4858_v55 = vunpack.c.l.b16 %v4846_v29 }
 0x410   :  { %v4834_v15 = vadd.f32 %v4833_v33, %v4832_v53 }
 0x411   :  { %v4835_v46 = vsel %vm709_vm3, %v8383_v35, 0.0 }
 0x412   :  { %v4836_v0 = vadd.f32 %v4835_v46, %v4834_v15 }
 0x414   :  { %v4837_v60 = vrot.slane %v4836_v0, 4 }
 0x416   :  { %v4838_v42 = vadd.f32 %v4837_v60, %v4836_v0 }
 0x418   :  { %v4839_v57 = vrot.slane %v4838_v42, 2 }
 0x41a   :  { %v4840_v4 = vadd.f32 %v4839_v57, %v4838_v42 }
 0x41c   :  { %v4841_v54 = vrot.slane %v4840_v4, 1 }
 0x41e   :  { %v4842_v8 = vadd.f32 %v4841_v54, %v4840_v4 }
 0x420   :  { %v4845_v59 = vmul.f32 0.015625, %v4842_v8  ;;  %v8757_v8 = vld [vmem:[#allocation5_spill] sm:$0xff] }
 0x422   :  { %v4847_v13 = vpack.c.bf16 %v4845_v59, %v4845_v59  ;;  %v8760_v59 = vld [vmem:[#allocation6_spill] sm:$0xff] }
 0x424   :  { %v4859_v41 = vunpack.c.l.b16 %v4847_v13 }
 0x426   :  { %v4861_v56 = vsel %vm4860_vm8, %v4859_v41, %v4858_v55  ;;  %v8763_v55 = vld [vmem:[#allocation7_spill] sm:$0xff] }
 0x427   :  { %v4862_v9 = vpack.c.b16 %v4861_v56, %v4861_v56  ;;  %v8765_v56 = vunpack.c.h.bf16 %v8763_v55 }
 0x429   :  { %5868 = vmatmul.mubr.msk.bf16.vlgmr.msra.gmra.mrb[32].mxu0 %vm709_vm3, %v4862_v9 }
 0x4fc   :  { %v4924_v32 = vpop.f32.mrb[32].mxu0 }
 0x4fd   :  { %v4930_v26 = vmax.f32 %v4924_v32, 0.0  ;;  %v5869_v37 = vpop.f32.mrb[33].mxu0  ;;  %v8766_v32 = vld [vmem:[#allocation8_spill] sm:$0xff] }
 0x4fe   :  { %v4927_v36 = vpop.f32.mrb[34].mxu0 }
 0x4ff   :  { %v4931_v62 = vpack.c.bf16 %v4930_v26, %v4930_v26  ;;  %v5870_v18 = vpop.f32.mrb[35].mxu0  ;;  %v8767_v26 = vunpack.c.l.bf16 %v8766_v32  ;;  %v8768_v36 = vunpack.c.h.bf16 %v8766_v32 }
 0x500   :  { %v8769_v18 = vld [vmem:[#allocation9_spill] sm:$0xff] }
 0x501   :  { %5874 = vmatmul.mubr.msk.bf16.vlgmr.msra.gmra.mrb[32].mxu1 %vm4933_vm9, %v4931_v62 }
 0x5d4   :  { %v4975_v3 = vpop.f32.mrb[32].mxu1 }
 0x5d5   :  { %v4981_v16 = vsub.f32 0.0, %v4975_v3  ;;  %v5875_v19 = vpop.f32.mrb[33].mxu1  ;;  %v8770_v3 = vunpack.c.l.bf16 %v8769_v18 }
 0x5d6   :  { %v4978_v7 = vpop.f32.mrb[34].mxu1  ;;  %v8771_v19 = vunpack.c.h.bf16 %v8769_v18 }
 0x5d7   :  { %v4982_v44 = vmul.f32 1.442695, %v4981_v16  ;;  %v5876_v40 = vpop.f32.mrb[35].mxu1 }
 0x5d9   :  { %6256 = vpow2.f32 %v4982_v44  ;;  %v8772_v44 = vld [vmem:[#allocation10_spill] sm:$0xff] }
 0x5da   :  { %v8773_v40 = vunpack.c.l.bf16 %v8772_v44 }
 0x5e3   :  { %v6257_v27 = vpop.eup %6256 }
 0x5e4   :  { %v4984_v47 = vadd.f32 1.0, %v6257_v27 }
 0x5e6   :  { %6258 = vrcp.f32 %v4984_v47  ;;  %v8774_v47 = vunpack.c.h.bf16 %v8772_v44 }
 0x5f0   :  { %v6259_v24 = vpop.eup %6258 }
 0x5f1   :  { %v4994_v17 = vrot.slane %v6259_v24, %v4993_v21 }
 0x5f3   :  { %v4995_v61 = vcombine.high %v4994_v17, %v4994_v17  ;;  %v5002_v22 = vrot.slane %v4994_v17, %v4993_v21 }
 0x5f5   :  { %v5009_v23 = vrot.slane %v4995_v61, %v4993_v21  ;;  %v5013_v53 = vrot.slane %v5002_v22, %v5012_v6 }
 0x5f7   :  { %v5017_v33 = vrot.slane %v5009_v23, %v5012_v6  ;;  %v5020_v34 = vmul.f32 %v5013_v53, %v8298_v14  ;;  %v5021_v15 = vmul.f32 %v5013_v53, %v8295_v1  ;;  %v5022_v46 = vmul.f32 %v5013_v53, %v8301_v45 }
 0x5f8   :  { %v5023_v0 = vmul.f32 %v5013_v53, %v8312_v39  ;;  %v5024_v50 = vmul.f32 %v5013_v53, %v8315_v30  ;;  %v5025_v60 = vmul.f32 %v5013_v53, %v8324_v48  ;;  %v5026_v42 = vmul.f32 %v5013_v53, %v8327_v25 }
 0x5f9   :  { %v5027_v58 = vmul.f32 %v5013_v53, %v8336_v49  ;;  %v5028_v57 = vmul.f32 %v5017_v33, %v8346_v10  ;;  %v5029_v4 = vmul.f32 %v5017_v33, %v8340_v12  ;;  %v5030_v14 = vmul.f32 %v5017_v33, %v8349_v52 }
 0x5fa   :  { %v5031_v1 = vmul.f32 %v5017_v33, %v8359_v63  ;;  %v5032_v45 = vmul.f32 %v5017_v33, %v8365_v2  ;;  %v5033_v39 = vmul.f32 %v5017_v33, %v8371_v31  ;;  %v5034_v30 = vmul.f32 %v5017_v33, %v8377_v38 }
 0x5fb   :  { %v5035_v48 = vmul.f32 %v5017_v33, %v8383_v35  ;;  %v8755_v25 = vunpack.c.l.bf16 %v8754_v11  ;;  %v8756_v49 = vunpack.c.h.bf16 %v8754_v11  ;;  %v8758_v12 = vunpack.c.l.bf16 %v8757_v8 }
 0x5fc   :  { %v8759_v52 = vunpack.c.h.bf16 %v8757_v8  ;;  %v8761_v2 = vunpack.c.l.bf16 %v8760_v59  ;;  %v8762_v31 = vunpack.c.h.bf16 %v8760_v59  ;;  %v8764_v35 = vunpack.c.l.bf16 %v8763_v55 }
 0x5fd   :  { %v5036_v54 = vadd.f32 %v8755_v25, %v5020_v34  ;;  %v5037_v10 = vadd.f32 %v8756_v49, %v5021_v15  ;;  %v5038_v29 = vadd.f32 %v8758_v12, %v5022_v46  ;;  %v5043_v9 = vadd.f32 %v8765_v56, %v5027_v58 }
 0x5fe   :  { %v5039_v63 = vadd.f32 %v8759_v52, %v5023_v0  ;;  %v5040_v13 = vadd.f32 %v8761_v2, %v5024_v50  ;;  %v5041_v38 = vadd.f32 %v8762_v31, %v5025_v60  ;;  %v5042_v41 = vadd.f32 %v8764_v35, %v5026_v42 }
 0x5ff   :  { %v5044_v37 = vadd.f32 %v8767_v26, %v5028_v57  ;;  %v5045_v62 = vadd.f32 %v8768_v36, %v5029_v4  ;;  %v5046_v16 = vadd.f32 %v8770_v3, %v5030_v14  ;;  %v5047_v7 = vadd.f32 %v8771_v19, %v5031_v1 }
 0x600   :  { %v5048_v27 = vadd.f32 %v8773_v40, %v5032_v45  ;;  %v5049_v5 = vadd.f32 %v8774_v47, %v5033_v39  ;;  %v5050_v20 = vadd.f32 %v8776_v28, %v5034_v30  ;;  %v5051_v21 = vadd.f32 %v8777_v43, %v5035_v48 }
 0x601   :  { %v5797_v24 = vpack.c.bf16 %v5036_v54, %v5036_v54  ;;  %v5798_v17 = vpack.c.bf16 %v5037_v10, %v5037_v10  ;;  %v5799_v6 = vpack.c.bf16 %v5038_v29, %v5038_v29  ;;  %v5800_v61 = vpack.c.bf16 %v5039_v63, %v5039_v63 }
 0x602   :  { %v5801_v22 = vpack.c.bf16 %v5040_v13, %v5040_v13  ;;  %v5802_v23 = vpack.c.bf16 %v5041_v38, %v5041_v38  ;;  %v5803_v53 = vpack.c.bf16 %v5042_v41, %v5042_v41  ;;  %v5804_v33 = vpack.c.bf16 %v5043_v9, %v5043_v9 }
 0x603   :  { %v5805_v34 = vpack.c.bf16 %v5044_v37, %v5044_v37  ;;  %v5806_v15 = vpack.c.bf16 %v5045_v62, %v5045_v62  ;;  %v5807_v46 = vpack.c.bf16 %v5046_v16, %v5046_v16  ;;  %5116 = vst.msk [vmem:[%s8510_s10] sm:$0xf] %vm331_vm1, %v5797_v24  ;;  %5117 = vst.msk [vmem:[%s8510_s10 + $0x4] sm:$0xf] %vm331_vm1, %v5798_v17 }
 0x604   :  { %5118 = vst.msk [vmem:[%s8510_s10 + $0x8] sm:$0xf] %vm331_vm1, %v5799_v6  ;;  %v5808_v0 = vpack.c.bf16 %v5047_v7, %v5047_v7  ;;  %v5809_v50 = vpack.c.bf16 %v5048_v27, %v5048_v27  ;;  %v5810_v60 = vpack.c.bf16 %v5049_v5, %v5049_v5  ;;  %v5811_v42 = vpack.c.bf16 %v5050_v20, %v5050_v20 }
 0x605   :  { %5119 = vst.msk [vmem:[%s8510_s10 + $0xc] sm:$0xf] %vm331_vm1, %v5800_v61  ;;  %5120 = vst.msk [vmem:[%s8510_s10 + $0x10] sm:$0xf] %vm331_vm1, %v5801_v22  ;;  %v5812_v58 = vpack.c.bf16 %v5051_v21, %v5051_v21 }
 0x606   :  { %5121 = vst.msk [vmem:[%s8510_s10 + $0x14] sm:$0xf] %vm331_vm1, %v5802_v23  ;;  %5122 = vst.msk [vmem:[%s8510_s10 + $0x18] sm:$0xf] %vm331_vm1, %v5803_v53 }
 0x607   :  { %5123 = vst.msk [vmem:[%s8510_s10 + $0x1c] sm:$0xf] %vm331_vm1, %v5804_v33  ;;  %5124 = vst.msk [vmem:[%s8510_s10 + $0x20] sm:$0xf] %vm331_vm1, %v5805_v34 }
 0x608   :  { %5125 = vst.msk [vmem:[%s8510_s10 + $0x24] sm:$0xf] %vm331_vm1, %v5806_v15  ;;  %5126 = vst.msk [vmem:[%s8510_s10 + $0x28] sm:$0xf] %vm331_vm1, %v5807_v46 }
 0x609   :  { %5127 = vst.msk [vmem:[%s8510_s10 + $0x2c] sm:$0xf] %vm331_vm1, %v5808_v0  ;;  %5128 = vst.msk [vmem:[%s8510_s10 + $0x30] sm:$0xf] %vm331_vm1, %v5809_v50 }
 0x60a   :  { %5129 = vst.msk [vmem:[%s8510_s10 + $0x34] sm:$0xf] %vm331_vm1, %v5810_v60  ;;  %5130 = vst.msk [vmem:[%s8510_s10 + $0x38] sm:$0xf] %vm331_vm1, %v5811_v42 }
 0x60b   :  { %5131 = vst.msk [vmem:[%s8510_s10 + $0x3c] sm:$0xf] %vm331_vm1, %v5812_v58 }

// kernel: fwd.3
= control target key start
LH: loop header
LB: loop body
LE: loop exit
PB: predicated region body
PF: predicated region fallthrough
CT: control target
= control target key end

     0   :  { %vm1036_vm0 = vcmask 257024   ;;  %vm1039_vm1 = vcmask 253952   ;;  %v8273_v0 = vmov 0.0|0.0   ;;  %vm355_vm2 = vcmask 1040384   ;;  %s8274_s11 = smov 64   ;;  %s8275_s14 = smov 32   ;;  %s11145_s0 = inlined_call_operand.vmem [shape: bf16[2,16,16,32], index: 0, kind: input, shape index: {}]   ;;  %s11146_s2 = inlined_call_operand.vmem [shape: f32[1,32], index: 2, kind: input, shape index: {}]   ;;  %s11147_s3 = inlined_call_operand.vmem [shape: f32[1,32], index: 3, kind: input, shape index: {}]   ;;  %s11148_s1 = inlined_call_operand.vmem [shape: bf16[3,96,64], index: 1, kind: input, shape index: {}]   ;;  %s11149_s4 = inlined_call_operand.vmem [shape: f32[1,64], index: 4, kind: input, shape index: {}]   ;;  %s11150_s5 = inlined_call_operand.vmem [shape: bf16[2,256,64], index: 5, kind: output, shape index: {}]  }
   0x1   :  { %v6596_v1 = vcombine.low %v8273_v0, %v8273_v0  ;;  %v6597_v2 = vcombine.high %v8273_v0, %v8273_v0  ;;  %v7346_v3 = vld [vmem:[%s11145_s0] sm:$0xff]   ;;  %v7473_v7 = vld [vmem:[%s11145_s0 + $0x8] sm:$0xff]   ;;  %v7474_v8 = vld [vmem:[%s11145_s0 + $0x10] sm:$0xff]   ;;  %vm2075_vm3 = vcmask 1046528   ;;  %vm1530_vm4 = vsmask.f32 7424 }
   0x2   :  { %v8312_v4 = vld [vmem:[%s11146_s2] ss:$0 sm:$0xff]  ;;  %v7347_v5 = vunpack.c.l.bf16 %v7346_v3  ;;  %v7348_v6 = vunpack.c.h.bf16 %v7346_v3  ;;  %v7351_v10 = vunpack.c.l.bf16 %v7473_v7  ;;  %v7352_v11 = vunpack.c.h.bf16 %v7473_v7  ;;  %v7475_v14 = vld [vmem:[%s11145_s0 + $0x18] sm:$0xff]   ;;  %v8360_v32 = vld [vmem:[%s11145_s0 + $0x28] sm:$0xff]  }
   0x3   :  { %1037 = vst.msk [vmem:[#allocation2] sm:$0xf] %vm1036_vm0, %v6596_v1  ;;  %1038 = vst.msk [vmem:[#allocation2 + $0x4] sm:$0xf] %vm1036_vm0, %v6597_v2  ;;  %v8335_v9 = vld [vmem:[%s11147_s3] ss:$0 sm:$0xff]  ;;  %v7355_v12 = vunpack.c.l.bf16 %v7474_v8  ;;  %v7356_v13 = vunpack.c.h.bf16 %v7474_v8  ;;  %v7359_v17 = vunpack.c.l.bf16 %v7475_v14  ;;  %v7360_v18 = vunpack.c.h.bf16 %v7475_v14 }
   0x4   :  { %1040 = vst.msk [vmem:[#allocation2 + $0x8] sm:$0x1] %vm1039_vm1, %v6596_v1  ;;  %1091 = vst.msk [vmem:[#allocation2 + $0xd4] sm:$0x1] %vm1039_vm1, %v6596_v1  ;;  %v156_v15 = vmul.f32 %v7347_v5, %v8312_v4  ;;  %v157_v16 = vmul.f32 %v7348_v6, %v8312_v4  ;;  %v158_v19 = vmul.f32 %v7351_v10, %v8312_v4  ;;  %v7476_v31 = vld [vmem:[%s11145_s0 + $0x20] sm:$0xff]   ;;  %v7367_v46 = vunpack.c.l.bf16 %v8360_v32 }
   0x5   :  { %1089 = vst.msk [vmem:[#allocation2 + $0xcc] sm:$0xf] %vm1036_vm0, %v6596_v1  ;;  %1090 = vst.msk [vmem:[#allocation2 + $0xd0] sm:$0xf] %vm1036_vm0, %v6597_v2  ;;  %v159_v20 = vmul.f32 %v7352_v11, %v8312_v4  ;;  %v160_v21 = vmul.f32 %v7355_v12, %v8312_v4  ;;  %v161_v22 = vmul.f32 %v7356_v13, %v8312_v4  ;;  %v7363_v44 = vunpack.c.l.bf16 %v7476_v31  ;;  %v8390_v11 = vld [vmem:[%s11145_s0 + $0x30] sm:$0xff]  }
   0x6   :  { %1092 = vst.msk [vmem:[#allocation2 + $0xd8] sm:$0xf] %vm1036_vm0, %v6596_v1  ;;  %1093 = vst.msk [vmem:[#allocation2 + $0xdc] sm:$0xf] %vm1036_vm0, %v6597_v2  ;;  %v227_v23 = vadd.f32 %v8335_v9, %v156_v15  ;;  %v228_v24 = vadd.f32 %v8335_v9, %v157_v16  ;;  %v162_v25 = vmul.f32 %v7359_v17, %v8312_v4  ;;  %v7364_v45 = vunpack.c.h.bf16 %v7476_v31 }
   0x7   :  { %1094 = vst.msk [vmem:[#allocation2 + $0xe0] sm:$0x1] %vm1039_vm1, %v6596_v1  ;;  %1145 = vst.msk [vmem:[#allocation2 + $0x1ac] sm:$0x1] %vm1039_vm1, %v6596_v1  ;;  %v163_v26 = vmul.f32 %v7360_v18, %v8312_v4  ;;  %v229_v27 = vadd.f32 %v8335_v9, %v158_v19  ;;  %v230_v28 = vadd.f32 %v8335_v9, %v159_v20  ;;  %vm2236_vm5 = vcmask 261120  }
   0x8   :  { %1143 = vst.msk [vmem:[#allocation2 + $0x1a4] sm:$0xf] %vm1036_vm0, %v6596_v1  ;;  %1144 = vst.msk [vmem:[#allocation2 + $0x1a8] sm:$0xf] %vm1036_vm0, %v6597_v2  ;;  %v231_v29 = vadd.f32 %v8335_v9, %v160_v21  ;;  %v232_v30 = vadd.f32 %v8335_v9, %v161_v22  ;;  %v356_v33 = vrot.slane %v227_v23, 7  ;;  %v357_v34 = vrot.slane %v228_v24, 7 }
   0x9   :  { %v8363_v35 = vadd.f32 %v8335_v9, %v162_v25  ;;  %v8366_v36 = vadd.f32 %v8335_v9, %v163_v26  ;;  %v359_v37 = vrot.slane %v229_v27, 7  ;;  %v360_v38 = vrot.slane %v230_v28, 7  ;;  %v8409_v24 = vld [vmem:[%s11145_s0 + $0x38] sm:$0xff]  }
   0xa   :  { %v362_v39 = vrot.slane %v231_v29, 7  ;;  %v363_v40 = vrot.slane %v232_v30, 7  ;;  %v1146_v41 = vld [vmem:[#allocation2] sm:$0xf]  ;;  %v1147_v42 = vld [vmem:[#allocation2 + $0x4] sm:$0xf]  ;;  %v358_v43 = vsel %vm355_vm2, %v356_v33, %v357_v34  ;;  %v164_v18 = vmul.f32 %v7363_v44, %v8312_v4 }
   0xb   :  { %v8370_v47 = vcombine.low %v1146_v41, %v1147_v42  ;;  %v7990_v48 = vld [vmem:[#allocation2 + $0x8] ss:$0 sps:$4 sm:$0x11]   ;;  %v1242_v49 = vld [vmem:[#allocation2] sm:$0xe]  ;;  %v548_v50 = vsel %vm355_vm2, 0.0, %v356_v33  ;;  %v7186_v51 = vpack.c.bf16 %v358_v43, %v358_v43  ;;  %v361_v52 = vsel %vm355_vm2, %v359_v37, %v360_v38 }
   0xc   :  { %v6758_v53 = vcombine.low %v1242_v49, %v1147_v42  ;;  %v580_v54 = vsel %vm355_vm2, %v357_v34, 0.0  ;;  %v7185_v55 = vpack.c.bf16 %v548_v50, %v548_v50  ;;  %v549_v56 = vsel %vm355_vm2, 0.0, %v359_v37  ;;  %v8057_v42 = vld [vmem:[%s11148_s1 + $0x30] sm:$0xff]  }
   0xd   :  { %v1532_v57 = vshrl.u32 %v8370_v47, 16  ;;  %v1534_v58 = vshll.u32 %v8370_v47, 16  ;;  %v1539_v59 = vshll.u32 %v7990_v48, 16  ;;  %v2077_v60 = vrot.slane %v7990_v48, 1  ;;  %1042 = vst.msk [vmem:[#allocation2 + $0x10] sm:$0xf] %vm1036_vm0, %v7186_v51  ;;  %7618 = vmatprep.subr.bf16.mxu1 %v8057_v42 }
   0xe   :  { %v2076_v61 = vrot.slane %v6758_v53, 1  ;;  %v7187_v62 = vpack.c.bf16 %v580_v54, %v580_v54  ;;  %1041 = vst.msk [vmem:[#allocation2 + $0xc] sm:$0xf] %vm1036_vm0, %v7185_v55  ;;  %v581_v63 = vsel %vm355_vm2, %v360_v38, 0.0  ;;  %v7188_v0 = vpack.c.bf16 %v549_v56, %v549_v56  ;;  %7619 = vmatpush3.bf16.msra.mxu1 %v8057_v42 }
   0xf   :  { %v1536_v1 = vrot.slane %v1534_v58, 1  ;;  %v1541_v2 = vrot.slane %v1539_v59, 1  ;;  %v7189_v3 = vpack.c.bf16 %v361_v52, %v361_v52  ;;  %v7190_v5 = vpack.c.bf16 %v581_v63, %v581_v63 }
  0x10   :  { %v2078_v6 = vsel %vm2075_vm3, %v2076_v61, %v2077_v60  ;;  %1043 = vst.msk [vmem:[#allocation2 + $0x14] sm:$0x1] %vm1039_vm1, %v7187_v62  ;;  %v364_v7 = vsel %vm355_vm2, %v362_v39, %v363_v40  ;;  %v550_v8 = vsel %vm355_vm2, 0.0, %v362_v39  ;;  %v582_v10 = vsel %vm355_vm2, %v363_v40, 0.0  ;;  %v8453_v60 = vld [vmem:[%s11145_s0 + $0x40] sm:$0xff]  }
  0x11   :  { %1044 = vst.msk [vmem:[#allocation2 + $0x18] sm:$0xf] %vm1036_vm0, %v7188_v0  ;;  %v1537_v12 = vor.u32 %v1536_v1, %v1532_v57  ;;  %2172 = vrot.lane.b32.xlu1 %v2078_v6, %s8274_s11  ;;  %1045 = vst.msk [vmem:[#allocation2 + $0x1c] sm:$0xf] %vm1036_vm0, %v7189_v3  ;;  %v7191_v13 = vpack.c.bf16 %v550_v8, %v550_v8  ;;  %v7192_v14 = vpack.c.bf16 %v364_v7, %v364_v7  ;;  %vm2301_vm6 = vcmask 523264  }
  0x12   :  { %1046 = vst.msk [vmem:[#allocation2 + $0x20] sm:$0x1] %vm1039_vm1, %v7190_v5  ;;  %v7193_v15 = vpack.c.bf16 %v582_v10, %v582_v10  ;;  %v365_v16 = vrot.slane %v8363_v35, 7  ;;  %v366_v17 = vrot.slane %v8366_v36, 7  ;;  %v165_v19 = vmul.f32 %v7364_v45, %v8312_v4 }
  0x13   :  { %v1542_v20 = vsel %vm1530_vm4, %v1537_v12, %v1541_v2  ;;  %1047 = vst.msk [vmem:[#allocation2 + $0x24] sm:$0xf] %vm1036_vm0, %v7191_v13  ;;  %1048 = vst.msk [vmem:[#allocation2 + $0x28] sm:$0xf] %vm1036_vm0, %v7192_v14  ;;  %v7368_v21 = vunpack.c.h.bf16 %v8360_v32  ;;  %v166_v22 = vmul.f32 %v7367_v46, %v8312_v4  ;;  %v7371_v23 = vunpack.c.l.bf16 %v8390_v11 }
  0x14   :  { %1049 = vst.msk [vmem:[#allocation2 + $0x2c] sm:$0x1] %vm1039_vm1, %v7193_v15  ;;  %1915 = vrot.lane.b32.xlu0 %v1542_v20, %s8275_s14  ;;  %v2380_v25 = vld [vmem:[#allocation2 + $0x10] sm:$0xf]  ;;  %v367_v27 = vsel %vm355_vm2, %v365_v16, %v366_v17  ;;  %v551_v28 = vsel %vm355_vm2, 0.0, %v365_v16  ;;  %v583_v29 = vsel %vm355_vm2, %v366_v17, 0.0  ;;  %v8416_v30 = vadd.f32 %v8335_v9, %v164_v18 }
  0x15   :  { %v1149_v26 = vld [vmem:[#allocation2 + $0x10] sm:$0xf]  ;;  %v2379_v31 = vld [vmem:[#allocation2 + $0xc] sm:$0xf]  ;;  %v7194_v34 = vpack.c.bf16 %v551_v28, %v551_v28  ;;  %v7195_v35 = vpack.c.bf16 %v367_v27, %v367_v27  ;;  %v7196_v36 = vpack.c.bf16 %v583_v29, %v583_v29  ;;  %v8419_v37 = vadd.f32 %v8335_v9, %v165_v19 }
  0x16   :  { %v2475_v32 = vld [vmem:[#allocation2 + $0xc] sm:$0xe]  ;;  %v8421_v39 = vcombine.low %v2379_v31, %v2380_v25  ;;  %v368_v41 = vrot.slane %v8416_v30, 7  ;;  %v167_v48 = vmul.f32 %v7368_v21, %v8312_v4  ;;  %v8439_v51 = vadd.f32 %v8335_v9, %v166_v22 }
  0x17   :  { %v1148_v33 = vld [vmem:[#allocation2 + $0xc] sm:$0xf]  ;;  %v6854_v38 = vcombine.low %v2475_v32, %v2380_v25  ;;  %v8427_v43 = vld [vmem:[#allocation2 + $0x14] ss:$0 sps:$4 sm:$0x11]   ;;  %v369_v46 = vrot.slane %v8419_v37, 7  ;;  %v7372_v52 = vunpack.c.h.bf16 %v8390_v11  ;;  %v7375_v53 = vunpack.c.l.bf16 %v8409_v24 }
  0x18   :  { %v1243_v40 = vld [vmem:[#allocation2 + $0xc] sm:$0xe]  ;;  %v8429_v45 = vcombine.low %v1148_v33, %v1149_v26  ;;  %1050 = vst.msk [vmem:[#allocation2 + $0x30] sm:$0xf] %vm1036_vm0, %v7194_v34  ;;  %1051 = vst.msk [vmem:[#allocation2 + $0x34] sm:$0xf] %vm1036_vm0, %v7195_v35  ;;  %v168_v59 = vmul.f32 %v7371_v23, %v8312_v4  ;;  %v8458_v1 = vadd.f32 %v8335_v9, %v167_v48  ;;  %v7376_v14 = vunpack.c.h.bf16 %v8409_v24 }
  0x19   :  { %v6759_v44 = vcombine.low %v1243_v40, %v1149_v26  ;;  %1052 = vst.msk [vmem:[#allocation2 + $0x38] sm:$0x1] %vm1039_vm1, %v7196_v36  ;;  %v3307_v49 = vrot.slane %v6854_v38, 1  ;;  %v8436_v50 = vld [vmem:[#allocation2 + $0x14] ss:$0 sps:$4 sm:$0x11]   ;;  %v370_v58 = vsel %vm355_vm2, %v368_v41, %v369_v46  ;;  %v169_v8 = vmul.f32 %v7372_v52, %v8312_v4 }
  0x1a   :  { %v3308_v54 = vrot.slane %v8427_v43, 1  ;;  %v2381_v56 = vld [vmem:[#allocation2 + $0x18] sm:$0xf]  ;;  %v2382_v57 = vld [vmem:[#allocation2 + $0x1c] sm:$0xf]  ;;  %v2080_v61 = vrot.slane %v8436_v50, 1  ;;  %v7198_v0 = vpack.c.bf16 %v370_v58, %v370_v58  ;;  %v170_v15 = vmul.f32 %v7375_v53, %v8312_v4 }
  0x1b   :  { %v2079_v55 = vrot.slane %v6759_v44, 1  ;;  %v2476_v62 = vld [vmem:[#allocation2 + $0x18] sm:$0xe]  ;;  %v2764_v63 = vshrl.u32 %v8421_v39, 16  ;;  %v1152_v6 = vld [vmem:[#allocation2 + $0x24] sm:$0xf]  ;;  %v8467_v11 = vcombine.low %v2381_v56, %v2382_v57  ;;  %v8477_v20 = vadd.f32 %v8335_v9, %v168_v59 }
  0x1c   :  { %v3309_v2 = vsel %vm2075_vm3, %v3307_v49, %v3308_v54  ;;  %v8461_v3 = vld [vmem:[#allocation2 + $0x20] ss:$0 sps:$4 sm:$0x11]   ;;  %v6855_v5 = vcombine.low %v2476_v62, %v2382_v57  ;;  %v2766_v7 = vshll.u32 %v8421_v39, 16  ;;  %v1153_v12 = vld [vmem:[#allocation2 + $0x28] sm:$0xf]  ;;  %v8482_v25 = vadd.f32 %v8335_v9, %v169_v8 }
  0x1d   :  { %3403 = vrot.lane.b32.xlu1 %v3309_v2, %s8274_s11  ;;  %v2081_v10 = vsel %vm2075_vm3, %v2079_v55, %v2080_v61  ;;  %v1245_v13 = vld [vmem:[#allocation2 + $0x24] sm:$0xe]  ;;  %1054 = vst.msk [vmem:[#allocation2 + $0x40] sm:$0xf] %vm1036_vm0, %v7198_v0  ;;  %v3311_v17 = vrot.slane %v8461_v3, 1  ;;  %v8479_v21 = vcombine.low %v1152_v6, %v1153_v12  ;;  %v171_v24 = vmul.f32 %v7376_v14, %v8312_v4 }
  0x1e   :  { %2174 = vrot.lane.b32.xlu0 %v2081_v10, %s8274_s11  ;;  %v3310_v16 = vrot.slane %v6855_v5, 1  ;;  %v8474_v18 = vld [vmem:[#allocation2 + $0x2c] ss:$0 sps:$4 sm:$0x11]   ;;  %v6761_v19 = vcombine.low %v1245_v13, %v1153_v12  ;;  %v1150_v22 = vld [vmem:[#allocation2 + $0x18] sm:$0xf]  ;;  %v7379_v26 = vunpack.c.l.bf16 %v8453_v60  ;;  %v8489_v33 = vadd.f32 %v8335_v9, %v170_v15 }
  0x1f   :  { %v1151_v23 = vld [vmem:[#allocation2 + $0x1c] sm:$0xf]  ;;  %v2086_v29 = vrot.slane %v8474_v18, 1  ;;  %v1244_v31 = vld [vmem:[#allocation2 + $0x18] sm:$0xe]  ;;  %v2768_v36 = vrot.slane %v2766_v7, 1  ;;  %v8498_v52 = vadd.f32 %v8335_v9, %v171_v24 }
  0x20   :  { %v3312_v27 = vsel %vm2075_vm3, %v3310_v16, %v3311_v17  ;;  %v2085_v28 = vrot.slane %v6761_v19, 1  ;;  %v2383_v32 = vld [vmem:[#allocation2 + $0x24] sm:$0xf]  ;;  %v8004_v34 = vld [vmem:[#allocation2 + $0x20] ss:$0 sps:$4 sm:$0x11]   ;;  %v6760_v35 = vcombine.low %v1244_v31, %v1151_v23  ;;  %v8495_v44 = vcombine.low %v1150_v22, %v1151_v23 }
  0x21   :  { %3405 = vrot.lane.b32.xlu1 %v3312_v27, %s8274_s11  ;;  %v2771_v38 = vshll.u32 %v8427_v43, 16  ;;  %v2776_v40 = vshrl.u32 %v8467_v11, 16  ;;  %v2384_v48 = vld [vmem:[#allocation2 + $0x28] sm:$0xf]  ;;  %v2477_v49 = vld [vmem:[#allocation2 + $0x24] sm:$0xe]  ;;  %v8501_v53 = vmul.f32 %v7379_v26, %v8312_v4  ;;  %v2769_v56 = vor.u32 %v2768_v36, %v2764_v63 }
  0x22   :  { %v2087_v42 = vsel %vm2075_vm3, %v2085_v28, %v2086_v29  ;;  %v2082_v54 = vrot.slane %v6760_v35, 1  ;;  %v2083_v55 = vrot.slane %v8004_v34, 1  ;;  %v8504_v57 = vld [vmem:[#allocation2 + $0x2c] ss:$0 sps:$4 sm:$0x11]   ;;  %v8506_v58 = vcombine.low %v2383_v32, %v2384_v48  ;;  %v8062_v10 = vld [vmem:[%s11148_s1 + $0x38] sm:$0xff]  }
  0x23   :  { %2178 = vrot.lane.b32.xlu0 %v2087_v42, %s8274_s11  ;;  %v2773_v43 = vrot.slane %v2771_v38, 1  ;;  %v6856_v59 = vcombine.low %v2477_v49, %v2384_v48  ;;  %v2778_v61 = vshll.u32 %v8467_v11, 16  ;;  %v2783_v62 = vshll.u32 %v8461_v3, 16  ;;  %v2385_v0 = vld [vmem:[#allocation2 + $0x30] sm:$0xf]  ;;  %7620 = vmatprep.subr.bf16.mxu1 %v8062_v10  ;;  %v8065_v42 = vld [vmem:[%s11148_s1 + $0x40] sm:$0xff]  }
  0x24   :  { %v2386_v2 = vld [vmem:[#allocation2 + $0x34] sm:$0xf]  ;;  %v2084_v5 = vsel %vm2075_vm3, %v2082_v54, %v2083_v55  ;;  %v3314_v7 = vrot.slane %v8504_v57, 1  ;;  %v2478_v8 = vld [vmem:[#allocation2 + $0x30] sm:$0xe]  ;;  %v1556_v16 = vshrl.u32 %v8495_v44, 16  ;;  %7621 = vmatpush3.bf16.msra.mxu1 %v8062_v10 }
  0x25   :  { %v2774_v6 = vsel %vm1530_vm4, %v2769_v56, %v2773_v43  ;;  %v8513_v63 = vcombine.low %v2385_v0, %v2386_v2  ;;  %2176 = vrot.lane.b32.xlu1 %v2084_v5, %s8274_s11  ;;  %v3313_v12 = vrot.slane %v6856_v59, 1  ;;  %v2780_v13 = vrot.slane %v2778_v61, 1  ;;  %v8010_v14 = vld [vmem:[#allocation2 + $0x38] ss:$0 sps:$4 sm:$0x11]   ;;  %v8541_v56 = vld [vmem:[%s11148_s1] sm:$0xff]   ;;  %7622 = vmatprep.subr.bf16.mxu1 %v8065_v42 }
  0x26   :  { %v2785_v3 = vrot.slane %v2783_v62, 1  ;;  %v6857_v15 = vcombine.low %v2478_v8, %v2386_v2  ;;  %v1558_v17 = vshll.u32 %v8495_v44, 16  ;;  %v1563_v19 = vshll.u32 %v8004_v34, 16  ;;  %v1154_v55 = vld [vmem:[#allocation2 + $0x30] sm:$0xf]  ;;  %7694 = vmatprep.subr.bf16.mxu0 %v8541_v56 }
  0x27   :  { %3147 = vrot.lane.b32.xlu0 %v2774_v6, %s8275_s14  ;;  %v1568_v22 = vshrl.u32 %v8479_v21, 16  ;;  %v3315_v23 = vsel %vm2075_vm3, %v3313_v12, %v3314_v7  ;;  %v2781_v24 = vor.u32 %v2780_v13, %v2776_v40  ;;  %v3317_v27 = vrot.slane %v8010_v14, 1  ;;  %v8531_v40 = vld [vmem:[#allocation2 + $0x38] ss:$0 sps:$4 sm:$0x11]   ;;  %7695 = vmatpush3.bf16.msra.mxu0 %v8541_v56 }
  0x28   :  { %v3316_v26 = vrot.slane %v6857_v15, 1  ;;  %v1560_v28 = vrot.slane %v1558_v17, 1  ;;  %v1565_v29 = vrot.slane %v1563_v19, 1  ;;  %v1570_v31 = vshll.u32 %v8479_v21, 16  ;;  %v1155_v0 = vld [vmem:[#allocation2 + $0x34] sm:$0xf]  ;;  %7623 = vmatpush3.bf16.msra.mxu1 %v8065_v42 }
  0x29   :  { %v1575_v32 = vshll.u32 %v8474_v18, 16  ;;  %3407 = vrot.lane.b32.xlu1 %v3315_v23, %s8274_s11  ;;  %v2786_v35 = vsel %vm1530_vm4, %v2781_v24, %v2785_v3  ;;  %v1544_v36 = vshrl.u32 %v8429_v45, 16  ;;  %v1546_v38 = vshll.u32 %v8429_v45, 16  ;;  %v1246_v13 = vld [vmem:[#allocation2 + $0x30] sm:$0xe]  ;;  %v8069_v3 = vld [vmem:[%s11148_s1 + $0x48] sm:$0xff]  }
  0x2a   :  { %v3318_v34 = vsel %vm2075_vm3, %v3316_v26, %v3317_v27  ;;  %v1561_v48 = vor.u32 %v1560_v28, %v1556_v16  ;;  %v1572_v18 = vrot.slane %v1570_v31, 1  ;;  %v1551_v54 = vshll.u32 %v8436_v50, 16  ;;  %7624 = vmatprep.subr.bf16.mxu1 %v8069_v3 }
  0x2b   :  { %3149 = vrot.lane.b32.xlu0 %v2786_v35, %s8275_s14  ;;  %v1577_v49 = vrot.slane %v1575_v32, 1  ;;  %v1548_v43 = vrot.slane %v1546_v38, 1  ;;  %v2800_v59 = vshrl.u32 %v8513_v63, 16  ;;  %v2802_v61 = vshll.u32 %v8513_v63, 16 }
  0x2c   :  { %v2807_v62 = vshll.u32 %v8010_v14, 16  ;;  %v1566_v2 = vsel %vm1530_vm4, %v1561_v48, %v1565_v29  ;;  %v1573_v5 = vor.u32 %v1572_v18, %v1568_v22  ;;  %v1553_v6 = vrot.slane %v1551_v54, 1  ;;  %7625 = vmatpush3.bf16.msra.mxu1 %v8069_v3  ;;  %v8072_v18 = vld [vmem:[%s11148_s1 + $0x50] sm:$0xff]  }
  0x2d   :  { %v2788_v50 = vshrl.u32 %v8506_v58, 16  ;;  %3409 = vrot.lane.b32.xlu1 %v3318_v34, %s8274_s11  ;;  %v1549_v7 = vor.u32 %v1548_v43, %v1544_v36  ;;  %v2804_v8 = vrot.slane %v2802_v61, 1  ;;  %v2790_v12 = vshll.u32 %v8506_v58, 16  ;;  %7626 = vmatprep.subr.bf16.mxu1 %v8072_v18  ;;  %v2388_v61 = vld [vmem:[#allocation2 + $0x40] sm:$0xf] }
  0x2e   :  { %v2809_v10 = vrot.slane %v2807_v62, 1  ;;  %v1578_v14 = vsel %vm1530_vm4, %v1573_v5, %v1577_v49  ;;  %v2795_v15 = vshll.u32 %v8504_v57, 16  ;;  %v8557_v16 = vcombine.low %v1154_v55, %v1155_v0  ;;  %v8601_v5 = vld [vmem:[#allocation2 + $0x40] sm:$0xf] }
  0x2f   :  { %1919 = vrot.lane.b32.xlu0 %v1566_v2, %s8275_s14  ;;  %v1587_v17 = vshll.u32 %v8531_v40, 16  ;;  %v1554_v19 = vsel %vm1530_vm4, %v1549_v7, %v1553_v6  ;;  %v2805_v22 = vor.u32 %v2804_v8, %v2800_v59  ;;  %v2792_v23 = vrot.slane %v2790_v12, 1 }
  0x30   :  { %v552_v24 = vsel %vm355_vm2, 0.0, %v368_v41  ;;  %v2797_v26 = vrot.slane %v2795_v15, 1  ;;  %v1580_v27 = vshrl.u32 %v8557_v16, 16  ;;  %v1582_v28 = vshll.u32 %v8557_v16, 16  ;;  %v8070_v41 = vld [vmem:[%s11148_s1 + $0x8] sm:$0xff]   ;;  %7627 = vmatpush3.bf16.msra.mxu1 %v8072_v18 }
  0x31   :  { %v1589_v29 = vrot.slane %v1587_v17, 1  ;;  %1917 = vrot.lane.b32.xlu1 %v1554_v19, %s8275_s14  ;;  %v2810_v57 = vsel %vm1530_vm4, %v2805_v22, %v2809_v10  ;;  %v2793_v31 = vor.u32 %v2792_v23, %v2788_v50  ;;  %v584_v32 = vsel %vm355_vm2, %v369_v46, 0.0  ;;  %7696 = vmatprep.subr.bf16.mxu0 %v8070_v41  ;;  %v8608_v10 = vld [vmem:[%s11145_s0 + $0x48] sm:$0xff]   ;;  %v8079_v19 = vld [vmem:[%s11148_s1 + $0x18] sm:$0xff]  }
  0x32   :  { %v7197_v30 = vpack.c.bf16 %v552_v24, %v552_v24  ;;  %v1584_v35 = vrot.slane %v1582_v28, 1  ;;  %v7199_v34 = vpack.c.bf16 %v584_v32, %v584_v32  ;;  %v6762_v36 = vcombine.low %v1246_v13, %v1155_v0  ;;  %7697 = vmatpush3.bf16.msra.mxu0 %v8070_v41 }
  0x33   :  { %1921 = vrot.lane.b32.xlu0 %v1578_v14, %s8275_s14  ;;  %v2089_v38 = vrot.slane %v8531_v40, 1  ;;  %v2798_v42 = vsel %vm1530_vm4, %v2793_v31, %v2797_v26  ;;  %v371_v37 = vrot.slane %v8439_v51, 7  ;;  %v372_v46 = vrot.slane %v8458_v1, 7  ;;  %v8073_v51 = vld [vmem:[%s11148_s1 + $0x10] sm:$0xff]  }
  0x34   :  { %1053 = vst.msk [vmem:[#allocation2 + $0x3c] sm:$0xf] %vm1036_vm0, %v7197_v30  ;;  %v374_v48 = vrot.slane %v8477_v20, 7  ;;  %v1585_v49 = vor.u32 %v1584_v35, %v1580_v27  ;;  %v2088_v54 = vrot.slane %v6762_v36, 1  ;;  %v375_v40 = vrot.slane %v8482_v25, 7  ;;  %v8078_v25 = vld [vmem:[%s11148_s1 + $0x58] sm:$0xff]   ;;  %7698 = vmatprep.subr.bf16.mxu0 %v8073_v51 }
  0x35   :  { %1055 = vst.msk [vmem:[#allocation2 + $0x44] sm:$0x1] %vm1039_vm1, %v7199_v34  ;;  %v377_v55 = vrot.slane %v8489_v33, 7  ;;  %3151 = vrot.lane.b32.xlu1 %v2798_v42, %s8275_s14  ;;  %v373_v1 = vsel %vm355_vm2, %v371_v37, %v372_v46  ;;  %v553_v20 = vsel %vm355_vm2, 0.0, %v371_v37  ;;  %v585_v43 = vsel %vm355_vm2, %v372_v46, 0.0  ;;  %7628 = vmatprep.subr.bf16.mxu1 %v8078_v25 }
  0x36   :  { %v554_v59 = vsel %vm355_vm2, 0.0, %v374_v48  ;;  %v1590_v33 = vsel %vm1530_vm4, %v1585_v49, %v1589_v29  ;;  %v7200_v62 = vpack.c.bf16 %v553_v20, %v553_v20  ;;  %v7201_v0 = vpack.c.bf16 %v373_v1, %v373_v1  ;;  %7699 = vmatpush3.bf16.msra.mxu0 %v8073_v51  ;;  %7629 = vmatpush3.bf16.msra.mxu1 %v8078_v25 }
  0x37   :  { %3153 = vrot.lane.b32.xlu0 %v2810_v57, %s8275_s14  ;;  %v7380_v2 = vunpack.c.h.bf16 %v8453_v60  ;;  %v7202_v6 = vpack.c.bf16 %v585_v43, %v585_v43  ;;  %v376_v50 = vsel %vm355_vm2, %v374_v48, %v375_v40  ;;  %v586_v7 = vsel %vm355_vm2, %v375_v40, 0.0  ;;  %7700 = vmatprep.subr.bf16.mxu0 %v8079_v19 }
  0x38   :  { %v7203_v8 = vpack.c.bf16 %v554_v59, %v554_v59  ;;  %1056 = vst.msk [vmem:[#allocation2 + $0x48] sm:$0xf] %vm1036_vm0, %v7200_v62  ;;  %1057 = vst.msk [vmem:[#allocation2 + $0x4c] sm:$0xf] %vm1036_vm0, %v7201_v0  ;;  %v7204_v60 = vpack.c.bf16 %v376_v50, %v376_v50  ;;  %v7205_v12 = vpack.c.bf16 %v586_v7, %v586_v7  ;;  %v378_v13 = vrot.slane %v8498_v52, 7  ;;  %v8626_v52 = vld [vmem:[%s11145_s0 + $0x50] sm:$0xff]  }
  0x39   :  { %v555_v3 = vsel %vm355_vm2, 0.0, %v377_v55  ;;  %v8615_v14 = vsel %vm2075_vm3, %v2088_v54, %v2089_v38  ;;  %1058 = vst.msk [vmem:[#allocation2 + $0x50] sm:$0x1] %vm1039_vm1, %v7202_v6  ;;  %v8621_v17 = vadd.f32 %v8335_v9, %v8501_v53  ;;  %v173_v26 = vmul.f32 %v7380_v2, %v8312_v4  ;;  %7846 = vmatprep.subr.bf16.mxu1 %v8541_v56 }
  0x3a   :  { %1059 = vst.msk [vmem:[#allocation2 + $0x54] sm:$0xf] %vm1036_vm0, %v7203_v8  ;;  %v7206_v15 = vpack.c.bf16 %v555_v3, %v555_v3  ;;  %1060 = vst.msk [vmem:[#allocation2 + $0x58] sm:$0xf] %vm1036_vm0, %v7204_v60  ;;  %v379_v53 = vsel %vm355_vm2, %v377_v55, %v378_v13  ;;  %v7383_v27 = vunpack.c.l.bf16 %v8608_v10  ;;  %v7384_v28 = vunpack.c.h.bf16 %v8608_v10  ;;  %7701 = vmatpush3.bf16.msra.mxu0 %v8079_v19 }
  0x3b   :  { %1923 = vrot.lane.b32.xlu0 %v1590_v33, %s8275_s14  ;;  %v2387_v22 = vld [vmem:[#allocation2 + $0x3c] sm:$0xf]  ;;  %1061 = vst.msk [vmem:[#allocation2 + $0x5c] sm:$0x1] %vm1039_vm1, %v7205_v12  ;;  %v587_v30 = vsel %vm355_vm2, %v378_v13, 0.0  ;;  %v7207_v35 = vpack.c.bf16 %v379_v53, %v379_v53  ;;  %v380_v36 = vrot.slane %v8621_v17, 7  ;;  %v7387_v38 = vunpack.c.l.bf16 %v8626_v52 }
  0x3c   :  { %v1156_v23 = vld [vmem:[#allocation2 + $0x3c] sm:$0xf]  ;;  %v8638_v29 = vcombine.low %v2387_v22, %v2388_v61  ;;  %v8640_v57 = vld [vmem:[#allocation2 + $0x44] ss:$0 sps:$4 sm:$0x11]   ;;  %v7208_v34 = vpack.c.bf16 %v587_v30, %v587_v30  ;;  %v7388_v59 = vunpack.c.h.bf16 %v8626_v52  ;;  %v8663_v0 = vadd.f32 %v8335_v9, %v173_v26 }
  0x3d   :  { %v2479_v24 = vld [vmem:[#allocation2 + $0x3c] sm:$0xe]  ;;  %v8643_v31 = vcombine.low %v1156_v23, %v8601_v5  ;;  %1062 = vst.msk [vmem:[#allocation2 + $0x60] sm:$0xf] %vm1036_vm0, %v7206_v15  ;;  %v2819_v46 = vshll.u32 %v8640_v57, 16  ;;  %v3320_v55 = vrot.slane %v8640_v57, 1  ;;  %v174_v15 = vmul.f32 %v7383_v27, %v8312_v4 }
  0x3e   :  { %v6858_v32 = vcombine.low %v2479_v24, %v2388_v61  ;;  %v8017_v41 = vld [vmem:[#allocation2 + $0x44] ss:$0 sps:$4 sm:$0x11]   ;;  %v2812_v42 = vshrl.u32 %v8638_v29, 16  ;;  %v2814_v37 = vshll.u32 %v8638_v29, 16  ;;  %v175_v53 = vmul.f32 %v7384_v28, %v8312_v4  ;;  %v8085_v27 = vld [vmem:[%s11148_s1 + $0x28] sm:$0xff]  }
  0x3f   :  { %v1592_v48 = vshrl.u32 %v8643_v31, 16  ;;  %v1247_v18 = vld [vmem:[#allocation2 + $0x3c] sm:$0xe]  ;;  %v1594_v49 = vshll.u32 %v8643_v31, 16  ;;  %v1599_v54 = vshll.u32 %v8017_v41, 16  ;;  %v2821_v51 = vrot.slane %v2819_v46, 1 }
  0x40   :  { %v3319_v40 = vrot.slane %v6858_v32, 1  ;;  %1063 = vst.msk [vmem:[#allocation2 + $0x64] sm:$0xf] %vm1036_vm0, %v7207_v35  ;;  %v2816_v56 = vrot.slane %v2814_v37, 1  ;;  %v2389_v1 = vld [vmem:[#allocation2 + $0x48] sm:$0xf]  ;;  %v6763_v43 = vcombine.low %v1247_v18, %v8601_v5 }
  0x41   :  { %1064 = vst.msk [vmem:[#allocation2 + $0x68] sm:$0x1] %vm1039_vm1, %v7208_v34  ;;  %v2390_v20 = vld [vmem:[#allocation2 + $0x4c] sm:$0xf]  ;;  %v1596_v25 = vrot.slane %v1594_v49, 1  ;;  %v1601_v33 = vrot.slane %v1599_v54, 1  ;;  %v8697_v49 = vadd.f32 %v8335_v9, %v174_v15 }
  0x42   :  { %v8660_v61 = vcombine.low %v2389_v1, %v2390_v20  ;;  %v2480_v62 = vld [vmem:[#allocation2 + $0x48] sm:$0xe]  ;;  %v2817_v2 = vor.u32 %v2816_v56, %v2812_v42  ;;  %v8665_v6 = vld [vmem:[#allocation2 + $0x50] ss:$0 sps:$4 sm:$0x11]   ;;  %v2091_v50 = vrot.slane %v6763_v43, 1  ;;  %v3321_v28 = vsel %vm2075_vm3, %v3319_v40, %v3320_v55 }
  0x43   :  { %v2092_v7 = vrot.slane %v8017_v41, 1  ;;  %v6859_v8 = vcombine.low %v2480_v62, %v2390_v20  ;;  %v8082_v5 = vld [vmem:[%s11148_s1 + $0x20] sm:$0xff]   ;;  %v1597_v10 = vor.u32 %v1596_v25, %v1592_v48  ;;  %v1158_v13 = vld [vmem:[#allocation2 + $0x48] sm:$0xf]  ;;  %v1159_v3 = vld [vmem:[#allocation2 + $0x4c] sm:$0xf]  ;;  %v8711_v1 = vadd.f32 %v8335_v9, %v175_v53 }
  0x44   :  { %v2824_v60 = vshrl.u32 %v8660_v61, 16  ;;  %v2826_v12 = vshll.u32 %v8660_v61, 16  ;;  %v2822_v19 = vsel %vm1530_vm4, %v2817_v2, %v2821_v51  ;;  %v2831_v22 = vshll.u32 %v8665_v6, 16  ;;  %v2391_v24 = vld [vmem:[#allocation2 + $0x54] sm:$0xf]  ;;  %7702 = vmatprep.subr.bf16.mxu0 %v8082_v5  ;;  %v7484_v52 = vld [vmem:[%s11145_s0 + $0x60] sm:$0xff]  }
  0x45   :  { %v3322_v23 = vrot.slane %v6859_v8, 1  ;;  %3155 = vrot.lane.b32.xlu1 %v2822_v19, %s8275_s14  ;;  %v1602_v26 = vsel %vm1530_vm4, %v1597_v10, %v1601_v33  ;;  %v3323_v32 = vrot.slane %v8665_v6, 1  ;;  %v8679_v30 = vcombine.low %v1158_v13, %v1159_v3  ;;  %v8681_v41 = vld [vmem:[#allocation2 + $0x50] ss:$0 sps:$4 sm:$0x11]   ;;  %7703 = vmatpush3.bf16.msra.mxu0 %v8082_v5 }
  0x46   :  { %v2828_v57 = vrot.slane %v2826_v12, 1  ;;  %1925 = vrot.lane.b32.xlu0 %v1602_v26, %s8275_s14  ;;  %v2833_v4 = vrot.slane %v2831_v22, 1  ;;  %v2093_v35 = vsel %vm2075_vm3, %v2091_v50, %v2092_v7  ;;  %v8689_v34 = vld [vmem:[#allocation2 + $0x58] sm:$0xf]  ;;  %v381_v42 = vrot.slane %v8663_v0, 7  ;;  %7704 = vmatprep.subr.bf16.mxu0 %v8085_v27 }
  0x47   :  { %v1604_v46 = vshrl.u32 %v8679_v30, 16  ;;  %v1606_v48 = vshll.u32 %v8679_v30, 16  ;;  %v8694_v18 = vld [vmem:[#allocation2 + $0x5c] ss:$0 sps:$4 sm:$0x11]   ;;  %v1611_v54 = vshll.u32 %v8681_v41, 16  ;;  %v8701_v40 = vcombine.low %v2391_v24, %v8689_v34 }
  0x48   :  { %v2829_v37 = vor.u32 %v2828_v57, %v2824_v60  ;;  %v1160_v55 = vld [vmem:[#allocation2 + $0x54] sm:$0xf]  ;;  %v8703_v56 = vld [vmem:[#allocation2 + $0x58] sm:$0xf]  ;;  %v382_v51 = vsel %vm355_vm2, %v380_v36, %v381_v42  ;;  %v2843_v25 = vshll.u32 %v8694_v18, 16  ;;  %v2095_v10 = vrot.slane %v8681_v41, 1 }
  0x49   :  { %2180 = vrot.lane.b32.xlu1 %v8615_v14, %s8274_s11  ;;  %v1608_v43 = vrot.slane %v1606_v48, 1  ;;  %v8718_v33 = vcombine.low %v1160_v55, %v8703_v56  ;;  %v1248_v62 = vld [vmem:[#allocation2 + $0x48] sm:$0xe]  ;;  %7705 = vmatpush3.bf16.msra.mxu0 %v8085_v27  ;;  %v1613_v2 = vrot.slane %v1611_v54, 1  ;;  %v2836_v6 = vshrl.u32 %v8701_v40, 16 }
  0x4a   :  { %v2834_v20 = vsel %vm1530_vm4, %v2829_v37, %v2833_v4  ;;  %v2838_v9 = vshll.u32 %v8701_v40, 16  ;;  %v8723_v50 = vld [vmem:[#allocation2 + $0x5c] ss:$0 sps:$4 sm:$0x11]   ;;  %v6764_v14 = vcombine.low %v1248_v62, %v1159_v3  ;;  %v2393_v60 = vld [vmem:[#allocation2 + $0x60] sm:$0xf]  ;;  %v3324_v24 = vsel %vm2075_vm3, %v3322_v23, %v3323_v32 }
  0x4b   :  { %3157 = vrot.lane.b32.xlu0 %v2834_v20, %s8275_s14  ;;  %v1609_v7 = vor.u32 %v1608_v43, %v1604_v46  ;;  %v1616_v8 = vshrl.u32 %v8718_v33, 16  ;;  %v1618_v5 = vshll.u32 %v8718_v33, 16  ;;  %v2845_v13 = vrot.slane %v2843_v25, 1  ;;  %v2394_v22 = vld [vmem:[#allocation2 + $0x64] sm:$0xf] }
  0x4c   :  { %v2840_v12 = vrot.slane %v2838_v9, 1  ;;  %v1623_v15 = vshll.u32 %v8723_v50, 16  ;;  %v2094_v19 = vrot.slane %v6764_v14, 1  ;;  %v8731_v3 = vcombine.low %v2393_v60, %v2394_v22  ;;  %v8733_v26 = vld [vmem:[#allocation2 + $0x68] ss:$0 sps:$4 sm:$0x11]  }
  0x4d   :  { %3411 = vrot.lane.b32.xlu1 %v3321_v28, %s8274_s11  ;;  %v1620_v53 = vrot.slane %v1618_v5, 1  ;;  %v7210_v57 = vpack.c.bf16 %v382_v51, %v382_v51  ;;  %v1614_v41 = vsel %vm1530_vm4, %v1609_v7, %v1613_v2  ;;  %v2481_v37 = vld [vmem:[#allocation2 + $0x54] sm:$0xe]  ;;  %v3326_v46 = vrot.slane %v8694_v18, 1  ;;  %v2482_v55 = vld [vmem:[#allocation2 + $0x60] sm:$0xe] }
  0x4e   :  { %v2841_v27 = vor.u32 %v2840_v12, %v2836_v6  ;;  %v1625_v4 = vrot.slane %v1623_v15, 1  ;;  %v1249_v48 = vld [vmem:[#allocation2 + $0x54] sm:$0xe]  ;;  %v2848_v28 = vshrl.u32 %v8731_v3, 16  ;;  %v2850_v23 = vshll.u32 %v8731_v3, 16 }
  0x4f   :  { %2182 = vrot.lane.b32.xlu0 %v2093_v35, %s8274_s11  ;;  %v1621_v54 = vor.u32 %v1620_v53, %v1616_v8  ;;  %v2855_v32 = vshll.u32 %v8733_v26, 16  ;;  %1066 = vst.msk [vmem:[#allocation2 + $0x70] sm:$0xf] %vm1036_vm0, %v7210_v57  ;;  %v2096_v35 = vsel %vm2075_vm3, %v2094_v19, %v2095_v10  ;;  %v6860_v51 = vcombine.low %v2481_v37, %v8689_v34  ;;  %v1162_v25 = vld [vmem:[#allocation2 + $0x60] sm:$0xf] }
  0x50   :  { %v6765_v20 = vcombine.low %v1249_v48, %v8703_v56  ;;  %v6861_v43 = vcombine.low %v2482_v55, %v2394_v22  ;;  %v1163_v18 = vld [vmem:[#allocation2 + $0x64] sm:$0xf]  ;;  %v2846_v62 = vsel %vm1530_vm4, %v2841_v27, %v2845_v13  ;;  %v2852_v2 = vrot.slane %v2850_v23, 1  ;;  %v8748_v14 = vld [vmem:[#allocation2 + $0x68] ss:$0 sps:$4 sm:$0x11]  }
  0x51   :  { %3413 = vrot.lane.b32.xlu1 %v3324_v24, %s8274_s11  ;;  %v2857_v6 = vrot.slane %v2855_v32, 1  ;;  %v2098_v9 = vrot.slane %v8723_v50, 1  ;;  %v1626_v7 = vsel %vm1530_vm4, %v1621_v54, %v1625_v4  ;;  %v3325_v34 = vrot.slane %v6860_v51, 1  ;;  %v1250_v5 = vld [vmem:[#allocation2 + $0x60] sm:$0xe] }
  0x52   :  { %v3329_v56 = vrot.slane %v8733_v26, 1  ;;  %v8753_v8 = vcombine.low %v1162_v25, %v1163_v18  ;;  %v2853_v10 = vor.u32 %v2852_v2, %v2848_v28  ;;  %v1635_v60 = vshll.u32 %v8748_v14, 16  ;;  %v8778_v37 = vld [vmem:[%s11146_s2] ss:$0 sm:$0xff] }
  0x53   :  { %1927 = vrot.lane.b32.xlu0 %v1614_v41, %s8275_s14  ;;  %v556_v12 = vsel %vm355_vm2, 0.0, %v380_v36  ;;  %v588_v50 = vsel %vm355_vm2, %v381_v42, 0.0  ;;  %v3327_v13 = vsel %vm2075_vm3, %v3325_v34, %v3326_v46  ;;  %v2097_v15 = vrot.slane %v6765_v20, 1  ;;  %v7483_v36 = vld [vmem:[%s11145_s0 + $0x58] sm:$0xff]  }
  0x54   :  { %v3328_v19 = vrot.slane %v6861_v43, 1  ;;  %v1628_v22 = vshrl.u32 %v8753_v8, 16  ;;  %v2858_v24 = vsel %vm1530_vm4, %v2853_v10, %v2857_v6  ;;  %v1630_v53 = vshll.u32 %v8753_v8, 16  ;;  %v8804_v43 = vld [vmem:[%s11147_s3] ss:$0 sm:$0xff] }
  0x55   :  { %3159 = vrot.lane.b32.xlu1 %v2846_v62, %s8275_s14  ;;  %v1637_v26 = vrot.slane %v1635_v60, 1  ;;  %v7209_v17 = vpack.c.bf16 %v556_v12, %v556_v12  ;;  %v7211_v0 = vpack.c.bf16 %v588_v50, %v588_v50  ;;  %v6766_v42 = vcombine.low %v1250_v5, %v1163_v18 }
  0x56   :  { %v2101_v57 = vrot.slane %v8748_v14, 1  ;;  %v383_v41 = vrot.slane %v8697_v49, 7  ;;  %v1632_v27 = vrot.slane %v1630_v53, 1  ;;  %v384_v4 = vrot.slane %v8711_v1, 7  ;;  %v2396_v62 = vld [vmem:[#allocation2 + $0x70] sm:$0xf] }
  0x57   :  { %1929 = vrot.lane.b32.xlu0 %v1626_v7, %s8275_s14  ;;  %1065 = vst.msk [vmem:[#allocation2 + $0x6c] sm:$0xf] %vm1036_vm0, %v7209_v17  ;;  %v176_v46 = vmul.f32 %v8778_v37, %v7387_v38  ;;  %v177_v48 = vmul.f32 %v8778_v37, %v7388_v59  ;;  %v2100_v49 = vrot.slane %v6766_v42, 1  ;;  %v7391_v28 = vunpack.c.l.bf16 %v7483_v36  ;;  %v8797_v38 = vld [vmem:[%s11145_s0 + $0x68] sm:$0xff]   ;;  %v1165_v14 = vld [vmem:[#allocation2 + $0x70] sm:$0xf] }
  0x58   :  { %1067 = vst.msk [vmem:[#allocation2 + $0x74] sm:$0x1] %vm1039_vm1, %v7211_v0  ;;  %v557_v54 = vsel %vm355_vm2, 0.0, %v383_v41  ;;  %v7392_v1 = vunpack.c.h.bf16 %v7483_v36  ;;  %v1633_v23 = vor.u32 %v1632_v27, %v1628_v22  ;;  %v385_v32 = vsel %vm355_vm2, %v383_v41, %v384_v4 }
  0x59   :  { %2184 = vrot.lane.b32.xlu1 %v2096_v35, %s8274_s11  ;;  %v589_v55 = vsel %vm355_vm2, %v384_v4, 0.0  ;;  %v7212_v51 = vpack.c.bf16 %v557_v54, %v557_v54  ;;  %v2099_v59 = vsel %vm2075_vm3, %v2097_v15, %v2098_v9  ;;  %v7213_v35 = vpack.c.bf16 %v385_v32, %v385_v32 }
  0x5a   :  { %v7214_v20 = vpack.c.bf16 %v589_v55, %v589_v55  ;;  %v247_v25 = vadd.f32 %v8804_v43, %v176_v46  ;;  %v3330_v18 = vsel %vm2075_vm3, %v3328_v19, %v3329_v56  ;;  %v8810_v2 = vadd.f32 %v8804_v43, %v177_v48 }
  0x5b   :  { %3161 = vrot.lane.b32.xlu0 %v2858_v24, %s8275_s14  ;;  %1068 = vst.msk [vmem:[#allocation2 + $0x78] sm:$0xf] %vm1036_vm0, %v7212_v51  ;;  %v178_v6 = vmul.f32 %v8778_v37, %v7391_v28  ;;  %v179_v9 = vmul.f32 %v8778_v37, %v7392_v1  ;;  %1069 = vst.msk [vmem:[#allocation2 + $0x7c] sm:$0xf] %vm1036_vm0, %v7213_v35  ;;  %v7395_v34 = vunpack.c.l.bf16 %v7484_v52  ;;  %v7396_v5 = vunpack.c.h.bf16 %v7484_v52 }
  0x5c   :  { %1070 = vst.msk [vmem:[#allocation2 + $0x80] sm:$0x1] %vm1039_vm1, %v7214_v20  ;;  %v386_v7 = vrot.slane %v247_v25, 7  ;;  %v7399_v56 = vunpack.c.l.bf16 %v8797_v38  ;;  %v1638_v10 = vsel %vm1530_vm4, %v1633_v23, %v1637_v26  ;;  %v8820_v60 = vsel %vm2075_vm3, %v2100_v49, %v2101_v57 }
  0x5d   :  { %3415 = vrot.lane.b32.xlu1 %v3327_v13, %s8274_s11  ;;  %v387_v12 = vrot.slane %v8810_v2, 7  ;;  %v8824_v50 = vadd.f32 %v8804_v43, %v178_v6  ;;  %v8828_v24 = vadd.f32 %v8804_v43, %v179_v9  ;;  %v180_v13 = vmul.f32 %v8778_v37, %v7395_v34 }
  0x5e   :  { %v2395_v15 = vld [vmem:[#allocation2 + $0x6c] sm:$0xf]  ;;  %v181_v53 = vmul.f32 %v8778_v37, %v7396_v5  ;;  %v7400_v26 = vunpack.c.h.bf16 %v8797_v38  ;;  %v558_v27 = vsel %vm355_vm2, 0.0, %v386_v7  ;;  %v8847_v48 = vmul.f32 %v8778_v37, %v7399_v56 }
  0x5f   :  { %2186 = vrot.lane.b32.xlu0 %v2099_v59, %s8274_s11  ;;  %v1164_v19 = vld [vmem:[#allocation2 + $0x6c] sm:$0xf]  ;;  %v8833_v17 = vcombine.low %v2395_v15, %v2396_v62  ;;  %v8033_v36 = vld [vmem:[#allocation2 + $0x74] ss:$0 sps:$4 sm:$0x11]   ;;  %v388_v57 = vsel %vm355_vm2, %v386_v7, %v387_v12  ;;  %v8844_v46 = vadd.f32 %v8804_v43, %v180_v13  ;;  %vm3644_vm7 = vcmask 785408  }
  0x60   :  { %v2483_v22 = vld [vmem:[#allocation2 + $0x6c] sm:$0xe]  ;;  %v8835_v0 = vcombine.low %v1164_v19, %v1165_v14  ;;  %v8840_v41 = vld [vmem:[#allocation2 + $0x74] ss:$0 sps:$4 sm:$0x11]   ;;  %v7216_v4 = vpack.c.bf16 %v388_v57, %v388_v57  ;;  %v2867_v28 = vshll.u32 %v8033_v36, 16  ;;  %v8860_v34 = vadd.f32 %v8804_v43, %v181_v53 }
  0x61   :  { %11176 = vst [vmem:[#allocation3_spill] sm:$0xff] %v8833_v17  ;;  %v6862_v42 = vcombine.low %v2483_v22, %v2396_v62  ;;  %3417 = vrot.lane.b32.xlu1 %v3330_v18, %s8274_s11  ;;  %v2860_v49 = vshrl.u32 %v8833_v17, 16  ;;  %v2862_v54 = vshll.u32 %v8833_v17, 16  ;;  %v1251_v23 = vld [vmem:[#allocation2 + $0x6c] sm:$0xe]  ;;  %v1647_v55 = vshll.u32 %v8840_v41, 16 }
  0x62   :  { %11177 = vst [vmem:[#allocation4_spill] sm:$0xff] %v8835_v0  ;;  %v1640_v1 = vshrl.u32 %v8835_v0, 16  ;;  %v1642_v32 = vshll.u32 %v8835_v0, 16  ;;  %v2397_v51 = vld [vmem:[#allocation2 + $0x78] sm:$0xf]  ;;  %v3332_v38 = vrot.slane %v8033_v36, 1  ;;  %v6767_v25 = vcombine.low %v1251_v23, %v1165_v14 }
  0x63   :  { %1931 = vrot.lane.b32.xlu0 %v1638_v10, %s8275_s14  ;;  %v3331_v52 = vrot.slane %v6862_v42, 1  ;;  %1072 = vst.msk [vmem:[#allocation2 + $0x88] sm:$0xf] %vm1036_vm0, %v7216_v4  ;;  %v2864_v59 = vrot.slane %v2862_v54, 1  ;;  %v2869_v35 = vrot.slane %v2867_v28, 1  ;;  %v7215_v18 = vpack.c.bf16 %v558_v27, %v558_v27 }
  0x64   :  { %v2398_v20 = vld [vmem:[#allocation2 + $0x7c] sm:$0xf]  ;;  %v1644_v62 = vrot.slane %v1642_v32, 1  ;;  %v1649_v6 = vrot.slane %v1647_v55, 1  ;;  %v2103_v10 = vrot.slane %v6767_v25, 1  ;;  %v2104_v15 = vrot.slane %v8840_v41, 1 }
  0x65   :  { %v8857_v9 = vcombine.low %v2397_v51, %v2398_v20  ;;  %v8037_v7 = vld [vmem:[#allocation2 + $0x80] ss:$0 sps:$4 sm:$0x11]   ;;  %v2865_v5 = vor.u32 %v2864_v59, %v2860_v49  ;;  %v3333_v56 = vsel %vm2075_vm3, %v3331_v52, %v3332_v38  ;;  %v2484_v19 = vld [vmem:[#allocation2 + $0x78] sm:$0xe]  ;;  %v8871_v54 = vmul.f32 %v8778_v37, %v7400_v26 }
  0x66   :  { %v1166_v22 = vld [vmem:[#allocation2 + $0x78] sm:$0xf]  ;;  %1071 = vst.msk [vmem:[#allocation2 + $0x84] sm:$0xf] %vm1036_vm0, %v7215_v18  ;;  %v1645_v14 = vor.u32 %v1644_v62, %v1640_v1  ;;  %v2879_v42 = vshll.u32 %v8037_v7, 16  ;;  %v6863_v27 = vcombine.low %v2484_v19, %v2398_v20  ;;  %v3335_v4 = vrot.slane %v8037_v7, 1 }
  0x67   :  { %11178 = vst [vmem:[#allocation5_spill] sm:$0xff] %v8857_v9  ;;  %v2872_v13 = vshrl.u32 %v8857_v9, 16  ;;  %v2874_v36 = vshll.u32 %v8857_v9, 16  ;;  %v1167_v57 = vld [vmem:[#allocation2 + $0x7c] sm:$0xf]  ;;  %v2870_v53 = vsel %vm1530_vm4, %v2865_v5, %v2869_v35  ;;  %v590_v52 = vsel %vm355_vm2, %v387_v12, 0.0 }
  0x68   :  { %v8868_v49 = vld [vmem:[#allocation2 + $0x80] ss:$0 sps:$4 sm:$0x11]   ;;  %3163 = vrot.lane.b32.xlu1 %v2870_v53, %s8275_s14  ;;  %v1650_v41 = vsel %vm1530_vm4, %v1645_v14, %v1649_v6  ;;  %v2881_v1 = vrot.slane %v2879_v42, 1  ;;  %v8875_v23 = vcombine.low %v1166_v22, %v1167_v57  ;;  %v1252_v32 = vld [vmem:[#allocation2 + $0x78] sm:$0xe]  ;;  %v7217_v20 = vpack.c.bf16 %v590_v52, %v590_v52 }
  0x69   :  { %v2876_v28 = vrot.slane %v2874_v36, 1  ;;  %1933 = vrot.lane.b32.xlu0 %v1650_v41, %s8275_s14  ;;  %v3334_v55 = vrot.slane %v6863_v27, 1  ;;  %v1659_v51 = vshll.u32 %v8868_v49, 16  ;;  %v6768_v26 = vcombine.low %v1252_v32, %v1167_v57  ;;  %v7486_v52 = vld [vmem:[%s11145_s0 + $0x70] sm:$0xff]  }
  0x6a   :  { %11179 = vst [vmem:[#allocation6_spill] sm:$0xff] %v8875_v23  ;;  %v1652_v59 = vshrl.u32 %v8875_v23, 16  ;;  %v1654_v35 = vshll.u32 %v8875_v23, 16  ;;  %v2400_v25 = vld [vmem:[#allocation2 + $0x88] sm:$0xf]  ;;  %v2105_v62 = vsel %vm2075_vm3, %v2103_v10, %v2104_v15  ;;  %v2107_v5 = vrot.slane %v8868_v49, 1 }
  0x6b   :  { %v2877_v38 = vor.u32 %v2876_v28, %v2872_v13  ;;  %v1169_v18 = vld [vmem:[#allocation2 + $0x88] sm:$0xf]  ;;  %v1661_v6 = vrot.slane %v1659_v51, 1  ;;  %v8885_v7 = vrot.slane %v6768_v26, 1  ;;  %v3336_v12 = vsel %vm2075_vm3, %v3334_v55, %v3335_v4  ;;  %1073 = vst.msk [vmem:[#allocation2 + $0x8c] sm:$0x1] %vm1039_vm1, %v7217_v20 }
  0x6c   :  { %2188 = vrot.lane.b32.xlu1 %v8820_v60, %s8274_s11  ;;  %v1656_v19 = vrot.slane %v1654_v35, 1  ;;  %v389_v13 = vrot.slane %v8824_v50, 7  ;;  %v390_v36 = vrot.slane %v8828_v24, 7  ;;  %v8902_v57 = vadd.f32 %v8804_v43, %v8847_v48 }
  0x6d   :  { %v2882_v2 = vsel %vm1530_vm4, %v2877_v38, %v2881_v1  ;;  %v2399_v22 = vld [vmem:[#allocation2 + $0x84] sm:$0xf]  ;;  %vm6525_vm9 = vcmask 519168  }
  0x6e   :  { %v1168_v14 = vld [vmem:[#allocation2 + $0x84] sm:$0xf]  ;;  %3165 = vrot.lane.b32.xlu0 %v2882_v2, %s8275_s14  ;;  %v8895_v10 = vcombine.low %v2399_v22, %v2400_v25  ;;  %v1657_v53 = vor.u32 %v1656_v19, %v1652_v59  ;;  %v559_v27 = vsel %vm355_vm2, 0.0, %v389_v13  ;;  %v391_v48 = vsel %vm355_vm2, %v389_v13, %v390_v36 }
  0x6f   :  { %v8897_v15 = vcombine.low %v1168_v14, %v1169_v18  ;;  %v2485_v60 = vld [vmem:[#allocation2 + $0x84] sm:$0xe]  ;;  %v591_v55 = vsel %vm355_vm2, %v390_v36, 0.0  ;;  %v7218_v51 = vpack.c.bf16 %v559_v27, %v559_v27  ;;  %v7219_v59 = vpack.c.bf16 %v391_v48, %v391_v48 }
  0x70   :  { %11180 = vst [vmem:[#allocation7_spill] sm:$0xff] %v8895_v10  ;;  %v1253_v42 = vld [vmem:[#allocation2 + $0x84] sm:$0xe]  ;;  %v6864_v4 = vcombine.low %v2485_v60, %v2400_v25  ;;  %v2884_v50 = vshrl.u32 %v8895_v10, 16  ;;  %v2886_v28 = vshll.u32 %v8895_v10, 16  ;;  %3419 = vrot.lane.b32.xlu1 %v3333_v56, %s8274_s11  ;;  %v1662_v24 = vsel %vm1530_vm4, %v1657_v53, %v1661_v6 }
  0x71   :  { %11181 = vst [vmem:[#allocation8_spill] sm:$0xff] %v8897_v15  ;;  %v6769_v41 = vcombine.low %v1253_v42, %v1169_v18  ;;  %v1664_v1 = vshrl.u32 %v8897_v15, 16  ;;  %v1666_v32 = vshll.u32 %v8897_v15, 16  ;;  %v7220_v35 = vpack.c.bf16 %v591_v55, %v591_v55  ;;  %1074 = vst.msk [vmem:[#allocation2 + $0x90] sm:$0xf] %vm1036_vm0, %v7218_v51 }
  0x72   :  { %2190 = vrot.lane.b32.xlu0 %v2105_v62, %s8274_s11  ;;  %v2888_v26 = vrot.slane %v2886_v28, 1  ;;  %v3337_v56 = vrot.slane %v6864_v4, 1  ;;  %v392_v25 = vrot.slane %v8844_v46, 7  ;;  %v393_v18 = vrot.slane %v8860_v34, 7  ;;  %1075 = vst.msk [vmem:[#allocation2 + $0x94] sm:$0xf] %vm1036_vm0, %v7219_v59 }
  0x73   :  { %v1668_v38 = vrot.slane %v1666_v32, 1  ;;  %v2109_v20 = vrot.slane %v6769_v41, 1  ;;  %v8042_v6 = vld [vmem:[#allocation2 + $0x8c] ss:$0 sps:$4 sm:$0x11]   ;;  %v254_v62 = vadd.f32 %v8804_v43, %v8871_v54  ;;  %v395_v19 = vrot.slane %v8902_v57, 7 }
  0x74   :  { %v2889_v2 = vor.u32 %v2888_v26, %v2884_v50  ;;  %1076 = vst.msk [vmem:[#allocation2 + $0x98] sm:$0x1] %vm1039_vm1, %v7220_v35  ;;  %v7403_v22 = vunpack.c.l.bf16 %v7486_v52  ;;  %3421 = vrot.lane.b32.xlu1 %v3336_v12, %s8274_s11  ;;  %v8044_v14 = vld [vmem:[#allocation2 + $0x8c] ss:$0 sps:$4 sm:$0x11]   ;;  %v394_v46 = vsel %vm355_vm2, %v392_v25, %v393_v18  ;;  %v560_v34 = vsel %vm355_vm2, 0.0, %v392_v25 }
  0x75   :  { %v1669_v13 = vor.u32 %v1668_v38, %v1664_v1  ;;  %v7404_v36 = vunpack.c.h.bf16 %v7486_v52  ;;  %v2891_v60 = vshll.u32 %v8042_v6, 16  ;;  %v3338_v42 = vrot.slane %v8042_v6, 1  ;;  %v7487_v54 = vld [vmem:[%s11145_s0 + $0x78] sm:$0xff]  }
  0x76   :  { %1935 = vrot.lane.b32.xlu0 %v1662_v24, %s8275_s14  ;;  %v592_v53 = vsel %vm355_vm2, %v393_v18, 0.0  ;;  %v7221_v27 = vpack.c.bf16 %v560_v34, %v560_v34  ;;  %v1671_v57 = vshll.u32 %v8044_v14, 16  ;;  %v2110_v12 = vrot.slane %v8044_v14, 1 }
  0x77   :  { %v7222_v4 = vpack.c.bf16 %v394_v46, %v394_v46  ;;  %v7223_v41 = vpack.c.bf16 %v592_v53, %v592_v53  ;;  %v2893_v50 = vrot.slane %v2891_v60, 1  ;;  %v2108_v28 = vsel %vm2075_vm3, %v8885_v7, %v2107_v5 }
  0x78   :  { %1077 = vst.msk [vmem:[#allocation2 + $0x9c] sm:$0xf] %vm1036_vm0, %v7221_v27  ;;  %v396_v1 = vrot.slane %v254_v62, 7  ;;  %v561_v32 = vsel %vm355_vm2, 0.0, %v395_v19  ;;  %v1673_v24 = vrot.slane %v1671_v57, 1  ;;  %v3339_v48 = vsel %vm2075_vm3, %v3337_v56, %v3338_v42 }
  0x79   :  { %1078 = vst.msk [vmem:[#allocation2 + $0xa0] sm:$0xf] %vm1036_vm0, %v7222_v4  ;;  %v7224_v55 = vpack.c.bf16 %v561_v32, %v561_v32  ;;  %v184_v51 = vmul.f32 %v8778_v37, %v7403_v22  ;;  %v2894_v49 = vsel %vm1530_vm4, %v2889_v2, %v2893_v50  ;;  %v2401_v52 = vld [vmem:[#allocation2 + $0x90] sm:$0xf]  ;;  %v8945_v7 = vsel %vm2075_vm3, %v2109_v20, %v2110_v12  ;;  %v2402_v56 = vld [vmem:[#allocation2 + $0x94] sm:$0xf] }
  0x7a   :  { %1079 = vst.msk [vmem:[#allocation2 + $0xa4] sm:$0x1] %vm1039_vm1, %v7223_v41  ;;  %v2486_v5 = vld [vmem:[#allocation2 + $0x90] sm:$0xe]  ;;  %v397_v38 = vsel %vm355_vm2, %v395_v19, %v396_v1  ;;  %v7407_v59 = vunpack.c.l.bf16 %v7487_v54  ;;  %3167 = vrot.lane.b32.xlu1 %v2894_v49, %s8275_s14  ;;  %v1674_v35 = vsel %vm1530_vm4, %v1669_v13, %v1673_v24  ;;  %v1171_v25 = vld [vmem:[#allocation2 + $0x94] sm:$0xf]  ;;  %v185_v6 = vmul.f32 %v8778_v37, %v7404_v36 }
  0x7b   :  { %v1170_v26 = vld [vmem:[#allocation2 + $0x90] sm:$0xf]  ;;  %v7225_v18 = vpack.c.bf16 %v397_v38, %v397_v38  ;;  %1080 = vst.msk [vmem:[#allocation2 + $0xa8] sm:$0xf] %vm1036_vm0, %v7224_v55  ;;  %v7408_v2 = vunpack.c.h.bf16 %v7487_v54  ;;  %1937 = vrot.lane.b32.xlu0 %v1674_v35, %s8275_s14  ;;  %v8953_v20 = vcombine.low %v2401_v52, %v2402_v56  ;;  %v6865_v22 = vcombine.low %v2486_v5, %v2402_v56  ;;  %v8976_v32 = vld [vmem:[%s11145_s0 + $0x80] sm:$0xff]  }
  0x7c   :  { %v8046_v62 = vld [vmem:[#allocation2 + $0x98] ss:$0 sps:$4 sm:$0x11]   ;;  %v8955_v19 = vcombine.low %v1170_v26, %v1171_v25  ;;  %v593_v14 = vsel %vm355_vm2, %v396_v1, 0.0  ;;  %v1254_v13 = vld [vmem:[#allocation2 + $0x90] sm:$0xe]  ;;  %v8962_v60 = vadd.f32 %v8804_v43, %v184_v51  ;;  %v186_v36 = vmul.f32 %v8778_v37, %v7407_v59 }
  0x7d   :  { %11182 = vst [vmem:[#allocation9_spill] sm:$0xff] %v8953_v20  ;;  %v8958_v46 = vld [vmem:[#allocation2 + $0x98] ss:$0 sps:$4 sm:$0x11]   ;;  %v7226_v34 = vpack.c.bf16 %v593_v14, %v593_v14  ;;  %1081 = vst.msk [vmem:[#allocation2 + $0xac] sm:$0xf] %vm1036_vm0, %v7225_v18  ;;  %v187_v42 = vmul.f32 %v8778_v37, %v7408_v2  ;;  %v6770_v49 = vcombine.low %v1254_v13, %v1171_v25 }
  0x7e   :  { %11183 = vst [vmem:[#allocation10_spill] sm:$0xff] %v8955_v19  ;;  %v2896_v53 = vshrl.u32 %v8953_v20, 16  ;;  %v2898_v27 = vshll.u32 %v8953_v20, 16  ;;  %v2903_v54 = vshll.u32 %v8046_v62, 16  ;;  %v3340_v57 = vrot.slane %v6865_v22, 1  ;;  %2192 = vrot.lane.b32.xlu1 %v2108_v28, %s8274_s11 }
  0x7f   :  { %v3341_v12 = vrot.slane %v8046_v62, 1  ;;  %v1676_v4 = vshrl.u32 %v8955_v19, 16  ;;  %v1678_v41 = vshll.u32 %v8955_v19, 16  ;;  %v1683_v50 = vshll.u32 %v8958_v46, 16  ;;  %v2403_v1 = vld [vmem:[#allocation2 + $0x9c] sm:$0xf] }
  0x80   :  { %1082 = vst.msk [vmem:[#allocation2 + $0xb0] sm:$0x1] %vm1039_vm1, %v7226_v34  ;;  %v2900_v24 = vrot.slane %v2898_v27, 1  ;;  %v2905_v55 = vrot.slane %v2903_v54, 1  ;;  %v2404_v51 = vld [vmem:[#allocation2 + $0xa0] sm:$0xf]  ;;  %v8979_v28 = vadd.f32 %v8804_v43, %v185_v6  ;;  %v8988_v62 = vadd.f32 %v8804_v43, %v186_v36 }
  0x81   :  { %v1680_v52 = vrot.slane %v1678_v41, 1  ;;  %v1685_v5 = vrot.slane %v1683_v50, 1  ;;  %v8981_v26 = vcombine.low %v2403_v1, %v2404_v51  ;;  %v8983_v38 = vld [vmem:[#allocation2 + $0xa4] ss:$0 sps:$4 sm:$0x11]   ;;  %v3342_v56 = vsel %vm2075_vm3, %v3340_v57, %v3341_v12 }
  0x82   :  { %v2901_v35 = vor.u32 %v2900_v24, %v2896_v53  ;;  %v1172_v18 = vld [vmem:[#allocation2 + $0x9c] sm:$0xf]  ;;  %v1173_v2 = vld [vmem:[#allocation2 + $0xa0] sm:$0xf]  ;;  %v8991_v25 = vadd.f32 %v8804_v43, %v187_v42  ;;  %3423 = vrot.lane.b32.xlu1 %v3339_v48, %s8274_s11  ;;  %v2915_v13 = vshll.u32 %v8983_v38, 16  ;;  %v2112_v36 = vrot.slane %v6770_v49, 1 }
  0x83   :  { %11184 = vst [vmem:[#allocation11_spill] sm:$0xff] %v8981_v26  ;;  %v1681_v6 = vor.u32 %v1680_v52, %v1676_v4  ;;  %v2908_v22 = vshrl.u32 %v8981_v26, 16  ;;  %v2910_v14 = vshll.u32 %v8981_v26, 16  ;;  %v8997_v34 = vld [vmem:[#allocation2 + $0xa4] ss:$0 sps:$4 sm:$0x11]   ;;  %v9000_v27 = vcombine.low %v1172_v18, %v1173_v2 }
  0x84   :  { %v2906_v53 = vsel %vm1530_vm4, %v2901_v35, %v2905_v55  ;;  %v2405_v54 = vld [vmem:[#allocation2 + $0xa8] sm:$0xf]  ;;  %v2406_v57 = vld [vmem:[#allocation2 + $0xac] sm:$0xf]  ;;  %v2917_v12 = vrot.slane %v2915_v13, 1  ;;  %v1695_v4 = vshll.u32 %v8997_v34, 16 }
  0x85   :  { %11185 = vst [vmem:[#allocation12_spill] sm:$0xff] %v9000_v27  ;;  %3169 = vrot.lane.b32.xlu0 %v2906_v53, %s8275_s14  ;;  %v2912_v48 = vrot.slane %v2910_v14, 1  ;;  %v2113_v41 = vrot.slane %v8958_v46, 1  ;;  %v2487_v50 = vld [vmem:[#allocation2 + $0x9c] sm:$0xe]  ;;  %v1688_v1 = vshrl.u32 %v9000_v27, 16  ;;  %v9008_v55 = vcombine.low %v2405_v54, %v2406_v57 }
  0x86   :  { %v1690_v24 = vshll.u32 %v9000_v27, 16  ;;  %v1255_v49 = vld [vmem:[#allocation2 + $0x9c] sm:$0xe]  ;;  %3425 = vrot.lane.b32.xlu1 %v3342_v56, %s8274_s11  ;;  %v1686_v35 = vsel %vm1530_vm4, %v1681_v6, %v1685_v5  ;;  %v6866_v13 = vcombine.low %v2487_v50, %v2404_v51  ;;  %v3344_v53 = vrot.slane %v8983_v38, 1  ;;  %v2488_v54 = vld [vmem:[#allocation2 + $0xa8] sm:$0xe] }
  0x87   :  { %11186 = vst [vmem:[#allocation13_spill] sm:$0xff] %v9008_v55  ;;  %v2913_v18 = vor.u32 %v2912_v48, %v2908_v22  ;;  %v8055_v14 = vld [vmem:[#allocation2 + $0xb0] ss:$0 sps:$4 sm:$0x11]   ;;  %v2920_v42 = vshrl.u32 %v9008_v55, 16  ;;  %v2922_v59 = vshll.u32 %v9008_v55, 16  ;;  %v6771_v27 = vcombine.low %v1255_v49, %v1173_v2 }
  0x88   :  { %v1692_v46 = vrot.slane %v1690_v24, 1  ;;  %v1697_v56 = vrot.slane %v1695_v4, 1  ;;  %v2927_v26 = vshll.u32 %v8055_v14, 16  ;;  %v3343_v5 = vrot.slane %v6866_v13, 1  ;;  %v1174_v6 = vld [vmem:[#allocation2 + $0xa8] sm:$0xf]  ;;  %v2173_v24 = vpop.permute.xlu1 %2172  ;;  %v1916_v4 = vpop.permute.xlu0 %1915 }
  0x89   :  { %2194 = vrot.lane.b32.xlu0 %v8945_v7, %s8274_s11  ;;  %v2918_v52 = vsel %vm1530_vm4, %v2913_v18, %v2917_v12  ;;  %v2114_v51 = vsel %vm2075_vm3, %v2112_v36, %v2113_v41  ;;  %v2924_v38 = vrot.slane %v2922_v59, 1  ;;  %v6867_v48 = vcombine.low %v2488_v54, %v2406_v57  ;;  %v1175_v50 = vld [vmem:[#allocation2 + $0xac] sm:$0xf]  ;;  %v9024_v12 = vld [vmem:[#allocation2 + $0xb0] ss:$0 sps:$4 sm:$0x11]  }
  0x8a   :  { %v1693_v22 = vor.u32 %v1692_v46, %v1688_v1  ;;  %3171 = vrot.lane.b32.xlu1 %v2918_v52, %s8275_s14  ;;  %v2929_v2 = vrot.slane %v2927_v26, 1  ;;  %v2116_v49 = vrot.slane %v8997_v34, 1  ;;  %v3347_v55 = vrot.slane %v8055_v14, 1 }
  0x8b   :  { %v9022_v7 = vcombine.low %v1174_v6, %v1175_v50  ;;  %v2925_v18 = vor.u32 %v2924_v38, %v2920_v42  ;;  %v3345_v1 = vsel %vm2075_vm3, %v3343_v5, %v3344_v53  ;;  %v2115_v13 = vrot.slane %v6771_v27, 1  ;;  %v1256_v27 = vld [vmem:[#allocation2 + $0xa8] sm:$0xe] }
  0x8c   :  { %v3346_v36 = vrot.slane %v6867_v48, 1  ;;  %v1698_v59 = vsel %vm1530_vm4, %v1693_v22, %v1697_v56  ;;  %v1707_v26 = vshll.u32 %v9024_v12, 16  ;;  %v399_v34 = vrot.slane %v8979_v28, 7  ;;  %v4388_v48 = vld [vmem:[#allocation2 + $0x18] sm:$0xf] }
  0x8d   :  { %11187 = vst [vmem:[#allocation14_spill] sm:$0xff] %v9022_v7  ;;  %1939 = vrot.lane.b32.xlu0 %v1686_v35, %s8275_s14  ;;  %v1702_v57 = vshll.u32 %v9022_v7, 16  ;;  %v2930_v41 = vsel %vm1530_vm4, %v2925_v18, %v2929_v2  ;;  %v1700_v52 = vshrl.u32 %v9022_v7, 16  ;;  %v11188_v42 = vrot.slane %v8962_v60, 7  ;;  %v9047_v2 = vld [vmem:[#allocation2 + $0x1c] sm:$0xf] }
  0x8e   :  { %2196 = vrot.lane.b32.xlu1 %v2114_v51, %s8274_s11  ;;  %v3348_v35 = vsel %vm2075_vm3, %v3346_v36, %v3347_v55  ;;  %v594_v28 = vsel %vm355_vm2, %v399_v34, 0.0  ;;  %v2238_v22 = vsel %vm2236_vm5, %v8370_v47, %v1916_v4  ;;  %v1709_v55 = vrot.slane %v1707_v26, 1  ;;  %v9052_v18 = vld [vmem:[#allocation2 + $0x20] ss:$0 sps:$4 sm:$0x11]  }
  0x8f   :  { %v562_v14 = vsel %vm355_vm2, 0.0, %v11188_v42  ;;  %v1704_v53 = vrot.slane %v1702_v57, 1  ;;  %v11189_v46 = vmov %v11188_v42  ;;  %v7229_v6 = vpack.c.bf16 %v594_v28, %v594_v28  ;;  %v9045_v38 = vpop.permute.xlu1 %3403  ;;  %v9060_v57 = vld [vmem:[#allocation2 + $0x2c] ss:$0 sps:$4 sm:$0x11]  }
  0x90   :  { %v400_v54 = vsel %vm355_vm2, %v11189_v46, %v399_v34  ;;  %v7227_v56 = vpack.c.bf16 %v562_v14, %v562_v14  ;;  %v6772_v60 = vcombine.low %v1256_v27, %v1175_v50  ;;  %v9050_v51 = vpop.permute.xlu0 %2174  ;;  %v2303_v47 = vsel %vm2301_vm6, %v2238_v22, %v2173_v24  ;;  %v9082_v46 = vld [vmem:[#allocation2 + $0x28] sm:$0xf] }
  0x91   :  { %v7228_v5 = vpack.c.bf16 %v400_v54, %v400_v54  ;;  %1941 = vrot.lane.b32.xlu0 %v1698_v59, %s8275_s14  ;;  %v1705_v36 = vor.u32 %v1704_v53, %v1700_v52  ;;  %1085 = vst.msk [vmem:[#allocation2 + $0xbc] sm:$0x1] %vm1039_vm1, %v7229_v6  ;;  %v401_v4 = vrot.slane %v8988_v62, 7  ;;  %v402_v59 = vrot.slane %v8991_v25, 7  ;;  %7706 = vmatprep.mubr.msk.bf16.mxu0 %vm3644_vm7, %v2303_v47  ;;  %v7489_v62 = vld [vmem:[%s11145_s0 + $0x88] sm:$0xff]  }
  0x92   :  { %1083 = vst.msk [vmem:[#allocation2 + $0xb4] sm:$0xf] %vm1036_vm0, %v7227_v56  ;;  %3427 = vrot.lane.b32.xlu1 %v3345_v1, %s8274_s11  ;;  %v2118_v50 = vrot.slane %v6772_v60, 1  ;;  %v2119_v26 = vrot.slane %v9024_v12, 1  ;;  %v11190_v34 = vunpack.c.l.bf16 %v8976_v32  ;;  %v11191_v42 = vunpack.c.h.bf16 %v8976_v32  ;;  %v4390_v53 = vld [vmem:[#allocation2 + $0x24] sm:$0xf] }
  0x93   :  { %1084 = vst.msk [vmem:[#allocation2 + $0xb8] sm:$0xf] %vm1036_vm0, %v7228_v5  ;;  %v403_v25 = vsel %vm355_vm2, %v401_v4, %v402_v59  ;;  %v563_v1 = vsel %vm355_vm2, 0.0, %v401_v4  ;;  %v595_v14 = vsel %vm355_vm2, %v402_v59, 0.0  ;;  %v9077_v27 = vpop.permute.xlu1 %3405  ;;  %v9080_v12 = vcombine.low %v4388_v48, %v9047_v2  ;;  %v9092_v47 = vld [vmem:[#allocation2 + $0x18] sm:$0xe] }
  0x94   :  { %v188_v52 = vmul.f32 %v8778_v37, %v11190_v34  ;;  %v189_v24 = vmul.f32 %v8778_v37, %v11191_v42  ;;  %v2117_v32 = vsel %vm2075_vm3, %v2115_v13, %v2116_v49  ;;  %v7230_v54 = vpack.c.bf16 %v563_v1, %v563_v1  ;;  %v9094_v4 = vld [vmem:[#allocation2 + $0x24] sm:$0xe] }
  0x95   :  { %11192 = vst [vmem:[#allocation15_spill] sm:$0xff] %v9080_v12  ;;  %3173 = vrot.lane.b32.xlu0 %v2930_v41, %s8275_s14  ;;  %v7231_v28 = vpack.c.bf16 %v403_v25, %v403_v25  ;;  %v7232_v56 = vpack.c.bf16 %v595_v14, %v595_v14  ;;  %v1710_v5 = vsel %vm1530_vm4, %v1705_v36, %v1709_v55  ;;  %v9087_v6 = vpop.permute.xlu0 %2178  ;;  %v4775_v48 = vshll.u32 %v9080_v12, 16 }
  0x96   :  { %v259_v22 = vadd.f32 %v8804_v43, %v188_v52  ;;  %v260_v60 = vadd.f32 %v8804_v43, %v189_v24  ;;  %3429 = vrot.lane.b32.xlu1 %v3348_v35, %s8274_s11  ;;  %1086 = vst.msk [vmem:[#allocation2 + $0xc0] sm:$0xf] %vm1036_vm0, %v7230_v54  ;;  %v4773_v49 = vshrl.u32 %v9080_v12, 16  ;;  %v4780_v13 = vshll.u32 %v9052_v18, 16 }
  0x97   :  { %1087 = vst.msk [vmem:[#allocation2 + $0xc4] sm:$0xf] %vm1036_vm0, %v7231_v28  ;;  %v7415_v41 = vunpack.c.l.bf16 %v7489_v62  ;;  %v7416_v55 = vunpack.c.h.bf16 %v7489_v62  ;;  %v4777_v34 = vrot.slane %v4775_v48, 1  ;;  %v9105_v24 = vsel %vm2075_vm3, %v2118_v50, %v2119_v26  ;;  %v9107_v25 = vpop.permute.xlu1 %2176 }
  0x98   :  { %1088 = vst.msk [vmem:[#allocation2 + $0xc8] sm:$0x1] %vm1039_vm1, %v7232_v56  ;;  %v404_v36 = vrot.slane %v259_v22, 7  ;;  %v405_v59 = vrot.slane %v260_v60, 7  ;;  %v9114_v62 = vcombine.low %v4390_v53, %v9082_v46  ;;  %v4782_v23 = vrot.slane %v4780_v13, 1 }
  0x99   :  { %2198 = vrot.lane.b32.xlu0 %v2117_v32, %s8274_s11  ;;  %v2407_v35 = vld [vmem:[#allocation2 + $0xb4] sm:$0xf]  ;;  %v190_v1 = vmul.f32 %v8778_v37, %v7415_v41  ;;  %v9111_v14 = vmul.f32 %v8778_v37, %v7416_v55  ;;  %v8061_v28 = vld [vmem:[#allocation2 + $0xbc] ss:$0 sps:$4 sm:$0x11]   ;;  %v3148_v32 = vpop.permute.xlu0 %3147  ;;  %v9122_v55 = vor.u32 %v4777_v34, %v4773_v49 }
  0x9a   :  { %v2408_v42 = vld [vmem:[#allocation2 + $0xb8] sm:$0xf]  ;;  %v1176_v56 = vld [vmem:[#allocation2 + $0xb4] sm:$0xf]  ;;  %v406_v22 = vsel %vm355_vm2, %v404_v36, %v405_v59  ;;  %v564_v50 = vsel %vm355_vm2, 0.0, %v404_v36  ;;  %v2939_v12 = vshll.u32 %v8061_v28, 16  ;;  %v3468_v49 = vsel %vm2236_vm5, %v8421_v39, %v3148_v32 }
  0x9b   :  { %v9116_v54 = vcombine.low %v2407_v35, %v2408_v42  ;;  %v1177_v60 = vld [vmem:[#allocation2 + $0xb8] sm:$0xf]  ;;  %v2489_v48 = vld [vmem:[#allocation2 + $0xb4] sm:$0xe]  ;;  %v7233_v41 = vpack.c.bf16 %v564_v50, %v564_v50  ;;  %v7234_v37 = vpack.c.bf16 %v406_v22, %v406_v22  ;;  %v3350_v19 = vrot.slane %v8061_v28, 1  ;;  %v9138_v22 = vpop.permute.xlu1 %3407 }
  0x9c   :  { %v9128_v7 = vcombine.low %v1176_v56, %v1177_v60  ;;  %v9130_v36 = vld [vmem:[#allocation2 + $0xbc] ss:$0 sps:$4 sm:$0x11]   ;;  %v6868_v26 = vcombine.low %v2489_v48, %v2408_v42  ;;  %v1257_v50 = vld [vmem:[#allocation2 + $0xb4] sm:$0xe]  ;;  %v596_v34 = vsel %vm355_vm2, %v405_v59, 0.0  ;;  %v261_v0 = vadd.f32 %v8804_v43, %v190_v1 }
  0x9d   :  { %11193 = vst [vmem:[#allocation16_spill] sm:$0xff] %v9116_v54  ;;  %v2932_v35 = vshrl.u32 %v9116_v54, 16  ;;  %v2934_v52 = vshll.u32 %v9116_v54, 16  ;;  %1943 = vrot.lane.b32.xlu0 %v1710_v5, %s8275_s14  ;;  %1095 = vst.msk [vmem:[#allocation2 + $0xe4] sm:$0xf] %vm1036_vm0, %v7233_v41  ;;  %v2941_v53 = vrot.slane %v2939_v12, 1  ;;  %v3150_v28 = vpop.permute.xlu0 %3149  ;;  %v6773_v32 = vcombine.low %v1257_v50, %v1177_v60 }
  0x9e   :  { %11194 = vst [vmem:[#allocation17_spill] sm:$0xff] %v9128_v7  ;;  %1096 = vst.msk [vmem:[#allocation2 + $0xe8] sm:$0xf] %vm1036_vm0, %v7234_v37  ;;  %v1712_v54 = vshrl.u32 %v9128_v7, 16  ;;  %v1714_v5 = vshll.u32 %v9128_v7, 16  ;;  %v1719_v48 = vshll.u32 %v9130_v36, 16  ;;  %v7235_v59 = vpack.c.bf16 %v596_v34, %v596_v34 }
  0x9f   :  { %v2936_v56 = vrot.slane %v2934_v52, 1  ;;  %v2409_v42 = vld [vmem:[#allocation2 + $0xc0] sm:$0xf]  ;;  %v2410_v20 = vld [vmem:[#allocation2 + $0xc4] sm:$0xf]  ;;  %v3349_v39 = vrot.slane %v6868_v26, 1  ;;  %v9149_v17 = vpop.permute.xlu1 %3409 }
  0xa0   :  { %v1716_v41 = vrot.slane %v1714_v5, 1  ;;  %v9143_v10 = vcombine.low %v2409_v42, %v2410_v20  ;;  %v8068_v37 = vld [vmem:[#allocation2 + $0xc8] ss:$0 sps:$4 sm:$0x11]   ;;  %v1721_v52 = vrot.slane %v1719_v48, 1  ;;  %v2122_v9 = vrot.slane %v9130_v36, 1 }
  0xa1   :  { %v2937_v15 = vor.u32 %v2936_v56, %v2932_v35  ;;  %v3351_v12 = vsel %vm2075_vm3, %v3349_v39, %v3350_v19  ;;  %v2490_v7 = vld [vmem:[#allocation2 + $0xc0] sm:$0xe]  ;;  %1097 = vst.msk [vmem:[#allocation2 + $0xec] sm:$0x1] %vm1039_vm1, %v7235_v59  ;;  %v1920_v13 = vpop.permute.xlu0 %1919  ;;  %v2951_v19 = vshll.u32 %v8068_v37, 16  ;;  %v2121_v34 = vrot.slane %v6773_v32, 1 }
  0xa2   :  { %v1717_v60 = vor.u32 %v1716_v41, %v1712_v54  ;;  %v2944_v35 = vshrl.u32 %v9143_v10, 16  ;;  %v2946_v50 = vshll.u32 %v9143_v10, 16  ;;  %v6869_v36 = vcombine.low %v2490_v7, %v2410_v20 }
  0xa3   :  { %v2942_v26 = vsel %vm1530_vm4, %v2937_v15, %v2941_v53  ;;  %v3353_v56 = vrot.slane %v8068_v37, 1  ;;  %v3532_v15 = vsel %vm2301_vm6, %v3468_v49, %v9045_v38  ;;  %v3470_v54 = vsel %vm2236_vm5, %v8467_v11, %v3150_v28 }
  0xa4   :  { %3175 = vrot.lane.b32.xlu1 %v2942_v26, %s8275_s14  ;;  %v1722_v5 = vsel %vm1530_vm4, %v1717_v60, %v1721_v52  ;;  %v2948_v42 = vrot.slane %v2946_v50, 1  ;;  %v2411_v1 = vld [vmem:[#allocation2 + $0xe4] sm:$0xf]  ;;  %v2953_v53 = vrot.slane %v2951_v19, 1  ;;  %v3352_v39 = vrot.slane %v6869_v36, 1  ;;  %7630 = vmatprep.mubr.msk.bf16.mxu1 %vm3644_vm7, %v3532_v15 }
  0xa5   :  { %v2412_v48 = vld [vmem:[#allocation2 + $0xe8] sm:$0xf]  ;;  %1945 = vrot.lane.b32.xlu0 %v1722_v5, %s8275_s14  ;;  %v262_v20 = vadd.f32 %v8804_v43, %v9111_v14  ;;  %v2491_v7 = vld [vmem:[#allocation2 + $0xe4] sm:$0xe]  ;;  %v9168_v41 = vsel %vm1530_vm4, %v9122_v55, %v4782_v23  ;;  %v407_v38 = vrot.slane %v261_v0, 7  ;;  %v3534_v11 = vsel %vm2301_vm6, %v3470_v54, %v9077_v27  ;;  %v1922_v43 = vpop.permute.xlu0 %1921  ;;  %v1918_v14 = vpop.permute.xlu1 %1917 }
  0xa6   :  { %v9161_v59 = vcombine.low %v2411_v1, %v2412_v48  ;;  %v2949_v32 = vor.u32 %v2948_v42, %v2944_v35  ;;  %v6870_v52 = vcombine.low %v2491_v7, %v2412_v48  ;;  %7631 = vmatmul.mubr.msk.bf16.vlgmr.msra.gmra.mrb[0].mxu1 %vm3644_vm7, %v3534_v11  ;;  %v2123_v0 = vsel %vm2075_vm3, %v2121_v34, %v2122_v9  ;;  %v8263_v9 = vld [vmem:[%s11148_s1 + $0x8] sm:$0xff]   ;;  %v4392_v54 = vld [vmem:[#allocation2 + $0x30] sm:$0xf] }
  0xa7   :  { %v408_v37 = vrot.slane %v262_v20, 7  ;;  %v3354_v55 = vsel %vm2075_vm3, %v3352_v39, %v3353_v56  ;;  %v565_v26 = vsel %vm355_vm2, 0.0, %v407_v38  ;;  %v2242_v5 = vsel %vm2236_vm5, %v8495_v44, %v1920_v13  ;;  %v7490_v7 = vld [vmem:[%s11145_s0 + $0x90] sm:$0xff]  }
  0xa8   :  { %2200 = vrot.lane.b32.xlu1 %v9105_v24, %s8274_s11  ;;  %v2956_v49 = vshrl.u32 %v9161_v59, 16  ;;  %v2958_v28 = vshll.u32 %v9161_v59, 16  ;;  %v2954_v23 = vsel %vm1530_vm4, %v2949_v32, %v2953_v53  ;;  %v8075_v27 = vld [vmem:[#allocation2 + $0xec] ss:$0 sps:$4 sm:$0x11]   ;;  %v8262_v24 = vld [vmem:[%s11148_s1] sm:$0xff]   ;;  %v7236_v19 = vpack.c.bf16 %v565_v26, %v565_v26 }
  0xa9   :  { %7852 = vmatpush3.bf16.msra.mxu1 %v8262_v24  ;;  %3177 = vrot.lane.b32.xlu0 %v2954_v23, %s8275_s14  ;;  %v409_v35 = vsel %vm355_vm2, %v407_v38, %v408_v37  ;;  %v597_v50 = vsel %vm355_vm2, %v408_v37, 0.0  ;;  %v2963_v34 = vshll.u32 %v8075_v27, 16  ;;  %v3355_v1 = vrot.slane %v6870_v52, 1  ;;  %v9195_v53 = vld [vmem:[#allocation2 + $0x34] sm:$0xf] }
  0xaa   :  { %v2960_v60 = vrot.slane %v2958_v28, 1  ;;  %7847 = vmatprep.subr.bf16.mxu1 %v8263_v9  ;;  %v7237_v36 = vpack.c.bf16 %v409_v35, %v409_v35  ;;  %v7238_v56 = vpack.c.bf16 %v597_v50, %v597_v50  ;;  %1098 = vst.msk [vmem:[#allocation2 + $0xf0] sm:$0xf] %vm1036_vm0, %v7236_v19  ;;  %v3356_v48 = vrot.slane %v8075_v27, 1  ;;  %v8264_v28 = vld [vmem:[%s11148_s1 + $0x10] sm:$0xff]   ;;  %v8266_v35 = vld [vmem:[%s11148_s1 + $0x18] sm:$0xff]  }
  0xab   :  { %v4787_v15 = vshll.u32 %v9114_v62, 16  ;;  %v2965_v39 = vrot.slane %v2963_v34, 1  ;;  %v11195_v44 = vcombine.low %v9092_v47, %v9047_v2  ;;  %v9205_v20 = vsel %vm2236_vm5, %v8479_v21, %v1922_v43  ;;  %v3154_v47 = vpop.permute.xlu0 %3153  ;;  %v3152_v21 = vpop.permute.xlu1 %3151 }
  0xac   :  { %3431 = vrot.lane.b32.xlu1 %v3351_v12, %s8274_s11  ;;  %v2961_v42 = vor.u32 %v2960_v60, %v2956_v49  ;;  %1099 = vst.msk [vmem:[#allocation2 + $0xf4] sm:$0xf] %vm1036_vm0, %v7237_v36  ;;  %v5317_v12 = vrot.slane %v9052_v18, 1  ;;  %v4785_v32 = vshrl.u32 %v9114_v62, 16  ;;  %v11196_v11 = vshll.u32 %v9060_v57, 16 }
  0xad   :  { %1100 = vst.msk [vmem:[#allocation2 + $0xf8] sm:$0x1] %vm1039_vm1, %v7238_v56  ;;  %v5316_v13 = vrot.slane %v11195_v44, 1  ;;  %7853 = vmatpush3.bf16.msra.mxu1 %v8263_v9  ;;  %2202 = vrot.lane.b32.xlu0 %v2123_v0, %s8274_s11  ;;  %v4789_v38 = vrot.slane %v4787_v15, 1  ;;  %v2240_v18 = vsel %vm2236_vm5, %v8429_v45, %v1918_v14  ;;  %v11197_v52 = vcombine.low %v9094_v4, %v9082_v46 }
  0xae   :  { %v9214_v2 = vrot.slane %v11196_v11, 1  ;;  %v9218_v49 = vld [vmem:[#allocation2 + $0x38] ss:$0 sps:$4 sm:$0x11]   ;;  %7848 = vmatprep.subr.bf16.mxu1 %v8264_v28  ;;  %v2966_v37 = vsel %vm1530_vm4, %v2961_v42, %v2965_v39  ;;  %v5320_v23 = vrot.slane %v9060_v57, 1  ;;  %v2305_v45 = vsel %vm2301_vm6, %v2240_v18, %v9050_v51 }
  0xaf   :  { %v5319_v43 = vrot.slane %v11197_v52, 1  ;;  %v3357_v14 = vsel %vm2075_vm3, %v3355_v1, %v3356_v48  ;;  %v9233_v0 = vsel %vm2075_vm3, %v5316_v13, %v5317_v12  ;;  %7707 = vmatmul.mubr.msk.bf16.vlgmr.msra.gmra.mrb[0].mxu0 %vm3644_vm7, %v2305_v45  ;;  %v2307_v27 = vsel %vm2301_vm6, %v2242_v5, %v9107_v25  ;;  %v9274_v5 = vld [vmem:[%s11147_s3] ss:$0 sm:$0xff]  ;;  %v1924_v48 = vpop.permute.xlu0 %1923 }
  0xb0   :  { %3433 = vrot.lane.b32.xlu1 %v3354_v55, %s8274_s11  ;;  %v7419_v26 = vunpack.c.l.bf16 %v7490_v7  ;;  %v3474_v46 = vsel %vm2236_vm5, %v8513_v63, %v3154_v47  ;;  %7710 = vmatprep.mubr.msk.bf16.mxu0 %vm3644_vm7, %v2307_v27  ;;  %v3472_v51 = vsel %vm2236_vm5, %v8506_v58, %v3152_v21  ;;  %v7420_v57 = vunpack.c.h.bf16 %v7490_v7  ;;  %v7491_v55 = vld [vmem:[%s11145_s0 + $0x98] sm:$0xff]   ;;  %v9253_v63 = vld [vmem:[%s11146_s2] ss:$0 sm:$0xff] }
  0xb1   :  { %v9244_v4 = vcombine.low %v4392_v54, %v9195_v53  ;;  %7854 = vmatpush3.bf16.msra.mxu1 %v8264_v28  ;;  %3179 = vrot.lane.b32.xlu0 %v2966_v37, %s8275_s14  ;;  %v4790_v25 = vor.u32 %v4789_v38, %v4785_v32  ;;  %v4804_v58 = vshll.u32 %v9218_v49, 16  ;;  %v3536_v60 = vsel %vm2301_vm6, %v3472_v51, %v9138_v22  ;;  %v2413_v50 = vld [vmem:[#allocation2 + $0xf0] sm:$0xf]  ;;  %v4394_v28 = vld [vmem:[#allocation2 + $0x3c] sm:$0xf]  ;;  %v8268_v37 = vld [vmem:[%s11148_s1 + $0x20] sm:$0xff]  }
  0xb2   :  { %v192_v24 = vmul.f32 %v9253_v63, %v7419_v26  ;;  %7849 = vmatprep.subr.bf16.mxu1 %v8266_v35  ;;  %v2492_v19 = vld [vmem:[#allocation2 + $0xf0] sm:$0xe]  ;;  %v9263_v9 = vsel %vm2075_vm3, %v5319_v43, %v5320_v23  ;;  %v193_v34 = vmul.f32 %v9253_v63, %v7420_v57  ;;  %7634 = vmatprep.mubr.msk.bf16.mxu1 %vm3644_vm7, %v3536_v60  ;;  %v7423_v54 = vunpack.c.l.bf16 %v7491_v55  ;;  %v9298_v57 = vld [vmem:[#allocation2 + $0x44] ss:$0 sps:$4 sm:$0x11]  }
  0xb3   :  { %v4797_v36 = vshrl.u32 %v9244_v4, 16  ;;  %v4799_v56 = vshll.u32 %v9244_v4, 16  ;;  %v2414_v22 = vld [vmem:[#allocation2 + $0xf4] sm:$0xf]  ;;  %v4806_v1 = vrot.slane %v4804_v58, 1  ;;  %v3538_v15 = vsel %vm2301_vm6, %v3474_v46, %v9149_v17 }
  0xb4   :  { %5156 = vrot.lane.b32.xlu1 %v9168_v41, %s8275_s14  ;;  %v263_v42 = vadd.f32 %v9274_v5, %v192_v24  ;;  %v9279_v39 = vcombine.low %v2413_v50, %v2414_v22  ;;  %v8081_v44 = vld [vmem:[#allocation2 + $0xf8] ss:$0 sps:$4 sm:$0x11]   ;;  %v6871_v13 = vcombine.low %v2492_v19, %v2414_v22  ;;  %v264_v41 = vadd.f32 %v9274_v5, %v193_v34 }
  0xb5   :  { %v4801_v12 = vrot.slane %v4799_v56, 1  ;;  %7635 = vmatmul.mubr.msk.bf16.gmra.mrb[4].mxu1 %vm3644_vm7, %v3538_v15  ;;  %v7424_v32 = vunpack.c.h.bf16 %v7491_v55  ;;  %v194_v38 = vmul.f32 %v9253_v63, %v7423_v54  ;;  %v2309_v11 = vsel %vm2301_vm6, %v9205_v20, %v9087_v6  ;;  %v9295_v20 = vld [vmem:[#allocation2 + $0x40] sm:$0xf]  ;;  %v4487_v54 = vld [vmem:[#allocation2 + $0x3c] sm:$0xe] }
  0xb6   :  { %v410_v7 = vrot.slane %v263_v42, 7  ;;  %7855 = vmatpush3.bf16.msra.mxu1 %v8266_v35  ;;  %v2968_v17 = vshrl.u32 %v9279_v39, 16  ;;  %v2970_v18 = vshll.u32 %v9279_v39, 16  ;;  %v2975_v47 = vshll.u32 %v8081_v44, 16  ;;  %v4486_v35 = vld [vmem:[#allocation2 + $0x30] sm:$0xe] }
  0xb7   :  { %v3358_v21 = vrot.slane %v6871_v13, 1  ;;  %7850 = vmatprep.subr.bf16.mxu1 %v8268_v37  ;;  %v3359_v52 = vrot.slane %v8081_v44, 1  ;;  %v411_v43 = vrot.slane %v264_v41, 7  ;;  %v4802_v6 = vor.u32 %v4801_v12, %v4797_v36  ;;  %7711 = vmatmul.mubr.msk.bf16.gmra.mrb[4].mxu0 %vm3644_vm7, %v2309_v11  ;;  %v3156_v46 = vpop.permute.xlu1 %3155  ;;  %v8144_v44 = vld [vmem:[%s11148_s1 + $0x60] sm:$0xff]  }
  0xb8   :  { %3435 = vrot.lane.b32.xlu1 %v3357_v14, %s8274_s11  ;;  %v566_v23 = vsel %vm355_vm2, 0.0, %v410_v7  ;;  %v2972_v45 = vrot.slane %v2970_v18, 1  ;;  %v2977_v27 = vrot.slane %v2975_v47, 1  ;;  %v195_v51 = vmul.f32 %v9253_v63, %v7424_v32  ;;  %v1926_v60 = vpop.permute.xlu0 %1925  ;;  %7770 = vmatprep.subr.bf16.mxu0 %v8144_v44 }
  0xb9   :  { %v7239_v26 = vpack.c.bf16 %v566_v23, %v566_v23  ;;  %v4795_v14 = vsel %vm1530_vm4, %v4790_v25, %v9214_v2  ;;  %v412_v55 = vsel %vm355_vm2, %v410_v7, %v411_v43  ;;  %v598_v24 = vsel %vm355_vm2, %v411_v43, 0.0  ;;  %v8269_v2 = vld [vmem:[%s11148_s1 + $0x28] sm:$0xff]   ;;  %7771 = vmatpush3.bf16.msra.mxu0 %v8144_v44 }
  0xba   :  { %v2246_v58 = vsel %vm2236_vm5, %v8557_v16, %v1924_v48  ;;  %7856 = vmatpush3.bf16.msra.mxu1 %v8268_v37  ;;  %v2973_v50 = vor.u32 %v2972_v45, %v2968_v17  ;;  %v9307_v19 = vsel %vm2075_vm3, %v3358_v21, %v3359_v52  ;;  %v7240_v34 = vpack.c.bf16 %v412_v55, %v412_v55  ;;  %v9348_v21 = vld [vmem:[#allocation2 + $0x50] ss:$0 sps:$4 sm:$0x11]   ;;  %v4396_v23 = vld [vmem:[#allocation2 + $0x48] sm:$0xf] }
  0xbb   :  { %v7241_v36 = vpack.c.bf16 %v598_v24, %v598_v24  ;;  %1101 = vst.msk [vmem:[#allocation2 + $0xfc] sm:$0xf] %vm1036_vm0, %v7239_v26  ;;  %7851 = vmatprep.subr.bf16.mxu1 %v8269_v2  ;;  %v4807_v16 = vsel %vm1530_vm4, %v4802_v6, %v4806_v1  ;;  %v265_v25 = vadd.f32 %v9274_v5, %v194_v38  ;;  %v2181_v15 = vpop.permute.xlu1 %2180  ;;  %v5323_v7 = vrot.slane %v9218_v49, 1  ;;  %v9350_v6 = vld [vmem:[#allocation2 + $0x4c] sm:$0xf] }
  0xbc   :  { %5412 = vrot.lane.b32.xlu1 %v9233_v0, %s8274_s11  ;;  %v266_v56 = vadd.f32 %v9274_v5, %v195_v51  ;;  %v9319_v22 = vcombine.low %v4394_v28, %v9295_v20  ;;  %v2978_v42 = vsel %vm1530_vm4, %v2973_v50, %v2977_v27  ;;  %1102 = vst.msk [vmem:[#allocation2 + $0x100] sm:$0xf] %vm1036_vm0, %v7240_v34  ;;  %v4816_v0 = vshll.u32 %v9298_v57, 16  ;;  %v9362_v24 = vld [vmem:[%s11145_s0 + $0xa8] sm:$0xff]  }
  0xbd   :  { %1103 = vst.msk [vmem:[#allocation2 + $0x104] sm:$0x1] %vm1039_vm1, %v7241_v36  ;;  %v3476_v48 = vsel %vm2236_vm5, %v8638_v29, %v3156_v46  ;;  %v7040_v1 = vcombine.low %v4486_v35, %v9195_v53  ;;  %3181 = vrot.lane.b32.xlu0 %v2978_v42, %s8275_s14  ;;  %v413_v13 = vrot.slane %v265_v25, 7  ;;  %v2311_v12 = vsel %vm2301_vm6, %v2246_v58, %v2181_v15  ;;  %v3158_v32 = vpop.permute.xlu0 %3157  ;;  %v8148_v35 = vld [vmem:[%s11148_s1 + $0x68] sm:$0xff]  }
  0xbe   :  { %v414_v41 = vrot.slane %v266_v56, 7  ;;  %7857 = vmatpush3.bf16.msra.mxu1 %v8269_v2  ;;  %v2248_v29 = vsel %vm2236_vm5, %v8643_v31, %v1926_v60  ;;  %v4809_v53 = vshrl.u32 %v9319_v22, 16  ;;  %v4811_v38 = vshll.u32 %v9319_v22, 16  ;;  %7714 = vmatprep.mubr.msk.bf16.mxu0 %vm3644_vm7, %v2311_v12  ;;  %v7492_v31 = vld [vmem:[%s11145_s0 + $0xa0] sm:$0xff]  }
  0xbf   :  { %v5322_v11 = vrot.slane %v7040_v1, 1  ;;  %v567_v49 = vsel %vm355_vm2, 0.0, %v413_v13  ;;  %v7041_v47 = vcombine.low %v4487_v54, %v9295_v20  ;;  %v4818_v20 = vrot.slane %v4816_v0, 1  ;;  %7772 = vmatprep.subr.bf16.mxu0 %v8148_v35 }
  0xc0   :  { %5414 = vrot.lane.b32.xlu1 %v9263_v9, %s8274_s11  ;;  %v415_v17 = vsel %vm355_vm2, %v413_v13, %v414_v41  ;;  %v599_v18 = vsel %vm355_vm2, %v414_v41, 0.0  ;;  %v7242_v28 = vpack.c.bf16 %v567_v49, %v567_v49  ;;  %v4813_v43 = vrot.slane %v4811_v38, 1  ;;  %v3412_v9 = vpop.permute.xlu1 %3411  ;;  %7773 = vmatpush3.bf16.msra.mxu0 %v8148_v35 }
  0xc1   :  { %v7243_v37 = vpack.c.bf16 %v415_v17, %v415_v17  ;;  %v7244_v52 = vpack.c.bf16 %v599_v18, %v599_v18  ;;  %5158 = vrot.lane.b32.xlu0 %v4795_v14, %s8275_s14  ;;  %v9354_v26 = vsel %vm2075_vm3, %v5322_v11, %v5323_v7  ;;  %v3478_v46 = vsel %vm2236_vm5, %v8660_v61, %v3158_v32  ;;  %v2183_v55 = vpop.permute.xlu0 %2182 }
  0xc2   :  { %v2415_v45 = vld [vmem:[#allocation2 + $0xfc] sm:$0xf]  ;;  %v3540_v51 = vsel %vm2301_vm6, %v3476_v48, %v3412_v9  ;;  %1104 = vst.msk [vmem:[#allocation2 + $0x108] sm:$0xf] %vm1036_vm0, %v7242_v28  ;;  %v5325_v14 = vrot.slane %v7041_v47, 1  ;;  %v2313_v58 = vsel %vm2301_vm6, %v2248_v29, %v2183_v55  ;;  %v7427_v61 = vunpack.c.l.bf16 %v7492_v31 }
  0xc3   :  { %v2493_v27 = vld [vmem:[#allocation2 + $0xfc] sm:$0xe]  ;;  %1105 = vst.msk [vmem:[#allocation2 + $0x10c] sm:$0xf] %vm1036_vm0, %v7243_v37  ;;  %7638 = vmatprep.mubr.msk.bf16.mxu1 %vm3644_vm7, %v3540_v51  ;;  %v7428_v60 = vunpack.c.h.bf16 %v7492_v31  ;;  %v2416_v50 = vld [vmem:[#allocation2 + $0x100] sm:$0xf]  ;;  %v4814_v34 = vor.u32 %v4813_v43, %v4809_v53  ;;  %v9375_v2 = vcombine.low %v4396_v23, %v9350_v6  ;;  %7715 = vmatmul.mubr.msk.bf16.gmra.mrb[8].mxu0 %vm3644_vm7, %v2313_v58  ;;  %v7431_v1 = vunpack.c.l.bf16 %v9362_v24 }
  0xc4   :  { %1106 = vst.msk [vmem:[#allocation2 + $0x110] sm:$0x1] %vm1039_vm1, %v7244_v52  ;;  %5160 = vrot.lane.b32.xlu1 %v4807_v16, %s8275_s14  ;;  %v5326_v36 = vrot.slane %v9298_v57, 1  ;;  %v4828_v25 = vshll.u32 %v9348_v21, 16  ;;  %v9379_v56 = vcombine.low %v2415_v45, %v2416_v50  ;;  %v6872_v48 = vcombine.low %v2493_v27, %v2416_v50  ;;  %v3414_v15 = vpop.permute.xlu1 %3413  ;;  %v8152_v31 = vld [vmem:[%s11148_s1 + $0x70] sm:$0xff]  }
  0xc5   :  { %v8089_v42 = vld [vmem:[#allocation2 + $0x104] ss:$0 sps:$4 sm:$0x11]   ;;  %v196_v0 = vmul.f32 %v9253_v63, %v7427_v61  ;;  %3437 = vrot.lane.b32.xlu0 %v9307_v19, %s8274_s11  ;;  %v3542_v57 = vsel %vm2301_vm6, %v3478_v46, %v3414_v15  ;;  %v197_v16 = vmul.f32 %v9253_v63, %v7428_v60  ;;  %v4821_v54 = vshrl.u32 %v9375_v2, 16  ;;  %v1928_v13 = vpop.permute.xlu0 %1927  ;;  %7774 = vmatprep.subr.bf16.mxu0 %v8152_v31 }
  0xc6   :  { %v4823_v44 = vshll.u32 %v9375_v2, 16  ;;  %v2980_v41 = vshrl.u32 %v9379_v56, 16  ;;  %v2982_v12 = vshll.u32 %v9379_v56, 16  ;;  %v2987_v7 = vshll.u32 %v8089_v42, 16  ;;  %7639 = vmatmul.mubr.msk.bf16.gmra.mrb[8].mxu1 %vm3644_vm7, %v3542_v57  ;;  %7775 = vmatpush3.bf16.msra.mxu0 %v8152_v31  ;;  %v8157_v31 = vld [vmem:[%s11148_s1 + $0x78] sm:$0xff]  }
  0xc7   :  { %v3361_v32 = vrot.slane %v6872_v48, 1  ;;  %v3362_v29 = vrot.slane %v8089_v42, 1  ;;  %v267_v19 = vadd.f32 %v9274_v5, %v196_v0  ;;  %v268_v53 = vadd.f32 %v9274_v5, %v197_v16  ;;  %v9415_v42 = vld [vmem:[#allocation2 + $0x58] sm:$0xf]  ;;  %7776 = vmatprep.subr.bf16.mxu0 %v8157_v31 }
  0xc8   :  { %v4825_v38 = vrot.slane %v4823_v44, 1  ;;  %v2984_v11 = vrot.slane %v2982_v12, 1  ;;  %v2989_v17 = vrot.slane %v2987_v7, 1  ;;  %v9395_v49 = vsel %vm2075_vm3, %v5325_v14, %v5326_v36  ;;  %v3160_v47 = vpop.permute.xlu1 %3159  ;;  %v9420_v57 = vld [vmem:[#allocation2 + $0x5c] ss:$0 sps:$4 sm:$0x11]  }
  0xc9   :  { %v4830_v18 = vrot.slane %v4828_v25, 1  ;;  %v2417_v28 = vld [vmem:[#allocation2 + $0x108] sm:$0xf]  ;;  %v3363_v52 = vsel %vm2075_vm3, %v3361_v32, %v3362_v29  ;;  %v9402_v43 = vsel %vm1530_vm4, %v4814_v34, %v4818_v20  ;;  %v2250_v9 = vsel %vm2236_vm5, %v8679_v30, %v1928_v13  ;;  %v1930_v45 = vpop.permute.xlu0 %1929  ;;  %v4398_v25 = vld [vmem:[#allocation2 + $0x54] sm:$0xf] }
  0xca   :  { %v2418_v37 = vld [vmem:[#allocation2 + $0x10c] sm:$0xf]  ;;  %v7432_v23 = vunpack.c.h.bf16 %v9362_v24  ;;  %v2985_v27 = vor.u32 %v2984_v11, %v2980_v41  ;;  %3439 = vrot.lane.b32.xlu1 %v3363_v52, %s8274_s11  ;;  %v2494_v55 = vld [vmem:[#allocation2 + $0x108] sm:$0xe]  ;;  %v416_v14 = vrot.slane %v267_v19, 7  ;;  %v4826_v58 = vor.u32 %v4825_v38, %v4821_v54  ;;  %7777 = vmatpush3.bf16.msra.mxu0 %v8157_v31 }
  0xcb   :  { %v9407_v46 = vcombine.low %v2417_v28, %v2418_v37  ;;  %v8093_v51 = vld [vmem:[#allocation2 + $0x110] ss:$0 sps:$4 sm:$0x11]   ;;  %v6873_v61 = vcombine.low %v2494_v55, %v2418_v37  ;;  %v417_v60 = vrot.slane %v268_v53, 7  ;;  %v198_v20 = vmul.f32 %v9253_v63, %v7431_v1  ;;  %v4488_v12 = vld [vmem:[#allocation2 + $0x48] sm:$0xe] }
  0xcc   :  { %v199_v35 = vmul.f32 %v9253_v63, %v7432_v23  ;;  %v2990_v30 = vsel %vm1530_vm4, %v2985_v27, %v2989_v17  ;;  %v2999_v34 = vshll.u32 %v8093_v51, 16  ;;  %v2185_v36 = vpop.permute.xlu1 %2184  ;;  %v3365_v15 = vrot.slane %v8093_v51, 1 }
  0xcd   :  { %v2992_v24 = vshrl.u32 %v9407_v46, 16  ;;  %v2994_v50 = vshll.u32 %v9407_v46, 16  ;;  %3183 = vrot.lane.b32.xlu0 %v2990_v30, %s8275_s14  ;;  %v3364_v48 = vrot.slane %v6873_v61, 1  ;;  %v418_v0 = vsel %vm355_vm2, %v416_v14, %v417_v60  ;;  %v3162_v16 = vpop.permute.xlu0 %3161  ;;  %v8160_v30 = vld [vmem:[%s11148_s1 + $0x80] sm:$0xff]  }
  0xce   :  { %v568_v1 = vsel %vm355_vm2, 0.0, %v416_v14  ;;  %v3001_v44 = vrot.slane %v2999_v34, 1  ;;  %5416 = vrot.lane.b32.xlu1 %v9354_v26, %s8274_s11  ;;  %v600_v13 = vsel %vm355_vm2, %v417_v60, 0.0  ;;  %v7246_v7 = vpack.c.bf16 %v418_v0, %v418_v0  ;;  %7778 = vmatprep.subr.bf16.mxu0 %v8160_v30 }
  0xcf   :  { %v2996_v54 = vrot.slane %v2994_v50, 1  ;;  %v7245_v41 = vpack.c.bf16 %v568_v1, %v568_v1  ;;  %v7247_v32 = vpack.c.bf16 %v600_v13, %v600_v13  ;;  %v3480_v29 = vsel %vm2236_vm5, %v8701_v40, %v3160_v47  ;;  %7779 = vmatpush3.bf16.msra.mxu0 %v8160_v30 }
  0xd0   :  { %v269_v19 = vadd.f32 %v9274_v5, %v198_v20  ;;  %v4831_v38 = vsel %vm1530_vm4, %v4826_v58, %v4830_v18  ;;  %v270_v11 = vadd.f32 %v9274_v5, %v199_v35  ;;  %v2315_v26 = vsel %vm2301_vm6, %v2250_v9, %v2185_v36  ;;  %v3416_v17 = vpop.permute.xlu1 %3415  ;;  %1108 = vst.msk [vmem:[#allocation2 + $0x118] sm:$0xf] %vm1036_vm0, %v7246_v7  ;;  %v4489_v58 = vld [vmem:[#allocation2 + $0x54] sm:$0xe]  ;;  %v4400_v35 = vld [vmem:[#allocation2 + $0x60] sm:$0xf] }
  0xd1   :  { %v2997_v53 = vor.u32 %v2996_v54, %v2992_v24  ;;  %1107 = vst.msk [vmem:[#allocation2 + $0x114] sm:$0xf] %vm1036_vm0, %v7245_v41  ;;  %v9436_v28 = vsel %vm2075_vm3, %v3364_v48, %v3365_v15  ;;  %v9441_v47 = vcombine.low %v4398_v25, %v9415_v42  ;;  %v7042_v18 = vcombine.low %v4488_v12, %v9350_v6  ;;  %v2187_v37 = vpop.permute.xlu0 %2186  ;;  %v7494_v20 = vld [vmem:[%s11145_s0 + $0xb0] sm:$0xff]   ;;  %v9465_v36 = vld [vmem:[#allocation2 + $0x64] sm:$0xf] }
  0xd2   :  { %1109 = vst.msk [vmem:[#allocation2 + $0x11c] sm:$0x1] %vm1039_vm1, %v7247_v32  ;;  %v419_v40 = vrot.slane %v269_v19, 7  ;;  %7718 = vmatprep.mubr.msk.bf16.mxu0 %vm3644_vm7, %v2315_v26  ;;  %5418 = vrot.lane.b32.xlu1 %v9395_v49, %s8274_s11  ;;  %v420_v9 = vrot.slane %v270_v11, 7  ;;  %v2252_v23 = vsel %vm2236_vm5, %v8718_v33, %v1930_v45  ;;  %v4840_v27 = vshll.u32 %v9420_v57, 16 }
  0xd3   :  { %v3002_v52 = vsel %vm1530_vm4, %v2997_v53, %v3001_v44  ;;  %v4833_v6 = vshrl.u32 %v9441_v47, 16  ;;  %v4835_v55 = vshll.u32 %v9441_v47, 16  ;;  %v5329_v14 = vrot.slane %v9348_v21, 1  ;;  %v9467_v25 = vld [vmem:[#allocation2 + $0x68] ss:$0 sps:$4 sm:$0x11]  }
  0xd4   :  { %3185 = vrot.lane.b32.xlu0 %v3002_v52, %s8275_s14  ;;  %v569_v51 = vsel %vm355_vm2, 0.0, %v419_v40  ;;  %v421_v49 = vsel %vm355_vm2, %v419_v40, %v420_v9  ;;  %v601_v61 = vsel %vm355_vm2, %v420_v9, 0.0  ;;  %v5328_v45 = vrot.slane %v7042_v18, 1  ;;  %v3418_v60 = vpop.permute.xlu1 %3417  ;;  %v7495_v52 = vld [vmem:[%s11145_s0 + $0xb8] sm:$0xff]  }
  0xd5   :  { %v7248_v33 = vpack.c.bf16 %v569_v51, %v569_v51  ;;  %v7249_v24 = vpack.c.bf16 %v421_v49, %v421_v49  ;;  %v7250_v21 = vpack.c.bf16 %v601_v61, %v601_v61  ;;  %v4837_v50 = vrot.slane %v4835_v55, 1  ;;  %v1932_v54 = vpop.permute.xlu0 %1931 }
  0xd6   :  { %v3544_v34 = vsel %vm2301_vm6, %v3480_v29, %v3416_v17  ;;  %5164 = vrot.lane.b32.xlu1 %v4831_v38, %s8275_s14  ;;  %v4842_v48 = vrot.slane %v4840_v27, 1  ;;  %v3482_v15 = vsel %vm2236_vm5, %v8731_v3, %v3162_v16  ;;  %v7043_v0 = vcombine.low %v4489_v58, %v9415_v42  ;;  %v8162_v17 = vld [vmem:[%s11148_s1 + $0x88] sm:$0xff]  }
  0xd7   :  { %1110 = vst.msk [vmem:[#allocation2 + $0x120] sm:$0xf] %vm1036_vm0, %v7248_v33  ;;  %7642 = vmatprep.mubr.msk.bf16.mxu1 %vm3644_vm7, %v3544_v34  ;;  %v2317_v1 = vsel %vm2301_vm6, %v2252_v23, %v2187_v37  ;;  %1111 = vst.msk [vmem:[#allocation2 + $0x124] sm:$0xf] %vm1036_vm0, %v7249_v24  ;;  %v9481_v41 = vsel %vm2075_vm3, %v5328_v45, %v5329_v14  ;;  %v3546_v3 = vsel %vm2301_vm6, %v3482_v15, %v3418_v60  ;;  %v2420_v12 = vld [vmem:[#allocation2 + $0x118] sm:$0xf] }
  0xd8   :  { %5162 = vrot.lane.b32.xlu0 %v9402_v43, %s8275_s14  ;;  %v2419_v44 = vld [vmem:[#allocation2 + $0x114] sm:$0xf]  ;;  %1112 = vst.msk [vmem:[#allocation2 + $0x128] sm:$0x1] %vm1039_vm1, %v7250_v21  ;;  %v7435_v42 = vunpack.c.l.bf16 %v7494_v20  ;;  %v7436_v16 = vunpack.c.h.bf16 %v7494_v20  ;;  %7719 = vmatmul.mubr.msk.bf16.gmra.mrb[12].mxu0 %vm3644_vm7, %v2317_v1  ;;  %v4838_v7 = vor.u32 %v4837_v50, %v4833_v6  ;;  %v9485_v32 = vrot.slane %v7043_v0, 1 }
  0xd9   :  { %v2495_v13 = vld [vmem:[#allocation2 + $0x114] sm:$0xe]  ;;  %v5332_v43 = vrot.slane %v9420_v57, 1  ;;  %v9489_v29 = vcombine.low %v4400_v35, %v9465_v36  ;;  %7643 = vmatmul.mubr.msk.bf16.gmra.mrb[12].mxu1 %vm3644_vm7, %v3546_v3  ;;  %v9492_v19 = vcombine.low %v2419_v44, %v2420_v12  ;;  %v8099_v53 = vld [vmem:[#allocation2 + $0x11c] ss:$0 sps:$4 sm:$0x11]   ;;  %v9504_v37 = vsel %vm2236_vm5, %v8753_v8, %v1932_v54  ;;  %7780 = vmatprep.subr.bf16.mxu0 %v8162_v17 }
  0xda   :  { %v6874_v38 = vcombine.low %v2495_v13, %v2420_v12  ;;  %v200_v11 = vmul.f32 %v9253_v63, %v7435_v42  ;;  %v4852_v26 = vshll.u32 %v9467_v25, 16  ;;  %v201_v31 = vmul.f32 %v9253_v63, %v7436_v16  ;;  %v3164_v6 = vpop.permute.xlu1 %3163  ;;  %7781 = vmatpush3.bf16.msra.mxu0 %v8162_v17 }
  0xdb   :  { %v4845_v40 = vshrl.u32 %v9489_v29, 16  ;;  %v4847_v18 = vshll.u32 %v9489_v29, 16  ;;  %v3004_v9 = vshrl.u32 %v9492_v19, 16  ;;  %v3006_v23 = vshll.u32 %v9492_v19, 16  ;;  %v9515_v49 = vpop.permute.xlu0 %1933 }
  0xdc   :  { %3441 = vrot.lane.b32.xlu0 %v9436_v28, %s8274_s11  ;;  %v3011_v27 = vshll.u32 %v8099_v53, 16  ;;  %v3367_v51 = vrot.slane %v6874_v38, 1  ;;  %v3368_v55 = vrot.slane %v8099_v53, 1  ;;  %v271_v14 = vadd.f32 %v9274_v5, %v200_v11  ;;  %v9530_v11 = vld [vmem:[#allocation2 + $0x74] ss:$0 sps:$4 sm:$0x11]  }
  0xdd   :  { %v272_v8 = vadd.f32 %v9274_v5, %v201_v31  ;;  %v4849_v58 = vrot.slane %v4847_v18, 1  ;;  %v3008_v61 = vrot.slane %v3006_v23, 1  ;;  %v9518_v28 = vsel %vm1530_vm4, %v4838_v7, %v4842_v48  ;;  %v4402_v18 = vld [vmem:[#allocation2 + $0x6c] sm:$0xf] }
  0xde   :  { %v3013_v33 = vrot.slane %v3011_v27, 1  ;;  %v2421_v45 = vld [vmem:[#allocation2 + $0x120] sm:$0xf]  ;;  %v7439_v20 = vunpack.c.l.bf16 %v7495_v52  ;;  %v2422_v35 = vld [vmem:[#allocation2 + $0x124] sm:$0xf]  ;;  %v3369_v30 = vsel %vm2075_vm3, %v3367_v51, %v3368_v55  ;;  %v422_v24 = vrot.slane %v271_v14, 7  ;;  %v2189_v44 = vpop.permute.xlu1 %2188 }
  0xdf   :  { %v2496_v60 = vld [vmem:[#allocation2 + $0x120] sm:$0xe]  ;;  %v423_v21 = vrot.slane %v272_v8, 7  ;;  %v4850_v50 = vor.u32 %v4849_v58, %v4845_v40  ;;  %v3009_v34 = vor.u32 %v3008_v61, %v3004_v9  ;;  %v9521_v15 = vcombine.low %v2421_v45, %v2422_v35  ;;  %v8103_v0 = vld [vmem:[#allocation2 + $0x128] ss:$0 sps:$4 sm:$0x11]   ;;  %3443 = vrot.lane.b32.xlu1 %v3369_v30, %s8274_s11 }
  0xe0   :  { %v6875_v1 = vcombine.low %v2496_v60, %v2422_v35  ;;  %v4854_v54 = vrot.slane %v4852_v26, 1  ;;  %v570_v13 = vsel %vm355_vm2, 0.0, %v422_v24  ;;  %v7440_v42 = vunpack.c.h.bf16 %v7495_v52  ;;  %v3166_v16 = vpop.permute.xlu0 %3165  ;;  %v9533_v9 = vld [vmem:[#allocation2 + $0x70] sm:$0xf]  ;;  %v4490_v55 = vld [vmem:[#allocation2 + $0x60] sm:$0xe] }
  0xe1   :  { %v424_v48 = vsel %vm355_vm2, %v422_v24, %v423_v21  ;;  %v602_v3 = vsel %vm355_vm2, %v423_v21, 0.0  ;;  %v3014_v12 = vsel %vm1530_vm4, %v3009_v34, %v3013_v33  ;;  %v3016_v7 = vshrl.u32 %v9521_v15, 16  ;;  %v11198_v58 = vld [vmem:[#allocation3_spill] sm:$0xff] }
  0xe2   :  { %v3018_v53 = vshll.u32 %v9521_v15, 16  ;;  %v3023_v38 = vshll.u32 %v8103_v0, 16  ;;  %3187 = vrot.lane.b32.xlu0 %v3014_v12, %s8275_s14  ;;  %v3370_v26 = vrot.slane %v6875_v1, 1  ;;  %v3371_v17 = vrot.slane %v8103_v0, 1  ;;  %v3420_v14 = vpop.permute.xlu1 %3419 }
  0xe3   :  { %v7251_v31 = vpack.c.bf16 %v570_v13, %v570_v13  ;;  %v7252_v40 = vpack.c.bf16 %v424_v48, %v424_v48  ;;  %5420 = vrot.lane.b32.xlu1 %v9481_v41, %s8274_s11  ;;  %v5333_v27 = vsel %vm2075_vm3, %v9485_v32, %v5332_v43  ;;  %v7253_v51 = vpack.c.bf16 %v602_v3, %v602_v3  ;;  %v4491_v48 = vld [vmem:[#allocation2 + $0x6c] sm:$0xe] }
  0xe4   :  { %v3020_v52 = vrot.slane %v3018_v53, 1  ;;  %v3025_v23 = vrot.slane %v3023_v38, 1  ;;  %v4855_v8 = vsel %vm1530_vm4, %v4850_v50, %v4854_v54  ;;  %v3484_v61 = vsel %vm2236_vm5, %v11198_v58, %v3164_v6  ;;  %v2191_v60 = vpop.permute.xlu0 %2190  ;;  %v11200_v38 = vld [vmem:[#allocation5_spill] sm:$0xff] }
  0xe5   :  { %1113 = vst.msk [vmem:[#allocation2 + $0x12c] sm:$0xf] %vm1036_vm0, %v7251_v31  ;;  %1114 = vst.msk [vmem:[#allocation2 + $0x130] sm:$0xf] %vm1036_vm0, %v7252_v40  ;;  %v202_v33 = vmul.f32 %v9253_v63, %v7439_v20  ;;  %v203_v41 = vmul.f32 %v9253_v63, %v7440_v42  ;;  %v2319_v32 = vsel %vm2301_vm6, %v9504_v37, %v2189_v44  ;;  %v4864_v45 = vshll.u32 %v9530_v11, 16  ;;  %v11199_v37 = vld [vmem:[#allocation4_spill] sm:$0xff] }
  0xe6   :  { %v3021_v57 = vor.u32 %v3020_v52, %v3016_v7  ;;  %1115 = vst.msk [vmem:[#allocation2 + $0x134] sm:$0x1] %vm1039_vm1, %v7253_v51  ;;  %v9552_v43 = vcombine.low %v4402_v18, %v9533_v9  ;;  %v9556_v35 = vsel %vm2075_vm3, %v3370_v26, %v3371_v17  ;;  %v7044_v30 = vcombine.low %v4490_v55, %v9465_v36  ;;  %v3422_v0 = vpop.permute.xlu1 %3421  ;;  %v9582_v17 = vld [vmem:[#allocation2 + $0x80] ss:$0 sps:$4 sm:$0x11]  }
  0xe7   :  { %v273_v6 = vadd.f32 %v9274_v5, %v202_v33  ;;  %v274_v20 = vadd.f32 %v9274_v5, %v203_v41  ;;  %7722 = vmatprep.mubr.msk.bf16.mxu0 %vm3644_vm7, %v2319_v32  ;;  %5422 = vrot.lane.b32.xlu1 %v5333_v27, %s8274_s11  ;;  %v2256_v21 = vsel %vm2236_vm5, %v11199_v37, %v9515_v49  ;;  %v5335_v34 = vrot.slane %v9467_v25, 1  ;;  %v7496_v49 = vld [vmem:[%s11145_s0 + $0xc0] sm:$0xff]   ;;  %v9596_v32 = vld [vmem:[#allocation2 + $0x7c] sm:$0xf] }
  0xe8   :  { %v3026_v24 = vsel %vm1530_vm4, %v3021_v57, %v3025_v23  ;;  %v4859_v50 = vshll.u32 %v9552_v43, 16  ;;  %v4857_v36 = vshrl.u32 %v9552_v43, 16  ;;  %v5334_v44 = vrot.slane %v7044_v30, 1  ;;  %v1936_v55 = vpop.permute.xlu0 %1935 }
  0xe9   :  { %3189 = vrot.lane.b32.xlu0 %v3026_v24, %s8275_s14  ;;  %v425_v1 = vrot.slane %v273_v6, 7  ;;  %v426_v54 = vrot.slane %v274_v20, 7  ;;  %v4866_v3 = vrot.slane %v4864_v45, 1  ;;  %v3548_v42 = vsel %vm2301_vm6, %v3484_v61, %v3420_v14 }
  0xea   :  { %v4861_v13 = vrot.slane %v4859_v50, 1  ;;  %v5338_v12 = vrot.slane %v9530_v11, 1  ;;  %v3486_v26 = vsel %vm2236_vm5, %v11200_v38, %v3166_v16  ;;  %7646 = vmatprep.mubr.msk.bf16.mxu1 %vm3644_vm7, %v3548_v42  ;;  %v7045_v51 = vcombine.low %v4491_v48, %v9533_v9  ;;  %v11201_v38 = vld [vmem:[#allocation6_spill] sm:$0xff] }
  0xeb   :  { %v427_v25 = vsel %vm355_vm2, %v425_v1, %v426_v54  ;;  %v571_v7 = vsel %vm355_vm2, 0.0, %v425_v1  ;;  %v603_v53 = vsel %vm355_vm2, %v426_v54, 0.0  ;;  %5168 = vrot.lane.b32.xlu1 %v4855_v8, %s8275_s14  ;;  %v5336_v61 = vsel %vm2075_vm3, %v5334_v44, %v5335_v34 }
  0xec   :  { %v2423_v31 = vld [vmem:[#allocation2 + $0x12c] sm:$0xf]  ;;  %v2424_v40 = vld [vmem:[#allocation2 + $0x130] sm:$0xf]  ;;  %v7254_v18 = vpack.c.bf16 %v571_v7, %v571_v7  ;;  %v7255_v52 = vpack.c.bf16 %v427_v25, %v427_v25  ;;  %v7256_v23 = vpack.c.bf16 %v603_v53, %v603_v53  ;;  %v2321_v33 = vsel %vm2301_vm6, %v2256_v21, %v2191_v60  ;;  %v3168_v45 = vpop.permute.xlu1 %3167 }
  0xed   :  { %v2497_v27 = vld [vmem:[#allocation2 + $0x12c] sm:$0xe]  ;;  %5166 = vrot.lane.b32.xlu0 %v9518_v28, %s8275_s14  ;;  %v9588_v14 = vcombine.low %v2423_v31, %v2424_v40  ;;  %v8109_v16 = vld [vmem:[#allocation2 + $0x134] ss:$0 sps:$4 sm:$0x11]   ;;  %v4862_v8 = vor.u32 %v4861_v13, %v4857_v36  ;;  %v3550_v9 = vsel %vm2301_vm6, %v3486_v26, %v3422_v0  ;;  %v7443_v41 = vunpack.c.l.bf16 %v7496_v49  ;;  %7723 = vmatmul.mubr.msk.bf16.gmra.mrb[16].mxu0 %vm3644_vm7, %v2321_v33  ;;  %v9619_v42 = vpop.permute.xlu0 %1937 }
  0xee   :  { %v6876_v58 = vcombine.low %v2497_v27, %v2424_v40  ;;  %1116 = vst.msk [vmem:[#allocation2 + $0x138] sm:$0xf] %vm1036_vm0, %v7254_v18  ;;  %1117 = vst.msk [vmem:[#allocation2 + $0x13c] sm:$0xf] %vm1036_vm0, %v7255_v52  ;;  %v7444_v57 = vunpack.c.h.bf16 %v7496_v49  ;;  %v4404_v28 = vld [vmem:[#allocation2 + $0x78] sm:$0xf]  ;;  %7647 = vmatmul.mubr.msk.bf16.gmra.mrb[16].mxu1 %vm3644_vm7, %v3550_v9  ;;  %v2258_v26 = vsel %vm2236_vm5, %v11201_v38, %v1936_v55 }
  0xef   :  { %1118 = vst.msk [vmem:[#allocation2 + $0x140] sm:$0x1] %vm1039_vm1, %v7256_v23  ;;  %v3028_v6 = vshrl.u32 %v9588_v14, 16  ;;  %v3030_v60 = vshll.u32 %v9588_v14, 16  ;;  %v3035_v20 = vshll.u32 %v8109_v16, 16  ;;  %v3374_v24 = vrot.slane %v8109_v16, 1 }
  0xf0   :  { %v3373_v30 = vrot.slane %v6876_v58, 1  ;;  %v5337_v37 = vrot.slane %v7045_v51, 1  ;;  %v204_v21 = vmul.f32 %v9253_v63, %v7443_v41  ;;  %v205_v50 = vmul.f32 %v9253_v63, %v7444_v57  ;;  %v7497_v36 = vld [vmem:[%s11145_s0 + $0xc8] sm:$0xff]   ;;  %v2193_v49 = vpop.permute.xlu1 %2192  ;;  %v4406_v33 = vld [vmem:[#allocation2 + $0x84] sm:$0xf] }
  0xf1   :  { %3445 = vrot.lane.b32.xlu0 %v9556_v35, %s8274_s11  ;;  %v3032_v34 = vrot.slane %v3030_v60, 1  ;;  %v3037_v0 = vrot.slane %v3035_v20, 1  ;;  %v9607_v1 = vcombine.low %v4404_v28, %v9596_v32  ;;  %v4876_v54 = vshll.u32 %v9582_v17, 16 }
  0xf2   :  { %v3375_v44 = vsel %vm2075_vm3, %v3373_v30, %v3374_v24  ;;  %v9615_v48 = vsel %vm1530_vm4, %v4862_v8, %v4866_v3  ;;  %v275_v13 = vadd.f32 %v9274_v5, %v204_v21  ;;  %v276_v35 = vadd.f32 %v9274_v5, %v205_v50  ;;  %v9642_v30 = vld [vmem:[#allocation2 + $0x88] sm:$0xf]  ;;  %v9644_v24 = vld [vmem:[#allocation2 + $0x8c] ss:$0 sps:$4 sm:$0x11]  }
  0xf3   :  { %v3033_v25 = vor.u32 %v3032_v34, %v3028_v6  ;;  %3447 = vrot.lane.b32.xlu1 %v3375_v44, %s8274_s11  ;;  %v4869_v7 = vshrl.u32 %v9607_v1, 16  ;;  %v4871_v53 = vshll.u32 %v9607_v1, 16  ;;  %v4878_v40 = vrot.slane %v4876_v54, 1  ;;  %v11202_v34 = vld [vmem:[#allocation7_spill] sm:$0xff] }
  0xf4   :  { %v428_v31 = vrot.slane %v275_v13, 7  ;;  %v429_v3 = vrot.slane %v276_v35, 7  ;;  %v7447_v18 = vunpack.c.l.bf16 %v7497_v36  ;;  %v5339_v51 = vsel %vm2075_vm3, %v5337_v37, %v5338_v12  ;;  %v9638_v11 = vpop.permute.xlu1 %3423 }
  0xf5   :  { %v3038_v52 = vsel %vm1530_vm4, %v3033_v25, %v3037_v0  ;;  %v2425_v23 = vld [vmem:[#allocation2 + $0x138] sm:$0xf]  ;;  %v2426_v27 = vld [vmem:[#allocation2 + $0x13c] sm:$0xf]  ;;  %v7448_v16 = vunpack.c.h.bf16 %v7497_v36  ;;  %v2323_v58 = vsel %vm2301_vm6, %v2258_v26, %v2193_v49  ;;  %v3488_v0 = vsel %vm2236_vm5, %v11202_v34, %v3168_v45 }
  0xf6   :  { %3191 = vrot.lane.b32.xlu0 %v3038_v52, %s8275_s14  ;;  %v9632_v8 = vcombine.low %v2425_v23, %v2426_v27  ;;  %v8113_v55 = vld [vmem:[#allocation2 + $0x140] ss:$0 sps:$4 sm:$0x11]   ;;  %v2498_v9 = vld [vmem:[#allocation2 + $0x138] sm:$0xe]  ;;  %v430_v41 = vsel %vm355_vm2, %v428_v31, %v429_v3  ;;  %v572_v57 = vsel %vm355_vm2, 0.0, %v428_v31  ;;  %v206_v28 = vmul.f32 %v9253_v63, %v7447_v18  ;;  %7726 = vmatprep.mubr.msk.bf16.mxu0 %vm3644_vm7, %v2323_v58 }
  0xf7   :  { %5424 = vrot.lane.b32.xlu1 %v5336_v61, %s8274_s11  ;;  %v6877_v12 = vcombine.low %v2498_v9, %v2426_v27  ;;  %v604_v6 = vsel %vm355_vm2, %v429_v3, 0.0  ;;  %v7257_v60 = vpack.c.bf16 %v572_v57, %v572_v57  ;;  %v7258_v20 = vpack.c.bf16 %v430_v41, %v430_v41  ;;  %v3170_v54 = vpop.permute.xlu0 %3169  ;;  %v4492_v26 = vld [vmem:[#allocation2 + $0x78] sm:$0xe] }
  0xf8   :  { %v3040_v37 = vshrl.u32 %v9632_v8, 16  ;;  %v3042_v21 = vshll.u32 %v9632_v8, 16  ;;  %v3047_v50 = vshll.u32 %v8113_v55, 16  ;;  %v3377_v36 = vrot.slane %v8113_v55, 1  ;;  %v3426_v31 = vpop.permute.xlu1 %3425 }
  0xf9   :  { %v7259_v61 = vpack.c.bf16 %v604_v6, %v604_v6  ;;  %1119 = vst.msk [vmem:[#allocation2 + $0x144] sm:$0xf] %vm1036_vm0, %v7257_v60  ;;  %1120 = vst.msk [vmem:[#allocation2 + $0x148] sm:$0xf] %vm1036_vm0, %v7258_v20  ;;  %v4873_v44 = vrot.slane %v4871_v53, 1  ;;  %v207_v13 = vmul.f32 %v9253_v63, %v7448_v16  ;;  %v277_v25 = vadd.f32 %v9274_v5, %v206_v28 }
  0xfa   :  { %v3044_v35 = vrot.slane %v3042_v21, 1  ;;  %v3049_v49 = vrot.slane %v3047_v50, 1  ;;  %v9655_v38 = vcombine.low %v4406_v33, %v9642_v30  ;;  %v3376_v45 = vrot.slane %v6877_v12, 1 }
  0xfb   :  { %5426 = vrot.lane.b32.xlu1 %v5339_v51, %s8274_s11  ;;  %1121 = vst.msk [vmem:[#allocation2 + $0x14c] sm:$0x1] %vm1039_vm1, %v7259_v61  ;;  %v4874_v3 = vor.u32 %v4873_v44, %v4869_v7  ;;  %v278_v18 = vadd.f32 %v9274_v5, %v207_v13  ;;  %v4888_v53 = vshll.u32 %v9644_v24, 16  ;;  %v431_v52 = vrot.slane %v277_v25, 7  ;;  %v2195_v16 = vpop.permute.xlu0 %2194  ;;  %v11203_v61 = vld [vmem:[#allocation8_spill] sm:$0xff] }
  0xfc   :  { %v3045_v63 = vor.u32 %v3044_v35, %v3040_v37  ;;  %v4881_v23 = vshrl.u32 %v9655_v38, 16  ;;  %v4883_v27 = vshll.u32 %v9655_v38, 16  ;;  %v7046_v51 = vcombine.low %v4492_v26, %v9596_v32  ;;  %v9670_v57 = vpop.permute.xlu1 %3171  ;;  %v4493_v32 = vld [vmem:[#allocation2 + $0x84] sm:$0xe]  ;;  %v4408_v13 = vld [vmem:[#allocation2 + $0x90] sm:$0xf] }
  0xfd   :  { %v4879_v58 = vsel %vm1530_vm4, %v4874_v3, %v4878_v40  ;;  %v432_v33 = vrot.slane %v278_v18, 7  ;;  %v9664_v55 = vrot.slane %v4888_v53, 1  ;;  %v573_v5 = vsel %vm355_vm2, 0.0, %v431_v52  ;;  %v9690_v3 = vld [vmem:[#allocation2 + $0x94] sm:$0xf]  ;;  %v11204_v53 = vld [vmem:[#allocation9_spill] sm:$0xff] }
  0xfe   :  { %v3050_v7 = vsel %vm1530_vm4, %v3045_v63, %v3049_v49  ;;  %v4885_v9 = vrot.slane %v4883_v27, 1  ;;  %v5341_v41 = vrot.slane %v9582_v17, 1  ;;  %v7260_v12 = vpack.c.bf16 %v573_v5, %v573_v5  ;;  %v9692_v18 = vld [vmem:[#allocation2 + $0x98] ss:$0 sps:$4 sm:$0x11]  }
  0xff   :  { %3193 = vrot.lane.b32.xlu0 %v3050_v7, %s8275_s14  ;;  %5172 = vrot.lane.b32.xlu1 %v4879_v58, %s8275_s14  ;;  %v433_v40 = vsel %vm355_vm2, %v431_v52, %v432_v33  ;;  %v605_v28 = vsel %vm355_vm2, %v432_v33, 0.0  ;;  %v5340_v6 = vrot.slane %v7046_v51, 1  ;;  %v3378_v60 = vsel %vm2075_vm3, %v3376_v45, %v3377_v36  ;;  %v9680_v35 = vpop.permute.xlu0 %1939  ;;  %v7498_v45 = vld [vmem:[%s11145_s0 + $0xd0] sm:$0xff]  }
 0x100   :  { %v2427_v20 = vld [vmem:[#allocation2 + $0x144] sm:$0xf]  ;;  %v2428_v37 = vld [vmem:[#allocation2 + $0x148] sm:$0xf]  ;;  %v7261_v21 = vpack.c.bf16 %v433_v40, %v433_v40  ;;  %v7262_v50 = vpack.c.bf16 %v605_v28, %v605_v28  ;;  %v2260_v44 = vsel %vm2236_vm5, %v11203_v61, %v9619_v42  ;;  %1122 = vst.msk [vmem:[#allocation2 + $0x150] sm:$0xf] %vm1036_vm0, %v7260_v12  ;;  %v4886_v26 = vor.u32 %v4885_v9, %v4881_v23 }
 0x101   :  { %v2499_v34 = vld [vmem:[#allocation2 + $0x144] sm:$0xe]  ;;  %v9682_v49 = vcombine.low %v2427_v20, %v2428_v37  ;;  %v3552_v36 = vsel %vm2301_vm6, %v3488_v0, %v9638_v11  ;;  %v3490_v63 = vsel %vm2236_vm5, %v11204_v53, %v3170_v54  ;;  %v7047_v52 = vcombine.low %v4493_v32, %v9642_v30  ;;  %v9720_v28 = vld [vmem:[%s11146_s2] ss:$0 sm:$0xff]  ;;  %v7499_v20 = vld [vmem:[%s11145_s0 + $0xd8] sm:$0xff]  }
 0x102   :  { %v6878_v25 = vcombine.low %v2499_v34, %v2428_v37  ;;  %v8119_v42 = vld [vmem:[#allocation2 + $0x14c] ss:$0 sps:$4 sm:$0x11]   ;;  %1123 = vst.msk [vmem:[#allocation2 + $0x154] sm:$0xf] %vm1036_vm0, %v7261_v21  ;;  %v5344_v11 = vrot.slane %v9644_v24, 1  ;;  %7650 = vmatprep.mubr.msk.bf16.mxu1 %vm3644_vm7, %v3552_v36  ;;  %v2325_v0 = vsel %vm2301_vm6, %v2260_v44, %v2195_v16  ;;  %v3554_v33 = vsel %vm2301_vm6, %v3490_v63, %v3426_v31  ;;  %v9711_v16 = vpop.permute.xlu1 %2196 }
 0x103   :  { %1124 = vst.msk [vmem:[#allocation2 + $0x158] sm:$0x1] %vm1039_vm1, %v7262_v50  ;;  %5170 = vrot.lane.b32.xlu0 %v9615_v48, %s8275_s14  ;;  %v3052_v23 = vshrl.u32 %v9682_v49, 16  ;;  %v3054_v27 = vshll.u32 %v9682_v49, 16  ;;  %7727 = vmatmul.mubr.msk.bf16.gmra.mrb[20].mxu0 %vm3644_vm7, %v2325_v0  ;;  %v3059_v54 = vshll.u32 %v8119_v42, 16  ;;  %v3380_v30 = vrot.slane %v8119_v42, 1  ;;  %v9709_v7 = vpop.permute.xlu0 %1941 }
 0x104   :  { %v3379_v58 = vrot.slane %v6878_v25, 1  ;;  %v5343_v51 = vrot.slane %v7047_v52, 1  ;;  %v7451_v24 = vunpack.c.l.bf16 %v7498_v45  ;;  %7651 = vmatmul.mubr.msk.bf16.gmra.mrb[20].mxu1 %vm3644_vm7, %v3554_v33  ;;  %v7452_v5 = vunpack.c.h.bf16 %v7498_v45  ;;  %v9743_v36 = vld [vmem:[%s11147_s3] ss:$0 sm:$0xff]  ;;  %v11205_v0 = vld [vmem:[#allocation10_spill] sm:$0xff] }
 0x105   :  { %v3056_v48 = vrot.slane %v3054_v27, 1  ;;  %v9714_v9 = vcombine.low %v4408_v13, %v9690_v3  ;;  %v3061_v40 = vrot.slane %v3059_v54, 1  ;;  %v4900_v32 = vshll.u32 %v9692_v18, 16  ;;  %v11206_v54 = vld [vmem:[#allocation11_spill] sm:$0xff] }
 0x106   :  { %v3381_v31 = vsel %vm2075_vm3, %v3379_v58, %v3380_v30  ;;  %v208_v12 = vmul.f32 %v9720_v28, %v7451_v24  ;;  %v209_v21 = vmul.f32 %v9720_v28, %v7452_v5  ;;  %v9734_v44 = vsel %vm1530_vm4, %v4886_v26, %v9664_v55  ;;  %v3428_v27 = vpop.permute.xlu1 %3427  ;;  %v4410_v24 = vld [vmem:[#allocation2 + $0x9c] sm:$0xf] }
 0x107   :  { %3449 = vrot.lane.b32.xlu0 %v3378_v60, %s8274_s11  ;;  %v3057_v37 = vor.u32 %v3056_v48, %v3052_v23  ;;  %3451 = vrot.lane.b32.xlu1 %v3381_v31, %s8274_s11  ;;  %v4893_v50 = vshrl.u32 %v9714_v9, 16  ;;  %v4895_v34 = vshll.u32 %v9714_v9, 16  ;;  %v2429_v61 = vld [vmem:[#allocation2 + $0x150] sm:$0xf]  ;;  %v5342_v13 = vsel %vm2075_vm3, %v5340_v6, %v5341_v41  ;;  %v9746_v42 = vpop.permute.xlu0 %3173  ;;  %v4411_v48 = vld [vmem:[#allocation2 + $0xa0] sm:$0xf] }
 0x108   :  { %v2500_v25 = vld [vmem:[#allocation2 + $0x150] sm:$0xe]  ;;  %v5345_v60 = vsel %vm2075_vm3, %v5343_v51, %v5344_v11  ;;  %v279_v45 = vadd.f32 %v9743_v36, %v208_v12  ;;  %v280_v26 = vadd.f32 %v9743_v36, %v209_v21  ;;  %v7455_v63 = vunpack.c.l.bf16 %v7499_v20 }
 0x109   :  { %v3062_v53 = vsel %vm1530_vm4, %v3057_v37, %v3061_v40  ;;  %v2430_v55 = vld [vmem:[#allocation2 + $0x154] sm:$0xf]  ;;  %v4897_v17 = vrot.slane %v4895_v34, 1  ;;  %v4902_v11 = vrot.slane %v4900_v32, 1  ;;  %v2262_v23 = vsel %vm2236_vm5, %v11205_v0, %v9680_v35 }
 0x10a   :  { %v9750_v41 = vcombine.low %v2429_v61, %v2430_v55  ;;  %v9752_v6 = vld [vmem:[#allocation2 + $0x158] ss:$0 sps:$4 sm:$0x11]   ;;  %v434_v52 = vrot.slane %v279_v45, 7  ;;  %v435_v58 = vrot.slane %v280_v26, 7  ;;  %v3492_v30 = vsel %vm2236_vm5, %v11206_v54, %v9670_v57 }
 0x10b   :  { %3195 = vrot.lane.b32.xlu0 %v3062_v53, %s8275_s14  ;;  %5428 = vrot.lane.b32.xlu1 %v5342_v13, %s8274_s11  ;;  %v4898_v33 = vor.u32 %v4897_v17, %v4893_v50  ;;  %v7456_v51 = vunpack.c.h.bf16 %v7499_v20  ;;  %v3071_v35 = vshll.u32 %v9752_v6, 16  ;;  %v210_v31 = vmul.f32 %v9720_v28, %v7455_v63  ;;  %v9766_v12 = vpop.permute.xlu0 %2198  ;;  %v9771_v20 = vld [vmem:[#allocation2 + $0xa4] ss:$0 sps:$4 sm:$0x11]   ;;  %v4494_v45 = vld [vmem:[#allocation2 + $0x90] sm:$0xe] }
 0x10c   :  { %v3064_v5 = vshrl.u32 %v9750_v41, 16  ;;  %v3066_v40 = vshll.u32 %v9750_v41, 16  ;;  %v6879_v32 = vcombine.low %v2500_v25, %v2430_v55  ;;  %v436_v37 = vsel %vm355_vm2, %v434_v52, %v435_v58  ;;  %v11207_v55 = vld [vmem:[#allocation12_spill] sm:$0xff] }
 0x10d   :  { %v574_v21 = vsel %vm355_vm2, 0.0, %v434_v52  ;;  %v606_v57 = vsel %vm355_vm2, %v435_v58, 0.0  ;;  %v3073_v34 = vrot.slane %v3071_v35, 1  ;;  %v7264_v13 = vpack.c.bf16 %v436_v37, %v436_v37  ;;  %v3430_v58 = vpop.permute.xlu1 %3429 }
 0x10e   :  { %v3068_v50 = vrot.slane %v3066_v40, 1  ;;  %v7263_v61 = vpack.c.bf16 %v574_v21, %v574_v21  ;;  %v7265_v53 = vpack.c.bf16 %v606_v57, %v606_v57  ;;  %v4903_v26 = vsel %vm1530_vm4, %v4898_v33, %v4902_v11 }
 0x10f   :  { %5430 = vrot.lane.b32.xlu1 %v5345_v60, %s8274_s11  ;;  %v211_v25 = vmul.f32 %v9720_v28, %v7456_v51  ;;  %v2264_v17 = vsel %vm2236_vm5, %v11207_v55, %v9709_v7  ;;  %1126 = vst.msk [vmem:[#allocation2 + $0x160] sm:$0xf] %vm1036_vm0, %v7264_v13  ;;  %v281_v52 = vadd.f32 %v9743_v36, %v210_v31  ;;  %v3382_v11 = vrot.slane %v6879_v32, 1  ;;  %v4495_v51 = vld [vmem:[#allocation2 + $0x9c] sm:$0xe] }
 0x110   :  { %v3069_v63 = vor.u32 %v3068_v50, %v3064_v5  ;;  %1125 = vst.msk [vmem:[#allocation2 + $0x15c] sm:$0xf] %vm1036_vm0, %v7263_v61  ;;  %v2327_v0 = vsel %vm2301_vm6, %v2262_v23, %v9711_v16  ;;  %v9784_v60 = vcombine.low %v4410_v24, %v4411_v48  ;;  %v4912_v7 = vshll.u32 %v9771_v20, 16  ;;  %v9794_v24 = vpop.permute.xlu0 %1943  ;;  %v7500_v50 = vld [vmem:[%s11145_s0 + $0xe0] sm:$0xff]   ;;  %v9815_v55 = vld [vmem:[#allocation2 + $0xac] sm:$0xf] }
 0x111   :  { %1127 = vst.msk [vmem:[#allocation2 + $0x164] sm:$0x1] %vm1039_vm1, %v7265_v53  ;;  %v282_v33 = vadd.f32 %v9743_v36, %v211_v25  ;;  %v7048_v54 = vcombine.low %v4494_v45, %v9690_v3  ;;  %7730 = vmatprep.mubr.msk.bf16.mxu0 %vm3644_vm7, %v2327_v0  ;;  %v3383_v40 = vrot.slane %v9752_v6, 1  ;;  %v437_v16 = vrot.slane %v281_v52, 7  ;;  %v11208_v45 = vld [vmem:[#allocation13_spill] sm:$0xff] }
 0x112   :  { %v3074_v5 = vsel %vm1530_vm4, %v3069_v63, %v3073_v34  ;;  %v4907_v23 = vshll.u32 %v9784_v60, 16  ;;  %v4905_v31 = vshrl.u32 %v9784_v60, 16  ;;  %v9799_v3 = vrot.slane %v4912_v7, 1  ;;  %v4412_v25 = vld [vmem:[#allocation2 + $0xa8] sm:$0xf] }
 0x113   :  { %3197 = vrot.lane.b32.xlu0 %v3074_v5, %s8275_s14  ;;  %5176 = vrot.lane.b32.xlu1 %v4903_v26, %s8275_s14  ;;  %v438_v35 = vrot.slane %v282_v33, 7  ;;  %v5347_v32 = vrot.slane %v9692_v18, 1  ;;  %v575_v37 = vsel %vm355_vm2, 0.0, %v437_v16  ;;  %v5346_v21 = vrot.slane %v7048_v54, 1 }
 0x114   :  { %v3556_v6 = vsel %vm2301_vm6, %v3492_v30, %v3428_v27  ;;  %v7049_v57 = vcombine.low %v4495_v51, %v4411_v48  ;;  %v7266_v13 = vpack.c.bf16 %v575_v37, %v575_v37  ;;  %v3494_v53 = vsel %vm2236_vm5, %v11208_v45, %v9746_v42  ;;  %v9813_v18 = vld [vmem:[#allocation2 + $0xb0] ss:$0 sps:$4 sm:$0x11]  }
 0x115   :  { %v439_v34 = vsel %vm355_vm2, %v437_v16, %v438_v35  ;;  %v607_v61 = vsel %vm355_vm2, %v438_v35, 0.0  ;;  %7654 = vmatprep.mubr.msk.bf16.mxu1 %vm3644_vm7, %v3556_v6  ;;  %v4909_v30 = vrot.slane %v4907_v23, 1  ;;  %v2329_v33 = vsel %vm2301_vm6, %v2264_v17, %v9766_v12 }
 0x116   :  { %v7267_v26 = vpack.c.bf16 %v439_v34, %v439_v34  ;;  %v7268_v27 = vpack.c.bf16 %v607_v61, %v607_v61  ;;  %v5349_v48 = vrot.slane %v7049_v57, 1  ;;  %v9817_v63 = vpop.permute.xlu1 %3175  ;;  %v2432_v0 = vld [vmem:[#allocation2 + $0x160] sm:$0xf]  ;;  %1128 = vst.msk [vmem:[#allocation2 + $0x168] sm:$0xf] %vm1036_vm0, %v7266_v13  ;;  %v3558_v7 = vsel %vm2301_vm6, %v3494_v53, %v3430_v58  ;;  %7731 = vmatmul.mubr.msk.bf16.gmra.mrb[24].mxu0 %vm3644_vm7, %v2329_v33 }
 0x117   :  { %5174 = vrot.lane.b32.xlu0 %v9734_v44, %s8275_s14  ;;  %v2431_v52 = vld [vmem:[#allocation2 + $0x15c] sm:$0xf]  ;;  %v7459_v54 = vunpack.c.l.bf16 %v7500_v50  ;;  %v7460_v51 = vunpack.c.h.bf16 %v7500_v50  ;;  %v3384_v5 = vsel %vm2075_vm3, %v3382_v11, %v3383_v40  ;;  %v5350_v35 = vrot.slane %v9771_v20, 1  ;;  %7655 = vmatmul.mubr.msk.bf16.gmra.mrb[24].mxu1 %vm3644_vm7, %v3558_v7  ;;  %v9833_v12 = vpop.permute.xlu0 %1945 }
 0x118   :  { %v2501_v42 = vld [vmem:[#allocation2 + $0x15c] sm:$0xe]  ;;  %v9826_v16 = vcombine.low %v2431_v52, %v2432_v0  ;;  %v8129_v23 = vld [vmem:[#allocation2 + $0x164] ss:$0 sps:$4 sm:$0x11]   ;;  %v9838_v11 = vcombine.low %v4412_v25, %v9815_v55  ;;  %v4924_v40 = vshll.u32 %v9813_v18, 16  ;;  %v5348_v61 = vsel %vm2075_vm3, %v5346_v21, %v5347_v32 }
 0x119   :  { %1129 = vst.msk [vmem:[#allocation2 + $0x16c] sm:$0xf] %vm1036_vm0, %v7267_v26  ;;  %v6880_v44 = vcombine.low %v2501_v42, %v2432_v0  ;;  %v212_v17 = vmul.f32 %v9720_v28, %v7459_v54  ;;  %v213_v58 = vmul.f32 %v9720_v28, %v7460_v51  ;;  %v3083_v20 = vshll.u32 %v8129_v23, 16  ;;  %v7501_v52 = vld [vmem:[%s11145_s0 + $0xe8] sm:$0xff]  }
 0x11a   :  { %1130 = vst.msk [vmem:[#allocation2 + $0x170] sm:$0x1] %vm1039_vm1, %v7268_v27  ;;  %11209 = vst [vmem:[#allocation3_spill] sm:$0xff] %v9838_v11  ;;  %v3076_v37 = vshrl.u32 %v9826_v16, 16  ;;  %v3078_v6 = vshll.u32 %v9826_v16, 16  ;;  %v2201_v50 = vpop.permute.xlu1 %2200  ;;  %v3386_v34 = vrot.slane %v8129_v23, 1  ;;  %v4910_v27 = vor.u32 %v4909_v30, %v4905_v31 }
 0x11b   :  { %v3385_v57 = vrot.slane %v6880_v44, 1  ;;  %3453 = vrot.lane.b32.xlu0 %v3384_v5, %s8274_s11  ;;  %v283_v13 = vadd.f32 %v9743_v36, %v212_v17  ;;  %v284_v45 = vadd.f32 %v9743_v36, %v213_v58  ;;  %v3085_v26 = vrot.slane %v3083_v20, 1  ;;  %v9855_v5 = vpop.permute.xlu0 %3177 }
 0x11c   :  { %v3080_v53 = vrot.slane %v3078_v6, 1  ;;  %v4919_v25 = vshll.u32 %v9838_v11, 16  ;;  %v4917_v7 = vshrl.u32 %v9838_v11, 16  ;;  %v5351_v51 = vsel %vm2075_vm3, %v5349_v48, %v5350_v35 }
 0x11d   :  { %v3387_v0 = vsel %vm2075_vm3, %v3385_v57, %v3386_v34  ;;  %v440_v42 = vrot.slane %v283_v13, 7  ;;  %v441_v33 = vrot.slane %v284_v45, 7  ;;  %v2433_v21 = vld [vmem:[#allocation2 + $0x168] sm:$0xf]  ;;  %v4926_v30 = vrot.slane %v4924_v40, 1 }
 0x11e   :  { %v3081_v32 = vor.u32 %v3080_v53, %v3076_v37  ;;  %3455 = vrot.lane.b32.xlu1 %v3387_v0, %s8274_s11  ;;  %v2502_v54 = vld [vmem:[#allocation2 + $0x168] sm:$0xe]  ;;  %v4921_v31 = vrot.slane %v4919_v25, 1  ;;  %v3432_v23 = vpop.permute.xlu1 %3431  ;;  %v7463_v20 = vunpack.c.l.bf16 %v7501_v52  ;;  %v7464_v25 = vunpack.c.h.bf16 %v7501_v52 }
 0x11f   :  { %v442_v17 = vsel %vm355_vm2, %v440_v42, %v441_v33  ;;  %v576_v58 = vsel %vm355_vm2, 0.0, %v440_v42  ;;  %v608_v6 = vsel %vm355_vm2, %v441_v33, 0.0  ;;  %v11210_v45 = vld [vmem:[#allocation14_spill] sm:$0xff] }
 0x120   :  { %v2434_v44 = vld [vmem:[#allocation2 + $0x16c] sm:$0xf]  ;;  %v3086_v37 = vsel %vm1530_vm4, %v3081_v32, %v3085_v26  ;;  %v7269_v48 = vpack.c.bf16 %v576_v58, %v576_v58  ;;  %v7270_v35 = vpack.c.bf16 %v442_v17, %v442_v17  ;;  %v7271_v40 = vpack.c.bf16 %v608_v6, %v608_v6  ;;  %v2203_v6 = vpop.permute.xlu0 %2202 }
 0x121   :  { %v9861_v57 = vcombine.low %v2433_v21, %v2434_v44  ;;  %v8133_v34 = vld [vmem:[#allocation2 + $0x170] ss:$0 sps:$4 sm:$0x11]   ;;  %v6881_v13 = vcombine.low %v2502_v54, %v2434_v44  ;;  %3199 = vrot.lane.b32.xlu0 %v3086_v37, %s8275_s14  ;;  %v2266_v53 = vsel %vm2236_vm5, %v11210_v45, %v9794_v24  ;;  %v4922_v26 = vor.u32 %v4921_v31, %v4917_v7  ;;  %v4414_v31 = vld [vmem:[#allocation2 + $0xb4] sm:$0xf] }
 0x122   :  { %v3095_v33 = vshll.u32 %v8133_v34, 16  ;;  %5432 = vrot.lane.b32.xlu1 %v5348_v61, %s8274_s11  ;;  %1131 = vst.msk [vmem:[#allocation2 + $0x174] sm:$0xf] %vm1036_vm0, %v7269_v48  ;;  %v3434_v32 = vpop.permute.xlu1 %3433  ;;  %v3389_v54 = vrot.slane %v8133_v34, 1  ;;  %1132 = vst.msk [vmem:[#allocation2 + $0x178] sm:$0xf] %vm1036_vm0, %v7270_v35  ;;  %v214_v24 = vmul.f32 %v9720_v28, %v7463_v20  ;;  %v215_v52 = vmul.f32 %v9720_v28, %v7464_v25 }
 0x123   :  { %v3088_v0 = vshrl.u32 %v9861_v57, 16  ;;  %v3090_v42 = vshll.u32 %v9861_v57, 16  ;;  %v3388_v21 = vrot.slane %v6881_v13, 1  ;;  %1133 = vst.msk [vmem:[#allocation2 + $0x17c] sm:$0x1] %vm1039_vm1, %v7271_v40  ;;  %v2331_v58 = vsel %vm2301_vm6, %v2266_v53, %v2201_v50  ;;  %v11211_v48 = vld [vmem:[#allocation16_spill] sm:$0xff] }
 0x124   :  { %v3097_v17 = vrot.slane %v3095_v33, 1  ;;  %v285_v61 = vadd.f32 %v9743_v36, %v214_v24  ;;  %v286_v7 = vadd.f32 %v9743_v36, %v215_v52  ;;  %v9878_v37 = vld [vmem:[#allocation2 + $0xb8] sm:$0xf]  ;;  %v4496_v34 = vld [vmem:[#allocation2 + $0xa8] sm:$0xe]  ;;  %7734 = vmatprep.mubr.msk.bf16.mxu0 %vm3644_vm7, %v2331_v58  ;;  %v4915_v20 = vsel %vm1530_vm4, %v4910_v27, %v9799_v3  ;;  %v11212_v25 = vld [vmem:[#allocation17_spill] sm:$0xff] }
 0x125   :  { %v3092_v44 = vrot.slane %v3090_v42, 1  ;;  %v3496_v50 = vsel %vm2236_vm5, %v11211_v48, %v9817_v63  ;;  %v4927_v40 = vsel %vm1530_vm4, %v4922_v26, %v4926_v30  ;;  %v2268_v42 = vsel %vm2236_vm5, %v11212_v25, %v9833_v12  ;;  %v4497_v33 = vld [vmem:[#allocation2 + $0xb4] sm:$0xe]  ;;  %v4416_v25 = vld [vmem:[#allocation2 + $0xc0] sm:$0xf] }
 0x126   :  { %5434 = vrot.lane.b32.xlu1 %v5351_v51, %s8274_s11  ;;  %v9887_v35 = vpop.permute.xlu1 %5156  ;;  %v443_v45 = vrot.slane %v285_v61, 7  ;;  %v444_v53 = vrot.slane %v286_v7, 7  ;;  %v3390_v27 = vsel %vm2075_vm3, %v3388_v21, %v3389_v54  ;;  %v9898_v51 = vcombine.low %v4414_v31, %v9878_v37  ;;  %v7502_v48 = vld [vmem:[%s11145_s0 + $0xf0] sm:$0xff]  }
 0x127   :  { %v3093_v13 = vor.u32 %v3092_v44, %v3088_v0  ;;  %v9893_v0 = vld [vmem:[#allocation2 + $0xbc] ss:$0 sps:$4 sm:$0x11]   ;;  %v7050_v63 = vcombine.low %v4496_v34, %v9815_v55  ;;  %v3560_v44 = vsel %vm2301_vm6, %v3496_v50, %v3432_v23  ;;  %v3180_v55 = vpop.permute.xlu0 %3179  ;;  %v3498_v23 = vsel %vm2236_vm5, %v9143_v10, %v9855_v5  ;;  %v9924_v10 = vld [vmem:[#allocation2 + $0xc4] sm:$0xf] }
 0x128   :  { %11213 = vst [vmem:[#allocation4_spill] sm:$0xff] %v9898_v51  ;;  %v445_v26 = vsel %vm355_vm2, %v443_v45, %v444_v53  ;;  %v577_v24 = vsel %vm355_vm2, 0.0, %v443_v45  ;;  %v609_v12 = vsel %vm355_vm2, %v444_v53, 0.0  ;;  %7658 = vmatprep.mubr.msk.bf16.mxu1 %vm3644_vm7, %v3560_v44  ;;  %v5353_v50 = vrot.slane %v9813_v18, 1 }
 0x129   :  { %v3098_v3 = vsel %vm1530_vm4, %v3093_v13, %v3097_v17  ;;  %v2435_v30 = vld [vmem:[#allocation2 + $0x174] sm:$0xf]  ;;  %v2436_v17 = vld [vmem:[#allocation2 + $0x178] sm:$0xf]  ;;  %v7272_v21 = vpack.c.bf16 %v577_v24, %v577_v24  ;;  %v7273_v54 = vpack.c.bf16 %v445_v26, %v445_v26  ;;  %v7274_v58 = vpack.c.bf16 %v609_v12, %v609_v12 }
 0x12a   :  { %3201 = vrot.lane.b32.xlu0 %v3098_v3, %s8275_s14  ;;  %v2503_v52 = vld [vmem:[#allocation2 + $0x174] sm:$0xe]  ;;  %5180 = vrot.lane.b32.xlu1 %v4927_v40, %s8275_s14  ;;  %v3436_v61 = vpop.permute.xlu1 %3435  ;;  %v9908_v7 = vcombine.low %v2435_v30, %v2436_v17  ;;  %v8139_v31 = vld [vmem:[#allocation2 + $0x17c] ss:$0 sps:$4 sm:$0x11]   ;;  %v7051_v40 = vcombine.low %v4497_v33, %v9878_v37  ;;  %v2333_v45 = vsel %vm2301_vm6, %v2268_v42, %v2203_v6  ;;  %v4931_v37 = vshll.u32 %v9898_v51, 16 }
 0x12b   :  { %v6882_v34 = vcombine.low %v2503_v52, %v2436_v17  ;;  %1134 = vst.msk [vmem:[#allocation2 + $0x180] sm:$0xf] %vm1036_vm0, %v7272_v21  ;;  %1135 = vst.msk [vmem:[#allocation2 + $0x184] sm:$0xf] %vm1036_vm0, %v7273_v54  ;;  %v3562_v53 = vsel %vm2301_vm6, %v3498_v23, %v3434_v32  ;;  %v3107_v30 = vshll.u32 %v8139_v31, 16  ;;  %v3392_v18 = vrot.slane %v8139_v31, 1  ;;  %7735 = vmatmul.mubr.msk.bf16.gmra.mrb[28].mxu0 %vm3644_vm7, %v2333_v45 }
 0x12c   :  { %11214 = vst [vmem:[#allocation5_spill] sm:$0xff] %v9908_v7  ;;  %1136 = vst.msk [vmem:[#allocation2 + $0x188] sm:$0x1] %vm1039_vm1, %v7274_v58  ;;  %v3100_v5 = vshrl.u32 %v9908_v7, 16  ;;  %v3102_v3 = vshll.u32 %v9908_v7, 16  ;;  %7659 = vmatmul.mubr.msk.bf16.gmra.mrb[28].mxu1 %vm3644_vm7, %v3562_v53  ;;  %v5352_v33 = vrot.slane %v7050_v63, 1  ;;  %v7467_v6 = vunpack.c.l.bf16 %v7502_v48 }
 0x12d   :  { %v3391_v26 = vrot.slane %v6882_v34, 1  ;;  %v9931_v42 = vld [vmem:[#allocation2 + $0xc8] ss:$0 sps:$4 sm:$0x11]   ;;  %v3109_v24 = vrot.slane %v3107_v30, 1  ;;  %v7468_v12 = vunpack.c.h.bf16 %v7502_v48  ;;  %v9937_v52 = vcombine.low %v4416_v25, %v9924_v10  ;;  %v7503_v54 = vld [vmem:[%s11145_s0 + $0xf8] sm:$0xff]  }
 0x12e   :  { %5178 = vrot.lane.b32.xlu0 %v4915_v20, %s8275_s14  ;;  %v9934_v32 = vpop.permute.xlu1 %5412  ;;  %v3104_v20 = vrot.slane %v3102_v3, 1  ;;  %v5355_v17 = vrot.slane %v7051_v40, 1  ;;  %v5356_v21 = vrot.slane %v9893_v0, 1  ;;  %v216_v63 = vmul.f32 %v9720_v28, %v7467_v6 }
 0x12f   :  { %11215 = vst [vmem:[#allocation6_spill] sm:$0xff] %v9937_v52  ;;  %v3393_v44 = vsel %vm2075_vm3, %v3391_v26, %v3392_v18  ;;  %v9945_v58 = vpop.permute.xlu0 %3181  ;;  %v4929_v34 = vshrl.u32 %v9898_v51, 16  ;;  %v217_v23 = vmul.f32 %v9720_v28, %v7468_v12  ;;  %v4943_v48 = vshll.u32 %v9937_v52, 16 }
 0x130   :  { %v3105_v31 = vor.u32 %v3104_v20, %v3100_v5  ;;  %3459 = vrot.lane.b32.xlu1 %v3393_v44, %s8274_s11  ;;  %v4933_v40 = vrot.slane %v4931_v37, 1  ;;  %v5354_v45 = vsel %vm2075_vm3, %v5352_v33, %v5353_v50  ;;  %v287_v53 = vadd.f32 %v9743_v36, %v216_v63 }
 0x131   :  { %v4948_v25 = vshll.u32 %v9931_v42, 16  ;;  %v288_v26 = vadd.f32 %v9743_v36, %v217_v23  ;;  %v3500_v18 = vsel %vm2236_vm5, %v9161_v59, %v3180_v55  ;;  %v7471_v6 = vunpack.c.l.bf16 %v7503_v54 }
 0x132   :  { %3457 = vrot.lane.b32.xlu0 %v3390_v27, %s8274_s11  ;;  %v9955_v3 = vpop.permute.xlu1 %5414  ;;  %v3110_v27 = vsel %vm1530_vm4, %v3105_v31, %v3109_v24  ;;  %v2437_v5 = vld [vmem:[#allocation2 + $0x180] sm:$0xf]  ;;  %v2438_v30 = vld [vmem:[#allocation2 + $0x184] sm:$0xf]  ;;  %v5357_v50 = vsel %vm2075_vm3, %v5355_v17, %v5356_v21  ;;  %v446_v33 = vrot.slane %v287_v53, 7  ;;  %v3564_v12 = vsel %vm2301_vm6, %v3500_v18, %v3436_v61 }
 0x133   :  { %v9961_v20 = vcombine.low %v2437_v5, %v2438_v30  ;;  %v9963_v37 = vld [vmem:[#allocation2 + $0x188] ss:$0 sps:$4 sm:$0x11]   ;;  %v9967_v44 = vpop.permute.xlu0 %5158  ;;  %v447_v24 = vrot.slane %v288_v26, 7  ;;  %v4941_v63 = vshrl.u32 %v9937_v52, 16  ;;  %v4945_v59 = vrot.slane %v4943_v48, 1  ;;  %7662 = vmatprep.mubr.msk.bf16.mxu1 %vm3644_vm7, %v3564_v12 }
 0x134   :  { %5436 = vrot.lane.b32.xlu1 %v5354_v45, %s8274_s11  ;;  %v7472_v55 = vunpack.c.h.bf16 %v7503_v54  ;;  %v3119_v17 = vshll.u32 %v9963_v37, 16  ;;  %v2504_v21 = vld [vmem:[#allocation2 + $0x180] sm:$0xe]  ;;  %v218_v61 = vmul.f32 %v9720_v28, %v7471_v6  ;;  %v578_v45 = vsel %vm355_vm2, 0.0, %v446_v33 }
 0x135   :  { %11216 = vst [vmem:[#allocation7_spill] sm:$0xff] %v9961_v20  ;;  %v3112_v31 = vshrl.u32 %v9961_v20, 16  ;;  %v3114_v23 = vshll.u32 %v9961_v20, 16  ;;  %v448_v53 = vsel %vm355_vm2, %v446_v33, %v447_v24  ;;  %v4950_v5 = vrot.slane %v4948_v25, 1 }
 0x136   :  { %3203 = vrot.lane.b32.xlu0 %v3110_v27, %s8275_s14  ;;  %v610_v27 = vsel %vm355_vm2, %v447_v24, 0.0  ;;  %v9980_v48 = vpop.permute.xlu1 %5160  ;;  %v3121_v26 = vrot.slane %v3119_v17, 1  ;;  %v7275_v18 = vpack.c.bf16 %v578_v45, %v578_v45  ;;  %v7276_v13 = vpack.c.bf16 %v448_v53, %v448_v53  ;;  %v10013_v53 = vld [vmem:[#allocation2 + $0xf4] sm:$0xf] }
 0x137   :  { %v3116_v54 = vrot.slane %v3114_v23, 1  ;;  %v6883_v52 = vcombine.low %v2504_v21, %v2438_v30  ;;  %v7277_v20 = vpack.c.bf16 %v610_v27, %v610_v27  ;;  %v4946_v6 = vor.u32 %v4945_v59, %v4941_v63  ;;  %v3438_v24 = vpop.permute.xlu0 %3437  ;;  %v11218_v59 = vld [vmem:[#allocation15_spill] sm:$0xff]  ;;  %v4498_v23 = vld [vmem:[#allocation2 + $0xc0] sm:$0xe] }
 0x138   :  { %5438 = vrot.lane.b32.xlu1 %v5357_v50, %s8274_s11  ;;  %v219_v12 = vmul.f32 %v9720_v28, %v7472_v55  ;;  %v4934_v7 = vor.u32 %v4933_v40, %v4929_v34  ;;  %v11217_v33 = vshll.u32 %v9893_v0, 16  ;;  %1137 = vst.msk [vmem:[#allocation2 + $0x18c] sm:$0xf] %vm1036_vm0, %v7275_v18  ;;  %1138 = vst.msk [vmem:[#allocation2 + $0x190] sm:$0xf] %vm1036_vm0, %v7276_v13  ;;  %v3395_v13 = vrot.slane %v9963_v37, 1 }
 0x139   :  { %v3117_v51 = vor.u32 %v3116_v54, %v3112_v31  ;;  %v289_v25 = vadd.f32 %v9743_v36, %v218_v61  ;;  %1139 = vst.msk [vmem:[#allocation2 + $0x194] sm:$0x1] %vm1039_vm1, %v7277_v20  ;;  %v4951_v30 = vsel %vm1530_vm4, %v4946_v6, %v4950_v5  ;;  %v4418_v34 = vld [vmem:[#allocation2 + $0xcc] sm:$0xf]  ;;  %v9993_v40 = vld [vmem:[#allocation2 + $0xd0] sm:$0xf]  ;;  %v5477_v20 = vsel %vm2236_vm5, %v11218_v59, %v9887_v35 }
 0x13a   :  { %v4938_v11 = vrot.slane %v11217_v33, 1  ;;  %v290_v50 = vadd.f32 %v9743_v36, %v219_v12  ;;  %v3394_v0 = vrot.slane %v6883_v52, 1  ;;  %v5541_v17 = vsel %vm2301_vm6, %v5477_v20, %v9934_v32  ;;  %v4420_v35 = vld [vmem:[#allocation2 + $0xf0] sm:$0xf]  ;;  %v4499_v5 = vld [vmem:[#allocation2 + $0xcc] sm:$0xe] }
 0x13b   :  { %v3122_v28 = vsel %vm1530_vm4, %v3117_v51, %v3121_v26  ;;  %v449_v63 = vrot.slane %v289_v25, 7  ;;  %v10010_v61 = vcombine.low %v4418_v34, %v9993_v40  ;;  %7782 = vmatprep.mubr.msk.bf16.mxu0 %vm3644_vm7, %v5541_v17  ;;  %v3502_v45 = vsel %vm2236_vm5, %v9279_v39, %v9945_v58  ;;  %v10018_v32 = vld [vmem:[#allocation2 + $0xd4] ss:$0 sps:$4 sm:$0x11]   ;;  %v10049_v59 = vld [vmem:[#allocation2 + $0xdc] sm:$0xf] }
 0x13c   :  { %3205 = vrot.lane.b32.xlu0 %v3122_v28, %s8275_s14  ;;  %5184 = vrot.lane.b32.xlu1 %v4951_v30, %s8275_s14  ;;  %v450_v55 = vrot.slane %v290_v50, 7  ;;  %v10001_v31 = vpop.permute.xlu1 %3439  ;;  %v4939_v36 = vsel %vm1530_vm4, %v4934_v7, %v4938_v11  ;;  %v5479_v27 = vsel %vm2236_vm5, %v9114_v62, %v9967_v44  ;;  %v3396_v26 = vsel %vm2075_vm3, %v3394_v0, %v3395_v13  ;;  %v10045_v28 = vld [vmem:[#allocation2 + $0xf8] ss:$0 sps:$4 sm:$0x11]  }
 0x13d   :  { %v579_v51 = vsel %vm355_vm2, 0.0, %v449_v63  ;;  %v7052_v39 = vcombine.low %v4498_v23, %v9924_v10  ;;  %v3566_v58 = vsel %vm2301_vm6, %v3502_v45, %v3438_v24  ;;  %v5543_v33 = vsel %vm2301_vm6, %v5479_v27, %v9955_v3  ;;  %v1178_v24 = vld [vmem:[#allocation2 + $0xd8] sm:$0xf] }
 0x13e   :  { %v451_v52 = vsel %vm355_vm2, %v449_v63, %v450_v55  ;;  %v611_v37 = vsel %vm355_vm2, %v450_v55, 0.0  ;;  %v7278_v21 = vpack.c.bf16 %v579_v51, %v579_v51  ;;  %v10039_v50 = vcombine.low %v4420_v35, %v10013_v53  ;;  %7663 = vmatmul.mubr.msk.bf16.gmra.mrb[32].mxu1 %vm3644_vm7, %v3566_v58  ;;  %7783 = vmatmul.mubr.msk.bf16.vlgmr.msra.gmra.mrb[0].mxu0 %vm3644_vm7, %v5543_v33 }
 0x13f   :  { %v7279_v11 = vpack.c.bf16 %v451_v52, %v451_v52  ;;  %v7280_v7 = vpack.c.bf16 %v611_v37, %v611_v37  ;;  %v10023_v54 = vpop.permute.xlu0 %3183  ;;  %v2439_v18 = vld [vmem:[#allocation2 + $0x18c] sm:$0xf]  ;;  %v2440_v6 = vld [vmem:[#allocation2 + $0x190] sm:$0xf]  ;;  %v4955_v10 = vshll.u32 %v10010_v61, 16  ;;  %v7053_v3 = vcombine.low %v4499_v5, %v9993_v40 }
 0x140   :  { %5182 = vrot.lane.b32.xlu0 %v4939_v36, %s8275_s14  ;;  %1140 = vst.msk [vmem:[#allocation2 + $0x198] sm:$0xf] %vm1036_vm0, %v7278_v21  ;;  %v2505_v12 = vld [vmem:[#allocation2 + $0x18c] sm:$0xe]  ;;  %v10032_v62 = vpop.permute.xlu1 %5416  ;;  %v10034_v44 = vcombine.low %v2439_v18, %v2440_v6  ;;  %v5358_v55 = vrot.slane %v7052_v39, 1  ;;  %v5359_v36 = vrot.slane %v9931_v42, 1 }
 0x141   :  { %v8151_v25 = vld [vmem:[#allocation2 + $0x194] ss:$0 sps:$4 sm:$0x11]   ;;  %1141 = vst.msk [vmem:[#allocation2 + $0x19c] sm:$0xf] %vm1036_vm0, %v7279_v11  ;;  %v6884_v30 = vcombine.low %v2505_v12, %v2440_v6  ;;  %v4960_v40 = vshll.u32 %v10018_v32, 16 }
 0x142   :  { %1142 = vst.msk [vmem:[#allocation2 + $0x1a0] sm:$0x1] %vm1039_vm1, %v7280_v7  ;;  %v3124_v63 = vshrl.u32 %v10034_v44, 16  ;;  %v3126_v34 = vshll.u32 %v10034_v44, 16  ;;  %v3131_v0 = vshll.u32 %v8151_v25, 16  ;;  %v3398_v20 = vrot.slane %v8151_v25, 1 }
 0x143   :  { %v3397_v13 = vrot.slane %v6884_v30, 1  ;;  %v4967_v17 = vshll.u32 %v10039_v50, 16  ;;  %v4953_v35 = vshrl.u32 %v10010_v61, 16  ;;  %v4957_v11 = vrot.slane %v4955_v10, 1  ;;  %v1258_v10 = vld [vmem:[#allocation2 + $0xd8] sm:$0xe] }
 0x144   :  { %3461 = vrot.lane.b32.xlu0 %v3396_v26, %s8274_s11  ;;  %v3128_v51 = vrot.slane %v3126_v34, 1  ;;  %v3133_v23 = vrot.slane %v3131_v0, 1  ;;  %v10057_v37 = vpop.permute.xlu1 %5418  ;;  %v10062_v7 = vcombine.low %v1178_v24, %v10049_v59  ;;  %v5361_v27 = vrot.slane %v7053_v3, 1  ;;  %v10074_v30 = vld [vmem:[#allocation2 + $0xe0] ss:$0 sps:$4 sm:$0x11]  }
 0x145   :  { %v3399_v21 = vsel %vm2075_vm3, %v3397_v13, %v3398_v20  ;;  %v5362_v5 = vrot.slane %v10018_v32, 1  ;;  %v4965_v26 = vshrl.u32 %v10039_v50, 16  ;;  %v5360_v6 = vsel %vm2075_vm3, %v5358_v55, %v5359_v36  ;;  %v1180_v34 = vld [vmem:[#allocation2 + $0xe4] sm:$0xf]  ;;  %v10078_v0 = vld [vmem:[#allocation2 + $0xe8] sm:$0xf] }
 0x146   :  { %v10055_v52 = vpop.permute.xlu0 %3185  ;;  %v3129_v45 = vor.u32 %v3128_v51, %v3124_v63  ;;  %3463 = vrot.lane.b32.xlu1 %v3399_v21, %s8274_s11  ;;  %v4969_v12 = vrot.slane %v4967_v17, 1  ;;  %v4972_v39 = vshll.u32 %v10045_v28, 16  ;;  %v4958_v32 = vor.u32 %v4957_v11, %v4953_v35  ;;  %v4500_v11 = vld [vmem:[#allocation2 + $0xf0] sm:$0xe] }
 0x147   :  { %v2441_v42 = vld [vmem:[#allocation2 + $0x198] sm:$0xf]  ;;  %v4962_v24 = vrot.slane %v4960_v40, 1  ;;  %v1726_v63 = vshll.u32 %v10062_v7, 16  ;;  %v5363_v51 = vsel %vm2075_vm3, %v5361_v27, %v5362_v5  ;;  %v3504_v21 = vsel %vm2236_vm5, %v9379_v56, %v10023_v54  ;;  %v4422_v27 = vld [vmem:[#allocation2 + $0xfc] sm:$0xf] }
 0x148   :  { %v2442_v18 = vld [vmem:[#allocation2 + $0x19c] sm:$0xf]  ;;  %v3134_v58 = vsel %vm1530_vm4, %v3129_v45, %v3133_v23  ;;  %v2506_v36 = vld [vmem:[#allocation2 + $0x198] sm:$0xe]  ;;  %v10085_v23 = vpop.permute.xlu1 %5164  ;;  %v4970_v17 = vor.u32 %v4969_v12, %v4965_v26  ;;  %v4974_v40 = vrot.slane %v4972_v39, 1  ;;  %v6774_v35 = vcombine.low %v1258_v10, %v10049_v59 }
 0x149   :  { %v10070_v33 = vcombine.low %v2441_v42, %v2442_v18  ;;  %v10072_v25 = vld [vmem:[#allocation2 + $0x1a0] ss:$0 sps:$4 sm:$0x11]   ;;  %3207 = vrot.lane.b32.xlu0 %v3134_v58, %s8275_s14  ;;  %v10092_v58 = vcombine.low %v1180_v34, %v10078_v0  ;;  %v4963_v5 = vsel %vm1530_vm4, %v4958_v32, %v4962_v24  ;;  %v6885_v26 = vcombine.low %v2506_v36, %v2442_v18  ;;  %v10101_v34 = vld [vmem:[#allocation2 + $0xec] ss:$0 sps:$4 sm:$0x11]  }
 0x14a   :  { %v5163_v3 = vpop.permute.xlu0 %5162  ;;  %v3143_v55 = vshll.u32 %v10072_v25, 16  ;;  %5440 = vrot.lane.b32.xlu1 %v5360_v6, %s8274_s11  ;;  %v3568_v6 = vsel %vm2301_vm6, %v3504_v21, %v10001_v31  ;;  %v1724_v12 = vshrl.u32 %v10062_v7, 16  ;;  %v4423_v39 = vld [vmem:[#allocation2 + $0x100] sm:$0xf]  ;;  %v1728_v59 = vrot.slane %v1726_v63, 1 }
 0x14b   :  { %v3136_v13 = vshrl.u32 %v10070_v33, 16  ;;  %v3138_v20 = vshll.u32 %v10070_v33, 16  ;;  %7666 = vmatprep.mubr.msk.bf16.mxu1 %vm3644_vm7, %v3568_v6  ;;  %v1731_v10 = vshll.u32 %v10074_v30, 16  ;;  %v7054_v31 = vcombine.low %v4500_v11, %v10013_v53  ;;  %v10113_v36 = vld [vmem:[#allocation2 + $0x104] ss:$0 sps:$4 sm:$0x11]  }
 0x14c   :  { %v3145_v42 = vrot.slane %v3143_v55, 1  ;;  %v5481_v18 = vsel %vm2236_vm5, %v9244_v4, %v9980_v48  ;;  %v2124_v32 = vrot.slane %v6774_v35, 1  ;;  %v2125_v24 = vrot.slane %v10074_v30, 1  ;;  %v4424_v21 = vld [vmem:[#allocation2 + $0x108] sm:$0xf] }
 0x14d   :  { %v3140_v45 = vrot.slane %v3138_v20, 1  ;;  %v4975_v20 = vsel %vm1530_vm4, %v4970_v17, %v4974_v40  ;;  %v1738_v55 = vshll.u32 %v10092_v58, 16  ;;  %v10111_v63 = vcombine.low %v4422_v27, %v4423_v39  ;;  %v10125_v35 = vld [vmem:[#allocation2 + $0x10c] sm:$0xf] }
 0x14e   :  { %v3442_v56 = vpop.permute.xlu0 %3441  ;;  %5442 = vrot.lane.b32.xlu1 %v5363_v51, %s8274_s11  ;;  %v5545_v53 = vsel %vm2301_vm6, %v5481_v18, %v10032_v62  ;;  %v4501_v51 = vld [vmem:[#allocation2 + $0xfc] sm:$0xe]  ;;  %v3400_v40 = vrot.slane %v6885_v26, 1  ;;  %v3401_v4 = vrot.slane %v10072_v25, 1  ;;  %v3506_v48 = vsel %vm2236_vm5, %v9407_v46, %v10055_v52  ;;  %v1182_v26 = vld [vmem:[#allocation2 + $0xf0] sm:$0xf] }
 0x14f   :  { %v3141_v54 = vor.u32 %v3140_v45, %v3136_v13  ;;  %v5483_v30 = vsel %vm2236_vm5, %v9319_v22, %v5163_v3  ;;  %7786 = vmatprep.mubr.msk.bf16.mxu0 %vm3644_vm7, %v5545_v53  ;;  %v5364_v62 = vrot.slane %v7054_v31, 1  ;;  %v5365_v11 = vrot.slane %v10045_v28, 1  ;;  %v10133_v22 = vld [vmem:[#allocation2 + $0x110] ss:$0 sps:$4 sm:$0x11]  }
 0x150   :  { %v3570_v45 = vsel %vm2301_vm6, %v3506_v48, %v3442_v56  ;;  %v5547_v25 = vsel %vm2301_vm6, %v5483_v30, %v10057_v37  ;;  %v2126_v46 = vsel %vm2075_vm3, %v2124_v32, %v2125_v24  ;;  %v7055_v52 = vcombine.low %v4501_v51, %v4423_v39  ;;  %v1259_v24 = vld [vmem:[#allocation2 + $0xe4] sm:$0xe]  ;;  %v1260_v48 = vld [vmem:[#allocation2 + $0xf0] sm:$0xe] }
 0x151   :  { %v3146_v13 = vsel %vm1530_vm4, %v3141_v54, %v3145_v42  ;;  %v3444_v17 = vpop.permute.xlu1 %3443  ;;  %v1733_v42 = vrot.slane %v1731_v10, 1  ;;  %7667 = vmatmul.mubr.msk.bf16.gmra.mrb[36].mxu1 %vm3644_vm7, %v3570_v45  ;;  %7787 = vmatmul.mubr.msk.bf16.gmra.mrb[4].mxu0 %vm3644_vm7, %v5547_v25  ;;  %v1729_v6 = vor.u32 %v1728_v59, %v1724_v12  ;;  %v1743_v27 = vshll.u32 %v10101_v34, 16 }
 0x152   :  { %3209 = vrot.lane.b32.xlu0 %v3146_v13, %s8275_s14  ;;  %5188 = vrot.lane.b32.xlu1 %v4975_v20, %s8275_s14  ;;  %v4979_v28 = vshll.u32 %v10111_v63, 16  ;;  %v10140_v56 = vcombine.low %v4424_v21, %v10125_v35  ;;  %v3402_v39 = vsel %vm2075_vm3, %v3400_v40, %v3401_v4  ;;  %v1736_v54 = vshrl.u32 %v10092_v58, 16  ;;  %v1183_v20 = vld [vmem:[#allocation2 + $0xf4] sm:$0xf] }
 0x153   :  { %v1740_v10 = vrot.slane %v1738_v55, 1  ;;  %v4984_v31 = vshll.u32 %v10113_v36, 16  ;;  %v4977_v12 = vshrl.u32 %v10111_v63, 16  ;;  %v5366_v59 = vsel %vm2075_vm3, %v5364_v62, %v5365_v11  ;;  %v10159_v11 = vld [vmem:[#allocation2 + $0xf8] ss:$0 sps:$4 sm:$0x11]  }
 0x154   :  { %v3188_v3 = vpop.permute.xlu0 %3187  ;;  %v5368_v18 = vrot.slane %v10113_v36, 1  ;;  %v4991_v32 = vshll.u32 %v10140_v56, 16  ;;  %v4989_v13 = vshrl.u32 %v10140_v56, 16  ;;  %v4996_v53 = vshll.u32 %v10133_v22, 16 }
 0x155   :  { %v5421_v37 = vpop.permute.xlu1 %5420  ;;  %v3508_v55 = vsel %vm2236_vm5, %v9492_v19, %v3188_v3  ;;  %v4981_v51 = vrot.slane %v4979_v28, 1  ;;  %v10155_v40 = vcombine.low %v1182_v26, %v1183_v20  ;;  %v1741_v36 = vor.u32 %v1740_v10, %v1736_v54 }
 0x156   :  { %5186 = vrot.lane.b32.xlu0 %v4963_v5, %s8275_s14  ;;  %2204 = vrot.lane.b32.xlu1 %v2126_v46, %s8274_s11  ;;  %v5367_v5 = vrot.slane %v7055_v52, 1  ;;  %v4993_v4 = vrot.slane %v4991_v32, 1  ;;  %v3572_v30 = vsel %vm2301_vm6, %v3508_v55, %v3444_v17  ;;  %v1745_v62 = vrot.slane %v1743_v27, 1  ;;  %v1184_v46 = vld [vmem:[#allocation2 + $0xfc] sm:$0xf] }
 0x157   :  { %7670 = vmatprep.mubr.msk.bf16.mxu1 %vm3644_vm7, %v3572_v30  ;;  %v1734_v25 = vsel %vm1530_vm4, %v1729_v6, %v1733_v42  ;;  %v6775_v19 = vcombine.low %v1259_v24, %v10078_v0  ;;  %v10165_v52 = vld [vmem:[#allocation2 + $0x100] sm:$0xf]  ;;  %v4998_v28 = vrot.slane %v4996_v53, 1  ;;  %v6776_v26 = vcombine.low %v1260_v48, %v1183_v20  ;;  %v4502_v27 = vld [vmem:[#allocation2 + $0x108] sm:$0xe] }
 0x158   :  { %v5369_v17 = vsel %vm2075_vm3, %v5367_v5, %v5368_v18  ;;  %v4994_v3 = vor.u32 %v4993_v4, %v4989_v13  ;;  %v4986_v54 = vrot.slane %v4984_v31, 1  ;;  %v1750_v10 = vshll.u32 %v10155_v40, 16  ;;  %v4426_v18 = vld [vmem:[#allocation2 + $0x114] sm:$0xf]  ;;  %v4427_v20 = vld [vmem:[#allocation2 + $0x118] sm:$0xf] }
 0x159   :  { %v5423_v21 = vpop.permute.xlu1 %5422  ;;  %v1746_v42 = vsel %vm1530_vm4, %v1741_v36, %v1745_v62  ;;  %v2128_v6 = vrot.slane %v10101_v34, 1  ;;  %v5485_v0 = vsel %vm2236_vm5, %v9375_v2, %v10085_v23  ;;  %v2127_v31 = vrot.slane %v6775_v19, 1  ;;  %v4428_v13 = vld [vmem:[#allocation2 + $0x120] sm:$0xf]  ;;  %v10184_v53 = vld [vmem:[#allocation2 + $0x124] sm:$0xf] }
 0x15a   :  { %3465 = vrot.lane.b32.xlu0 %v3402_v39, %s8274_s11  ;;  %5444 = vrot.lane.b32.xlu1 %v5366_v59, %s8274_s11  ;;  %v4982_v39 = vor.u32 %v4981_v51, %v4977_v12  ;;  %v10176_v59 = vcombine.low %v1184_v46, %v10165_v52  ;;  %v1755_v24 = vshll.u32 %v10159_v11, 16  ;;  %v7056_v5 = vcombine.low %v4502_v27, %v10125_v35  ;;  %v4503_v4 = vld [vmem:[#allocation2 + $0x114] sm:$0xe] }
 0x15b   :  { %v3190_v45 = vpop.permute.xlu0 %3189  ;;  %v5549_v34 = vsel %vm2301_vm6, %v5485_v0, %v5421_v37  ;;  %v4999_v2 = vsel %vm1530_vm4, %v4994_v3, %v4998_v28  ;;  %v2130_v23 = vrot.slane %v6776_v26, 1  ;;  %v2131_v55 = vrot.slane %v10159_v11, 1  ;;  %v10193_v37 = vld [vmem:[#allocation2 + $0x104] ss:$0 sps:$4 sm:$0x11]  }
 0x15c   :  { %7790 = vmatprep.mubr.msk.bf16.mxu0 %vm3644_vm7, %v5549_v34  ;;  %v4987_v48 = vsel %vm1530_vm4, %v4982_v39, %v4986_v54  ;;  %v1748_v35 = vshrl.u32 %v10155_v40, 16  ;;  %v1752_v30 = vrot.slane %v1750_v10, 1  ;;  %v1762_v62 = vshll.u32 %v10176_v59, 16  ;;  %v10210_v26 = vld [vmem:[#allocation2 + $0x128] ss:$0 sps:$4 sm:$0x11]  }
 0x15d   :  { %v10178_v12 = vpop.permute.xlu1 %5168  ;;  %v3510_v11 = vsel %vm2236_vm5, %v9521_v15, %v3190_v45  ;;  %v10203_v19 = vcombine.low %v4428_v13, %v10184_v53  ;;  %v5370_v46 = vrot.slane %v7056_v5, 1  ;;  %v2132_v28 = vsel %vm2075_vm3, %v2130_v23, %v2131_v55  ;;  %v8184_v39 = vld [vmem:[#allocation2 + $0x11c] ss:$0 sps:$4 sm:$0x11]   ;;  %v1187_v5 = vld [vmem:[#allocation2 + $0x10c] sm:$0xf] }
 0x15e   :  { %1947 = vrot.lane.b32.xlu0 %v1734_v25, %s8275_s14  ;;  %5446 = vrot.lane.b32.xlu1 %v5369_v17, %s8274_s11  ;;  %v7057_v17 = vcombine.low %v4503_v4, %v4427_v20  ;;  %v2129_v45 = vsel %vm2075_vm3, %v2127_v31, %v2128_v6  ;;  %v1767_v27 = vshll.u32 %v10193_v37, 16  ;;  %v1757_v10 = vrot.slane %v1755_v24, 1  ;;  %v1262_v4 = vld [vmem:[#allocation2 + $0x108] sm:$0xe] }
 0x15f   :  { %v5167_v32 = vpop.permute.xlu0 %5166  ;;  %v5015_v54 = vshll.u32 %v10203_v19, 16  ;;  %v5374_v31 = vrot.slane %v8184_v39, 1  ;;  %v5013_v13 = vshrl.u32 %v10203_v19, 16  ;;  %v5020_v23 = vshll.u32 %v10210_v26, 16 }
 0x160   :  { %v5487_v51 = vsel %vm2236_vm5, %v9441_v47, %v5167_v32  ;;  %v10200_v47 = vcombine.low %v4426_v18, %v4427_v20  ;;  %v1186_v18 = vld [vmem:[#allocation2 + $0x108] sm:$0xf]  ;;  %v1764_v20 = vrot.slane %v1762_v62, 1  ;;  %v5373_v6 = vrot.slane %v7057_v17, 1  ;;  %v1261_v62 = vld [vmem:[#allocation2 + $0xfc] sm:$0xe] }
 0x161   :  { %v5551_v36 = vsel %vm2301_vm6, %v5487_v51, %v5423_v21  ;;  %v5371_v21 = vrot.slane %v10133_v22, 1  ;;  %v1753_v22 = vor.u32 %v1752_v30, %v1748_v35  ;;  %v1769_v51 = vrot.slane %v1767_v27, 1  ;;  %v1188_v17 = vld [vmem:[#allocation2 + $0x114] sm:$0xf] }
 0x162   :  { %1949 = vrot.lane.b32.xlu0 %v1746_v42, %s8275_s14  ;;  %7791 = vmatmul.mubr.msk.bf16.gmra.mrb[8].mxu0 %vm3644_vm7, %v5551_v36  ;;  %v1760_v42 = vshrl.u32 %v10176_v59, 16  ;;  %v5003_v0 = vshll.u32 %v10200_v47, 16  ;;  %v5001_v35 = vshrl.u32 %v10200_v47, 16  ;;  %v5008_v36 = vshll.u32 %v8184_v39, 16  ;;  %v4504_v39 = vld [vmem:[#allocation2 + $0x120] sm:$0xe] }
 0x163   :  { %v3446_v25 = vpop.permute.xlu0 %3445  ;;  %5192 = vrot.lane.b32.xlu1 %v4999_v2, %s8275_s14  ;;  %v5372_v32 = vsel %vm2075_vm3, %v5370_v46, %v5371_v21  ;;  %v5017_v2 = vrot.slane %v5015_v54, 1  ;;  %v5489_v21 = vsel %vm2236_vm5, %v9489_v29, %v10178_v12  ;;  %v6778_v27 = vcombine.low %v1262_v4, %v1187_v5 }
 0x164   :  { %v3574_v3 = vsel %vm2301_vm6, %v3510_v11, %v3446_v25  ;;  %v5005_v30 = vrot.slane %v5003_v0, 1  ;;  %v10228_v11 = vcombine.low %v1186_v18, %v1187_v5  ;;  %v1758_v25 = vsel %vm1530_vm4, %v1753_v22, %v1757_v10  ;;  %v10242_v0 = vld [vmem:[#allocation2 + $0x13c] sm:$0xf] }
 0x165   :  { %7671 = vmatmul.mubr.msk.bf16.gmra.mrb[40].mxu1 %vm3644_vm7, %v3574_v3  ;;  %v3448_v15 = vpop.permute.xlu1 %3447  ;;  %v1765_v46 = vor.u32 %v1764_v20, %v1760_v42  ;;  %v10237_v3 = vld [vmem:[#allocation2 + $0x118] sm:$0xf]  ;;  %v6777_v10 = vcombine.low %v1261_v62, %v10165_v52  ;;  %v5010_v12 = vrot.slane %v5008_v36, 1  ;;  %v7058_v52 = vcombine.low %v4504_v39, %v10184_v53 }
 0x166   :  { %5190 = vrot.lane.b32.xlu0 %v4987_v48, %s8275_s14  ;;  %v4432_v42 = vld [vmem:[#allocation2 + $0x138] sm:$0xf]  ;;  %v5006_v29 = vor.u32 %v5005_v30, %v5001_v35  ;;  %v1774_v18 = vshll.u32 %v10228_v11, 16  ;;  %v10247_v20 = vcombine.low %v1188_v17, %v10237_v3  ;;  %v2136_v5 = vrot.slane %v6778_v27, 1 }
 0x167   :  { %2208 = vrot.lane.b32.xlu1 %v2132_v28, %s8274_s11  ;;  %v8189_v28 = vld [vmem:[#allocation2 + $0x110] ss:$0 sps:$4 sm:$0x11]   ;;  %v2134_v4 = vrot.slane %v10193_v37, 1  ;;  %v1772_v35 = vshrl.u32 %v10228_v11, 16  ;;  %v5377_v37 = vrot.slane %v10210_v26, 1 }
 0x168   :  { %v3192_v34 = vpop.permute.xlu0 %3191  ;;  %v5011_v53 = vsel %vm1530_vm4, %v5006_v29, %v5010_v12  ;;  %v1776_v30 = vrot.slane %v1774_v18, 1  ;;  %v1786_v36 = vshll.u32 %v10247_v20, 16  ;;  %v1190_v18 = vld [vmem:[#allocation2 + $0x120] sm:$0xf] }
 0x169   :  { %v3512_v24 = vsel %vm2236_vm5, %v9588_v14, %v3192_v34  ;;  %v5425_v55 = vpop.permute.xlu1 %5424  ;;  %v5375_v14 = vsel %vm2075_vm3, %v5373_v6, %v5374_v31  ;;  %v4430_v6 = vld [vmem:[#allocation2 + $0x12c] sm:$0xf]  ;;  %v2137_v34 = vrot.slane %v8189_v28, 1 }
 0x16a   :  { %v3576_v48 = vsel %vm2301_vm6, %v3512_v24, %v3448_v15  ;;  %2206 = vrot.lane.b32.xlu0 %v2129_v45, %s8274_s11  ;;  %v5018_v15 = vor.u32 %v5017_v2, %v5013_v13  ;;  %v5022_v45 = vrot.slane %v5020_v23, 1  ;;  %v5553_v54 = vsel %vm2301_vm6, %v5489_v21, %v5425_v55  ;;  %v4431_v2 = vld [vmem:[#allocation2 + $0x130] sm:$0xf]  ;;  %v4505_v23 = vld [vmem:[#allocation2 + $0x12c] sm:$0xe] }
 0x16b   :  { %7674 = vmatprep.mubr.msk.bf16.mxu1 %vm3644_vm7, %v3576_v48  ;;  %5448 = vrot.lane.b32.xlu1 %v5372_v32, %s8274_s11  ;;  %v1770_v32 = vsel %vm1530_vm4, %v1765_v46, %v1769_v51  ;;  %v10254_v24 = vcombine.low %v4432_v42, %v10242_v0  ;;  %v2133_v55 = vrot.slane %v6777_v10, 1  ;;  %v1779_v48 = vshll.u32 %v8189_v28, 16  ;;  %v10257_v51 = vld [vmem:[#allocation2 + $0x11c] ss:$0 sps:$4 sm:$0x11]  }
 0x16c   :  { %7794 = vmatprep.mubr.msk.bf16.mxu0 %vm3644_vm7, %v5553_v54  ;;  %v5023_v31 = vsel %vm1530_vm4, %v5018_v15, %v5022_v45  ;;  %v5376_v46 = vrot.slane %v7058_v52, 1  ;;  %v2138_v21 = vsel %vm2075_vm3, %v2136_v5, %v2137_v34  ;;  %v10268_v28 = vld [vmem:[#allocation2 + $0x140] ss:$0 sps:$4 sm:$0x11]   ;;  %v1791_v39 = vshll.u32 %v10257_v51, 16 }
 0x16d   :  { %v5427_v22 = vpop.permute.xlu1 %5426  ;;  %v5039_v15 = vshll.u32 %v10254_v24, 16  ;;  %v2135_v45 = vsel %vm2075_vm3, %v2133_v55, %v2134_v4  ;;  %v1781_v27 = vrot.slane %v1779_v48, 1  ;;  %v8196_v54 = vld [vmem:[#allocation2 + $0x134] ss:$0 sps:$4 sm:$0x11]   ;;  %v1777_v26 = vor.u32 %v1776_v30, %v1772_v35 }
 0x16e   :  { %1951 = vrot.lane.b32.xlu0 %v1758_v25, %s8275_s14  ;;  %v10264_v25 = vcombine.low %v4430_v6, %v4431_v2  ;;  %v1784_v42 = vshrl.u32 %v10247_v20, 16  ;;  %v1788_v29 = vrot.slane %v1786_v36, 1  ;;  %v5378_v6 = vsel %vm2075_vm3, %v5376_v46, %v5377_v37  ;;  %v1191_v5 = vld [vmem:[#allocation2 + $0x124] sm:$0xf]  ;;  %v1264_v48 = vld [vmem:[#allocation2 + $0x120] sm:$0xe] }
 0x16f   :  { %5450 = vrot.lane.b32.xlu1 %v5375_v14, %s8274_s11  ;;  %v7059_v14 = vcombine.low %v4505_v23, %v4431_v2  ;;  %v5037_v2 = vshrl.u32 %v10254_v24, 16  ;;  %v5041_v23 = vrot.slane %v5039_v15, 1  ;;  %v1793_v35 = vrot.slane %v1791_v39, 1  ;;  %v1263_v36 = vld [vmem:[#allocation2 + $0x114] sm:$0xe] }
 0x170   :  { %v5032_v30 = vshll.u32 %v8196_v54, 16  ;;  %v10288_v46 = vcombine.low %v1190_v18, %v1191_v5  ;;  %v5025_v37 = vshrl.u32 %v10264_v25, 16 }
 0x171   :  { %v3194_v13 = vpop.permute.xlu0 %3193  ;;  %v5173_v62 = vpop.permute.xlu1 %5172  ;;  %v5379_v52 = vrot.slane %v7059_v14, 1  ;;  %v5042_v39 = vor.u32 %v5041_v23, %v5037_v2  ;;  %v4435_v2 = vld [vmem:[#allocation2 + $0x148] sm:$0xf] }
 0x172   :  { %1953 = vrot.lane.b32.xlu0 %v1770_v32, %s8275_s14  ;;  %v5027_v32 = vshll.u32 %v10264_v25, 16 }
 0x173   :  { %5196 = vrot.lane.b32.xlu1 %v5023_v31, %s8275_s14  ;;  %v5380_v31 = vrot.slane %v8196_v54, 1 }
 0x174   :  { %v5029_v14 = vrot.slane %v5027_v32, 1 }
 0x175   :  { %v5171_v17 = vpop.permute.xlu0 %5170 }
 0x176   :  { %v5491_v10 = vsel %vm2236_vm5, %v9552_v43, %v5171_v17  ;;  %5194 = vrot.lane.b32.xlu0 %v5011_v53, %s8275_s14  ;;  %v3514_v43 = vsel %vm2236_vm5, %v9632_v8, %v3194_v13  ;;  %v1789_v53 = vor.u32 %v1788_v29, %v1784_v42  ;;  %v1782_v13 = vsel %vm1530_vm4, %v1777_v26, %v1781_v27  ;;  %v1192_v17 = vld [vmem:[#allocation2 + $0x12c] sm:$0xf]  ;;  %v10301_v29 = vld [vmem:[#allocation2 + $0x130] sm:$0xf]  ;;  %v4506_v26 = vld [vmem:[#allocation2 + $0x138] sm:$0xe] }
 0x177   :  { %v5555_v12 = vsel %vm2301_vm6, %v5491_v10, %v5427_v22  ;;  %2212 = vrot.lane.b32.xlu1 %v2138_v21, %s8274_s11  ;;  %v5044_v22 = vshll.u32 %v10268_v28, 16  ;;  %v5381_v21 = vsel %vm2075_vm3, %v5379_v52, %v5380_v31  ;;  %v5493_v42 = vsel %vm2236_vm5, %v9607_v1, %v5173_v62  ;;  %v10306_v52 = vld [vmem:[#allocation2 + $0x154] sm:$0xf] }
 0x178   :  { %7795 = vmatmul.mubr.msk.bf16.gmra.mrb[12].mxu0 %vm3644_vm7, %v5555_v12  ;;  %v6780_v27 = vcombine.low %v1264_v48, %v1191_v5  ;;  %v6779_v1 = vcombine.low %v1263_v36, %v10237_v3  ;;  %v1798_v62 = vshll.u32 %v10288_v46, 16  ;;  %v5030_v23 = vor.u32 %v5029_v14, %v5025_v37  ;;  %v4507_v37 = vld [vmem:[#allocation2 + $0x144] sm:$0xe] }
 0x179   :  { %v3450_v34 = vpop.permute.xlu0 %3449  ;;  %v3452_v55 = vpop.permute.xlu1 %3451  ;;  %v5046_v54 = vrot.slane %v5044_v22, 1  ;;  %v5034_v22 = vrot.slane %v5032_v30, 1  ;;  %v7060_v48 = vcombine.low %v4506_v26, %v10242_v0  ;;  %v2140_v36 = vrot.slane %v10257_v51, 1 }
 0x17a   :  { %v3578_v4 = vsel %vm2301_vm6, %v3514_v43, %v3450_v34  ;;  %2210 = vrot.lane.b32.xlu0 %v2135_v45, %s8274_s11  ;;  %v10291_v8 = vpop.f32.mrb[0].mxu1  ;;  %v8201_v45 = vld [vmem:[#allocation2 + $0x128] ss:$0 sps:$4 sm:$0x11]   ;;  %v1794_v43 = vsel %vm1530_vm4, %v1789_v53, %v1793_v35  ;;  %v4434_v34 = vld [vmem:[#allocation2 + $0x144] sm:$0xf] }
 0x17b   :  { %7675 = vmatmul.mubr.msk.bf16.gmra.mrb[44].mxu1 %vm3644_vm7, %v3578_v4  ;;  %5452 = vrot.lane.b32.xlu1 %v5378_v6, %s8274_s11  ;;  %v10297_v15 = vpop.f32.mrb[1].mxu1  ;;  %v4436_v6 = vld [vmem:[#allocation2 + $0x150] sm:$0xf]  ;;  %v10320_v4 = vcombine.low %v1192_v17, %v10301_v29  ;;  %v5047_v3 = vsel %vm1530_vm4, %v5042_v39, %v5046_v54  ;;  %v2143_v53 = vrot.slane %v8201_v45, 1  ;;  %v10331_v30 = vcombine.low %v4434_v34, %v4435_v2  ;;  %v1194_v34 = vld [vmem:[#allocation2 + $0x138] sm:$0xf] }
 0x17c   :  { %11219 = vst [vmem:[#allocation8_spill] sm:$0xff] %v10297_v15  ;;  %v10308_v31 = vpop.f32.mrb[2].mxu1  ;;  %v10326_v35 = vcombine.low %v4436_v6, %v10306_v52  ;;  %v2139_v14 = vrot.slane %v6779_v1, 1  ;;  %v1796_v0 = vshrl.u32 %v10288_v46, 16  ;;  %v1803_v17 = vshll.u32 %v8201_v45, 16 }
 0x17d   :  { %v3196_v10 = vpop.permute.xlu0 %3195  ;;  %v5429_v12 = vpop.permute.xlu1 %5428  ;;  %11220 = vst [vmem:[#allocation9_spill] sm:$0xff] %v10308_v31  ;;  %v5035_v39 = vsel %vm1530_vm4, %v5030_v23, %v5034_v22  ;;  %v1810_v54 = vshll.u32 %v10320_v4, 16  ;;  %v5383_v51 = vrot.slane %v10268_v28, 1  ;;  %v8208_v6 = vld [vmem:[#allocation2 + $0x14c] ss:$0 sps:$4 sm:$0x11]  }
 0x17e   :  { %v3516_v18 = vsel %vm2236_vm5, %v9682_v49, %v3196_v10  ;;  %v5557_v32 = vsel %vm2301_vm6, %v5493_v42, %v5429_v12  ;;  %1955 = vrot.lane.b32.xlu0 %v1782_v13, %s8275_s14  ;;  %v10316_v49 = vpop.f32.mrb[3].mxu1  ;;  %v10329_v13 = vld [vmem:[#allocation2 + $0x134] ss:$0 sps:$4 sm:$0x11]   ;;  %v5382_v10 = vrot.slane %v7060_v48, 1  ;;  %v7061_v12 = vcombine.low %v4507_v37, %v4435_v2 }
 0x17f   :  { %v3580_v5 = vsel %vm2301_vm6, %v3516_v18, %v3452_v55  ;;  %7798 = vmatprep.mubr.msk.bf16.mxu0 %vm3644_vm7, %v5557_v32  ;;  %11221 = vst [vmem:[#allocation10_spill] sm:$0xff] %v10316_v49  ;;  %5454 = vrot.lane.b32.xlu1 %v5381_v21, %s8274_s11  ;;  %v2142_v55 = vrot.slane %v6780_v27, 1  ;;  %v1800_v21 = vrot.slane %v1798_v62, 1  ;;  %v10340_v18 = vld [vmem:[#allocation2 + $0x158] ss:$0 sps:$4 sm:$0x11]  }
 0x180   :  { %7678 = vmatprep.mubr.msk.bf16.mxu1 %vm3644_vm7, %v3580_v5  ;;  %v5063_v32 = vshll.u32 %v10326_v35, 16  ;;  %v5051_v45 = vshll.u32 %v10331_v30, 16  ;;  %v1805_v62 = vrot.slane %v1803_v17, 1  ;;  %v1815_v28 = vshll.u32 %v10329_v13, 16  ;;  %v1265_v5 = vld [vmem:[#allocation2 + $0x12c] sm:$0xe] }
 0x181   :  { %v5431_v42 = vpop.permute.xlu1 %5430  ;;  %v2144_v27 = vsel %vm2075_vm3, %v2142_v55, %v2143_v53  ;;  %v1801_v1 = vor.u32 %v1800_v21, %v1796_v0  ;;  %v1195_v23 = vld [vmem:[#allocation2 + $0x13c] sm:$0xf]  ;;  %v1808_v2 = vshrl.u32 %v10320_v4, 16  ;;  %v1812_v22 = vrot.slane %v1810_v54, 1  ;;  %v1266_v55 = vld [vmem:[#allocation2 + $0x138] sm:$0xe] }
 0x182   :  { %1957 = vrot.lane.b32.xlu0 %v1794_v43, %s8275_s14  ;;  %v2141_v43 = vsel %vm2075_vm3, %v2139_v14, %v2140_v36  ;;  %v5384_v48 = vsel %vm2075_vm3, %v5382_v10, %v5383_v51  ;;  %v5385_v36 = vrot.slane %v7061_v12, 1  ;;  %v5061_v14 = vshrl.u32 %v10326_v35, 16 }
 0x183   :  { %5200 = vrot.lane.b32.xlu1 %v5047_v3, %s8275_s14  ;;  %v5386_v3 = vrot.slane %v8208_v6, 1  ;;  %v5065_v0 = vrot.slane %v5063_v32, 1  ;;  %v5068_v21 = vshll.u32 %v10340_v18, 16  ;;  %v5053_v54 = vrot.slane %v5051_v45, 1  ;;  %v10371_v45 = vld [vmem:[#allocation2 + $0x148] sm:$0xf] }
 0x184   :  { %v5056_v49 = vshll.u32 %v8208_v6, 16  ;;  %v1806_v12 = vsel %vm1530_vm4, %v1801_v1, %v1805_v62  ;;  %v1817_v15 = vrot.slane %v1815_v28, 1  ;;  %v6781_v6 = vcombine.low %v1265_v5, %v10301_v29  ;;  %v4508_v28 = vld [vmem:[#allocation2 + $0x150] sm:$0xe]  ;;  %v4440_v5 = vld [vmem:[#allocation2 + $0x168] sm:$0xf] }
 0x185   :  { %v3198_v26 = vpop.permute.xlu0 %3197  ;;  %v5177_v51 = vpop.permute.xlu1 %5176 }
 0x186   :  { %5198 = vrot.lane.b32.xlu0 %v5035_v39, %s8275_s14  ;;  %v5049_v39 = vshrl.u32 %v10331_v30, 16  ;;  %v3518_v1 = vsel %vm2236_vm5, %v9750_v41, %v3198_v26 }
 0x187   :  { %2216 = vrot.lane.b32.xlu1 %v2144_v27, %s8274_s11 }
 0x188   :  { %v10350_v53 = vpop.f32.mrb[4].mxu1 }
 0x189   :  { %11222 = vst [vmem:[#allocation11_spill] sm:$0xff] %v10350_v53  ;;  %v5175_v37 = vpop.permute.xlu0 %5174  ;;  %v10354_v17 = vpop.f32.mrb[5].mxu1  ;;  %v10364_v53 = vcombine.low %v1194_v34, %v1195_v23  ;;  %v8213_v34 = vld [vmem:[#allocation2 + $0x140] ss:$0 sps:$4 sm:$0x11]  }
 0x18a   :  { %11223 = vst [vmem:[#allocation12_spill] sm:$0xff] %v10354_v17  ;;  %v5495_v10 = vsel %vm2236_vm5, %v9655_v38, %v5175_v37  ;;  %v10359_v27 = vpop.f32.mrb[6].mxu1  ;;  %2214 = vrot.lane.b32.xlu0 %v2141_v43, %s8274_s11  ;;  %v1813_v17 = vor.u32 %v1812_v22, %v1808_v2  ;;  %v1196_v38 = vld [vmem:[#allocation2 + $0x144] sm:$0xf]  ;;  %v6782_v43 = vcombine.low %v1266_v55, %v1195_v23  ;;  %v5070_v2 = vrot.slane %v5068_v21, 1 }
 0x18b   :  { %11224 = vst [vmem:[#allocation13_spill] sm:$0xff] %v10359_v27  ;;  %v5559_v32 = vsel %vm2301_vm6, %v5495_v10, %v5431_v42  ;;  %v10366_v31 = vpop.f32.mrb[7].mxu1  ;;  %5456 = vrot.lane.b32.xlu1 %v5384_v48, %s8274_s11  ;;  %v5387_v42 = vsel %vm2075_vm3, %v5385_v36, %v5386_v3  ;;  %v5066_v37 = vor.u32 %v5065_v0, %v5061_v14  ;;  %v5058_v48 = vrot.slane %v5056_v49, 1  ;;  %v10377_v10 = vld [vmem:[#allocation2 + $0x16c] sm:$0xf] }
 0x18c   :  { %11225 = vst [vmem:[#allocation14_spill] sm:$0xff] %v10366_v31  ;;  %7799 = vmatmul.mubr.msk.bf16.gmra.mrb[16].mxu0 %vm3644_vm7, %v5559_v32  ;;  %v5054_v22 = vor.u32 %v5053_v54, %v5049_v39  ;;  %v1822_v23 = vshll.u32 %v10364_v53, 16  ;;  %v10383_v41 = vcombine.low %v1196_v38, %v10371_v45  ;;  %v1818_v26 = vsel %vm1530_vm4, %v1813_v17, %v1817_v15  ;;  %v4438_v36 = vld [vmem:[#allocation2 + $0x15c] sm:$0xf]  ;;  %v4439_v14 = vld [vmem:[#allocation2 + $0x160] sm:$0xf] }
 0x18d   :  { %v3454_v62 = vpop.permute.xlu0 %3453  ;;  %v2148_v3 = vrot.slane %v6782_v43, 1  ;;  %v2149_v49 = vrot.slane %v8213_v34, 1  ;;  %v7062_v0 = vcombine.low %v4508_v28, %v10306_v52  ;;  %v2145_v21 = vrot.slane %v6781_v6, 1  ;;  %v4509_v38 = vld [vmem:[#allocation2 + $0x15c] sm:$0xe] }
 0x18e   :  { %v3582_v29 = vsel %vm2301_vm6, %v3518_v1, %v3454_v62  ;;  %1959 = vrot.lane.b32.xlu0 %v1806_v12, %s8275_s14  ;;  %v5071_v39 = vsel %vm1530_vm4, %v5066_v37, %v5070_v2  ;;  %v10390_v54 = vcombine.low %v4440_v5, %v10377_v10  ;;  %v5059_v12 = vsel %vm1530_vm4, %v5054_v22, %v5058_v48  ;;  %v10410_v5 = vld [vmem:[#allocation2 + $0x170] ss:$0 sps:$4 sm:$0x11]   ;;  %v4510_v31 = vld [vmem:[#allocation2 + $0x168] sm:$0xe] }
 0x18f   :  { %7679 = vmatmul.mubr.msk.bf16.gmra.mrb[48].mxu1 %vm3644_vm7, %v3582_v29  ;;  %5458 = vrot.lane.b32.xlu1 %v5387_v42, %s8274_s11  ;;  %v2146_v32 = vrot.slane %v10329_v13, 1  ;;  %v1820_v15 = vshrl.u32 %v10364_v53, 16  ;;  %v1827_v17 = vshll.u32 %v8213_v34, 16  ;;  %v1824_v43 = vrot.slane %v1822_v23, 1 }
 0x190   :  { %v3456_v55 = vpop.permute.xlu1 %3455  ;;  %v10396_v42 = vld [vmem:[#allocation2 + $0x14c] ss:$0 sps:$4 sm:$0x11]   ;;  %v1834_v52 = vshll.u32 %v10383_v41, 16  ;;  %v10399_v6 = vcombine.low %v4438_v36, %v4439_v14  ;;  %v5389_v62 = vrot.slane %v10340_v18, 1  ;;  %v5497_v34 = vsel %vm2236_vm5, %v9714_v9, %v5177_v51 }
 0x191   :  { %v2150_v37 = vsel %vm2075_vm3, %v2148_v3, %v2149_v49  ;;  %v5388_v2 = vrot.slane %v7062_v0, 1  ;;  %v7063_v29 = vcombine.low %v4509_v38, %v4439_v14  ;;  %v5087_v18 = vshll.u32 %v10390_v54, 16  ;;  %v1198_v9 = vld [vmem:[#allocation2 + $0x150] sm:$0xf] }
 0x192   :  { %1961 = vrot.lane.b32.xlu0 %v1818_v26, %s8275_s14  ;;  %v2147_v23 = vsel %vm2075_vm3, %v2145_v21, %v2146_v32  ;;  %v8220_v26 = vld [vmem:[#allocation2 + $0x164] ss:$0 sps:$4 sm:$0x11]   ;;  %v1836_v51 = vrot.slane %v1834_v52, 1  ;;  %v1839_v3 = vshll.u32 %v10396_v42, 16  ;;  %v5075_v49 = vshll.u32 %v10399_v6, 16 }
 0x193   :  { %v3200_v1 = vpop.permute.xlu0 %3199  ;;  %5204 = vrot.lane.b32.xlu1 %v5071_v39, %s8275_s14  ;;  %v1825_v36 = vor.u32 %v1824_v43, %v1820_v15  ;;  %v1829_v14 = vrot.slane %v1827_v17, 1  ;;  %v5390_v0 = vsel %vm2075_vm3, %v5388_v2, %v5389_v62  ;;  %v5392_v21 = vrot.slane %v8220_v26, 1  ;;  %v1267_v32 = vld [vmem:[#allocation2 + $0x144] sm:$0xe] }
 0x194   :  { %v3520_v13 = vsel %vm2236_vm5, %v9826_v16, %v3200_v1  ;;  %v5433_v28 = vpop.permute.xlu1 %5432  ;;  %v1832_v16 = vshrl.u32 %v10383_v41, 16  ;;  %v5391_v38 = vrot.slane %v7063_v29, 1  ;;  %v5089_v1 = vrot.slane %v5087_v18, 1  ;;  %v8225_v18 = vld [vmem:[#allocation2 + $0x158] ss:$0 sps:$4 sm:$0x11]  }
 0x195   :  { %v3584_v22 = vsel %vm2301_vm6, %v3520_v13, %v3456_v55  ;;  %v5561_v48 = vsel %vm2301_vm6, %v5497_v34, %v5433_v28  ;;  %v1199_v55 = vld [vmem:[#allocation2 + $0x154] sm:$0xf]  ;;  %v5092_v52 = vshll.u32 %v10410_v5, 16  ;;  %v5080_v13 = vshll.u32 %v8220_v26, 16  ;;  %v1268_v28 = vld [vmem:[#allocation2 + $0x150] sm:$0xe] }
 0x196   :  { %7682 = vmatprep.mubr.msk.bf16.mxu1 %vm3644_vm7, %v3584_v22  ;;  %7802 = vmatprep.mubr.msk.bf16.mxu0 %vm3644_vm7, %v5561_v48  ;;  %v10424_v34 = vcombine.low %v1198_v9, %v1199_v55  ;;  %v1837_v15 = vor.u32 %v1836_v51, %v1832_v16  ;;  %v1841_v17 = vrot.slane %v1839_v3, 1  ;;  %v5073_v62 = vshrl.u32 %v10399_v6, 16  ;;  %v1200_v26 = vld [vmem:[#allocation2 + $0x15c] sm:$0xf]  ;;  %v10435_v9 = vld [vmem:[#allocation2 + $0x160] sm:$0xf] }
 0x197   :  { %5202 = vrot.lane.b32.xlu0 %v5059_v12, %s8275_s14  ;;  %2220 = vrot.lane.b32.xlu1 %v2150_v37, %s8274_s11  ;;  %v5085_v12 = vshrl.u32 %v10390_v54, 16  ;;  %v5077_v37 = vrot.slane %v5075_v49, 1  ;;  %v1830_v48 = vsel %vm1530_vm4, %v1825_v36, %v1829_v14  ;;  %v6783_v29 = vcombine.low %v1267_v32, %v10371_v45  ;;  %v10443_v45 = vld [vmem:[#allocation2 + $0x184] sm:$0xf] }
 0x198   :  { %v5435_v39 = vpop.permute.xlu1 %5434  ;;  %v5094_v51 = vrot.slane %v5092_v52, 1  ;;  %v6784_v49 = vcombine.low %v1268_v28, %v1199_v55  ;;  %v5082_v36 = vrot.slane %v5080_v13, 1  ;;  %v1846_v14 = vshll.u32 %v10424_v34, 16  ;;  %v4442_v52 = vld [vmem:[#allocation2 + $0x174] sm:$0xf] }
 0x199   :  { %v10426_v22 = vpop.f32.mrb[8].mxu1  ;;  %v5090_v16 = vor.u32 %v5089_v1, %v5085_v12  ;;  %v1842_v32 = vsel %vm1530_vm4, %v1837_v15, %v1841_v17  ;;  %v2151_v12 = vrot.slane %v6783_v29, 1  ;;  %v2155_v1 = vrot.slane %v8225_v18, 1  ;;  %v4443_v13 = vld [vmem:[#allocation2 + $0x178] sm:$0xf] }
 0x19a   :  { %11226 = vst [vmem:[#allocation16_spill] sm:$0xff] %v10426_v22  ;;  %v10430_v2 = vpop.f32.mrb[9].mxu1  ;;  %v7064_v28 = vcombine.low %v4510_v31, %v10377_v10  ;;  %v10462_v29 = vld [vmem:[#allocation2 + $0x164] ss:$0 sps:$4 sm:$0x11]  }
 0x19b   :  { %2218 = vrot.lane.b32.xlu0 %v2147_v23, %s8274_s11  ;;  %11227 = vst [vmem:[#allocation17_spill] sm:$0xff] %v10430_v2  ;;  %5460 = vrot.lane.b32.xlu1 %v5390_v0, %s8274_s11  ;;  %v10437_v22 = vpop.f32.mrb[10].mxu1  ;;  %v5393_v23 = vsel %vm2075_vm3, %v5391_v38, %v5392_v21  ;;  %v4444_v0 = vld [vmem:[#allocation2 + $0x180] sm:$0xf]  ;;  %v2152_v21 = vrot.slane %v10396_v42, 1  ;;  %v10449_v38 = vcombine.low %v1200_v26, %v10435_v9 }
 0x19c   :  { %v3202_v43 = vpop.permute.xlu0 %3201  ;;  %11228 = vst [vmem:[#allocation15_spill] sm:$0xff] %v10437_v22  ;;  %v5181_v3 = vpop.permute.xlu1 %5180  ;;  %v5078_v22 = vor.u32 %v5077_v37, %v5073_v62  ;;  %v5095_v17 = vsel %vm1530_vm4, %v5090_v16, %v5094_v51  ;;  %v2154_v62 = vrot.slane %v6784_v49, 1  ;;  %v4511_v42 = vld [vmem:[#allocation2 + $0x174] sm:$0xe]  ;;  %v10458_v37 = vcombine.low %v4444_v0, %v10443_v45 }
 0x19d   :  { %v10440_v2 = vpop.f32.mrb[11].mxu1  ;;  %11230 = vst [vmem:[#allocation19_spill] sm:$0xff] %v10449_v38  ;;  %v3522_v31 = vsel %vm2236_vm5, %v9861_v57, %v3202_v43  ;;  %v1858_v26 = vshll.u32 %v10449_v38, 16  ;;  %v10469_v16 = vcombine.low %v4442_v52, %v4443_v13  ;;  %v5394_v49 = vrot.slane %v7064_v28, 1 }
 0x19e   :  { %11229 = vst [vmem:[#allocation18_spill] sm:$0xff] %v10440_v2  ;;  %11231 = vst [vmem:[#allocation20_spill] sm:$0xff] %v10458_v37  ;;  %v5083_v10 = vsel %vm1530_vm4, %v5078_v22, %v5082_v36  ;;  %v7065_v0 = vcombine.low %v4511_v42, %v4443_v13  ;;  %v2156_v57 = vsel %vm2075_vm3, %v2154_v62, %v2155_v1  ;;  %v10477_v22 = vld [vmem:[#allocation2 + $0x188] ss:$0 sps:$4 sm:$0x11]   ;;  %v5111_v43 = vshll.u32 %v10458_v37, 16 }
 0x19f   :  { %1963 = vrot.lane.b32.xlu0 %v1830_v48, %s8275_s14  ;;  %5462 = vrot.lane.b32.xlu1 %v5393_v23, %s8274_s11  ;;  %v1844_v48 = vshrl.u32 %v10424_v34, 16  ;;  %v1856_v52 = vshrl.u32 %v10449_v38, 16  ;;  %v11232_v13 = vld [vmem:[#allocation3_spill] sm:$0xff]  ;;  %v5099_v28 = vshll.u32 %v10469_v16, 16  ;;  %v11233_v62 = vld [vmem:[#allocation5_spill] sm:$0xff] }
 0x1a0   :  { %v5179_v27 = vpop.permute.xlu0 %5178  ;;  %v4512_v2 = vld [vmem:[#allocation2 + $0x180] sm:$0xe]  ;;  %v1208_v38 = vld [vmem:[#allocation2 + $0x18c] sm:$0xf] }
 0x1a1   :  { %v5499_v55 = vsel %vm2236_vm5, %v9784_v60, %v5179_v27  ;;  %v1848_v60 = vrot.slane %v1846_v14, 1  ;;  %v1851_v27 = vshll.u32 %v8225_v18, 16  ;;  %v8232_v18 = vld [vmem:[#allocation2 + $0x17c] ss:$0 sps:$4 sm:$0x11]   ;;  %v5395_v14 = vrot.slane %v10410_v5, 1 }
 0x1a2   :  { %v5563_v15 = vsel %vm2301_vm6, %v5499_v55, %v5435_v39  ;;  %v3460_v23 = vpop.permute.xlu1 %3459 }
 0x1a3   :  { %7803 = vmatmul.mubr.msk.bf16.gmra.mrb[20].mxu0 %vm3644_vm7, %v5563_v15  ;;  %1965 = vrot.lane.b32.xlu0 %v1842_v32, %s8275_s14  ;;  %v2153_v32 = vsel %vm2075_vm3, %v2151_v12, %v2152_v21  ;;  %v1849_v36 = vor.u32 %v1848_v60, %v1844_v48  ;;  %v1853_v55 = vrot.slane %v1851_v27, 1  ;;  %v1863_v15 = vshll.u32 %v10462_v29, 16 }
 0x1a4   :  { %v3458_v39 = vpop.permute.xlu0 %3457  ;;  %5208 = vrot.lane.b32.xlu1 %v5095_v17, %s8275_s14  ;;  %v5501_v21 = vsel %vm2236_vm5, %v11232_v13, %v5181_v3  ;;  %v1860_v12 = vrot.slane %v1858_v26, 1  ;;  %v5398_v17 = vrot.slane %v8232_v18, 1  ;;  %v5396_v48 = vsel %vm2075_vm3, %v5394_v49, %v5395_v14  ;;  %v1270_v13 = vld [vmem:[#allocation2 + $0x168] sm:$0xe] }
 0x1a5   :  { %v3586_v51 = vsel %vm2301_vm6, %v3522_v31, %v3458_v39  ;;  %v5397_v27 = vrot.slane %v7065_v0, 1  ;;  %v1202_v31 = vld [vmem:[#allocation2 + $0x168] sm:$0xf]  ;;  %v5109_v3 = vshrl.u32 %v10458_v37, 16  ;;  %v5113_v26 = vrot.slane %v5111_v43, 1 }
 0x1a6   :  { %7683 = vmatmul.mubr.msk.bf16.gmra.mrb[52].mxu1 %vm3644_vm7, %v3586_v51  ;;  %v5437_v1 = vpop.permute.xlu1 %5436  ;;  %v5116_v51 = vshll.u32 %v10477_v22, 16  ;;  %v5097_v49 = vshrl.u32 %v10469_v16, 16  ;;  %v5101_v14 = vrot.slane %v5099_v28, 1  ;;  %v5104_v0 = vshll.u32 %v8232_v18, 16 }
 0x1a7   :  { %5206 = vrot.lane.b32.xlu0 %v5083_v10, %s8275_s14  ;;  %v5565_v60 = vsel %vm2301_vm6, %v5501_v21, %v5437_v1  ;;  %v1203_v10 = vld [vmem:[#allocation2 + $0x16c] sm:$0xf]  ;;  %v1861_v21 = vor.u32 %v1860_v12, %v1856_v52  ;;  %v1865_v1 = vrot.slane %v1863_v15, 1  ;;  %v8237_v43 = vld [vmem:[#allocation2 + $0x170] ss:$0 sps:$4 sm:$0x11]   ;;  %v5114_v28 = vor.u32 %v5113_v26, %v5109_v3 }
 0x1a8   :  { %v3204_v5 = vpop.permute.xlu0 %3203  ;;  %2224 = vrot.lane.b32.xlu1 %v2156_v57, %s8274_s11  ;;  %7806 = vmatprep.mubr.msk.bf16.mxu0 %vm3644_vm7, %v5565_v60  ;;  %v1269_v57 = vld [vmem:[#allocation2 + $0x15c] sm:$0xe]  ;;  %v6786_v60 = vcombine.low %v1270_v13, %v1203_v10  ;;  %v5118_v18 = vrot.slane %v5116_v51, 1  ;;  %v4448_v52 = vld [vmem:[#allocation2 + $0x198] sm:$0xf]  ;;  %v5106_v13 = vrot.slane %v5104_v0, 1 }
 0x1a9   :  { %v3524_v42 = vsel %vm2236_vm5, %v11233_v62, %v3204_v5  ;;  %v10498_v5 = vcombine.low %v1202_v31, %v1203_v10  ;;  %v1204_v62 = vld [vmem:[#allocation2 + $0x174] sm:$0xf]  ;;  %v10510_v15 = vld [vmem:[#allocation2 + $0x19c] sm:$0xf]  ;;  %v5102_v10 = vor.u32 %v5101_v14, %v5097_v49  ;;  %v1866_v3 = vsel %vm1530_vm4, %v1861_v21, %v1865_v1  ;;  %v4513_v14 = vld [vmem:[#allocation2 + $0x18c] sm:$0xe] }
 0x1aa   :  { %v3588_v39 = vsel %vm2301_vm6, %v3524_v42, %v3460_v23  ;;  %v1854_v23 = vsel %vm1530_vm4, %v1849_v36, %v1853_v55  ;;  %v10502_v42 = vld [vmem:[#allocation2 + $0x178] sm:$0xf]  ;;  %v6785_v36 = vcombine.low %v1269_v57, %v10435_v9  ;;  %v5439_v55 = vpop.permute.xlu1 %5438  ;;  %v2160_v9 = vrot.slane %v6786_v60, 1 }
 0x1ab   :  { %7686 = vmatprep.mubr.msk.bf16.mxu1 %vm3644_vm7, %v3588_v39  ;;  %2222 = vrot.lane.b32.xlu0 %v2153_v32, %s8274_s11  ;;  %11234 = vst [vmem:[#allocation3_spill] sm:$0xff] %v10498_v5  ;;  %v5399_v32 = vsel %vm2075_vm3, %v5397_v27, %v5398_v17  ;;  %v1870_v17 = vshll.u32 %v10498_v5, 16  ;;  %v10517_v27 = vcombine.low %v1204_v62, %v10502_v42  ;;  %v2161_v26 = vrot.slane %v8237_v43, 1 }
 0x1ac   :  { %5464 = vrot.lane.b32.xlu1 %v5396_v48, %s8274_s11  ;;  %v10504_v39 = vpop.f32.mrb[12].mxu1  ;;  %v5119_v57 = vsel %vm1530_vm4, %v5114_v28, %v5118_v18  ;;  %v7066_v49 = vcombine.low %v4512_v2, %v10443_v45  ;;  %v10526_v0 = vcombine.low %v4448_v52, %v10510_v15  ;;  %v2157_v62 = vrot.slane %v6785_v36, 1  ;;  %v10532_v18 = vld [vmem:[#allocation2 + $0x17c] ss:$0 sps:$4 sm:$0x11]  }
 0x1ad   :  { %11235 = vst [vmem:[#allocation5_spill] sm:$0xff] %v10504_v39  ;;  %v10507_v31 = vpop.f32.mrb[13].mxu1  ;;  %11238 = vst [vmem:[#allocation23_spill] sm:$0xff] %v10517_v27  ;;  %v1875_v21 = vshll.u32 %v8237_v43, 16  ;;  %v5107_v1 = vsel %vm1530_vm4, %v5102_v10, %v5106_v13  ;;  %v1872_v28 = vrot.slane %v1870_v17, 1  ;;  %v1882_v2 = vshll.u32 %v10517_v27, 16 }
 0x1ae   :  { %11236 = vst [vmem:[#allocation21_spill] sm:$0xff] %v10507_v31  ;;  %v10512_v12 = vpop.f32.mrb[14].mxu1  ;;  %v3206_v48 = vpop.permute.xlu0 %3205  ;;  %11240 = vst [vmem:[#allocation25_spill] sm:$0xff] %v10526_v0  ;;  %v2158_v31 = vrot.slane %v10462_v29, 1  ;;  %v11241_v45 = vld [vmem:[#allocation4_spill] sm:$0xff]  ;;  %v2162_v29 = vsel %vm2075_vm3, %v2160_v9, %v2161_v26  ;;  %v5400_v13 = vrot.slane %v7066_v49, 1 }
 0x1af   :  { %11237 = vst [vmem:[#allocation22_spill] sm:$0xff] %v10512_v12  ;;  %1967 = vrot.lane.b32.xlu0 %v1854_v23, %s8275_s14  ;;  %v10521_v51 = vpop.f32.mrb[15].mxu1  ;;  %v4446_v12 = vld [vmem:[#allocation2 + $0x18c] sm:$0xf]  ;;  %v4447_v23 = vld [vmem:[#allocation2 + $0x190] sm:$0xf]  ;;  %v5185_v36 = vpop.permute.xlu1 %5184 }
 0x1b0   :  { %5466 = vrot.lane.b32.xlu1 %v5399_v32, %s8274_s11  ;;  %11239 = vst [vmem:[#allocation24_spill] sm:$0xff] %v10521_v51  ;;  %v1868_v32 = vshrl.u32 %v10498_v5, 16  ;;  %v10539_v43 = vcombine.low %v4446_v12, %v4447_v23  ;;  %v5401_v17 = vrot.slane %v10477_v22, 1  ;;  %v10543_v51 = vld [vmem:[#allocation2 + $0x1a0] ss:$0 sps:$4 sm:$0x11]   ;;  %v2159_v5 = vsel %vm2075_vm3, %v2157_v62, %v2158_v31 }
 0x1b1   :  { %v5135_v39 = vshll.u32 %v10526_v0, 16  ;;  %v8244_v9 = vld [vmem:[#allocation2 + $0x194] ss:$0 sps:$4 sm:$0x11]   ;;  %v1884_v22 = vrot.slane %v1882_v2, 1  ;;  %v1887_v49 = vshll.u32 %v10532_v18, 16 }
 0x1b2   :  { %v5183_v60 = vpop.permute.xlu0 %5182  ;;  %v11242_v12 = vld [vmem:[#allocation7_spill] sm:$0xff]  ;;  %v5123_v31 = vshll.u32 %v10539_v43, 16 }
 0x1b3   :  { %1969 = vrot.lane.b32.xlu0 %v1866_v3, %s8275_s14  ;;  %v5503_v52 = vsel %vm2236_vm5, %v11241_v45, %v5183_v60  ;;  %v7067_v3 = vcombine.low %v4513_v14, %v4447_v23  ;;  %v1877_v60 = vrot.slane %v1875_v21, 1  ;;  %v3526_v26 = vsel %vm2236_vm5, %v11242_v12, %v3206_v48  ;;  %v1206_v14 = vld [vmem:[#allocation2 + $0x180] sm:$0xf] }
 0x1b4   :  { %5212 = vrot.lane.b32.xlu1 %v5119_v57, %s8275_s14  ;;  %v5567_v10 = vsel %vm2301_vm6, %v5503_v52, %v5439_v55  ;;  %v1880_v57 = vshrl.u32 %v10517_v27, 16  ;;  %v1873_v23 = vor.u32 %v1872_v28, %v1868_v32  ;;  %v5404_v21 = vrot.slane %v8244_v9, 1  ;;  %v1207_v52 = vld [vmem:[#allocation2 + $0x184] sm:$0xf] }
 0x1b5   :  { %7807 = vmatmul.mubr.msk.bf16.gmra.mrb[24].mxu0 %vm3644_vm7, %v5567_v10  ;;  %v5403_v62 = vrot.slane %v7067_v3, 1  ;;  %v5402_v48 = vsel %vm2075_vm3, %v5400_v13, %v5401_v17  ;;  %v5137_v32 = vrot.slane %v5135_v39, 1  ;;  %v5140_v28 = vshll.u32 %v10543_v51, 16  ;;  %v1272_v10 = vld [vmem:[#allocation2 + $0x180] sm:$0xe] }
 0x1b6   :  { %v3462_v55 = vpop.permute.xlu0 %3461  ;;  %v1885_v12 = vor.u32 %v1884_v22, %v1880_v57  ;;  %v1878_v3 = vsel %vm1530_vm4, %v1873_v23, %v1877_v60  ;;  %v5128_v27 = vshll.u32 %v8244_v9, 16  ;;  %v1271_v13 = vld [vmem:[#allocation2 + $0x174] sm:$0xe]  ;;  %v6788_v57 = vcombine.low %v1272_v10, %v1207_v52  ;;  %v11243_v60 = vld [vmem:[#allocation6_spill] sm:$0xff]  ;;  %v4514_v9 = vld [vmem:[#allocation2 + $0x198] sm:$0xe] }
 0x1b7   :  { %5210 = vrot.lane.b32.xlu0 %v5107_v1, %s8275_s14  ;;  %v3590_v45 = vsel %vm2301_vm6, %v3526_v26, %v3462_v55  ;;  %v5133_v1 = vshrl.u32 %v10526_v0, 16  ;;  %v10561_v26 = vcombine.low %v1206_v14, %v1207_v52  ;;  %v5121_v55 = vshrl.u32 %v10539_v43, 16  ;;  %v4450_v10 = vld [vmem:[#allocation2 + $0x1a4] sm:$0xf] }
 0x1b8   :  { %2228 = vrot.lane.b32.xlu1 %v2162_v29, %s8274_s11  ;;  %7687 = vmatmul.mubr.msk.bf16.gmra.mrb[56].mxu1 %vm3644_vm7, %v3590_v45  ;;  %v3464_v2 = vpop.permute.xlu1 %3463  ;;  %v1889_v29 = vrot.slane %v1887_v49, 1  ;;  %v5125_v45 = vrot.slane %v5123_v31, 1  ;;  %v5405_v17 = vsel %vm2075_vm3, %v5403_v62, %v5404_v21  ;;  %v5142_v37 = vrot.slane %v5140_v28, 1  ;;  %v8249_v21 = vld [vmem:[#allocation2 + $0x188] ss:$0 sps:$4 sm:$0x11]  }
 0x1b9   :  { %v5138_v0 = vor.u32 %v5137_v32, %v5133_v1  ;;  %v5505_v23 = vsel %vm2236_vm5, %v11243_v60, %v5185_v36  ;;  %v5130_v1 = vrot.slane %v5128_v27, 1  ;;  %v2166_v28 = vrot.slane %v6788_v57, 1 }
 0x1ba   :  { %v1890_v14 = vsel %vm1530_vm4, %v1885_v12, %v1889_v29  ;;  %v5126_v52 = vor.u32 %v5125_v45, %v5121_v55  ;;  %v4451_v12 = vld [vmem:[#allocation2 + $0x1a8] sm:$0xf]  ;;  %v7068_v29 = vcombine.low %v4514_v9, %v10510_v15  ;;  %v4515_v55 = vld [vmem:[#allocation2 + $0x1a4] sm:$0xe]  ;;  %v1892_v45 = vshrl.u32 %v10561_v26, 16 }
 0x1bb   :  { %2226 = vrot.lane.b32.xlu0 %v2159_v5, %s8274_s11  ;;  %v3208_v39 = vpop.permute.xlu0 %3207  ;;  %v10567_v5 = vld [vmem:[#allocation2 + $0x190] sm:$0xf]  ;;  %v5143_v32 = vsel %vm1530_vm4, %v5138_v0, %v5142_v37  ;;  %v1899_v37 = vshll.u32 %v8249_v21, 16  ;;  %v10599_v57 = vcombine.low %v4450_v10, %v4451_v12  ;;  %v7069_v9 = vcombine.low %v4515_v55, %v4451_v12 }
 0x1bc   :  { %5468 = vrot.lane.b32.xlu1 %v5402_v48, %s8274_s11  ;;  %v3528_v22 = vsel %vm2236_vm5, %v10034_v44, %v3208_v39  ;;  %v5441_v49 = vpop.permute.xlu1 %5440  ;;  %v1894_v48 = vshll.u32 %v10561_v26, 16  ;;  %v6787_v44 = vcombine.low %v1271_v13, %v10502_v42  ;;  %v10582_v36 = vcombine.low %v1208_v38, %v10567_v5 }
 0x1bd   :  { %v3592_v31 = vsel %vm2301_vm6, %v3528_v22, %v3464_v2  ;;  %v5569_v62 = vsel %vm2301_vm6, %v5505_v23, %v5441_v49  ;;  %v2167_v2 = vrot.slane %v8249_v21, 1  ;;  %v2164_v38 = vrot.slane %v10532_v18, 1 }
 0x1be   :  { %7690 = vmatprep.mubr.msk.bf16.mxu1 %vm3644_vm7, %v3592_v31  ;;  %7810 = vmatprep.mubr.msk.bf16.mxu0 %vm3644_vm7, %v5569_v62  ;;  %v1896_v13 = vrot.slane %v1894_v48, 1  ;;  %v5131_v39 = vsel %vm1530_vm4, %v5126_v52, %v5130_v1  ;;  %v1906_v15 = vshll.u32 %v10582_v36, 16  ;;  %v5406_v23 = vrot.slane %v7068_v29, 1  ;;  %v8256_v52 = vld [vmem:[#allocation2 + $0x1ac] ss:$0 sps:$4 sm:$0x11]  }
 0x1bf   :  { %1971 = vrot.lane.b32.xlu0 %v1878_v3, %s8275_s14  ;;  %v10587_v3 = vld [vmem:[#allocation2 + $0x194] ss:$0 sps:$4 sm:$0x11]   ;;  %v2168_v18 = vsel %vm2075_vm3, %v2166_v28, %v2167_v2  ;;  %v5407_v49 = vrot.slane %v10543_v51, 1  ;;  %v1901_v21 = vrot.slane %v1899_v37, 1  ;;  %v5147_v51 = vshll.u32 %v10599_v57, 16 }
 0x1c0   :  { %5470 = vrot.lane.b32.xlu1 %v5405_v17, %s8274_s11  ;;  %v5443_v27 = vpop.permute.xlu1 %5442  ;;  %v2163_v17 = vrot.slane %v6787_v44, 1  ;;  %v1897_v62 = vor.u32 %v1896_v13, %v1892_v45  ;;  %v1911_v48 = vshll.u32 %v10587_v3, 16  ;;  %v1904_v44 = vshrl.u32 %v10582_v36, 16 }
 0x1c1   :  { %v10589_v42 = vpop.f32.mrb[16].mxu1  ;;  %v5408_v2 = vsel %vm2075_vm3, %v5406_v23, %v5407_v49  ;;  %v5409_v10 = vrot.slane %v7069_v9, 1  ;;  %v5410_v12 = vrot.slane %v8256_v52, 1  ;;  %v1273_v23 = vld [vmem:[#allocation2 + $0x18c] sm:$0xe] }
 0x1c2   :  { %v10594_v0 = vpop.f32.mrb[17].mxu1  ;;  %v2165_v1 = vsel %vm2075_vm3, %v2163_v17, %v2164_v38  ;;  %v1902_v45 = vsel %vm1530_vm4, %v1897_v62, %v1901_v21  ;;  %v1913_v13 = vrot.slane %v1911_v48, 1  ;;  %v5149_v17 = vrot.slane %v5147_v51, 1 }
 0x1c3   :  { %1973 = vrot.lane.b32.xlu0 %v1890_v14, %s8275_s14  ;;  %v10601_v22 = vpop.f32.mrb[18].mxu1  ;;  %v5411_v49 = vsel %vm2075_vm3, %v5409_v10, %v5410_v12 }
 0x1c4   :  { %5216 = vrot.lane.b32.xlu1 %v5143_v32, %s8275_s14  ;;  %v3210_v60 = vpop.permute.xlu0 %3209  ;;  %v10605_v14 = vpop.f32.mrb[19].mxu1  ;;  %v1908_v32 = vrot.slane %v1906_v15, 1  ;;  %v5152_v15 = vshll.u32 %v8256_v52, 16 }
 0x1c5   :  { %v5189_v31 = vpop.permute.xlu1 %5188 }
 0x1c6   :  { %v1909_v37 = vor.u32 %v1908_v32, %v1904_v44  ;;  %v5509_v9 = vsel %vm2236_vm5, %v10039_v50, %v5189_v31 }
 0x1c7   :  { %5214 = vrot.lane.b32.xlu0 %v5131_v39, %s8275_s14  ;;  %v5145_v39 = vshrl.u32 %v10599_v57, 16 }
 0x1c8   :  { %2232 = vrot.lane.b32.xlu1 %v2168_v18, %s8274_s11  ;;  %v5187_v28 = vpop.permute.xlu0 %5186  ;;  %v1914_v48 = vsel %vm1530_vm4, %v1909_v37, %v1913_v13 }
 0x1c9   :  { %v5507_v29 = vsel %vm2236_vm5, %v10010_v61, %v5187_v28  ;;  %v2205_v55 = vpop.permute.xlu1 %2204  ;;  %v3530_v61 = vsel %vm2236_vm5, %v10070_v33, %v3210_v60  ;;  %v5150_v52 = vor.u32 %v5149_v17, %v5145_v39  ;;  %v5154_v33 = vrot.slane %v5152_v15, 1 }
 0x1ca   :  { %v5571_v38 = vsel %vm2301_vm6, %v5507_v29, %v5443_v27  ;;  %v6789_v60 = vcombine.low %v1273_v23, %v10567_v5  ;;  %v2170_v5 = vrot.slane %v10587_v3, 1 }
 0x1cb   :  { %2230 = vrot.lane.b32.xlu0 %v2165_v1, %s8274_s11  ;;  %7811 = vmatmul.mubr.msk.bf16.gmra.mrb[28].mxu0 %vm3644_vm7, %v5571_v38  ;;  %v5155_v32 = vsel %vm1530_vm4, %v5150_v52, %v5154_v33 }
 0x1cc   :  { %5472 = vrot.lane.b32.xlu1 %v5408_v2, %s8274_s11  ;;  %v3466_v18 = vpop.permute.xlu0 %3465  ;;  %v2169_v51 = vrot.slane %v6789_v60, 1 }
 0x1cd   :  { %v3594_v27 = vsel %vm2301_vm6, %v3530_v61, %v3466_v18  ;;  %v5445_v62 = vpop.permute.xlu1 %5444 }
 0x1ce   :  { %7691 = vmatmul.mubr.msk.bf16.gmra.mrb[60].mxu1 %vm3644_vm7, %v3594_v27  ;;  %v5573_v21 = vsel %vm2301_vm6, %v5509_v9, %v5445_v62 }
 0x1cf   :  { %1975 = vrot.lane.b32.xlu0 %v1902_v45, %s8275_s14  ;;  %7814 = vmatprep.mubr.msk.bf16.mxu0 %vm3644_vm7, %v5573_v21 }
 0x1d0   :  { %5474 = vrot.lane.b32.xlu1 %v5411_v49, %s8274_s11  ;;  %v1948_v1 = vpop.permute.xlu0 %1947 }
 0x1d1   :  { %v2270_v50 = vsel %vm2236_vm5, %v10062_v7, %v1948_v1  ;;  %v5447_v31 = vpop.permute.xlu1 %5446  ;;  %v2171_v7 = vsel %vm2075_vm3, %v2169_v51, %v2170_v5 }
 0x1d2   :  { %v2335_v44 = vsel %vm2301_vm6, %v2270_v50, %v2205_v55 }
 0x1d3   :  { %1977 = vrot.lane.b32.xlu0 %v1914_v48, %s8275_s14  ;;  %7738 = vmatprep.mubr.msk.bf16.mxu1 %vm3644_vm7, %v2335_v44 }
 0x1d4   :  { %v1950_v28 = vpop.permute.xlu0 %1949 }
 0x1d5   :  { %v5193_v2 = vpop.permute.xlu1 %5192  ;;  %v2272_v37 = vsel %vm2236_vm5, %v10092_v58, %v1950_v28 }
 0x1d6   :  { %v5513_v15 = vsel %vm2236_vm5, %v10140_v56, %v5193_v2 }
 0x1d7   :  { %5218 = vrot.lane.b32.xlu0 %v5155_v32, %s8275_s14  ;;  %v10643_v10 = vpop.f32.mrb[20].mxu1 }
 0x1d8   :  { %v10646_v12 = vpop.f32.mrb[21].mxu1  ;;  %v5191_v29 = vpop.permute.xlu0 %5190 }
 0x1d9   :  { %v10648_v38 = vpop.f32.mrb[22].mxu1  ;;  %v5511_v55 = vsel %vm2236_vm5, %v10111_v63, %v5191_v29  ;;  %v2209_v45 = vpop.permute.xlu1 %2208 }
 0x1da   :  { %v10652_v13 = vpop.f32.mrb[23].mxu1  ;;  %v5575_v3 = vsel %vm2301_vm6, %v5511_v55, %v5447_v31 }
 0x1db   :  { %2234 = vrot.lane.b32.xlu0 %v2171_v7, %s8274_s11  ;;  %7815 = vmatmul.mubr.msk.bf16.gmra.mrb[32].mxu0 %vm3644_vm7, %v5575_v3 }
 0x1dc   :  { %v2207_v39 = vpop.permute.xlu0 %2206 }
 0x1dd   :  { %v2337_v17 = vsel %vm2301_vm6, %v2272_v37, %v2207_v39  ;;  %v5449_v61 = vpop.permute.xlu1 %5448 }
 0x1de   :  { %7739 = vmatmul.mubr.msk.bf16.vlgmr.msra.gmra.mrb[32].mxu1 %vm3644_vm7, %v2337_v17  ;;  %v5577_v63 = vsel %vm2301_vm6, %v5513_v15, %v5449_v61 }
 0x1df   :  { %7818 = vmatprep.mubr.msk.bf16.mxu0 %vm3644_vm7, %v5577_v63 }
 0x1e0   :  { %v1952_v18 = vpop.permute.xlu0 %1951 }
 0x1e1   :  { %v2274_v23 = vsel %vm2236_vm5, %v10155_v40, %v1952_v18  ;;  %v5451_v49 = vpop.permute.xlu1 %5450 }
 0x1e2   :  { %v2339_v58 = vsel %vm2301_vm6, %v2274_v23, %v2209_v45 }
 0x1e3   :  { %7742 = vmatprep.mubr.msk.bf16.mxu1 %vm3644_vm7, %v2339_v58 }
 0x1e4   :  { %v1954_v27 = vpop.permute.xlu0 %1953 }
 0x1e5   :  { %v5197_v9 = vpop.permute.xlu1 %5196  ;;  %v2276_v40 = vsel %vm2236_vm5, %v10176_v59, %v1954_v27 }
 0x1e8   :  { %v5195_v62 = vpop.permute.xlu0 %5194 }
 0x1e9   :  { %v5515_v56 = vsel %vm2236_vm5, %v10200_v47, %v5195_v62  ;;  %v2213_v21 = vpop.permute.xlu1 %2212  ;;  %v5517_v47 = vsel %vm2236_vm5, %v10203_v19, %v5197_v9 }
 0x1ea   :  { %v5579_v48 = vsel %vm2301_vm6, %v5515_v56, %v5451_v49  ;;  %v10672_v52 = vpop.f32.mrb[24].mxu1 }
 0x1eb   :  { %7819 = vmatmul.mubr.msk.bf16.gmra.mrb[36].mxu0 %vm3644_vm7, %v5579_v48  ;;  %v10675_v33 = vpop.f32.mrb[25].mxu1 }
 0x1ec   :  { %v2211_v60 = vpop.permute.xlu0 %2210  ;;  %v10679_v1 = vpop.f32.mrb[26].mxu1 }
 0x1ed   :  { %v2341_v50 = vsel %vm2301_vm6, %v2276_v40, %v2211_v60  ;;  %v5453_v31 = vpop.permute.xlu1 %5452  ;;  %v10684_v44 = vpop.f32.mrb[27].mxu1 }
 0x1ee   :  { %7743 = vmatmul.mubr.msk.bf16.gmra.mrb[36].mxu1 %vm3644_vm7, %v2341_v50  ;;  %v5581_v32 = vsel %vm2301_vm6, %v5517_v47, %v5453_v31 }
 0x1ef   :  { %7822 = vmatprep.mubr.msk.bf16.mxu0 %vm3644_vm7, %v5581_v32 }
 0x1f0   :  { %v1956_v51 = vpop.permute.xlu0 %1955 }
 0x1f1   :  { %v2278_v59 = vsel %vm2236_vm5, %v10228_v11, %v1956_v51  ;;  %v5455_v5 = vpop.permute.xlu1 %5454 }
 0x1f2   :  { %v2343_v28 = vsel %vm2301_vm6, %v2278_v59, %v2213_v21 }
 0x1f3   :  { %7746 = vmatprep.mubr.msk.bf16.mxu1 %vm3644_vm7, %v2343_v28 }
 0x1f4   :  { %v1958_v2 = vpop.permute.xlu0 %1957 }
 0x1f5   :  { %v5201_v19 = vpop.permute.xlu1 %5200  ;;  %v2280_v3 = vsel %vm2236_vm5, %v10247_v20, %v1958_v2 }
 0x1f6   :  { %v5521_v39 = vsel %vm2236_vm5, %v10254_v24, %v5201_v19  ;;  %v11244_v19 = vld [vmem:[#allocation8_spill] sm:$0xff] }
 0x1f8   :  { %v5199_v7 = vpop.permute.xlu0 %5198 }
 0x1f9   :  { %v5519_v29 = vsel %vm2236_vm5, %v10264_v25, %v5199_v7  ;;  %v2217_v55 = vpop.permute.xlu1 %2216 }
 0x1fa   :  { %v5583_v45 = vsel %vm2301_vm6, %v5519_v29, %v5455_v5 }
 0x1fb   :  { %7823 = vmatmul.mubr.msk.bf16.gmra.mrb[40].mxu0 %vm3644_vm7, %v5583_v45 }
 0x1fc   :  { %v2215_v11 = vpop.permute.xlu0 %2214 }
 0x1fd   :  { %v2345_v37 = vsel %vm2301_vm6, %v2280_v3, %v2215_v11  ;;  %v5457_v17 = vpop.permute.xlu1 %5456 }
 0x1fe   :  { %7747 = vmatmul.mubr.msk.bf16.gmra.mrb[40].mxu1 %vm3644_vm7, %v2345_v37  ;;  %v5585_v15 = vsel %vm2301_vm6, %v5521_v39, %v5457_v17  ;;  %v11246_v39 = vld [vmem:[#allocation10_spill] sm:$0xff] }
 0x1ff   :  { %7826 = vmatprep.mubr.msk.bf16.mxu0 %vm3644_vm7, %v5585_v15  ;;  %v10705_v25 = vpop.f32.mrb[28].mxu1 }
 0x200   :  { %v1960_v61 = vpop.permute.xlu0 %1959  ;;  %v10707_v63 = vpop.f32.mrb[29].mxu1 }
 0x201   :  { %v2282_v20 = vsel %vm2236_vm5, %v10288_v46, %v1960_v61  ;;  %v5459_v18 = vpop.permute.xlu1 %5458  ;;  %v10711_v23 = vpop.f32.mrb[30].mxu1 }
 0x202   :  { %v2347_v24 = vsel %vm2301_vm6, %v2282_v20, %v2217_v55  ;;  %v10714_v49 = vpop.f32.mrb[31].mxu1  ;;  %v11245_v55 = vld [vmem:[#allocation9_spill] sm:$0xff] }
 0x203   :  { %7750 = vmatprep.mubr.msk.bf16.mxu1 %vm3644_vm7, %v2347_v24 }
 0x204   :  { %v1962_v58 = vpop.permute.xlu0 %1961 }
 0x205   :  { %v5205_v27 = vpop.permute.xlu1 %5204  ;;  %v2284_v46 = vsel %vm2236_vm5, %v10320_v4, %v1962_v58 }
 0x206   :  { %v5525_v60 = vsel %vm2236_vm5, %v10326_v35, %v5205_v27  ;;  %v10736_v35 = vld [vmem:[%s11149_s4] ss:$0 sm:$0xff] }
 0x209   :  { %v5203_v9 = vpop.permute.xlu0 %5202  ;;  %v2221_v56 = vpop.permute.xlu1 %2220 }
 0x20a   :  { %v5523_v62 = vsel %vm2236_vm5, %v10331_v30, %v5203_v9 }
 0x20b   :  { %v5587_v21 = vsel %vm2301_vm6, %v5523_v62, %v5459_v18 }
 0x20c   :  { %7827 = vmatmul.mubr.msk.bf16.gmra.mrb[44].mxu0 %vm3644_vm7, %v5587_v21 }
 0x20d   :  { %v2219_v48 = vpop.permute.xlu0 %2218  ;;  %v5461_v50 = vpop.permute.xlu1 %5460 }
 0x20e   :  { %v2349_v40 = vsel %vm2301_vm6, %v2284_v46, %v2219_v48  ;;  %v5589_v47 = vsel %vm2301_vm6, %v5525_v60, %v5461_v50 }
 0x20f   :  { %7751 = vmatmul.mubr.msk.bf16.gmra.mrb[44].mxu1 %vm3644_vm7, %v2349_v40  ;;  %7830 = vmatprep.mubr.msk.bf16.mxu0 %vm3644_vm7, %v5589_v47 }
 0x211   :  { %v1964_v30 = vpop.permute.xlu0 %1963  ;;  %v5463_v32 = vpop.permute.xlu1 %5462 }
 0x212   :  { %v2286_v31 = vsel %vm2236_vm5, %v10364_v53, %v1964_v30  ;;  %v7784_v59 = vpop.f32.mrb[0].mxu0 }
 0x213   :  { %v2351_v4 = vsel %vm2301_vm6, %v2286_v31, %v2221_v56  ;;  %v7858_v28 = vadd.f32 %v7784_v59, %v10291_v8  ;;  %v5751_v2 = vpop.f32.mrb[1].mxu0 }
 0x214   :  { %7754 = vmatprep.mubr.msk.bf16.mxu1 %vm3644_vm7, %v2351_v4  ;;  %v7859_v7 = vadd.f32 %v5751_v2, %v11244_v19  ;;  %v7785_v29 = vpop.f32.mrb[2].mxu0 }
 0x215   :  { %v1966_v51 = vpop.permute.xlu0 %1965  ;;  %vm6072_vm8 = vcmp.ge.f32.partialorder %v7858_v28, 0.0  ;;  %v6143_v53 = vmul.f32 %v7858_v28, %v10736_v35  ;;  %v7860_v45 = vadd.f32 %v7785_v29, %v11245_v55  ;;  %v5754_v3 = vpop.f32.mrb[3].mxu0  ;;  %v11248_v29 = vld [vmem:[#allocation12_spill] sm:$0xff] }
 0x216   :  { %v5209_v5 = vpop.permute.xlu1 %5208  ;;  %vm6070_vm10 = vcmp.ge.f32.partialorder %v7859_v7, 0.0  ;;  %v6141_v37 = vmul.f32 %v7859_v7, %v10736_v35  ;;  %v7861_v17 = vadd.f32 %v5754_v3, %v11246_v39  ;;  %v2288_v56 = vsel %vm2236_vm5, %v10383_v41, %v1966_v51  ;;  %v11249_v3 = vld [vmem:[#allocation13_spill] sm:$0xff]  ;;  %v11250_v39 = vld [vmem:[#allocation19_spill] sm:$0xff] }
 0x217   :  { %v6207_v61 = vsel %vm6072_vm8, %v7858_v28, %v6143_v53  ;;  %vm6073_vm11 = vcmp.ge.f32.partialorder %v7860_v45, 0.0  ;;  %v6144_v20 = vmul.f32 %v7860_v45, %v10736_v35  ;;  %v5529_v48 = vsel %vm2236_vm5, %v10390_v54, %v5209_v5  ;;  %v11247_v5 = vld [vmem:[#allocation11_spill] sm:$0xff] }
 0x218   :  { %v7283_v24 = vpack.c.bf16 %v6207_v61, %v6207_v61  ;;  %v6205_v58 = vsel %vm6070_vm10, %v7859_v7, %v6141_v37  ;;  %vm6071_vm12 = vcmp.ge.f32.partialorder %v7861_v17, 0.0  ;;  %v6142_v62 = vmul.f32 %v7861_v17, %v10736_v35 }
 0x219   :  { %v5207_v11 = vpop.permute.xlu0 %5206  ;;  %v7281_v27 = vpack.c.bf16 %v6205_v58, %v6205_v58  ;;  %v6208_v9 = vsel %vm6073_vm11, %v7860_v45, %v6144_v20  ;;  %v11252_v20 = vld [vmem:[#allocation20_spill] sm:$0xff] }
 0x21a   :  { %v5527_v8 = vsel %vm2236_vm5, %v10399_v6, %v5207_v11  ;;  %v2225_v15 = vpop.permute.xlu1 %2224  ;;  %6528 = vst.msk [vmem:[%s11150_s5 + $0x8] sm:$0xf] %vm6525_vm9, %v7283_v24  ;;  %v7284_v21 = vpack.c.bf16 %v6208_v9, %v6208_v9  ;;  %v6206_v60 = vsel %vm6071_vm12, %v7861_v17, %v6142_v62 }
 0x21b   :  { %v5591_v18 = vsel %vm2301_vm6, %v5527_v8, %v5463_v32  ;;  %6526 = vst.msk [vmem:[%s11150_s5] sm:$0xf] %vm6525_vm9, %v7281_v27  ;;  %v7282_v50 = vpack.c.bf16 %v6206_v60, %v6206_v60  ;;  %v11251_v8 = vld [vmem:[#allocation14_spill] sm:$0xff] }
 0x21c   :  { %7831 = vmatmul.mubr.msk.bf16.gmra.mrb[48].mxu0 %vm3644_vm7, %v5591_v18  ;;  %6529 = vst.msk [vmem:[%s11150_s5 + $0xc] sm:$0xf] %vm6525_vm9, %v7284_v21 }
 0x21d   :  { %v2223_v6 = vpop.permute.xlu0 %2222  ;;  %6527 = vst.msk [vmem:[%s11150_s5 + $0x4] sm:$0xf] %vm6525_vm9, %v7282_v50  ;;  %v11253_v50 = vld [vmem:[#allocation3_spill] sm:$0xff] }
 0x21e   :  { %v2353_v46 = vsel %vm2301_vm6, %v2288_v56, %v2223_v6  ;;  %v5465_v40 = vpop.permute.xlu1 %5464 }
 0x21f   :  { %7755 = vmatmul.mubr.msk.bf16.gmra.mrb[48].mxu1 %vm3644_vm7, %v2353_v46  ;;  %v5593_v41 = vsel %vm2301_vm6, %v5529_v48, %v5465_v40 }
 0x220   :  { %7834 = vmatprep.mubr.msk.bf16.mxu0 %vm3644_vm7, %v5593_v41 }
 0x221   :  { %v1968_v54 = vpop.permute.xlu0 %1967 }
 0x222   :  { %v2290_v47 = vsel %vm2236_vm5, %v10424_v34, %v1968_v54  ;;  %v5467_v30 = vpop.permute.xlu1 %5466 }
 0x223   :  { %v2355_v31 = vsel %vm2301_vm6, %v2290_v47, %v2225_v15 }
 0x224   :  { %7758 = vmatprep.mubr.msk.bf16.mxu1 %vm3644_vm7, %v2355_v31  ;;  %v7788_v51 = vpop.f32.mrb[4].mxu0 }
 0x225   :  { %v1970_v32 = vpop.permute.xlu0 %1969  ;;  %v7862_v28 = vadd.f32 %v7788_v51, %v11247_v5  ;;  %v5767_v2 = vpop.f32.mrb[5].mxu0 }
 0x226   :  { %v5213_v4 = vpop.permute.xlu1 %5212  ;;  %v7863_v53 = vadd.f32 %v5767_v2, %v11248_v29  ;;  %v7789_v55 = vpop.f32.mrb[6].mxu0  ;;  %v2292_v17 = vsel %vm2236_vm5, %v11250_v39, %v1970_v32  ;;  %v11255_v2 = vld [vmem:[#allocation17_spill] sm:$0xff]  ;;  %v11257_v39 = vld [vmem:[#allocation18_spill] sm:$0xff] }
 0x227   :  { %vm6076_vm13 = vcmp.ge.f32.partialorder %v7862_v28, 0.0  ;;  %v6147_v45 = vmul.f32 %v7862_v28, %v10736_v35  ;;  %v7864_v11 = vadd.f32 %v7789_v55, %v11249_v3  ;;  %v5770_v37 = vpop.f32.mrb[7].mxu0  ;;  %v5533_v18 = vsel %vm2236_vm5, %v11252_v20, %v5213_v4  ;;  %v11256_v55 = vld [vmem:[#allocation15_spill] sm:$0xff] }
 0x228   :  { %vm6074_vm14 = vcmp.ge.f32.partialorder %v7863_v53, 0.0  ;;  %v7865_v15 = vadd.f32 %v5770_v37, %v11251_v8 }
 0x229   :  { %v5211_v59 = vpop.permute.xlu0 %5210  ;;  %v6211_v24 = vsel %vm6076_vm13, %v7862_v28, %v6147_v45  ;;  %vm6077_vm15 = vcmp.ge.f32.partialorder %v7864_v11, 0.0  ;;  %v6148_v58 = vmul.f32 %v7864_v11, %v10736_v35 }
 0x22a   :  { %v5531_v19 = vsel %vm2236_vm5, %v10469_v16, %v5211_v59  ;;  %v2229_v7 = vpop.permute.xlu1 %2228  ;;  %v6145_v16 = vmul.f32 %v7863_v53, %v10736_v35  ;;  %v7287_v62 = vpack.c.bf16 %v6211_v24, %v6211_v24  ;;  %vm6075_vm0 = vcmp.ge.f32.partialorder %v7865_v15, 0.0  ;;  %v11254_v59 = vld [vmem:[#allocation16_spill] sm:$0xff] }
 0x22b   :  { %v5595_v34 = vsel %vm2301_vm6, %v5531_v19, %v5467_v30  ;;  %v6212_v46 = vsel %vm6077_vm15, %v7864_v11, %v6148_v58  ;;  %v6146_v48 = vmul.f32 %v7865_v15, %v10736_v35 }
 0x22c   :  { %7835 = vmatmul.mubr.msk.bf16.gmra.mrb[52].mxu0 %vm3644_vm7, %v5595_v34  ;;  %v6209_v56 = vsel %vm6074_vm14, %v7863_v53, %v6145_v16  ;;  %6532 = vst.msk [vmem:[%s11150_s5 + $0x18] sm:$0xf] %vm6525_vm9, %v7287_v62  ;;  %v7288_v40 = vpack.c.bf16 %v6212_v46, %v6212_v46 }
 0x22d   :  { %v2227_v61 = vpop.permute.xlu0 %2226  ;;  %v7285_v21 = vpack.c.bf16 %v6209_v56, %v6209_v56  ;;  %v6210_v41 = vsel %vm6075_vm0, %v7865_v15, %v6146_v48  ;;  %v11259_v56 = vld [vmem:[#allocation25_spill] sm:$0xff] }
 0x22e   :  { %v2357_v27 = vsel %vm2301_vm6, %v2292_v17, %v2227_v61  ;;  %v5469_v9 = vpop.permute.xlu1 %5468  ;;  %6533 = vst.msk [vmem:[%s11150_s5 + $0x1c] sm:$0xf] %vm6525_vm9, %v7288_v40  ;;  %v7286_v30 = vpack.c.bf16 %v6210_v41, %v6210_v41 }
 0x22f   :  { %7759 = vmatmul.mubr.msk.bf16.gmra.mrb[52].mxu1 %vm3644_vm7, %v2357_v27  ;;  %v5597_v6 = vsel %vm2301_vm6, %v5533_v18, %v5469_v9  ;;  %6530 = vst.msk [vmem:[%s11150_s5 + $0x10] sm:$0xf] %vm6525_vm9, %v7285_v21 }
 0x230   :  { %7838 = vmatprep.mubr.msk.bf16.mxu0 %vm3644_vm7, %v5597_v6  ;;  %6531 = vst.msk [vmem:[%s11150_s5 + $0x14] sm:$0xf] %vm6525_vm9, %v7286_v30 }
 0x231   :  { %v1972_v60 = vpop.permute.xlu0 %1971 }
 0x232   :  { %v2294_v54 = vsel %vm2236_vm5, %v11253_v50, %v1972_v60  ;;  %v5471_v47 = vpop.permute.xlu1 %5470 }
 0x233   :  { %v2359_v31 = vsel %vm2301_vm6, %v2294_v54, %v2229_v7 }
 0x234   :  { %7762 = vmatprep.mubr.msk.bf16.mxu1 %vm3644_vm7, %v2359_v31 }
 0x235   :  { %v1974_v32 = vpop.permute.xlu0 %1973  ;;  %v7792_v51 = vpop.f32.mrb[8].mxu0 }
 0x236   :  { %v5217_v4 = vpop.permute.xlu1 %5216  ;;  %v7866_v5 = vadd.f32 %v7792_v51, %v11254_v59  ;;  %v5783_v28 = vpop.f32.mrb[9].mxu0  ;;  %v11260_v59 = vld [vmem:[#allocation5_spill] sm:$0xff] }
 0x237   :  { %v7867_v19 = vadd.f32 %v5783_v28, %v11255_v2  ;;  %v7793_v29 = vpop.f32.mrb[10].mxu0  ;;  %v5537_v6 = vsel %vm2236_vm5, %v11259_v56, %v5217_v4 }
 0x238   :  { %vm6080_vm1 = vcmp.ge.f32.partialorder %v7866_v5, 0.0  ;;  %v6151_v7 = vmul.f32 %v7866_v5, %v10736_v35  ;;  %v7868_v34 = vadd.f32 %v7793_v29, %v11256_v55  ;;  %v5786_v45 = vpop.f32.mrb[11].mxu0  ;;  %v11262_v55 = vld [vmem:[#allocation22_spill] sm:$0xff] }
 0x239   :  { %v5215_v53 = vpop.permute.xlu0 %5214  ;;  %vm6078_vm2 = vcmp.ge.f32.partialorder %v7867_v19, 0.0  ;;  %v6149_v37 = vmul.f32 %v7867_v19, %v10736_v35  ;;  %v7869_v17 = vadd.f32 %v5786_v45, %v11257_v39 }
 0x23a   :  { %v5535_v3 = vsel %vm2236_vm5, %v10539_v43, %v5215_v53  ;;  %v2233_v11 = vpop.permute.xlu1 %2232  ;;  %v6215_v8 = vsel %vm6080_vm1, %v7866_v5, %v6151_v7  ;;  %vm6081_vm3 = vcmp.ge.f32.partialorder %v7868_v34, 0.0  ;;  %v6152_v15 = vmul.f32 %v7868_v34, %v10736_v35  ;;  %v11258_v43 = vld [vmem:[#allocation23_spill] sm:$0xff] }
 0x23b   :  { %v5599_v16 = vsel %vm2301_vm6, %v5535_v3, %v5471_v47  ;;  %v7291_v61 = vpack.c.bf16 %v6215_v8, %v6215_v8  ;;  %v6213_v20 = vsel %vm6078_vm2, %v7867_v19, %v6149_v37  ;;  %vm6079_vm4 = vcmp.ge.f32.partialorder %v7869_v17, 0.0  ;;  %v11261_v19 = vld [vmem:[#allocation21_spill] sm:$0xff] }
 0x23c   :  { %7839 = vmatmul.mubr.msk.bf16.gmra.mrb[56].mxu0 %vm3644_vm7, %v5599_v16  ;;  %v6150_v18 = vmul.f32 %v7869_v17, %v10736_v35  ;;  %v2296_v24 = vsel %vm2236_vm5, %v11258_v43, %v1974_v32  ;;  %v7289_v27 = vpack.c.bf16 %v6213_v20, %v6213_v20  ;;  %v6216_v9 = vsel %vm6081_vm3, %v7868_v34, %v6152_v15 }
 0x23d   :  { %v2231_v58 = vpop.permute.xlu0 %2230  ;;  %6536 = vst.msk [vmem:[%s11150_s5 + $0x28] sm:$0xf] %vm6525_vm9, %v7291_v61  ;;  %v7292_v46 = vpack.c.bf16 %v6216_v9, %v6216_v9 }
 0x23e   :  { %v2361_v62 = vsel %vm2301_vm6, %v2296_v24, %v2231_v58  ;;  %v5473_v21 = vpop.permute.xlu1 %5472  ;;  %v6214_v48 = vsel %vm6079_vm4, %v7869_v17, %v6150_v18  ;;  %6534 = vst.msk [vmem:[%s11150_s5 + $0x20] sm:$0xf] %vm6525_vm9, %v7289_v27 }
 0x23f   :  { %7763 = vmatmul.mubr.msk.bf16.gmra.mrb[56].mxu1 %vm3644_vm7, %v2361_v62  ;;  %v5601_v40 = vsel %vm2301_vm6, %v5537_v6, %v5473_v21  ;;  %v7290_v60 = vpack.c.bf16 %v6214_v48, %v6214_v48  ;;  %6537 = vst.msk [vmem:[%s11150_s5 + $0x2c] sm:$0xf] %vm6525_vm9, %v7292_v46 }
 0x240   :  { %7842 = vmatprep.mubr.msk.bf16.mxu0 %vm3644_vm7, %v5601_v40 }
 0x241   :  { %v1976_v41 = vpop.permute.xlu0 %1975  ;;  %6535 = vst.msk [vmem:[%s11150_s5 + $0x24] sm:$0xf] %vm6525_vm9, %v7290_v60 }
 0x242   :  { %v2298_v50 = vsel %vm2236_vm5, %v10561_v26, %v1976_v41  ;;  %v5475_v30 = vpop.permute.xlu1 %5474 }
 0x243   :  { %v2363_v54 = vsel %vm2301_vm6, %v2298_v50, %v2233_v11  ;;  %v11263_v11 = vld [vmem:[#allocation24_spill] sm:$0xff] }
 0x244   :  { %7766 = vmatprep.mubr.msk.bf16.mxu1 %vm3644_vm7, %v2363_v54 }
 0x245   :  { %v1978_v47 = vpop.permute.xlu0 %1977 }
 0x246   :  { %v2300_v26 = vsel %vm2236_vm5, %v10582_v36, %v1978_v47 }
 0x249   :  { %v5219_v31 = vpop.permute.xlu0 %5218 }
 0x24a   :  { %v5539_v32 = vsel %vm2236_vm5, %v10599_v57, %v5219_v31 }
 0x24b   :  { %v5603_v4 = vsel %vm2301_vm6, %v5539_v32, %v5475_v30  ;;  %v7796_v51 = vpop.f32.mrb[12].mxu0 }
 0x24c   :  { %7843 = vmatmul.mubr.msk.bf16.gmra.mrb[60].mxu0 %vm3644_vm7, %v5603_v4  ;;  %v7870_v5 = vadd.f32 %v7796_v51, %v11260_v59  ;;  %v5799_v28 = vpop.f32.mrb[13].mxu0 }
 0x24d   :  { %v2235_v2 = vpop.permute.xlu0 %2234  ;;  %v7871_v29 = vadd.f32 %v5799_v28, %v11261_v19  ;;  %v7797_v53 = vpop.f32.mrb[14].mxu0 }
 0x24e   :  { %v2365_v7 = vsel %vm2301_vm6, %v2300_v26, %v2235_v2  ;;  %vm6084_vm8 = vcmp.ge.f32.partialorder %v7870_v5, 0.0  ;;  %v6155_v57 = vmul.f32 %v7870_v5, %v10736_v35  ;;  %v7872_v34 = vadd.f32 %v7797_v53, %v11262_v55  ;;  %v5802_v45 = vpop.f32.mrb[15].mxu0 }
 0x24f   :  { %7767 = vmatmul.mubr.msk.bf16.gmra.mrb[60].mxu1 %vm3644_vm7, %v2365_v7  ;;  %vm6082_vm10 = vcmp.ge.f32.partialorder %v7871_v29, 0.0  ;;  %v6153_v3 = vmul.f32 %v7871_v29, %v10736_v35  ;;  %v7873_v37 = vadd.f32 %v5802_v45, %v11263_v11 }
 0x250   :  { %v6219_v36 = vsel %vm6084_vm8, %v7870_v5, %v6155_v57  ;;  %vm6085_vm5 = vcmp.ge.f32.partialorder %v7872_v34, 0.0  ;;  %v6156_v39 = vmul.f32 %v7872_v34, %v10736_v35 }
 0x251   :  { %v7295_v17 = vpack.c.bf16 %v6219_v36, %v6219_v36  ;;  %v6217_v16 = vsel %vm6082_vm10, %v7871_v29, %v6153_v3  ;;  %vm6083_vm6 = vcmp.ge.f32.partialorder %v7873_v37, 0.0  ;;  %v6154_v8 = vmul.f32 %v7873_v37, %v10736_v35 }
 0x252   :  { %v7293_v15 = vpack.c.bf16 %v6217_v16, %v6217_v16  ;;  %v6220_v61 = vsel %vm6085_vm5, %v7872_v34, %v6156_v39 }
 0x253   :  { %6540 = vst.msk [vmem:[%s11150_s5 + $0x38] sm:$0xf] %vm6525_vm9, %v7295_v17  ;;  %v7296_v20 = vpack.c.bf16 %v6220_v61, %v6220_v61  ;;  %v6218_v18 = vsel %vm6083_vm6, %v7873_v37, %v6154_v8 }
 0x254   :  { %6538 = vst.msk [vmem:[%s11150_s5 + $0x30] sm:$0xf] %vm6525_vm9, %v7293_v15  ;;  %v7294_v43 = vpack.c.bf16 %v6218_v18, %v6218_v18 }
 0x255   :  { %6541 = vst.msk [vmem:[%s11150_s5 + $0x3c] sm:$0xf] %vm6525_vm9, %v7296_v20 }
 0x256   :  { %6539 = vst.msk [vmem:[%s11150_s5 + $0x34] sm:$0xf] %vm6525_vm9, %v7294_v43 }
 0x25f   :  { %v7800_v24 = vpop.f32.mrb[16].mxu0 }
 0x260   :  { %v7874_v58 = vadd.f32 %v7800_v24, %v10589_v42  ;;  %v5815_v27 = vpop.f32.mrb[17].mxu0 }
 0x261   :  { %v7875_v9 = vadd.f32 %v5815_v27, %v10594_v0  ;;  %v7801_v62 = vpop.f32.mrb[18].mxu0 }
 0x262   :  { %vm6088_vm7 = vcmp.ge.f32.partialorder %v7874_v58, 0.0  ;;  %v6159_v56 = vmul.f32 %v7874_v58, %v10736_v35  ;;  %v7876_v6 = vadd.f32 %v7801_v62, %v10601_v22  ;;  %v5818_v21 = vpop.f32.mrb[19].mxu0 }
 0x263   :  { %vm6086_vm11 = vcmp.ge.f32.partialorder %v7875_v9, 0.0  ;;  %v6157_v46 = vmul.f32 %v7875_v9, %v10736_v35  ;;  %v7877_v48 = vadd.f32 %v5818_v21, %v10605_v14 }
 0x264   :  { %v6223_v40 = vsel %vm6088_vm7, %v7874_v58, %v6159_v56  ;;  %vm6089_vm12 = vcmp.ge.f32.partialorder %v7876_v6, 0.0  ;;  %v6160_v60 = vmul.f32 %v7876_v6, %v10736_v35 }
 0x265   :  { %v7299_v42 = vpack.c.bf16 %v6223_v40, %v6223_v40  ;;  %v6221_v41 = vsel %vm6086_vm11, %v7875_v9, %v6157_v46  ;;  %vm6087_vm13 = vcmp.ge.f32.partialorder %v7877_v48, 0.0  ;;  %v6158_v0 = vmul.f32 %v7877_v48, %v10736_v35 }
 0x266   :  { %v7297_v50 = vpack.c.bf16 %v6221_v41, %v6221_v41  ;;  %v6224_v54 = vsel %vm6089_vm12, %v7876_v6, %v6160_v60 }
 0x267   :  { %6544 = vst.msk [vmem:[%s11150_s5 + $0x48] sm:$0xf] %vm6525_vm9, %v7299_v42  ;;  %v7300_v22 = vpack.c.bf16 %v6224_v54, %v6224_v54  ;;  %v6222_v47 = vsel %vm6087_vm13, %v7877_v48, %v6158_v0 }
 0x268   :  { %6542 = vst.msk [vmem:[%s11150_s5 + $0x40] sm:$0xf] %vm6525_vm9, %v7297_v50  ;;  %v7298_v14 = vpack.c.bf16 %v6222_v47, %v6222_v47 }
 0x269   :  { %6545 = vst.msk [vmem:[%s11150_s5 + $0x4c] sm:$0xf] %vm6525_vm9, %v7300_v22 }
 0x26a   :  { %6543 = vst.msk [vmem:[%s11150_s5 + $0x44] sm:$0xf] %vm6525_vm9, %v7298_v14 }
 0x276   :  { %v7804_v30 = vpop.f32.mrb[20].mxu0 }
 0x277   :  { %v7878_v31 = vadd.f32 %v7804_v30, %v10643_v10  ;;  %v5831_v32 = vpop.f32.mrb[21].mxu0 }
 0x278   :  { %v7879_v4 = vadd.f32 %v5831_v32, %v10646_v12  ;;  %v7805_v51 = vpop.f32.mrb[22].mxu0 }
 0x279   :  { %vm6092_vm14 = vcmp.ge.f32.partialorder %v7878_v31, 0.0  ;;  %v6163_v59 = vmul.f32 %v7878_v31, %v10736_v35  ;;  %v7880_v5 = vadd.f32 %v7805_v51, %v10648_v38  ;;  %v5834_v28 = vpop.f32.mrb[23].mxu0 }
 0x27a   :  { %vm6090_vm15 = vcmp.ge.f32.partialorder %v7879_v4, 0.0  ;;  %v6161_v26 = vmul.f32 %v7879_v4, %v10736_v35  ;;  %v7881_v2 = vadd.f32 %v5834_v28, %v10652_v13 }
 0x27b   :  { %v6227_v19 = vsel %vm6092_vm14, %v7878_v31, %v6163_v59  ;;  %vm6093_vm0 = vcmp.ge.f32.partialorder %v7880_v5, 0.0  ;;  %v6164_v29 = vmul.f32 %v7880_v5, %v10736_v35 }
 0x27c   :  { %v7303_v10 = vpack.c.bf16 %v6227_v19, %v6227_v19  ;;  %v6225_v53 = vsel %vm6090_vm15, %v7879_v4, %v6161_v26  ;;  %vm6091_vm1 = vcmp.ge.f32.partialorder %v7881_v2, 0.0  ;;  %v6162_v12 = vmul.f32 %v7881_v2, %v10736_v35 }
 0x27d   :  { %v7301_v7 = vpack.c.bf16 %v6225_v53, %v6225_v53  ;;  %v6228_v57 = vsel %vm6093_vm0, %v7880_v5, %v6164_v29 }
 0x27e   :  { %6548 = vst.msk [vmem:[%s11150_s5 + $0x58] sm:$0xf] %vm6525_vm9, %v7303_v10  ;;  %v7304_v38 = vpack.c.bf16 %v6228_v57, %v6228_v57  ;;  %v6226_v55 = vsel %vm6091_vm1, %v7881_v2, %v6162_v12 }
 0x27f   :  { %6546 = vst.msk [vmem:[%s11150_s5 + $0x50] sm:$0xf] %vm6525_vm9, %v7301_v7  ;;  %v7302_v13 = vpack.c.bf16 %v6226_v55, %v6226_v55 }
 0x280   :  { %6549 = vst.msk [vmem:[%s11150_s5 + $0x5c] sm:$0xf] %vm6525_vm9, %v7304_v38 }
 0x281   :  { %6547 = vst.msk [vmem:[%s11150_s5 + $0x54] sm:$0xf] %vm6525_vm9, %v7302_v13 }
 0x288   :  { %v7808_v34 = vpop.f32.mrb[24].mxu0 }
 0x289   :  { %v7882_v45 = vadd.f32 %v7808_v34, %v10672_v52  ;;  %v5847_v3 = vpop.f32.mrb[25].mxu0 }
 0x28a   :  { %v7883_v11 = vadd.f32 %v5847_v3, %v10675_v33  ;;  %v7809_v37 = vpop.f32.mrb[26].mxu0 }
 0x28b   :  { %vm6096_vm2 = vcmp.ge.f32.partialorder %v7882_v45, 0.0  ;;  %v6167_v36 = vmul.f32 %v7882_v45, %v10736_v35  ;;  %v7884_v39 = vadd.f32 %v7809_v37, %v10679_v1  ;;  %v5850_v17 = vpop.f32.mrb[27].mxu0 }
 0x28c   :  { %vm6094_vm3 = vcmp.ge.f32.partialorder %v7883_v11, 0.0  ;;  %v6165_v16 = vmul.f32 %v7883_v11, %v10736_v35  ;;  %v7885_v8 = vadd.f32 %v5850_v17, %v10684_v44 }
 0x28d   :  { %v6231_v15 = vsel %vm6096_vm2, %v7882_v45, %v6167_v36  ;;  %vm6097_vm4 = vcmp.ge.f32.partialorder %v7884_v39, 0.0  ;;  %v6168_v61 = vmul.f32 %v7884_v39, %v10736_v35 }
 0x28e   :  { %v7307_v52 = vpack.c.bf16 %v6231_v15, %v6231_v15  ;;  %v6229_v20 = vsel %vm6094_vm3, %v7883_v11, %v6165_v16  ;;  %vm6095_vm8 = vcmp.ge.f32.partialorder %v7885_v8, 0.0  ;;  %v6166_v33 = vmul.f32 %v7885_v8, %v10736_v35 }
 0x28f   :  { %v7305_v18 = vpack.c.bf16 %v6229_v20, %v6229_v20  ;;  %v6232_v43 = vsel %vm6097_vm4, %v7884_v39, %v6168_v61 }
 0x290   :  { %6552 = vst.msk [vmem:[%s11150_s5 + $0x68] sm:$0xf] %vm6525_vm9, %v7307_v52  ;;  %v7308_v1 = vpack.c.bf16 %v6232_v43, %v6232_v43  ;;  %v6230_v24 = vsel %vm6095_vm8, %v7885_v8, %v6166_v33 }
 0x291   :  { %6550 = vst.msk [vmem:[%s11150_s5 + $0x60] sm:$0xf] %vm6525_vm9, %v7305_v18  ;;  %v7306_v44 = vpack.c.bf16 %v6230_v24, %v6230_v24 }
 0x292   :  { %6553 = vst.msk [vmem:[%s11150_s5 + $0x6c] sm:$0xf] %vm6525_vm9, %v7308_v1 }
 0x293   :  { %6551 = vst.msk [vmem:[%s11150_s5 + $0x64] sm:$0xf] %vm6525_vm9, %v7306_v44 }
 0x29e   :  { %v7812_v58 = vpop.f32.mrb[28].mxu0 }
 0x29f   :  { %v7886_v27 = vadd.f32 %v7812_v58, %v10705_v25  ;;  %v5863_v9 = vpop.f32.mrb[29].mxu0 }
 0x2a0   :  { %v7887_v62 = vadd.f32 %v5863_v9, %v10707_v63  ;;  %v7813_v56 = vpop.f32.mrb[30].mxu0 }
 0x2a1   :  { %vm6100_vm10 = vcmp.ge.f32.partialorder %v7886_v27, 0.0  ;;  %v6171_v6 = vmul.f32 %v7886_v27, %v10736_v35  ;;  %v7888_v21 = vadd.f32 %v7813_v56, %v10711_v23  ;;  %v5866_v46 = vpop.f32.mrb[31].mxu0 }
 0x2a2   :  { %vm6098_vm5 = vcmp.ge.f32.partialorder %v7887_v62, 0.0  ;;  %v6169_v48 = vmul.f32 %v7887_v62, %v10736_v35  ;;  %v7889_v40 = vadd.f32 %v5866_v46, %v10714_v49 }
 0x2a3   :  { %v6235_v60 = vsel %vm6100_vm10, %v7886_v27, %v6171_v6  ;;  %vm6101_vm6 = vcmp.ge.f32.partialorder %v7888_v21, 0.0  ;;  %v6172_v42 = vmul.f32 %v7888_v21, %v10736_v35 }
 0x2a4   :  { %v7311_v25 = vpack.c.bf16 %v6235_v60, %v6235_v60  ;;  %v6233_v41 = vsel %vm6098_vm5, %v7887_v62, %v6169_v48  ;;  %vm6099_vm7 = vcmp.ge.f32.partialorder %v7889_v40, 0.0  ;;  %v6170_v63 = vmul.f32 %v7889_v40, %v10736_v35 }
 0x2a5   :  { %v7309_v0 = vpack.c.bf16 %v6233_v41, %v6233_v41  ;;  %v6236_v50 = vsel %vm6101_vm6, %v7888_v21, %v6172_v42 }
 0x2a6   :  { %6556 = vst.msk [vmem:[%s11150_s5 + $0x78] sm:$0xf] %vm6525_vm9, %v7311_v25  ;;  %v7312_v23 = vpack.c.bf16 %v6236_v50, %v6236_v50  ;;  %v6234_v54 = vsel %vm6099_vm7, %v7889_v40, %v6170_v63 }
 0x2a7   :  { %6554 = vst.msk [vmem:[%s11150_s5 + $0x70] sm:$0xf] %vm6525_vm9, %v7309_v0  ;;  %v7310_v49 = vpack.c.bf16 %v6234_v54, %v6234_v54 }
 0x2a8   :  { %6557 = vst.msk [vmem:[%s11150_s5 + $0x7c] sm:$0xf] %vm6525_vm9, %v7312_v23 }
 0x2a9   :  { %6555 = vst.msk [vmem:[%s11150_s5 + $0x74] sm:$0xf] %vm6525_vm9, %v7310_v49 }
 0x2ae   :  { %v7816_v22 = vpop.f32.mrb[32].mxu0 }
 0x2af   :  { %v5879_v47 = vpop.f32.mrb[33].mxu0 }
 0x2b0   :  { %v7817_v14 = vpop.f32.mrb[34].mxu0 }
 0x2b1   :  { %v7740_v30 = vpop.f32.mrb[32].mxu1  ;;  %v5882_v31 = vpop.f32.mrb[35].mxu0 }
 0x2b2   :  { %v7890_v32 = vadd.f32 %v7816_v22, %v7740_v30  ;;  %v4260_v4 = vpop.f32.mrb[33].mxu1 }
 0x2b3   :  { %v7891_v51 = vadd.f32 %v5879_v47, %v4260_v4  ;;  %v7741_v59 = vpop.f32.mrb[34].mxu1 }
 0x2b4   :  { %vm6104_vm11 = vcmp.ge.f32.partialorder %v7890_v32, 0.0  ;;  %v6175_v5 = vmul.f32 %v7890_v32, %v10736_v35  ;;  %v7892_v28 = vadd.f32 %v7817_v14, %v7741_v59  ;;  %v4263_v26 = vpop.f32.mrb[35].mxu1 }
 0x2b5   :  { %vm6102_vm12 = vcmp.ge.f32.partialorder %v7891_v51, 0.0  ;;  %v6173_v2 = vmul.f32 %v7891_v51, %v10736_v35  ;;  %v7893_v19 = vadd.f32 %v5882_v31, %v4263_v26 }
 0x2b6   :  { %v6239_v29 = vsel %vm6104_vm11, %v7890_v32, %v6175_v5  ;;  %vm6105_vm13 = vcmp.ge.f32.partialorder %v7892_v28, 0.0  ;;  %v6176_v10 = vmul.f32 %v7892_v28, %v10736_v35 }
 0x2b7   :  { %v7315_v53 = vpack.c.bf16 %v6239_v29, %v6239_v29  ;;  %v6237_v12 = vsel %vm6102_vm12, %v7891_v51, %v6173_v2  ;;  %vm6103_vm14 = vcmp.ge.f32.partialorder %v7893_v19, 0.0  ;;  %v6174_v7 = vmul.f32 %v7893_v19, %v10736_v35 }
 0x2b8   :  { %v7313_v57 = vpack.c.bf16 %v6237_v12, %v6237_v12  ;;  %v6240_v38 = vsel %vm6105_vm13, %v7892_v28, %v6176_v10 }
 0x2b9   :  { %6560 = vst.msk [vmem:[%s11150_s5 + $0x88] sm:$0xf] %vm6525_vm9, %v7315_v53  ;;  %v7316_v55 = vpack.c.bf16 %v6240_v38, %v6240_v38  ;;  %v6238_v13 = vsel %vm6103_vm14, %v7893_v19, %v6174_v7 }
 0x2ba   :  { %6558 = vst.msk [vmem:[%s11150_s5 + $0x80] sm:$0xf] %vm6525_vm9, %v7313_v57  ;;  %v7314_v34 = vpack.c.bf16 %v6238_v13, %v6238_v13 }
 0x2bb   :  { %6561 = vst.msk [vmem:[%s11150_s5 + $0x8c] sm:$0xf] %vm6525_vm9, %v7316_v55 }
 0x2bc   :  { %6559 = vst.msk [vmem:[%s11150_s5 + $0x84] sm:$0xf] %vm6525_vm9, %v7314_v34 }
 0x2be   :  { %v7820_v45 = vpop.f32.mrb[36].mxu0 }
 0x2bf   :  { %v5895_v3 = vpop.f32.mrb[37].mxu0 }
 0x2c0   :  { %v7821_v11 = vpop.f32.mrb[38].mxu0 }
 0x2c1   :  { %v7744_v37 = vpop.f32.mrb[36].mxu1  ;;  %v5898_v36 = vpop.f32.mrb[39].mxu0 }
 0x2c2   :  { %v7894_v39 = vadd.f32 %v7820_v45, %v7744_v37  ;;  %v4276_v17 = vpop.f32.mrb[37].mxu1 }
 0x2c3   :  { %v7895_v16 = vadd.f32 %v5895_v3, %v4276_v17  ;;  %v7745_v8 = vpop.f32.mrb[38].mxu1 }
 0x2c4   :  { %vm6108_vm15 = vcmp.ge.f32.partialorder %v7894_v39, 0.0  ;;  %v6179_v15 = vmul.f32 %v7894_v39, %v10736_v35  ;;  %v7896_v61 = vadd.f32 %v7821_v11, %v7745_v8  ;;  %v4279_v52 = vpop.f32.mrb[39].mxu1 }
 0x2c5   :  { %vm6106_vm0 = vcmp.ge.f32.partialorder %v7895_v16, 0.0  ;;  %v6177_v20 = vmul.f32 %v7895_v16, %v10736_v35  ;;  %v7897_v33 = vadd.f32 %v5898_v36, %v4279_v52 }
 0x2c6   :  { %v6243_v18 = vsel %vm6108_vm15, %v7894_v39, %v6179_v15  ;;  %vm6109_vm1 = vcmp.ge.f32.partialorder %v7896_v61, 0.0  ;;  %v6180_v43 = vmul.f32 %v7896_v61, %v10736_v35 }
 0x2c7   :  { %v7319_v1 = vpack.c.bf16 %v6243_v18, %v6243_v18  ;;  %v6241_v24 = vsel %vm6106_vm0, %v7895_v16, %v6177_v20  ;;  %vm6107_vm2 = vcmp.ge.f32.partialorder %v7897_v33, 0.0  ;;  %v6178_v44 = vmul.f32 %v7897_v33, %v10736_v35 }
 0x2c8   :  { %v7317_v58 = vpack.c.bf16 %v6241_v24, %v6241_v24  ;;  %v6244_v27 = vsel %vm6109_vm1, %v7896_v61, %v6180_v43 }
 0x2c9   :  { %6564 = vst.msk [vmem:[%s11150_s5 + $0x98] sm:$0xf] %vm6525_vm9, %v7319_v1  ;;  %v7320_v9 = vpack.c.bf16 %v6244_v27, %v6244_v27  ;;  %v6242_v62 = vsel %vm6107_vm2, %v7897_v33, %v6178_v44 }
 0x2ca   :  { %6562 = vst.msk [vmem:[%s11150_s5 + $0x90] sm:$0xf] %vm6525_vm9, %v7317_v58  ;;  %v7318_v56 = vpack.c.bf16 %v6242_v62, %v6242_v62 }
 0x2cb   :  { %6565 = vst.msk [vmem:[%s11150_s5 + $0x9c] sm:$0xf] %vm6525_vm9, %v7320_v9 }
 0x2cc   :  { %6563 = vst.msk [vmem:[%s11150_s5 + $0x94] sm:$0xf] %vm6525_vm9, %v7318_v56 }
 0x2ce   :  { %v7824_v6 = vpop.f32.mrb[40].mxu0 }
 0x2cf   :  { %v5911_v21 = vpop.f32.mrb[41].mxu0 }
 0x2d0   :  { %v7825_v46 = vpop.f32.mrb[42].mxu0 }
 0x2d1   :  { %v7748_v48 = vpop.f32.mrb[40].mxu1  ;;  %v5914_v40 = vpop.f32.mrb[43].mxu0 }
 0x2d2   :  { %v7898_v60 = vadd.f32 %v7824_v6, %v7748_v48  ;;  %v4292_v42 = vpop.f32.mrb[41].mxu1 }
 0x2d3   :  { %v7899_v25 = vadd.f32 %v5911_v21, %v4292_v42  ;;  %v7749_v41 = vpop.f32.mrb[42].mxu1 }
 0x2d4   :  { %vm6112_vm3 = vcmp.ge.f32.partialorder %v7898_v60, 0.0  ;;  %v6183_v63 = vmul.f32 %v7898_v60, %v10736_v35  ;;  %v7900_v0 = vadd.f32 %v7825_v46, %v7749_v41  ;;  %v4295_v50 = vpop.f32.mrb[43].mxu1 }
 0x2d5   :  { %vm6110_vm4 = vcmp.ge.f32.partialorder %v7899_v25, 0.0  ;;  %v6181_v23 = vmul.f32 %v7899_v25, %v10736_v35  ;;  %v7901_v54 = vadd.f32 %v5914_v40, %v4295_v50 }
 0x2d6   :  { %v6247_v49 = vsel %vm6112_vm3, %v7898_v60, %v6183_v63  ;;  %vm6113_vm8 = vcmp.ge.f32.partialorder %v7900_v0, 0.0  ;;  %v6184_v22 = vmul.f32 %v7900_v0, %v10736_v35 }
 0x2d7   :  { %v7323_v47 = vpack.c.bf16 %v6247_v49, %v6247_v49  ;;  %v6245_v14 = vsel %vm6110_vm4, %v7899_v25, %v6181_v23  ;;  %vm6111_vm10 = vcmp.ge.f32.partialorder %v7901_v54, 0.0  ;;  %v6182_v30 = vmul.f32 %v7901_v54, %v10736_v35 }
 0x2d8   :  { %v7321_v31 = vpack.c.bf16 %v6245_v14, %v6245_v14  ;;  %v6248_v32 = vsel %vm6113_vm8, %v7900_v0, %v6184_v22 }
 0x2d9   :  { %6568 = vst.msk [vmem:[%s11150_s5 + $0xa8] sm:$0xf] %vm6525_vm9, %v7323_v47  ;;  %v7324_v4 = vpack.c.bf16 %v6248_v32, %v6248_v32  ;;  %v6246_v51 = vsel %vm6111_vm10, %v7901_v54, %v6182_v30 }
 0x2da   :  { %6566 = vst.msk [vmem:[%s11150_s5 + $0xa0] sm:$0xf] %vm6525_vm9, %v7321_v31  ;;  %v7322_v59 = vpack.c.bf16 %v6246_v51, %v6246_v51 }
 0x2db   :  { %6569 = vst.msk [vmem:[%s11150_s5 + $0xac] sm:$0xf] %vm6525_vm9, %v7324_v4 }
 0x2dc   :  { %6567 = vst.msk [vmem:[%s11150_s5 + $0xa4] sm:$0xf] %vm6525_vm9, %v7322_v59 }
 0x2df   :  { %v7828_v5 = vpop.f32.mrb[44].mxu0 }
 0x2e0   :  { %v5927_v28 = vpop.f32.mrb[45].mxu0 }
 0x2e1   :  { %v7829_v26 = vpop.f32.mrb[46].mxu0 }
 0x2e2   :  { %v7752_v2 = vpop.f32.mrb[44].mxu1  ;;  %v5930_v19 = vpop.f32.mrb[47].mxu0 }
 0x2e3   :  { %v7902_v29 = vadd.f32 %v7828_v5, %v7752_v2  ;;  %v4308_v10 = vpop.f32.mrb[45].mxu1 }
 0x2e4   :  { %v7903_v53 = vadd.f32 %v5927_v28, %v4308_v10  ;;  %v7753_v12 = vpop.f32.mrb[46].mxu1 }
 0x2e5   :  { %vm6116_vm5 = vcmp.ge.f32.partialorder %v7902_v29, 0.0  ;;  %v6187_v7 = vmul.f32 %v7902_v29, %v10736_v35  ;;  %v7904_v57 = vadd.f32 %v7829_v26, %v7753_v12  ;;  %v4311_v38 = vpop.f32.mrb[47].mxu1 }
 0x2e6   :  { %vm6114_vm6 = vcmp.ge.f32.partialorder %v7903_v53, 0.0  ;;  %v6185_v55 = vmul.f32 %v7903_v53, %v10736_v35  ;;  %v7905_v13 = vadd.f32 %v5930_v19, %v4311_v38 }
 0x2e7   :  { %v6251_v34 = vsel %vm6116_vm5, %v7902_v29, %v6187_v7  ;;  %vm6117_vm7 = vcmp.ge.f32.partialorder %v7904_v57, 0.0  ;;  %v6188_v45 = vmul.f32 %v7904_v57, %v10736_v35 }
 0x2e8   :  { %v7327_v3 = vpack.c.bf16 %v6251_v34, %v6251_v34  ;;  %v6249_v11 = vsel %vm6114_vm6, %v7903_v53, %v6185_v55  ;;  %vm6115_vm11 = vcmp.ge.f32.partialorder %v7905_v13, 0.0  ;;  %v6186_v37 = vmul.f32 %v7905_v13, %v10736_v35 }
 0x2e9   :  { %v7325_v36 = vpack.c.bf16 %v6249_v11, %v6249_v11  ;;  %v6252_v39 = vsel %vm6117_vm7, %v7904_v57, %v6188_v45 }
 0x2ea   :  { %6572 = vst.msk [vmem:[%s11150_s5 + $0xb8] sm:$0xf] %vm6525_vm9, %v7327_v3  ;;  %v7328_v17 = vpack.c.bf16 %v6252_v39, %v6252_v39  ;;  %v6250_v16 = vsel %vm6115_vm11, %v7905_v13, %v6186_v37 }
 0x2eb   :  { %6570 = vst.msk [vmem:[%s11150_s5 + $0xb0] sm:$0xf] %vm6525_vm9, %v7325_v36  ;;  %v7326_v8 = vpack.c.bf16 %v6250_v16, %v6250_v16 }
 0x2ec   :  { %6573 = vst.msk [vmem:[%s11150_s5 + $0xbc] sm:$0xf] %vm6525_vm9, %v7328_v17 }
 0x2ed   :  { %6571 = vst.msk [vmem:[%s11150_s5 + $0xb4] sm:$0xf] %vm6525_vm9, %v7326_v8 }
 0x2ef   :  { %v7832_v15 = vpop.f32.mrb[48].mxu0 }
 0x2f0   :  { %v5943_v61 = vpop.f32.mrb[49].mxu0 }
 0x2f1   :  { %v7833_v52 = vpop.f32.mrb[50].mxu0 }
 0x2f2   :  { %v7756_v20 = vpop.f32.mrb[48].mxu1  ;;  %v5946_v33 = vpop.f32.mrb[51].mxu0 }
 0x2f3   :  { %v7906_v18 = vadd.f32 %v7832_v15, %v7756_v20  ;;  %v4324_v43 = vpop.f32.mrb[49].mxu1 }
 0x2f4   :  { %v7907_v1 = vadd.f32 %v5943_v61, %v4324_v43  ;;  %v7757_v24 = vpop.f32.mrb[50].mxu1 }
 0x2f5   :  { %vm6120_vm12 = vcmp.ge.f32.partialorder %v7906_v18, 0.0  ;;  %v6191_v44 = vmul.f32 %v7906_v18, %v10736_v35  ;;  %v7908_v58 = vadd.f32 %v7833_v52, %v7757_v24  ;;  %v4327_v27 = vpop.f32.mrb[51].mxu1 }
 0x2f6   :  { %vm6118_vm13 = vcmp.ge.f32.partialorder %v7907_v1, 0.0  ;;  %v6189_v9 = vmul.f32 %v7907_v1, %v10736_v35  ;;  %v7909_v62 = vadd.f32 %v5946_v33, %v4327_v27 }
 0x2f7   :  { %v6255_v56 = vsel %vm6120_vm12, %v7906_v18, %v6191_v44  ;;  %vm6121_vm14 = vcmp.ge.f32.partialorder %v7908_v58, 0.0  ;;  %v6192_v6 = vmul.f32 %v7908_v58, %v10736_v35 }
 0x2f8   :  { %v7331_v21 = vpack.c.bf16 %v6255_v56, %v6255_v56  ;;  %v6253_v46 = vsel %vm6118_vm13, %v7907_v1, %v6189_v9  ;;  %vm6119_vm15 = vcmp.ge.f32.partialorder %v7909_v62, 0.0  ;;  %v6190_v48 = vmul.f32 %v7909_v62, %v10736_v35 }
 0x2f9   :  { %v7329_v40 = vpack.c.bf16 %v6253_v46, %v6253_v46  ;;  %v6256_v60 = vsel %vm6121_vm14, %v7908_v58, %v6192_v6  ;;  %v8272_v46 = vld [vmem:[%s11149_s4] ss:$0 sm:$0xff] }
 0x2fa   :  { %6576 = vst.msk [vmem:[%s11150_s5 + $0xc8] sm:$0xf] %vm6525_vm9, %v7331_v21  ;;  %v7332_v42 = vpack.c.bf16 %v6256_v60, %v6256_v60  ;;  %v6254_v25 = vsel %vm6119_vm15, %v7909_v62, %v6190_v48 }
 0x2fb   :  { %6574 = vst.msk [vmem:[%s11150_s5 + $0xc0] sm:$0xf] %vm6525_vm9, %v7329_v40  ;;  %v7330_v41 = vpack.c.bf16 %v6254_v25, %v6254_v25 }
 0x2fc   :  { %6577 = vst.msk [vmem:[%s11150_s5 + $0xcc] sm:$0xf] %vm6525_vm9, %v7332_v42 }
 0x2fd   :  { %6575 = vst.msk [vmem:[%s11150_s5 + $0xc4] sm:$0xf] %vm6525_vm9, %v7330_v41 }
 0x2ff   :  { %v7836_v63 = vpop.f32.mrb[52].mxu0 }
 0x300   :  { %v5959_v0 = vpop.f32.mrb[53].mxu0 }
 0x301   :  { %v7837_v50 = vpop.f32.mrb[54].mxu0 }
 0x302   :  { %v7760_v23 = vpop.f32.mrb[52].mxu1  ;;  %v5962_v54 = vpop.f32.mrb[55].mxu0 }
 0x303   :  { %v7910_v49 = vadd.f32 %v7836_v63, %v7760_v23  ;;  %v4340_v22 = vpop.f32.mrb[53].mxu1 }
 0x304   :  { %v7911_v47 = vadd.f32 %v5959_v0, %v4340_v22  ;;  %v7761_v14 = vpop.f32.mrb[54].mxu1 }
 0x305   :  { %vm6124_vm0 = vcmp.ge.f32.partialorder %v7910_v49, 0.0  ;;  %v6195_v30 = vmul.f32 %v7910_v49, %v10736_v35  ;;  %v7912_v31 = vadd.f32 %v7837_v50, %v7761_v14  ;;  %v4343_v32 = vpop.f32.mrb[55].mxu1 }
 0x306   :  { %vm6122_vm1 = vcmp.ge.f32.partialorder %v7911_v47, 0.0  ;;  %v6193_v4 = vmul.f32 %v7911_v47, %v10736_v35  ;;  %v7913_v51 = vadd.f32 %v5962_v54, %v4343_v32 }
 0x307   :  { %v6259_v59 = vsel %vm6124_vm0, %v7910_v49, %v6195_v30  ;;  %vm6125_vm2 = vcmp.ge.f32.partialorder %v7912_v31, 0.0  ;;  %v6196_v5 = vmul.f32 %v7912_v31, %v10736_v35 }
 0x308   :  { %v7335_v28 = vpack.c.bf16 %v6259_v59, %v6259_v59  ;;  %v6257_v26 = vsel %vm6122_vm1, %v7911_v47, %v6193_v4  ;;  %vm6123_vm3 = vcmp.ge.f32.partialorder %v7913_v51, 0.0  ;;  %v6194_v2 = vmul.f32 %v7913_v51, %v10736_v35 }
 0x309   :  { %v7333_v19 = vpack.c.bf16 %v6257_v26, %v6257_v26  ;;  %v6260_v29 = vsel %vm6125_vm2, %v7912_v31, %v6196_v5 }
 0x30a   :  { %6580 = vst.msk [vmem:[%s11150_s5 + $0xd8] sm:$0xf] %vm6525_vm9, %v7335_v28  ;;  %v7336_v10 = vpack.c.bf16 %v6260_v29, %v6260_v29  ;;  %v6258_v53 = vsel %vm6123_vm3, %v7913_v51, %v6194_v2 }
 0x30b   :  { %6578 = vst.msk [vmem:[%s11150_s5 + $0xd0] sm:$0xf] %vm6525_vm9, %v7333_v19  ;;  %v7334_v12 = vpack.c.bf16 %v6258_v53, %v6258_v53 }
 0x30c   :  { %6581 = vst.msk [vmem:[%s11150_s5 + $0xdc] sm:$0xf] %vm6525_vm9, %v7336_v10 }
 0x30d   :  { %6579 = vst.msk [vmem:[%s11150_s5 + $0xd4] sm:$0xf] %vm6525_vm9, %v7334_v12 }
 0x30f   :  { %v7840_v7 = vpop.f32.mrb[56].mxu0 }
 0x310   :  { %v5975_v57 = vpop.f32.mrb[57].mxu0 }
 0x311   :  { %v7841_v38 = vpop.f32.mrb[58].mxu0 }
 0x312   :  { %v7764_v55 = vpop.f32.mrb[56].mxu1  ;;  %v5978_v13 = vpop.f32.mrb[59].mxu0 }
 0x313   :  { %v7914_v34 = vadd.f32 %v7840_v7, %v7764_v55  ;;  %v4356_v45 = vpop.f32.mrb[57].mxu1 }
 0x314   :  { %v7915_v3 = vadd.f32 %v5975_v57, %v4356_v45  ;;  %v7765_v11 = vpop.f32.mrb[58].mxu1 }
 0x315   :  { %vm6128_vm4 = vcmp.ge.f32.partialorder %v7914_v34, 0.0  ;;  %v6199_v37 = vmul.f32 %v7914_v34, %v10736_v35  ;;  %v7916_v36 = vadd.f32 %v7841_v38, %v7765_v11  ;;  %v4359_v39 = vpop.f32.mrb[59].mxu1 }
 0x316   :  { %vm6126_vm8 = vcmp.ge.f32.partialorder %v7915_v3, 0.0  ;;  %v6197_v17 = vmul.f32 %v7915_v3, %v10736_v35  ;;  %v7917_v16 = vadd.f32 %v5978_v13, %v4359_v39 }
 0x317   :  { %v6263_v8 = vsel %vm6128_vm4, %v7914_v34, %v6199_v37  ;;  %vm6129_vm10 = vcmp.ge.f32.partialorder %v7916_v36, 0.0  ;;  %v6200_v15 = vmul.f32 %v7916_v36, %v10736_v35 }
 0x318   :  { %v7339_v61 = vpack.c.bf16 %v6263_v8, %v6263_v8  ;;  %v6261_v52 = vsel %vm6126_vm8, %v7915_v3, %v6197_v17  ;;  %vm6127_vm5 = vcmp.ge.f32.partialorder %v7917_v16, 0.0  ;;  %v6198_v20 = vmul.f32 %v7917_v16, %v10736_v35 }
 0x319   :  { %v7337_v33 = vpack.c.bf16 %v6261_v52, %v6261_v52  ;;  %v6264_v18 = vsel %vm6129_vm10, %v7916_v36, %v6200_v15 }
 0x31a   :  { %6584 = vst.msk [vmem:[%s11150_s5 + $0xe8] sm:$0xf] %vm6525_vm9, %v7339_v61  ;;  %v7340_v43 = vpack.c.bf16 %v6264_v18, %v6264_v18  ;;  %v6262_v1 = vsel %vm6127_vm5, %v7917_v16, %v6198_v20 }
 0x31b   :  { %6582 = vst.msk [vmem:[%s11150_s5 + $0xe0] sm:$0xf] %vm6525_vm9, %v7337_v33  ;;  %v7338_v24 = vpack.c.bf16 %v6262_v1, %v6262_v1 }
 0x31c   :  { %6585 = vst.msk [vmem:[%s11150_s5 + $0xec] sm:$0xf] %vm6525_vm9, %v7340_v43 }
 0x31d   :  { %6583 = vst.msk [vmem:[%s11150_s5 + $0xe4] sm:$0xf] %vm6525_vm9, %v7338_v24 }
 0x31f   :  { %v7844_v35 = vpop.f32.mrb[60].mxu0 }
 0x320   :  { %v5991_v44 = vpop.f32.mrb[61].mxu0 }
 0x321   :  { %v7845_v58 = vpop.f32.mrb[62].mxu0 }
 0x322   :  { %v7768_v27 = vpop.f32.mrb[60].mxu1  ;;  %v5994_v9 = vpop.f32.mrb[63].mxu0 }
 0x323   :  { %v7918_v62 = vadd.f32 %v7844_v35, %v7768_v27  ;;  %v4372_v56 = vpop.f32.mrb[61].mxu1 }
 0x324   :  { %v7919_v6 = vadd.f32 %v5991_v44, %v4372_v56  ;;  %v7769_v21 = vpop.f32.mrb[62].mxu1 }
 0x325   :  { %vm6132_vm6 = vcmp.ge.f32.partialorder %v7918_v62, 0.0  ;;  %v6203_v48 = vmul.f32 %v8272_v46, %v7918_v62  ;;  %v7920_v40 = vadd.f32 %v7845_v58, %v7769_v21  ;;  %v4375_v60 = vpop.f32.mrb[63].mxu1 }
 0x326   :  { %vm6130_vm7 = vcmp.ge.f32.partialorder %v7919_v6, 0.0  ;;  %v6201_v42 = vmul.f32 %v8272_v46, %v7919_v6  ;;  %v7921_v25 = vadd.f32 %v5994_v9, %v4375_v60 }
 0x327   :  { %v6267_v41 = vsel %vm6132_vm6, %v7918_v62, %v6203_v48  ;;  %vm6133_vm11 = vcmp.ge.f32.partialorder %v7920_v40, 0.0  ;;  %v6204_v63 = vmul.f32 %v8272_v46, %v7920_v40 }
 0x328   :  { %v7343_v0 = vpack.c.bf16 %v6267_v41, %v6267_v41  ;;  %v6265_v50 = vsel %vm6130_vm7, %v7919_v6, %v6201_v42  ;;  %vm6131_vm12 = vcmp.ge.f32.partialorder %v7921_v25, 0.0  ;;  %v6202_v23 = vmul.f32 %v8272_v46, %v7921_v25 }
 0x329   :  { %v7341_v54 = vpack.c.bf16 %v6265_v50, %v6265_v50  ;;  %v6268_v49 = vsel %vm6133_vm11, %v7920_v40, %v6204_v63 }
 0x32a   :  { %6588 = vst.msk [vmem:[%s11150_s5 + $0xf8] sm:$0xf] %vm6525_vm9, %v7343_v0  ;;  %v7344_v22 = vpack.c.bf16 %v6268_v49, %v6268_v49  ;;  %v6266_v47 = vsel %vm6131_vm12, %v7921_v25, %v6202_v23 }
 0x32b   :  { %6586 = vst.msk [vmem:[%s11150_s5 + $0xf0] sm:$0xf] %vm6525_vm9, %v7341_v54  ;;  %v7342_v14 = vpack.c.bf16 %v6266_v47, %v6266_v47 }
 0x32c   :  { %6589 = vst.msk [vmem:[%s11150_s5 + $0xfc] sm:$0xf] %vm6525_vm9, %v7344_v22 }
 0x32d   :  { %6587 = vst.msk [vmem:[%s11150_s5 + $0xf4] sm:$0xf] %vm6525_vm9, %v7342_v14 }

</bundles_post_ra>
